<compile_context>
chip_gen: v6e
topology: v6e:2x2x1
jax: 0.10.0
libtpu: 0.0.40
codegen_flags: <defaults>
</compile_context>

<pallas_src>
import functools
import math

import jax
import jax.numpy as jnp
from jax.experimental import pallas as pl
from jax.experimental.pallas import tpu as pltpu

NEG_SLOPE = 0.01  # torch.nn.LeakyReLU default negative_slope


def _leaky_relu(v):
    return jnp.where(v > 0, v, NEG_SLOPE * v)


# --------------------------- fused Pallas kernel -----------------------------


def _gcn_fused_kernel(
    a_ref, at_ref, xy_ref,
    emb_w_ref, emb_b_ref,
    w1s_ref, b1s_ref, w2s_ref, b2s_ref,
    ow1_ref, ob1_ref, ow2_ref, ob2_ref,
    o_ref, *, nx, n_layers,
):
    f32 = jnp.float32
    A = a_ref[...]    # (Ny, Nx)
    AT = at_ref[...]  # (Nx, Ny) — transposed once in the wrapper, reused below

    # Batched initial embedding: one matmul for [x; y] (embx applied to both,
    # matching the reference module's behavior).
    xy = (
        jnp.dot(xy_ref[...], emb_w_ref[...], preferred_element_type=f32)
        + emb_b_ref[...]
    )
    x = xy[:nx]
    y = xy[nx:]

    def mlp(v, idx):
        # Linear -> LeakyReLU -> Linear, weights taken from the stacked slabs
        # with a STATIC index (loop below is unrolled).
        h = jnp.dot(v, w1s_ref[idx], preferred_element_type=f32) + b1s_ref[idx]
        h = _leaky_relu(h)
        return jnp.dot(h, w2s_ref[idx], preferred_element_type=f32) + b2s_ref[idx]

    # Unrolled GCN_layer loop; per layer the 6 MLPs are laid out in order
    # (embx, emby, outlayer, emby2, embx2, outlayer2) inside the slabs.
    for l in range(n_layers):
        base = 6 * l
        Ax = mlp(jnp.dot(A, x, preferred_element_type=f32), base + 0)    # embx(A @ x)
        y = mlp(y, base + 1) + Ax                                        # emby(y) + Ax
        y = mlp(y, base + 2)                                             # outlayer(y)
        ATy = mlp(jnp.dot(AT, y, preferred_element_type=f32), base + 3)  # emby2(A^T @ y)
        x = mlp(x, base + 4) + ATy                                       # embx2(x) + ATy
        x = mlp(x, base + 5)                                             # outlayer2(x)

    # Final MLP: Linear -> LeakyReLU -> Linear(feat, 1) -> LeakyReLU.
    h = _leaky_relu(
        jnp.dot(x, ow1_ref[...], preferred_element_type=f32) + ob1_ref[...]
    )
    out = jnp.dot(h, ow2_ref[...], preferred_element_type=f32) + ob2_ref[...]
    o_ref[...] = _leaky_relu(out)


# --------------------------- jitted driver -----------------------------------

_MLP_ORDER = ("embx", "emby", "outlayer", "emby2", "embx2", "outlayer2")


@jax.jit
def gcn_forward(params, A, x, y):
    n_layers = len(params["layers"])
    Nx = x.shape[0]

    # Stack every GCN_layer MLP into contiguous weight slabs: (6*L, F, F) /
    # (6*L, 1, F).  Cheap under jit; keeps the kernel argument list small.
    layers = params["layers"]
    w1s = jnp.stack([lp[n]["w1"] for lp in layers for n in _MLP_ORDER])
    b1s = jnp.stack([lp[n]["b1"] for lp in layers for n in _MLP_ORDER])
    w2s = jnp.stack([lp[n]["w2"] for lp in layers for n in _MLP_ORDER])
    b2s = jnp.stack([lp[n]["b2"] for lp in layers for n in _MLP_ORDER])

    xy = jnp.concatenate([x, y], axis=0)  # batched initial embedding input
    AT = A.T                              # transpose once, reuse in-kernel

    vmem = pl.BlockSpec(memory_space=pltpu.MemorySpace.VMEM)
    kernel = functools.partial(_gcn_fused_kernel, nx=Nx, n_layers=n_layers)

    # No grid: kernel runs once, all operands whole-array resident in VMEM
    # (total ~170 KB f32 — comfortably under scoped VMEM on v5e/v6e/v7x).
    # TODO(synk): if node count / feat ever scale, add a row-tiled grid over A.
    return pl.pallas_call(
        kernel,
        out_shape=jax.ShapeDtypeStruct((Nx, 1), jnp.float32),
        in_specs=[vmem] * 13,
        out_specs=vmem,
    )(
        A, AT, xy,
        params["embx"]["w"], params["embx"]["b"],
        w1s, b1s, w2s, b2s,
        params["outlayer"]["w1"], params["outlayer"]["b1"],
        params["outlayer"]["w2"], params["outlayer"]["b2"],
    )


# --------------------------- parameters --------------------------------------


def _init_linear(key, in_dim, out_dim):
    kw, kb = jax.random.split(key)
    lim = 1.0 / math.sqrt(in_dim)
    w = jax.random.uniform(kw, (in_dim, out_dim), jnp.float32, -lim, lim)
    b = jax.random.uniform(kb, (1, out_dim), jnp.float32, -lim, lim)
    return {"w": w, "b": b}


def _init_mlp(key, in_dim, hid_dim, out_dim):
    k1, k2 = jax.random.split(key)
    l1 = _init_linear(k1, in_dim, hid_dim)
    l2 = _init_linear(k2, hid_dim, out_dim)
    return {"w1": l1["w"], "b1": l1["b"], "w2": l2["w"], "b2": l2["b"]}


def init_gcn_layer(key, x_size, y_size, feat):
    keys = jax.random.split(key, 6)
    return {
        "embx": _init_mlp(keys[0], x_size, feat, feat),
        "emby": _init_mlp(keys[1], y_size, feat, feat),
        "outlayer": _init_mlp(keys[2], feat, feat, feat),
        "embx2": _init_mlp(keys[3], x_size, feat, feat),
        "emby2": _init_mlp(keys[4], y_size, feat, feat),
        "outlayer2": _init_mlp(keys[5], feat, feat, feat),
    }


def init_gcn(key, x_size, y_size, feat, n_layer=4):
    keys = jax.random.split(key, n_layer + 4)
    return {
        "embx": _init_linear(keys[0], x_size, feat),
        # emby exists in the PyTorch module but its forward never uses it
        # (it applies self.embx to y); kept for parameter parity.
        "emby": _init_linear(keys[1], y_size, feat),
        "layers": [
            init_gcn_layer(keys[2 + i], feat, feat, feat) for i in range(n_layer + 1)
        ],
        "outlayer": _init_mlp(keys[n_layer + 3], feat, feat, 1),
    }


# --------------------------- pure-JAX reference -------------------------------


def _ref_linear(x, p):
    return x @ p["w"] + p["b"]


def _ref_mlp(x, p, final_act=False):
    h = _leaky_relu(x @ p["w1"] + p["b1"])
    o = h @ p["w2"] + p["b2"]
    return _leaky_relu(o) if final_act else o


def gcn_forward_ref(p, A, x, y):
    x = _ref_linear(x, p["embx"])
    y = _ref_linear(y, p["embx"])  # reference applies embx to y as well
    for lp in p["layers"]:
        Ax = _ref_mlp(A @ x, lp["embx"])
        y = _ref_mlp(y, lp["emby"]) + Ax
        y = _ref_mlp(y, lp["outlayer"])
        ATy = _ref_mlp(A.T @ y, lp["emby2"])
        x = _ref_mlp(x, lp["embx2"]) + ATy
        x = _ref_mlp(x, lp["outlayer2"])
    return _ref_mlp(x, p["outlayer"], final_act=True)


# --------------------------- main ----------------------------------------------

if __name__ == "__main__":
    # Make the pure-JAX reference use full f32 matmuls so it matches the
    # f32-accumulated MXU math inside the Pallas kernel.
    jax.config.update("jax_default_matmul_precision", "highest")

    key = jax.random.PRNGKey(0)
    k_par, k_a, k_x, k_y = jax.random.split(key, 4)

    feat = 32
    x_size = y_size = feat  # required for embx to apply to both x and y
    Nx, Ny = 8, 8           # number of x-nodes / y-nodes
    n_layer = 2             # GCN builds n_layer + 1 GCN_layer blocks

    params = init_gcn(k_par, x_size, y_size, feat, n_layer=n_layer)

    A = jax.random.normal(k_a, (Ny, Nx), dtype=jnp.float32)
    x = jax.random.normal(k_x, (Nx, x_size), dtype=jnp.float32)
    y = jax.random.normal(k_y, (Ny, y_size), dtype=jnp.float32)

    out = gcn_forward(params, A, x, y)
    out = jax.block_until_ready(out)

    ref = gcn_forward_ref(params, A, x, y)
    assert out.shape == (Nx, 1), f"unexpected output shape {out.shape}"
    assert jnp.allclose(out, ref, atol=1e-3, rtol=1e-3), "mismatch vs reference"

    print("KERNEL_OK")
</pallas_src>

<mosaic_0001>
module attributes {stable_mosaic.version = 11 : i64} {
  func.func @_gcn_fused_kernel(%arg0: memref<8x8xf32, #tpu.memory_space<vmem>>, %arg1: memref<8x8xf32, #tpu.memory_space<vmem>>, %arg2: memref<16x32xf32, #tpu.memory_space<vmem>>, %arg3: memref<32x32xf32, #tpu.memory_space<vmem>>, %arg4: memref<1x32xf32, #tpu.memory_space<vmem>>, %arg5: memref<18x32x32xf32, #tpu.memory_space<vmem>>, %arg6: memref<18x1x32xf32, #tpu.memory_space<vmem>>, %arg7: memref<18x32x32xf32, #tpu.memory_space<vmem>>, %arg8: memref<18x1x32xf32, #tpu.memory_space<vmem>>, %arg9: memref<32x32xf32, #tpu.memory_space<vmem>>, %arg10: memref<1x32xf32, #tpu.memory_space<vmem>>, %arg11: memref<32x1xf32, #tpu.memory_space<vmem>>, %arg12: memref<1x1xf32, #tpu.memory_space<vmem>>, %arg13: memref<8x1xf32, #tpu.memory_space<vmem>>) attributes {dimension_semantics = [], scalar_prefetch = 0 : i64, scratch_operands = 0 : i64, tpu.core_type = #tpu.core_type<tc>} {
    %c0 = arith.constant 0 : index
    %c0_0 = arith.constant 0 : index
    %0 = vector.load %arg0[%c0, %c0_0] : memref<8x8xf32, #tpu.memory_space<vmem>>, vector<8x8xf32>
    %c0_1 = arith.constant 0 : index
    %c0_2 = arith.constant 0 : index
    %1 = vector.load %arg1[%c0_1, %c0_2] : memref<8x8xf32, #tpu.memory_space<vmem>>, vector<8x8xf32>
    %c0_3 = arith.constant 0 : index
    %c0_4 = arith.constant 0 : index
    %2 = vector.load %arg2[%c0_3, %c0_4] : memref<16x32xf32, #tpu.memory_space<vmem>>, vector<16x32xf32>
    %c0_5 = arith.constant 0 : index
    %c0_6 = arith.constant 0 : index
    %3 = vector.load %arg3[%c0_5, %c0_6] : memref<32x32xf32, #tpu.memory_space<vmem>>, vector<32x32xf32>
    %cst = arith.constant dense<0.000000e+00> : vector<16x32xf32>
    %4 = tpu.matmul %2, %3, %cst {dimension_numbers = #tpu.dot_dimension_numbers<[1], [0], [0], [1], [0, 0, 1, 1], [], []>, precision = #tpu.contract_precision<fp32>} : vector<16x32xf32>, vector<32x32xf32>, vector<16x32xf32> -> vector<16x32xf32>
    %c0_7 = arith.constant 0 : index
    %c0_8 = arith.constant 0 : index
    %5 = vector.load %arg4[%c0_7, %c0_8] : memref<1x32xf32, #tpu.memory_space<vmem>>, vector<1x32xf32>
    %6 = vector.broadcast %5 : vector<1x32xf32> to vector<16x32xf32>
    %7 = arith.addf %4, %6 : vector<16x32xf32>
    %8 = vector.extract_strided_slice %7 {offsets = [0, 0], sizes = [8, 32], strides = [1, 1]} : vector<16x32xf32> to vector<8x32xf32>
    %9 = vector.extract_strided_slice %7 {offsets = [8, 0], sizes = [8, 32], strides = [1, 1]} : vector<16x32xf32> to vector<8x32xf32>
    %cst_9 = arith.constant dense<0.000000e+00> : vector<8x32xf32>
    %10 = tpu.matmul %0, %8, %cst_9 {dimension_numbers = #tpu.dot_dimension_numbers<[1], [0], [0], [1], [0, 0, 1, 1], [], []>, precision = #tpu.contract_precision<fp32>} : vector<8x8xf32>, vector<8x32xf32>, vector<8x32xf32> -> vector<8x32xf32>
    %c0_10 = arith.constant 0 : index
    %c0_11 = arith.constant 0 : index
    %c0_12 = arith.constant 0 : index
    %11 = vector.load %arg5[%c0_10, %c0_11, %c0_12] : memref<18x32x32xf32, #tpu.memory_space<vmem>>, vector<1x32x32xf32>
    %12 = vector.shape_cast %11 : vector<1x32x32xf32> to vector<32x32xf32>
    %cst_13 = arith.constant dense<0.000000e+00> : vector<8x32xf32>
    %13 = tpu.matmul %10, %12, %cst_13 {dimension_numbers = #tpu.dot_dimension_numbers<[1], [0], [0], [1], [0, 0, 1, 1], [], []>, precision = #tpu.contract_precision<fp32>} : vector<8x32xf32>, vector<32x32xf32>, vector<8x32xf32> -> vector<8x32xf32>
    %c0_14 = arith.constant 0 : index
    %c0_15 = arith.constant 0 : index
    %c0_16 = arith.constant 0 : index
    %14 = vector.load %arg6[%c0_14, %c0_15, %c0_16] : memref<18x1x32xf32, #tpu.memory_space<vmem>>, vector<1x1x32xf32>
    %15 = vector.shape_cast %14 : vector<1x1x32xf32> to vector<1x32xf32>
    %16 = vector.broadcast %15 : vector<1x32xf32> to vector<8x32xf32>
    %17 = arith.addf %13, %16 : vector<8x32xf32>
    %cst_17 = arith.constant 0.000000e+00 : f32
    %18 = vector.broadcast %cst_17 : f32 to vector<8x32xf32>
    %19 = arith.cmpf ogt, %17, %18 : vector<8x32xf32>
    %cst_18 = arith.constant 0.00999999977 : f32
    %20 = vector.broadcast %cst_18 : f32 to vector<8x32xf32>
    %21 = arith.mulf %20, %17 : vector<8x32xf32>
    %22 = arith.select %19, %17, %21 : vector<8x32xi1>, vector<8x32xf32>
    %c0_19 = arith.constant 0 : index
    %c0_20 = arith.constant 0 : index
    %c0_21 = arith.constant 0 : index
    %23 = vector.load %arg7[%c0_19, %c0_20, %c0_21] : memref<18x32x32xf32, #tpu.memory_space<vmem>>, vector<1x32x32xf32>
    %24 = vector.shape_cast %23 : vector<1x32x32xf32> to vector<32x32xf32>
    %cst_22 = arith.constant dense<0.000000e+00> : vector<8x32xf32>
    %25 = tpu.matmul %22, %24, %cst_22 {dimension_numbers = #tpu.dot_dimension_numbers<[1], [0], [0], [1], [0, 0, 1, 1], [], []>, precision = #tpu.contract_precision<fp32>} : vector<8x32xf32>, vector<32x32xf32>, vector<8x32xf32> -> vector<8x32xf32>
    %c0_23 = arith.constant 0 : index
    %c0_24 = arith.constant 0 : index
    %c0_25 = arith.constant 0 : index
    %26 = vector.load %arg8[%c0_23, %c0_24, %c0_25] : memref<18x1x32xf32, #tpu.memory_space<vmem>>, vector<1x1x32xf32>
    %27 = vector.shape_cast %26 : vector<1x1x32xf32> to vector<1x32xf32>
    %28 = vector.broadcast %27 : vector<1x32xf32> to vector<8x32xf32>
    %29 = arith.addf %25, %28 : vector<8x32xf32>
    %c1 = arith.constant 1 : index
    %c0_26 = arith.constant 0 : index
    %c0_27 = arith.constant 0 : index
    %30 = vector.load %arg5[%c1, %c0_26, %c0_27] : memref<18x32x32xf32, #tpu.memory_space<vmem>>, vector<1x32x32xf32>
    %31 = vector.shape_cast %30 : vector<1x32x32xf32> to vector<32x32xf32>
    %cst_28 = arith.constant dense<0.000000e+00> : vector<8x32xf32>
    %32 = tpu.matmul %9, %31, %cst_28 {dimension_numbers = #tpu.dot_dimension_numbers<[1], [0], [0], [1], [0, 0, 1, 1], [], []>, precision = #tpu.contract_precision<fp32>} : vector<8x32xf32>, vector<32x32xf32>, vector<8x32xf32> -> vector<8x32xf32>
    %c1_29 = arith.constant 1 : index
    %c0_30 = arith.constant 0 : index
    %c0_31 = arith.constant 0 : index
    %33 = vector.load %arg6[%c1_29, %c0_30, %c0_31] : memref<18x1x32xf32, #tpu.memory_space<vmem>>, vector<1x1x32xf32>
    %34 = vector.shape_cast %33 : vector<1x1x32xf32> to vector<1x32xf32>
    %35 = vector.broadcast %34 : vector<1x32xf32> to vector<8x32xf32>
    %36 = arith.addf %32, %35 : vector<8x32xf32>
    %cst_32 = arith.constant 0.000000e+00 : f32
    %37 = vector.broadcast %cst_32 : f32 to vector<8x32xf32>
    %38 = arith.cmpf ogt, %36, %37 : vector<8x32xf32>
    %cst_33 = arith.constant 0.00999999977 : f32
    %39 = vector.broadcast %cst_33 : f32 to vector<8x32xf32>
    %40 = arith.mulf %39, %36 : vector<8x32xf32>
    %41 = arith.select %38, %36, %40 : vector<8x32xi1>, vector<8x32xf32>
    %c1_34 = arith.constant 1 : index
    %c0_35 = arith.constant 0 : index
    %c0_36 = arith.constant 0 : index
    %42 = vector.load %arg7[%c1_34, %c0_35, %c0_36] : memref<18x32x32xf32, #tpu.memory_space<vmem>>, vector<1x32x32xf32>
    %43 = vector.shape_cast %42 : vector<1x32x32xf32> to vector<32x32xf32>
    %cst_37 = arith.constant dense<0.000000e+00> : vector<8x32xf32>
    %44 = tpu.matmul %41, %43, %cst_37 {dimension_numbers = #tpu.dot_dimension_numbers<[1], [0], [0], [1], [0, 0, 1, 1], [], []>, precision = #tpu.contract_precision<fp32>} : vector<8x32xf32>, vector<32x32xf32>, vector<8x32xf32> -> vector<8x32xf32>
    %c1_38 = arith.constant 1 : index
    %c0_39 = arith.constant 0 : index
    %c0_40 = arith.constant 0 : index
    %45 = vector.load %arg8[%c1_38, %c0_39, %c0_40] : memref<18x1x32xf32, #tpu.memory_space<vmem>>, vector<1x1x32xf32>
    %46 = vector.shape_cast %45 : vector<1x1x32xf32> to vector<1x32xf32>
    %47 = vector.broadcast %46 : vector<1x32xf32> to vector<8x32xf32>
    %48 = arith.addf %44, %47 : vector<8x32xf32>
    %49 = arith.addf %48, %29 : vector<8x32xf32>
    %c2 = arith.constant 2 : index
    %c0_41 = arith.constant 0 : index
    %c0_42 = arith.constant 0 : index
    %50 = vector.load %arg5[%c2, %c0_41, %c0_42] : memref<18x32x32xf32, #tpu.memory_space<vmem>>, vector<1x32x32xf32>
    %51 = vector.shape_cast %50 : vector<1x32x32xf32> to vector<32x32xf32>
    %cst_43 = arith.constant dense<0.000000e+00> : vector<8x32xf32>
    %52 = tpu.matmul %49, %51, %cst_43 {dimension_numbers = #tpu.dot_dimension_numbers<[1], [0], [0], [1], [0, 0, 1, 1], [], []>, precision = #tpu.contract_precision<fp32>} : vector<8x32xf32>, vector<32x32xf32>, vector<8x32xf32> -> vector<8x32xf32>
    %c2_44 = arith.constant 2 : index
    %c0_45 = arith.constant 0 : index
    %c0_46 = arith.constant 0 : index
    %53 = vector.load %arg6[%c2_44, %c0_45, %c0_46] : memref<18x1x32xf32, #tpu.memory_space<vmem>>, vector<1x1x32xf32>
    %54 = vector.shape_cast %53 : vector<1x1x32xf32> to vector<1x32xf32>
    %55 = vector.broadcast %54 : vector<1x32xf32> to vector<8x32xf32>
    %56 = arith.addf %52, %55 : vector<8x32xf32>
    %cst_47 = arith.constant 0.000000e+00 : f32
    %57 = vector.broadcast %cst_47 : f32 to vector<8x32xf32>
    %58 = arith.cmpf ogt, %56, %57 : vector<8x32xf32>
    %cst_48 = arith.constant 0.00999999977 : f32
    %59 = vector.broadcast %cst_48 : f32 to vector<8x32xf32>
    %60 = arith.mulf %59, %56 : vector<8x32xf32>
    %61 = arith.select %58, %56, %60 : vector<8x32xi1>, vector<8x32xf32>
    %c2_49 = arith.constant 2 : index
    %c0_50 = arith.constant 0 : index
    %c0_51 = arith.constant 0 : index
    %62 = vector.load %arg7[%c2_49, %c0_50, %c0_51] : memref<18x32x32xf32, #tpu.memory_space<vmem>>, vector<1x32x32xf32>
    %63 = vector.shape_cast %62 : vector<1x32x32xf32> to vector<32x32xf32>
    %cst_52 = arith.constant dense<0.000000e+00> : vector<8x32xf32>
    %64 = tpu.matmul %61, %63, %cst_52 {dimension_numbers = #tpu.dot_dimension_numbers<[1], [0], [0], [1], [0, 0, 1, 1], [], []>, precision = #tpu.contract_precision<fp32>} : vector<8x32xf32>, vector<32x32xf32>, vector<8x32xf32> -> vector<8x32xf32>
    %c2_53 = arith.constant 2 : index
    %c0_54 = arith.constant 0 : index
    %c0_55 = arith.constant 0 : index
    %65 = vector.load %arg8[%c2_53, %c0_54, %c0_55] : memref<18x1x32xf32, #tpu.memory_space<vmem>>, vector<1x1x32xf32>
    %66 = vector.shape_cast %65 : vector<1x1x32xf32> to vector<1x32xf32>
    %67 = vector.broadcast %66 : vector<1x32xf32> to vector<8x32xf32>
    %68 = arith.addf %64, %67 : vector<8x32xf32>
    %cst_56 = arith.constant dense<0.000000e+00> : vector<8x32xf32>
    %69 = tpu.matmul %1, %68, %cst_56 {dimension_numbers = #tpu.dot_dimension_numbers<[1], [0], [0], [1], [0, 0, 1, 1], [], []>, precision = #tpu.contract_precision<fp32>} : vector<8x8xf32>, vector<8x32xf32>, vector<8x32xf32> -> vector<8x32xf32>
    %c3 = arith.constant 3 : index
    %c0_57 = arith.constant 0 : index
    %c0_58 = arith.constant 0 : index
    %70 = vector.load %arg5[%c3, %c0_57, %c0_58] : memref<18x32x32xf32, #tpu.memory_space<vmem>>, vector<1x32x32xf32>
    %71 = vector.shape_cast %70 : vector<1x32x32xf32> to vector<32x32xf32>
    %cst_59 = arith.constant dense<0.000000e+00> : vector<8x32xf32>
    %72 = tpu.matmul %69, %71, %cst_59 {dimension_numbers = #tpu.dot_dimension_numbers<[1], [0], [0], [1], [0, 0, 1, 1], [], []>, precision = #tpu.contract_precision<fp32>} : vector<8x32xf32>, vector<32x32xf32>, vector<8x32xf32> -> vector<8x32xf32>
    %c3_60 = arith.constant 3 : index
    %c0_61 = arith.constant 0 : index
    %c0_62 = arith.constant 0 : index
    %73 = vector.load %arg6[%c3_60, %c0_61, %c0_62] : memref<18x1x32xf32, #tpu.memory_space<vmem>>, vector<1x1x32xf32>
    %74 = vector.shape_cast %73 : vector<1x1x32xf32> to vector<1x32xf32>
    %75 = vector.broadcast %74 : vector<1x32xf32> to vector<8x32xf32>
    %76 = arith.addf %72, %75 : vector<8x32xf32>
    %cst_63 = arith.constant 0.000000e+00 : f32
    %77 = vector.broadcast %cst_63 : f32 to vector<8x32xf32>
    %78 = arith.cmpf ogt, %76, %77 : vector<8x32xf32>
    %cst_64 = arith.constant 0.00999999977 : f32
    %79 = vector.broadcast %cst_64 : f32 to vector<8x32xf32>
    %80 = arith.mulf %79, %76 : vector<8x32xf32>
    %81 = arith.select %78, %76, %80 : vector<8x32xi1>, vector<8x32xf32>
    %c3_65 = arith.constant 3 : index
    %c0_66 = arith.constant 0 : index
    %c0_67 = arith.constant 0 : index
    %82 = vector.load %arg7[%c3_65, %c0_66, %c0_67] : memref<18x32x32xf32, #tpu.memory_space<vmem>>, vector<1x32x32xf32>
    %83 = vector.shape_cast %82 : vector<1x32x32xf32> to vector<32x32xf32>
    %cst_68 = arith.constant dense<0.000000e+00> : vector<8x32xf32>
    %84 = tpu.matmul %81, %83, %cst_68 {dimension_numbers = #tpu.dot_dimension_numbers<[1], [0], [0], [1], [0, 0, 1, 1], [], []>, precision = #tpu.contract_precision<fp32>} : vector<8x32xf32>, vector<32x32xf32>, vector<8x32xf32> -> vector<8x32xf32>
    %c3_69 = arith.constant 3 : index
    %c0_70 = arith.constant 0 : index
    %c0_71 = arith.constant 0 : index
    %85 = vector.load %arg8[%c3_69, %c0_70, %c0_71] : memref<18x1x32xf32, #tpu.memory_space<vmem>>, vector<1x1x32xf32>
    %86 = vector.shape_cast %85 : vector<1x1x32xf32> to vector<1x32xf32>
    %87 = vector.broadcast %86 : vector<1x32xf32> to vector<8x32xf32>
    %88 = arith.addf %84, %87 : vector<8x32xf32>
    %c4 = arith.constant 4 : index
    %c0_72 = arith.constant 0 : index
    %c0_73 = arith.constant 0 : index
    %89 = vector.load %arg5[%c4, %c0_72, %c0_73] : memref<18x32x32xf32, #tpu.memory_space<vmem>>, vector<1x32x32xf32>
    %90 = vector.shape_cast %89 : vector<1x32x32xf32> to vector<32x32xf32>
    %cst_74 = arith.constant dense<0.000000e+00> : vector<8x32xf32>
    %91 = tpu.matmul %8, %90, %cst_74 {dimension_numbers = #tpu.dot_dimension_numbers<[1], [0], [0], [1], [0, 0, 1, 1], [], []>, precision = #tpu.contract_precision<fp32>} : vector<8x32xf32>, vector<32x32xf32>, vector<8x32xf32> -> vector<8x32xf32>
    %c4_75 = arith.constant 4 : index
    %c0_76 = arith.constant 0 : index
    %c0_77 = arith.constant 0 : index
    %92 = vector.load %arg6[%c4_75, %c0_76, %c0_77] : memref<18x1x32xf32, #tpu.memory_space<vmem>>, vector<1x1x32xf32>
    %93 = vector.shape_cast %92 : vector<1x1x32xf32> to vector<1x32xf32>
    %94 = vector.broadcast %93 : vector<1x32xf32> to vector<8x32xf32>
    %95 = arith.addf %91, %94 : vector<8x32xf32>
    %cst_78 = arith.constant 0.000000e+00 : f32
    %96 = vector.broadcast %cst_78 : f32 to vector<8x32xf32>
    %97 = arith.cmpf ogt, %95, %96 : vector<8x32xf32>
    %cst_79 = arith.constant 0.00999999977 : f32
    %98 = vector.broadcast %cst_79 : f32 to vector<8x32xf32>
    %99 = arith.mulf %98, %95 : vector<8x32xf32>
    %100 = arith.select %97, %95, %99 : vector<8x32xi1>, vector<8x32xf32>
    %c4_80 = arith.constant 4 : index
    %c0_81 = arith.constant 0 : index
    %c0_82 = arith.constant 0 : index
    %101 = vector.load %arg7[%c4_80, %c0_81, %c0_82] : memref<18x32x32xf32, #tpu.memory_space<vmem>>, vector<1x32x32xf32>
    %102 = vector.shape_cast %101 : vector<1x32x32xf32> to vector<32x32xf32>
    %cst_83 = arith.constant dense<0.000000e+00> : vector<8x32xf32>
    %103 = tpu.matmul %100, %102, %cst_83 {dimension_numbers = #tpu.dot_dimension_numbers<[1], [0], [0], [1], [0, 0, 1, 1], [], []>, precision = #tpu.contract_precision<fp32>} : vector<8x32xf32>, vector<32x32xf32>, vector<8x32xf32> -> vector<8x32xf32>
    %c4_84 = arith.constant 4 : index
    %c0_85 = arith.constant 0 : index
    %c0_86 = arith.constant 0 : index
    %104 = vector.load %arg8[%c4_84, %c0_85, %c0_86] : memref<18x1x32xf32, #tpu.memory_space<vmem>>, vector<1x1x32xf32>
    %105 = vector.shape_cast %104 : vector<1x1x32xf32> to vector<1x32xf32>
    %106 = vector.broadcast %105 : vector<1x32xf32> to vector<8x32xf32>
    %107 = arith.addf %103, %106 : vector<8x32xf32>
    %108 = arith.addf %107, %88 : vector<8x32xf32>
    %c5 = arith.constant 5 : index
    %c0_87 = arith.constant 0 : index
    %c0_88 = arith.constant 0 : index
    %109 = vector.load %arg5[%c5, %c0_87, %c0_88] : memref<18x32x32xf32, #tpu.memory_space<vmem>>, vector<1x32x32xf32>
    %110 = vector.shape_cast %109 : vector<1x32x32xf32> to vector<32x32xf32>
    %cst_89 = arith.constant dense<0.000000e+00> : vector<8x32xf32>
    %111 = tpu.matmul %108, %110, %cst_89 {dimension_numbers = #tpu.dot_dimension_numbers<[1], [0], [0], [1], [0, 0, 1, 1], [], []>, precision = #tpu.contract_precision<fp32>} : vector<8x32xf32>, vector<32x32xf32>, vector<8x32xf32> -> vector<8x32xf32>
    %c5_90 = arith.constant 5 : index
    %c0_91 = arith.constant 0 : index
    %c0_92 = arith.constant 0 : index
    %112 = vector.load %arg6[%c5_90, %c0_91, %c0_92] : memref<18x1x32xf32, #tpu.memory_space<vmem>>, vector<1x1x32xf32>
    %113 = vector.shape_cast %112 : vector<1x1x32xf32> to vector<1x32xf32>
    %114 = vector.broadcast %113 : vector<1x32xf32> to vector<8x32xf32>
    %115 = arith.addf %111, %114 : vector<8x32xf32>
    %cst_93 = arith.constant 0.000000e+00 : f32
    %116 = vector.broadcast %cst_93 : f32 to vector<8x32xf32>
    %117 = arith.cmpf ogt, %115, %116 : vector<8x32xf32>
    %cst_94 = arith.constant 0.00999999977 : f32
    %118 = vector.broadcast %cst_94 : f32 to vector<8x32xf32>
    %119 = arith.mulf %118, %115 : vector<8x32xf32>
    %120 = arith.select %117, %115, %119 : vector<8x32xi1>, vector<8x32xf32>
    %c5_95 = arith.constant 5 : index
    %c0_96 = arith.constant 0 : index
    %c0_97 = arith.constant 0 : index
    %121 = vector.load %arg7[%c5_95, %c0_96, %c0_97] : memref<18x32x32xf32, #tpu.memory_space<vmem>>, vector<1x32x32xf32>
    %122 = vector.shape_cast %121 : vector<1x32x32xf32> to vector<32x32xf32>
    %cst_98 = arith.constant dense<0.000000e+00> : vector<8x32xf32>
    %123 = tpu.matmul %120, %122, %cst_98 {dimension_numbers = #tpu.dot_dimension_numbers<[1], [0], [0], [1], [0, 0, 1, 1], [], []>, precision = #tpu.contract_precision<fp32>} : vector<8x32xf32>, vector<32x32xf32>, vector<8x32xf32> -> vector<8x32xf32>
    %c5_99 = arith.constant 5 : index
    %c0_100 = arith.constant 0 : index
    %c0_101 = arith.constant 0 : index
    %124 = vector.load %arg8[%c5_99, %c0_100, %c0_101] : memref<18x1x32xf32, #tpu.memory_space<vmem>>, vector<1x1x32xf32>
    %125 = vector.shape_cast %124 : vector<1x1x32xf32> to vector<1x32xf32>
    %126 = vector.broadcast %125 : vector<1x32xf32> to vector<8x32xf32>
    %127 = arith.addf %123, %126 : vector<8x32xf32>
    %cst_102 = arith.constant dense<0.000000e+00> : vector<8x32xf32>
    %128 = tpu.matmul %0, %127, %cst_102 {dimension_numbers = #tpu.dot_dimension_numbers<[1], [0], [0], [1], [0, 0, 1, 1], [], []>, precision = #tpu.contract_precision<fp32>} : vector<8x8xf32>, vector<8x32xf32>, vector<8x32xf32> -> vector<8x32xf32>
    %c6 = arith.constant 6 : index
    %c0_103 = arith.constant 0 : index
    %c0_104 = arith.constant 0 : index
    %129 = vector.load %arg5[%c6, %c0_103, %c0_104] : memref<18x32x32xf32, #tpu.memory_space<vmem>>, vector<1x32x32xf32>
    %130 = vector.shape_cast %129 : vector<1x32x32xf32> to vector<32x32xf32>
    %cst_105 = arith.constant dense<0.000000e+00> : vector<8x32xf32>
    %131 = tpu.matmul %128, %130, %cst_105 {dimension_numbers = #tpu.dot_dimension_numbers<[1], [0], [0], [1], [0, 0, 1, 1], [], []>, precision = #tpu.contract_precision<fp32>} : vector<8x32xf32>, vector<32x32xf32>, vector<8x32xf32> -> vector<8x32xf32>
    %c6_106 = arith.constant 6 : index
    %c0_107 = arith.constant 0 : index
    %c0_108 = arith.constant 0 : index
    %132 = vector.load %arg6[%c6_106, %c0_107, %c0_108] : memref<18x1x32xf32, #tpu.memory_space<vmem>>, vector<1x1x32xf32>
    %133 = vector.shape_cast %132 : vector<1x1x32xf32> to vector<1x32xf32>
    %134 = vector.broadcast %133 : vector<1x32xf32> to vector<8x32xf32>
    %135 = arith.addf %131, %134 : vector<8x32xf32>
    %cst_109 = arith.constant 0.000000e+00 : f32
    %136 = vector.broadcast %cst_109 : f32 to vector<8x32xf32>
    %137 = arith.cmpf ogt, %135, %136 : vector<8x32xf32>
    %cst_110 = arith.constant 0.00999999977 : f32
    %138 = vector.broadcast %cst_110 : f32 to vector<8x32xf32>
    %139 = arith.mulf %138, %135 : vector<8x32xf32>
    %140 = arith.select %137, %135, %139 : vector<8x32xi1>, vector<8x32xf32>
    %c6_111 = arith.constant 6 : index
    %c0_112 = arith.constant 0 : index
    %c0_113 = arith.constant 0 : index
    %141 = vector.load %arg7[%c6_111, %c0_112, %c0_113] : memref<18x32x32xf32, #tpu.memory_space<vmem>>, vector<1x32x32xf32>
    %142 = vector.shape_cast %141 : vector<1x32x32xf32> to vector<32x32xf32>
    %cst_114 = arith.constant dense<0.000000e+00> : vector<8x32xf32>
    %143 = tpu.matmul %140, %142, %cst_114 {dimension_numbers = #tpu.dot_dimension_numbers<[1], [0], [0], [1], [0, 0, 1, 1], [], []>, precision = #tpu.contract_precision<fp32>} : vector<8x32xf32>, vector<32x32xf32>, vector<8x32xf32> -> vector<8x32xf32>
    %c6_115 = arith.constant 6 : index
    %c0_116 = arith.constant 0 : index
    %c0_117 = arith.constant 0 : index
    %144 = vector.load %arg8[%c6_115, %c0_116, %c0_117] : memref<18x1x32xf32, #tpu.memory_space<vmem>>, vector<1x1x32xf32>
    %145 = vector.shape_cast %144 : vector<1x1x32xf32> to vector<1x32xf32>
    %146 = vector.broadcast %145 : vector<1x32xf32> to vector<8x32xf32>
    %147 = arith.addf %143, %146 : vector<8x32xf32>
    %c7 = arith.constant 7 : index
    %c0_118 = arith.constant 0 : index
    %c0_119 = arith.constant 0 : index
    %148 = vector.load %arg5[%c7, %c0_118, %c0_119] : memref<18x32x32xf32, #tpu.memory_space<vmem>>, vector<1x32x32xf32>
    %149 = vector.shape_cast %148 : vector<1x32x32xf32> to vector<32x32xf32>
    %cst_120 = arith.constant dense<0.000000e+00> : vector<8x32xf32>
    %150 = tpu.matmul %68, %149, %cst_120 {dimension_numbers = #tpu.dot_dimension_numbers<[1], [0], [0], [1], [0, 0, 1, 1], [], []>, precision = #tpu.contract_precision<fp32>} : vector<8x32xf32>, vector<32x32xf32>, vector<8x32xf32> -> vector<8x32xf32>
    %c7_121 = arith.constant 7 : index
    %c0_122 = arith.constant 0 : index
    %c0_123 = arith.constant 0 : index
    %151 = vector.load %arg6[%c7_121, %c0_122, %c0_123] : memref<18x1x32xf32, #tpu.memory_space<vmem>>, vector<1x1x32xf32>
    %152 = vector.shape_cast %151 : vector<1x1x32xf32> to vector<1x32xf32>
    %153 = vector.broadcast %152 : vector<1x32xf32> to vector<8x32xf32>
    %154 = arith.addf %150, %153 : vector<8x32xf32>
    %cst_124 = arith.constant 0.000000e+00 : f32
    %155 = vector.broadcast %cst_124 : f32 to vector<8x32xf32>
    %156 = arith.cmpf ogt, %154, %155 : vector<8x32xf32>
    %cst_125 = arith.constant 0.00999999977 : f32
    %157 = vector.broadcast %cst_125 : f32 to vector<8x32xf32>
    %158 = arith.mulf %157, %154 : vector<8x32xf32>
    %159 = arith.select %156, %154, %158 : vector<8x32xi1>, vector<8x32xf32>
    %c7_126 = arith.constant 7 : index
    %c0_127 = arith.constant 0 : index
    %c0_128 = arith.constant 0 : index
    %160 = vector.load %arg7[%c7_126, %c0_127, %c0_128] : memref<18x32x32xf32, #tpu.memory_space<vmem>>, vector<1x32x32xf32>
    %161 = vector.shape_cast %160 : vector<1x32x32xf32> to vector<32x32xf32>
    %cst_129 = arith.constant dense<0.000000e+00> : vector<8x32xf32>
    %162 = tpu.matmul %159, %161, %cst_129 {dimension_numbers = #tpu.dot_dimension_numbers<[1], [0], [0], [1], [0, 0, 1, 1], [], []>, precision = #tpu.contract_precision<fp32>} : vector<8x32xf32>, vector<32x32xf32>, vector<8x32xf32> -> vector<8x32xf32>
    %c7_130 = arith.constant 7 : index
    %c0_131 = arith.constant 0 : index
    %c0_132 = arith.constant 0 : index
    %163 = vector.load %arg8[%c7_130, %c0_131, %c0_132] : memref<18x1x32xf32, #tpu.memory_space<vmem>>, vector<1x1x32xf32>
    %164 = vector.shape_cast %163 : vector<1x1x32xf32> to vector<1x32xf32>
    %165 = vector.broadcast %164 : vector<1x32xf32> to vector<8x32xf32>
    %166 = arith.addf %162, %165 : vector<8x32xf32>
    %167 = arith.addf %166, %147 : vector<8x32xf32>
    %c8 = arith.constant 8 : index
    %c0_133 = arith.constant 0 : index
    %c0_134 = arith.constant 0 : index
    %168 = vector.load %arg5[%c8, %c0_133, %c0_134] : memref<18x32x32xf32, #tpu.memory_space<vmem>>, vector<1x32x32xf32>
    %169 = vector.shape_cast %168 : vector<1x32x32xf32> to vector<32x32xf32>
    %cst_135 = arith.constant dense<0.000000e+00> : vector<8x32xf32>
    %170 = tpu.matmul %167, %169, %cst_135 {dimension_numbers = #tpu.dot_dimension_numbers<[1], [0], [0], [1], [0, 0, 1, 1], [], []>, precision = #tpu.contract_precision<fp32>} : vector<8x32xf32>, vector<32x32xf32>, vector<8x32xf32> -> vector<8x32xf32>
    %c8_136 = arith.constant 8 : index
    %c0_137 = arith.constant 0 : index
    %c0_138 = arith.constant 0 : index
    %171 = vector.load %arg6[%c8_136, %c0_137, %c0_138] : memref<18x1x32xf32, #tpu.memory_space<vmem>>, vector<1x1x32xf32>
    %172 = vector.shape_cast %171 : vector<1x1x32xf32> to vector<1x32xf32>
    %173 = vector.broadcast %172 : vector<1x32xf32> to vector<8x32xf32>
    %174 = arith.addf %170, %173 : vector<8x32xf32>
    %cst_139 = arith.constant 0.000000e+00 : f32
    %175 = vector.broadcast %cst_139 : f32 to vector<8x32xf32>
    %176 = arith.cmpf ogt, %174, %175 : vector<8x32xf32>
    %cst_140 = arith.constant 0.00999999977 : f32
    %177 = vector.broadcast %cst_140 : f32 to vector<8x32xf32>
    %178 = arith.mulf %177, %174 : vector<8x32xf32>
    %179 = arith.select %176, %174, %178 : vector<8x32xi1>, vector<8x32xf32>
    %c8_141 = arith.constant 8 : index
    %c0_142 = arith.constant 0 : index
    %c0_143 = arith.constant 0 : index
    %180 = vector.load %arg7[%c8_141, %c0_142, %c0_143] : memref<18x32x32xf32, #tpu.memory_space<vmem>>, vector<1x32x32xf32>
    %181 = vector.shape_cast %180 : vector<1x32x32xf32> to vector<32x32xf32>
    %cst_144 = arith.constant dense<0.000000e+00> : vector<8x32xf32>
    %182 = tpu.matmul %179, %181, %cst_144 {dimension_numbers = #tpu.dot_dimension_numbers<[1], [0], [0], [1], [0, 0, 1, 1], [], []>, precision = #tpu.contract_precision<fp32>} : vector<8x32xf32>, vector<32x32xf32>, vector<8x32xf32> -> vector<8x32xf32>
    %c8_145 = arith.constant 8 : index
    %c0_146 = arith.constant 0 : index
    %c0_147 = arith.constant 0 : index
    %183 = vector.load %arg8[%c8_145, %c0_146, %c0_147] : memref<18x1x32xf32, #tpu.memory_space<vmem>>, vector<1x1x32xf32>
    %184 = vector.shape_cast %183 : vector<1x1x32xf32> to vector<1x32xf32>
    %185 = vector.broadcast %184 : vector<1x32xf32> to vector<8x32xf32>
    %186 = arith.addf %182, %185 : vector<8x32xf32>
    %cst_148 = arith.constant dense<0.000000e+00> : vector<8x32xf32>
    %187 = tpu.matmul %1, %186, %cst_148 {dimension_numbers = #tpu.dot_dimension_numbers<[1], [0], [0], [1], [0, 0, 1, 1], [], []>, precision = #tpu.contract_precision<fp32>} : vector<8x8xf32>, vector<8x32xf32>, vector<8x32xf32> -> vector<8x32xf32>
    %c9 = arith.constant 9 : index
    %c0_149 = arith.constant 0 : index
    %c0_150 = arith.constant 0 : index
    %188 = vector.load %arg5[%c9, %c0_149, %c0_150] : memref<18x32x32xf32, #tpu.memory_space<vmem>>, vector<1x32x32xf32>
    %189 = vector.shape_cast %188 : vector<1x32x32xf32> to vector<32x32xf32>
    %cst_151 = arith.constant dense<0.000000e+00> : vector<8x32xf32>
    %190 = tpu.matmul %187, %189, %cst_151 {dimension_numbers = #tpu.dot_dimension_numbers<[1], [0], [0], [1], [0, 0, 1, 1], [], []>, precision = #tpu.contract_precision<fp32>} : vector<8x32xf32>, vector<32x32xf32>, vector<8x32xf32> -> vector<8x32xf32>
    %c9_152 = arith.constant 9 : index
    %c0_153 = arith.constant 0 : index
    %c0_154 = arith.constant 0 : index
    %191 = vector.load %arg6[%c9_152, %c0_153, %c0_154] : memref<18x1x32xf32, #tpu.memory_space<vmem>>, vector<1x1x32xf32>
    %192 = vector.shape_cast %191 : vector<1x1x32xf32> to vector<1x32xf32>
    %193 = vector.broadcast %192 : vector<1x32xf32> to vector<8x32xf32>
    %194 = arith.addf %190, %193 : vector<8x32xf32>
    %cst_155 = arith.constant 0.000000e+00 : f32
    %195 = vector.broadcast %cst_155 : f32 to vector<8x32xf32>
    %196 = arith.cmpf ogt, %194, %195 : vector<8x32xf32>
    %cst_156 = arith.constant 0.00999999977 : f32
    %197 = vector.broadcast %cst_156 : f32 to vector<8x32xf32>
    %198 = arith.mulf %197, %194 : vector<8x32xf32>
    %199 = arith.select %196, %194, %198 : vector<8x32xi1>, vector<8x32xf32>
    %c9_157 = arith.constant 9 : index
    %c0_158 = arith.constant 0 : index
    %c0_159 = arith.constant 0 : index
    %200 = vector.load %arg7[%c9_157, %c0_158, %c0_159] : memref<18x32x32xf32, #tpu.memory_space<vmem>>, vector<1x32x32xf32>
    %201 = vector.shape_cast %200 : vector<1x32x32xf32> to vector<32x32xf32>
    %cst_160 = arith.constant dense<0.000000e+00> : vector<8x32xf32>
    %202 = tpu.matmul %199, %201, %cst_160 {dimension_numbers = #tpu.dot_dimension_numbers<[1], [0], [0], [1], [0, 0, 1, 1], [], []>, precision = #tpu.contract_precision<fp32>} : vector<8x32xf32>, vector<32x32xf32>, vector<8x32xf32> -> vector<8x32xf32>
    %c9_161 = arith.constant 9 : index
    %c0_162 = arith.constant 0 : index
    %c0_163 = arith.constant 0 : index
    %203 = vector.load %arg8[%c9_161, %c0_162, %c0_163] : memref<18x1x32xf32, #tpu.memory_space<vmem>>, vector<1x1x32xf32>
    %204 = vector.shape_cast %203 : vector<1x1x32xf32> to vector<1x32xf32>
    %205 = vector.broadcast %204 : vector<1x32xf32> to vector<8x32xf32>
    %206 = arith.addf %202, %205 : vector<8x32xf32>
    %c10 = arith.constant 10 : index
    %c0_164 = arith.constant 0 : index
    %c0_165 = arith.constant 0 : index
    %207 = vector.load %arg5[%c10, %c0_164, %c0_165] : memref<18x32x32xf32, #tpu.memory_space<vmem>>, vector<1x32x32xf32>
    %208 = vector.shape_cast %207 : vector<1x32x32xf32> to vector<32x32xf32>
    %cst_166 = arith.constant dense<0.000000e+00> : vector<8x32xf32>
    %209 = tpu.matmul %127, %208, %cst_166 {dimension_numbers = #tpu.dot_dimension_numbers<[1], [0], [0], [1], [0, 0, 1, 1], [], []>, precision = #tpu.contract_precision<fp32>} : vector<8x32xf32>, vector<32x32xf32>, vector<8x32xf32> -> vector<8x32xf32>
    %c10_167 = arith.constant 10 : index
    %c0_168 = arith.constant 0 : index
    %c0_169 = arith.constant 0 : index
    %210 = vector.load %arg6[%c10_167, %c0_168, %c0_169] : memref<18x1x32xf32, #tpu.memory_space<vmem>>, vector<1x1x32xf32>
    %211 = vector.shape_cast %210 : vector<1x1x32xf32> to vector<1x32xf32>
    %212 = vector.broadcast %211 : vector<1x32xf32> to vector<8x32xf32>
    %213 = arith.addf %209, %212 : vector<8x32xf32>
    %cst_170 = arith.constant 0.000000e+00 : f32
    %214 = vector.broadcast %cst_170 : f32 to vector<8x32xf32>
    %215 = arith.cmpf ogt, %213, %214 : vector<8x32xf32>
    %cst_171 = arith.constant 0.00999999977 : f32
    %216 = vector.broadcast %cst_171 : f32 to vector<8x32xf32>
    %217 = arith.mulf %216, %213 : vector<8x32xf32>
    %218 = arith.select %215, %213, %217 : vector<8x32xi1>, vector<8x32xf32>
    %c10_172 = arith.constant 10 : index
    %c0_173 = arith.constant 0 : index
    %c0_174 = arith.constant 0 : index
    %219 = vector.load %arg7[%c10_172, %c0_173, %c0_174] : memref<18x32x32xf32, #tpu.memory_space<vmem>>, vector<1x32x32xf32>
    %220 = vector.shape_cast %219 : vector<1x32x32xf32> to vector<32x32xf32>
    %cst_175 = arith.constant dense<0.000000e+00> : vector<8x32xf32>
    %221 = tpu.matmul %218, %220, %cst_175 {dimension_numbers = #tpu.dot_dimension_numbers<[1], [0], [0], [1], [0, 0, 1, 1], [], []>, precision = #tpu.contract_precision<fp32>} : vector<8x32xf32>, vector<32x32xf32>, vector<8x32xf32> -> vector<8x32xf32>
    %c10_176 = arith.constant 10 : index
    %c0_177 = arith.constant 0 : index
    %c0_178 = arith.constant 0 : index
    %222 = vector.load %arg8[%c10_176, %c0_177, %c0_178] : memref<18x1x32xf32, #tpu.memory_space<vmem>>, vector<1x1x32xf32>
    %223 = vector.shape_cast %222 : vector<1x1x32xf32> to vector<1x32xf32>
    %224 = vector.broadcast %223 : vector<1x32xf32> to vector<8x32xf32>
    %225 = arith.addf %221, %224 : vector<8x32xf32>
    %226 = arith.addf %225, %206 : vector<8x32xf32>
    %c11 = arith.constant 11 : index
    %c0_179 = arith.constant 0 : index
    %c0_180 = arith.constant 0 : index
    %227 = vector.load %arg5[%c11, %c0_179, %c0_180] : memref<18x32x32xf32, #tpu.memory_space<vmem>>, vector<1x32x32xf32>
    %228 = vector.shape_cast %227 : vector<1x32x32xf32> to vector<32x32xf32>
    %cst_181 = arith.constant dense<0.000000e+00> : vector<8x32xf32>
    %229 = tpu.matmul %226, %228, %cst_181 {dimension_numbers = #tpu.dot_dimension_numbers<[1], [0], [0], [1], [0, 0, 1, 1], [], []>, precision = #tpu.contract_precision<fp32>} : vector<8x32xf32>, vector<32x32xf32>, vector<8x32xf32> -> vector<8x32xf32>
    %c11_182 = arith.constant 11 : index
    %c0_183 = arith.constant 0 : index
    %c0_184 = arith.constant 0 : index
    %230 = vector.load %arg6[%c11_182, %c0_183, %c0_184] : memref<18x1x32xf32, #tpu.memory_space<vmem>>, vector<1x1x32xf32>
    %231 = vector.shape_cast %230 : vector<1x1x32xf32> to vector<1x32xf32>
    %232 = vector.broadcast %231 : vector<1x32xf32> to vector<8x32xf32>
    %233 = arith.addf %229, %232 : vector<8x32xf32>
    %cst_185 = arith.constant 0.000000e+00 : f32
    %234 = vector.broadcast %cst_185 : f32 to vector<8x32xf32>
    %235 = arith.cmpf ogt, %233, %234 : vector<8x32xf32>
    %cst_186 = arith.constant 0.00999999977 : f32
    %236 = vector.broadcast %cst_186 : f32 to vector<8x32xf32>
    %237 = arith.mulf %236, %233 : vector<8x32xf32>
    %238 = arith.select %235, %233, %237 : vector<8x32xi1>, vector<8x32xf32>
    %c11_187 = arith.constant 11 : index
    %c0_188 = arith.constant 0 : index
    %c0_189 = arith.constant 0 : index
    %239 = vector.load %arg7[%c11_187, %c0_188, %c0_189] : memref<18x32x32xf32, #tpu.memory_space<vmem>>, vector<1x32x32xf32>
    %240 = vector.shape_cast %239 : vector<1x32x32xf32> to vector<32x32xf32>
    %cst_190 = arith.constant dense<0.000000e+00> : vector<8x32xf32>
    %241 = tpu.matmul %238, %240, %cst_190 {dimension_numbers = #tpu.dot_dimension_numbers<[1], [0], [0], [1], [0, 0, 1, 1], [], []>, precision = #tpu.contract_precision<fp32>} : vector<8x32xf32>, vector<32x32xf32>, vector<8x32xf32> -> vector<8x32xf32>
    %c11_191 = arith.constant 11 : index
    %c0_192 = arith.constant 0 : index
    %c0_193 = arith.constant 0 : index
    %242 = vector.load %arg8[%c11_191, %c0_192, %c0_193] : memref<18x1x32xf32, #tpu.memory_space<vmem>>, vector<1x1x32xf32>
    %243 = vector.shape_cast %242 : vector<1x1x32xf32> to vector<1x32xf32>
    %244 = vector.broadcast %243 : vector<1x32xf32> to vector<8x32xf32>
    %245 = arith.addf %241, %244 : vector<8x32xf32>
    %cst_194 = arith.constant dense<0.000000e+00> : vector<8x32xf32>
    %246 = tpu.matmul %0, %245, %cst_194 {dimension_numbers = #tpu.dot_dimension_numbers<[1], [0], [0], [1], [0, 0, 1, 1], [], []>, precision = #tpu.contract_precision<fp32>} : vector<8x8xf32>, vector<8x32xf32>, vector<8x32xf32> -> vector<8x32xf32>
    %c12 = arith.constant 12 : index
    %c0_195 = arith.constant 0 : index
    %c0_196 = arith.constant 0 : index
    %247 = vector.load %arg5[%c12, %c0_195, %c0_196] : memref<18x32x32xf32, #tpu.memory_space<vmem>>, vector<1x32x32xf32>
    %248 = vector.shape_cast %247 : vector<1x32x32xf32> to vector<32x32xf32>
    %cst_197 = arith.constant dense<0.000000e+00> : vector<8x32xf32>
    %249 = tpu.matmul %246, %248, %cst_197 {dimension_numbers = #tpu.dot_dimension_numbers<[1], [0], [0], [1], [0, 0, 1, 1], [], []>, precision = #tpu.contract_precision<fp32>} : vector<8x32xf32>, vector<32x32xf32>, vector<8x32xf32> -> vector<8x32xf32>
    %c12_198 = arith.constant 12 : index
    %c0_199 = arith.constant 0 : index
    %c0_200 = arith.constant 0 : index
    %250 = vector.load %arg6[%c12_198, %c0_199, %c0_200] : memref<18x1x32xf32, #tpu.memory_space<vmem>>, vector<1x1x32xf32>
    %251 = vector.shape_cast %250 : vector<1x1x32xf32> to vector<1x32xf32>
    %252 = vector.broadcast %251 : vector<1x32xf32> to vector<8x32xf32>
    %253 = arith.addf %249, %252 : vector<8x32xf32>
    %cst_201 = arith.constant 0.000000e+00 : f32
    %254 = vector.broadcast %cst_201 : f32 to vector<8x32xf32>
    %255 = arith.cmpf ogt, %253, %254 : vector<8x32xf32>
    %cst_202 = arith.constant 0.00999999977 : f32
    %256 = vector.broadcast %cst_202 : f32 to vector<8x32xf32>
    %257 = arith.mulf %256, %253 : vector<8x32xf32>
    %258 = arith.select %255, %253, %257 : vector<8x32xi1>, vector<8x32xf32>
    %c12_203 = arith.constant 12 : index
    %c0_204 = arith.constant 0 : index
    %c0_205 = arith.constant 0 : index
    %259 = vector.load %arg7[%c12_203, %c0_204, %c0_205] : memref<18x32x32xf32, #tpu.memory_space<vmem>>, vector<1x32x32xf32>
    %260 = vector.shape_cast %259 : vector<1x32x32xf32> to vector<32x32xf32>
    %cst_206 = arith.constant dense<0.000000e+00> : vector<8x32xf32>
    %261 = tpu.matmul %258, %260, %cst_206 {dimension_numbers = #tpu.dot_dimension_numbers<[1], [0], [0], [1], [0, 0, 1, 1], [], []>, precision = #tpu.contract_precision<fp32>} : vector<8x32xf32>, vector<32x32xf32>, vector<8x32xf32> -> vector<8x32xf32>
    %c12_207 = arith.constant 12 : index
    %c0_208 = arith.constant 0 : index
    %c0_209 = arith.constant 0 : index
    %262 = vector.load %arg8[%c12_207, %c0_208, %c0_209] : memref<18x1x32xf32, #tpu.memory_space<vmem>>, vector<1x1x32xf32>
    %263 = vector.shape_cast %262 : vector<1x1x32xf32> to vector<1x32xf32>
    %264 = vector.broadcast %263 : vector<1x32xf32> to vector<8x32xf32>
    %265 = arith.addf %261, %264 : vector<8x32xf32>
    %c13 = arith.constant 13 : index
    %c0_210 = arith.constant 0 : index
    %c0_211 = arith.constant 0 : index
    %266 = vector.load %arg5[%c13, %c0_210, %c0_211] : memref<18x32x32xf32, #tpu.memory_space<vmem>>, vector<1x32x32xf32>
    %267 = vector.shape_cast %266 : vector<1x32x32xf32> to vector<32x32xf32>
    %cst_212 = arith.constant dense<0.000000e+00> : vector<8x32xf32>
    %268 = tpu.matmul %186, %267, %cst_212 {dimension_numbers = #tpu.dot_dimension_numbers<[1], [0], [0], [1], [0, 0, 1, 1], [], []>, precision = #tpu.contract_precision<fp32>} : vector<8x32xf32>, vector<32x32xf32>, vector<8x32xf32> -> vector<8x32xf32>
    %c13_213 = arith.constant 13 : index
    %c0_214 = arith.constant 0 : index
    %c0_215 = arith.constant 0 : index
    %269 = vector.load %arg6[%c13_213, %c0_214, %c0_215] : memref<18x1x32xf32, #tpu.memory_space<vmem>>, vector<1x1x32xf32>
    %270 = vector.shape_cast %269 : vector<1x1x32xf32> to vector<1x32xf32>
    %271 = vector.broadcast %270 : vector<1x32xf32> to vector<8x32xf32>
    %272 = arith.addf %268, %271 : vector<8x32xf32>
    %cst_216 = arith.constant 0.000000e+00 : f32
    %273 = vector.broadcast %cst_216 : f32 to vector<8x32xf32>
    %274 = arith.cmpf ogt, %272, %273 : vector<8x32xf32>
    %cst_217 = arith.constant 0.00999999977 : f32
    %275 = vector.broadcast %cst_217 : f32 to vector<8x32xf32>
    %276 = arith.mulf %275, %272 : vector<8x32xf32>
    %277 = arith.select %274, %272, %276 : vector<8x32xi1>, vector<8x32xf32>
    %c13_218 = arith.constant 13 : index
    %c0_219 = arith.constant 0 : index
    %c0_220 = arith.constant 0 : index
    %278 = vector.load %arg7[%c13_218, %c0_219, %c0_220] : memref<18x32x32xf32, #tpu.memory_space<vmem>>, vector<1x32x32xf32>
    %279 = vector.shape_cast %278 : vector<1x32x32xf32> to vector<32x32xf32>
    %cst_221 = arith.constant dense<0.000000e+00> : vector<8x32xf32>
    %280 = tpu.matmul %277, %279, %cst_221 {dimension_numbers = #tpu.dot_dimension_numbers<[1], [0], [0], [1], [0, 0, 1, 1], [], []>, precision = #tpu.contract_precision<fp32>} : vector<8x32xf32>, vector<32x32xf32>, vector<8x32xf32> -> vector<8x32xf32>
    %c13_222 = arith.constant 13 : index
    %c0_223 = arith.constant 0 : index
    %c0_224 = arith.constant 0 : index
    %281 = vector.load %arg8[%c13_222, %c0_223, %c0_224] : memref<18x1x32xf32, #tpu.memory_space<vmem>>, vector<1x1x32xf32>
    %282 = vector.shape_cast %281 : vector<1x1x32xf32> to vector<1x32xf32>
    %283 = vector.broadcast %282 : vector<1x32xf32> to vector<8x32xf32>
    %284 = arith.addf %280, %283 : vector<8x32xf32>
    %285 = arith.addf %284, %265 : vector<8x32xf32>
    %c14 = arith.constant 14 : index
    %c0_225 = arith.constant 0 : index
    %c0_226 = arith.constant 0 : index
    %286 = vector.load %arg5[%c14, %c0_225, %c0_226] : memref<18x32x32xf32, #tpu.memory_space<vmem>>, vector<1x32x32xf32>
    %287 = vector.shape_cast %286 : vector<1x32x32xf32> to vector<32x32xf32>
    %cst_227 = arith.constant dense<0.000000e+00> : vector<8x32xf32>
    %288 = tpu.matmul %285, %287, %cst_227 {dimension_numbers = #tpu.dot_dimension_numbers<[1], [0], [0], [1], [0, 0, 1, 1], [], []>, precision = #tpu.contract_precision<fp32>} : vector<8x32xf32>, vector<32x32xf32>, vector<8x32xf32> -> vector<8x32xf32>
    %c14_228 = arith.constant 14 : index
    %c0_229 = arith.constant 0 : index
    %c0_230 = arith.constant 0 : index
    %289 = vector.load %arg6[%c14_228, %c0_229, %c0_230] : memref<18x1x32xf32, #tpu.memory_space<vmem>>, vector<1x1x32xf32>
    %290 = vector.shape_cast %289 : vector<1x1x32xf32> to vector<1x32xf32>
    %291 = vector.broadcast %290 : vector<1x32xf32> to vector<8x32xf32>
    %292 = arith.addf %288, %291 : vector<8x32xf32>
    %cst_231 = arith.constant 0.000000e+00 : f32
    %293 = vector.broadcast %cst_231 : f32 to vector<8x32xf32>
    %294 = arith.cmpf ogt, %292, %293 : vector<8x32xf32>
    %cst_232 = arith.constant 0.00999999977 : f32
    %295 = vector.broadcast %cst_232 : f32 to vector<8x32xf32>
    %296 = arith.mulf %295, %292 : vector<8x32xf32>
    %297 = arith.select %294, %292, %296 : vector<8x32xi1>, vector<8x32xf32>
    %c14_233 = arith.constant 14 : index
    %c0_234 = arith.constant 0 : index
    %c0_235 = arith.constant 0 : index
    %298 = vector.load %arg7[%c14_233, %c0_234, %c0_235] : memref<18x32x32xf32, #tpu.memory_space<vmem>>, vector<1x32x32xf32>
    %299 = vector.shape_cast %298 : vector<1x32x32xf32> to vector<32x32xf32>
    %cst_236 = arith.constant dense<0.000000e+00> : vector<8x32xf32>
    %300 = tpu.matmul %297, %299, %cst_236 {dimension_numbers = #tpu.dot_dimension_numbers<[1], [0], [0], [1], [0, 0, 1, 1], [], []>, precision = #tpu.contract_precision<fp32>} : vector<8x32xf32>, vector<32x32xf32>, vector<8x32xf32> -> vector<8x32xf32>
    %c14_237 = arith.constant 14 : index
    %c0_238 = arith.constant 0 : index
    %c0_239 = arith.constant 0 : index
    %301 = vector.load %arg8[%c14_237, %c0_238, %c0_239] : memref<18x1x32xf32, #tpu.memory_space<vmem>>, vector<1x1x32xf32>
    %302 = vector.shape_cast %301 : vector<1x1x32xf32> to vector<1x32xf32>
    %303 = vector.broadcast %302 : vector<1x32xf32> to vector<8x32xf32>
    %304 = arith.addf %300, %303 : vector<8x32xf32>
    %cst_240 = arith.constant dense<0.000000e+00> : vector<8x32xf32>
    %305 = tpu.matmul %1, %304, %cst_240 {dimension_numbers = #tpu.dot_dimension_numbers<[1], [0], [0], [1], [0, 0, 1, 1], [], []>, precision = #tpu.contract_precision<fp32>} : vector<8x8xf32>, vector<8x32xf32>, vector<8x32xf32> -> vector<8x32xf32>
    %c15 = arith.constant 15 : index
    %c0_241 = arith.constant 0 : index
    %c0_242 = arith.constant 0 : index
    %306 = vector.load %arg5[%c15, %c0_241, %c0_242] : memref<18x32x32xf32, #tpu.memory_space<vmem>>, vector<1x32x32xf32>
    %307 = vector.shape_cast %306 : vector<1x32x32xf32> to vector<32x32xf32>
    %cst_243 = arith.constant dense<0.000000e+00> : vector<8x32xf32>
    %308 = tpu.matmul %305, %307, %cst_243 {dimension_numbers = #tpu.dot_dimension_numbers<[1], [0], [0], [1], [0, 0, 1, 1], [], []>, precision = #tpu.contract_precision<fp32>} : vector<8x32xf32>, vector<32x32xf32>, vector<8x32xf32> -> vector<8x32xf32>
    %c15_244 = arith.constant 15 : index
    %c0_245 = arith.constant 0 : index
    %c0_246 = arith.constant 0 : index
    %309 = vector.load %arg6[%c15_244, %c0_245, %c0_246] : memref<18x1x32xf32, #tpu.memory_space<vmem>>, vector<1x1x32xf32>
    %310 = vector.shape_cast %309 : vector<1x1x32xf32> to vector<1x32xf32>
    %311 = vector.broadcast %310 : vector<1x32xf32> to vector<8x32xf32>
    %312 = arith.addf %308, %311 : vector<8x32xf32>
    %cst_247 = arith.constant 0.000000e+00 : f32
    %313 = vector.broadcast %cst_247 : f32 to vector<8x32xf32>
    %314 = arith.cmpf ogt, %312, %313 : vector<8x32xf32>
    %cst_248 = arith.constant 0.00999999977 : f32
    %315 = vector.broadcast %cst_248 : f32 to vector<8x32xf32>
    %316 = arith.mulf %315, %312 : vector<8x32xf32>
    %317 = arith.select %314, %312, %316 : vector<8x32xi1>, vector<8x32xf32>
    %c15_249 = arith.constant 15 : index
    %c0_250 = arith.constant 0 : index
    %c0_251 = arith.constant 0 : index
    %318 = vector.load %arg7[%c15_249, %c0_250, %c0_251] : memref<18x32x32xf32, #tpu.memory_space<vmem>>, vector<1x32x32xf32>
    %319 = vector.shape_cast %318 : vector<1x32x32xf32> to vector<32x32xf32>
    %cst_252 = arith.constant dense<0.000000e+00> : vector<8x32xf32>
    %320 = tpu.matmul %317, %319, %cst_252 {dimension_numbers = #tpu.dot_dimension_numbers<[1], [0], [0], [1], [0, 0, 1, 1], [], []>, precision = #tpu.contract_precision<fp32>} : vector<8x32xf32>, vector<32x32xf32>, vector<8x32xf32> -> vector<8x32xf32>
    %c15_253 = arith.constant 15 : index
    %c0_254 = arith.constant 0 : index
    %c0_255 = arith.constant 0 : index
    %321 = vector.load %arg8[%c15_253, %c0_254, %c0_255] : memref<18x1x32xf32, #tpu.memory_space<vmem>>, vector<1x1x32xf32>
    %322 = vector.shape_cast %321 : vector<1x1x32xf32> to vector<1x32xf32>
    %323 = vector.broadcast %322 : vector<1x32xf32> to vector<8x32xf32>
    %324 = arith.addf %320, %323 : vector<8x32xf32>
    %c16 = arith.constant 16 : index
    %c0_256 = arith.constant 0 : index
    %c0_257 = arith.constant 0 : index
    %325 = vector.load %arg5[%c16, %c0_256, %c0_257] : memref<18x32x32xf32, #tpu.memory_space<vmem>>, vector<1x32x32xf32>
    %326 = vector.shape_cast %325 : vector<1x32x32xf32> to vector<32x32xf32>
    %cst_258 = arith.constant dense<0.000000e+00> : vector<8x32xf32>
    %327 = tpu.matmul %245, %326, %cst_258 {dimension_numbers = #tpu.dot_dimension_numbers<[1], [0], [0], [1], [0, 0, 1, 1], [], []>, precision = #tpu.contract_precision<fp32>} : vector<8x32xf32>, vector<32x32xf32>, vector<8x32xf32> -> vector<8x32xf32>
    %c16_259 = arith.constant 16 : index
    %c0_260 = arith.constant 0 : index
    %c0_261 = arith.constant 0 : index
    %328 = vector.load %arg6[%c16_259, %c0_260, %c0_261] : memref<18x1x32xf32, #tpu.memory_space<vmem>>, vector<1x1x32xf32>
    %329 = vector.shape_cast %328 : vector<1x1x32xf32> to vector<1x32xf32>
    %330 = vector.broadcast %329 : vector<1x32xf32> to vector<8x32xf32>
    %331 = arith.addf %327, %330 : vector<8x32xf32>
    %cst_262 = arith.constant 0.000000e+00 : f32
    %332 = vector.broadcast %cst_262 : f32 to vector<8x32xf32>
    %333 = arith.cmpf ogt, %331, %332 : vector<8x32xf32>
    %cst_263 = arith.constant 0.00999999977 : f32
    %334 = vector.broadcast %cst_263 : f32 to vector<8x32xf32>
    %335 = arith.mulf %334, %331 : vector<8x32xf32>
    %336 = arith.select %333, %331, %335 : vector<8x32xi1>, vector<8x32xf32>
    %c16_264 = arith.constant 16 : index
    %c0_265 = arith.constant 0 : index
    %c0_266 = arith.constant 0 : index
    %337 = vector.load %arg7[%c16_264, %c0_265, %c0_266] : memref<18x32x32xf32, #tpu.memory_space<vmem>>, vector<1x32x32xf32>
    %338 = vector.shape_cast %337 : vector<1x32x32xf32> to vector<32x32xf32>
    %cst_267 = arith.constant dense<0.000000e+00> : vector<8x32xf32>
    %339 = tpu.matmul %336, %338, %cst_267 {dimension_numbers = #tpu.dot_dimension_numbers<[1], [0], [0], [1], [0, 0, 1, 1], [], []>, precision = #tpu.contract_precision<fp32>} : vector<8x32xf32>, vector<32x32xf32>, vector<8x32xf32> -> vector<8x32xf32>
    %c16_268 = arith.constant 16 : index
    %c0_269 = arith.constant 0 : index
    %c0_270 = arith.constant 0 : index
    %340 = vector.load %arg8[%c16_268, %c0_269, %c0_270] : memref<18x1x32xf32, #tpu.memory_space<vmem>>, vector<1x1x32xf32>
    %341 = vector.shape_cast %340 : vector<1x1x32xf32> to vector<1x32xf32>
    %342 = vector.broadcast %341 : vector<1x32xf32> to vector<8x32xf32>
    %343 = arith.addf %339, %342 : vector<8x32xf32>
    %344 = arith.addf %343, %324 : vector<8x32xf32>
    %c17 = arith.constant 17 : index
    %c0_271 = arith.constant 0 : index
    %c0_272 = arith.constant 0 : index
    %345 = vector.load %arg5[%c17, %c0_271, %c0_272] : memref<18x32x32xf32, #tpu.memory_space<vmem>>, vector<1x32x32xf32>
    %346 = vector.shape_cast %345 : vector<1x32x32xf32> to vector<32x32xf32>
    %cst_273 = arith.constant dense<0.000000e+00> : vector<8x32xf32>
    %347 = tpu.matmul %344, %346, %cst_273 {dimension_numbers = #tpu.dot_dimension_numbers<[1], [0], [0], [1], [0, 0, 1, 1], [], []>, precision = #tpu.contract_precision<fp32>} : vector<8x32xf32>, vector<32x32xf32>, vector<8x32xf32> -> vector<8x32xf32>
    %c17_274 = arith.constant 17 : index
    %c0_275 = arith.constant 0 : index
    %c0_276 = arith.constant 0 : index
    %348 = vector.load %arg6[%c17_274, %c0_275, %c0_276] : memref<18x1x32xf32, #tpu.memory_space<vmem>>, vector<1x1x32xf32>
    %349 = vector.shape_cast %348 : vector<1x1x32xf32> to vector<1x32xf32>
    %350 = vector.broadcast %349 : vector<1x32xf32> to vector<8x32xf32>
    %351 = arith.addf %347, %350 : vector<8x32xf32>
    %cst_277 = arith.constant 0.000000e+00 : f32
    %352 = vector.broadcast %cst_277 : f32 to vector<8x32xf32>
    %353 = arith.cmpf ogt, %351, %352 : vector<8x32xf32>
    %cst_278 = arith.constant 0.00999999977 : f32
    %354 = vector.broadcast %cst_278 : f32 to vector<8x32xf32>
    %355 = arith.mulf %354, %351 : vector<8x32xf32>
    %356 = arith.select %353, %351, %355 : vector<8x32xi1>, vector<8x32xf32>
    %c17_279 = arith.constant 17 : index
    %c0_280 = arith.constant 0 : index
    %c0_281 = arith.constant 0 : index
    %357 = vector.load %arg7[%c17_279, %c0_280, %c0_281] : memref<18x32x32xf32, #tpu.memory_space<vmem>>, vector<1x32x32xf32>
    %358 = vector.shape_cast %357 : vector<1x32x32xf32> to vector<32x32xf32>
    %cst_282 = arith.constant dense<0.000000e+00> : vector<8x32xf32>
    %359 = tpu.matmul %356, %358, %cst_282 {dimension_numbers = #tpu.dot_dimension_numbers<[1], [0], [0], [1], [0, 0, 1, 1], [], []>, precision = #tpu.contract_precision<fp32>} : vector<8x32xf32>, vector<32x32xf32>, vector<8x32xf32> -> vector<8x32xf32>
    %c17_283 = arith.constant 17 : index
    %c0_284 = arith.constant 0 : index
    %c0_285 = arith.constant 0 : index
    %360 = vector.load %arg8[%c17_283, %c0_284, %c0_285] : memref<18x1x32xf32, #tpu.memory_space<vmem>>, vector<1x1x32xf32>
    %361 = vector.shape_cast %360 : vector<1x1x32xf32> to vector<1x32xf32>
    %362 = vector.broadcast %361 : vector<1x32xf32> to vector<8x32xf32>
    %363 = arith.addf %359, %362 : vector<8x32xf32>
    %c0_286 = arith.constant 0 : index
    %c0_287 = arith.constant 0 : index
    %364 = vector.load %arg9[%c0_286, %c0_287] : memref<32x32xf32, #tpu.memory_space<vmem>>, vector<32x32xf32>
    %cst_288 = arith.constant dense<0.000000e+00> : vector<8x32xf32>
    %365 = tpu.matmul %363, %364, %cst_288 {dimension_numbers = #tpu.dot_dimension_numbers<[1], [0], [0], [1], [0, 0, 1, 1], [], []>, precision = #tpu.contract_precision<fp32>} : vector<8x32xf32>, vector<32x32xf32>, vector<8x32xf32> -> vector<8x32xf32>
    %c0_289 = arith.constant 0 : index
    %c0_290 = arith.constant 0 : index
    %366 = vector.load %arg10[%c0_289, %c0_290] : memref<1x32xf32, #tpu.memory_space<vmem>>, vector<1x32xf32>
    %367 = vector.broadcast %366 : vector<1x32xf32> to vector<8x32xf32>
    %368 = arith.addf %365, %367 : vector<8x32xf32>
    %cst_291 = arith.constant 0.000000e+00 : f32
    %369 = vector.broadcast %cst_291 : f32 to vector<8x32xf32>
    %370 = arith.cmpf ogt, %368, %369 : vector<8x32xf32>
    %cst_292 = arith.constant 0.00999999977 : f32
    %371 = vector.broadcast %cst_292 : f32 to vector<8x32xf32>
    %372 = arith.mulf %371, %368 : vector<8x32xf32>
    %373 = arith.select %370, %368, %372 : vector<8x32xi1>, vector<8x32xf32>
    %c0_293 = arith.constant 0 : index
    %c0_294 = arith.constant 0 : index
    %374 = vector.load %arg11[%c0_293, %c0_294] : memref<32x1xf32, #tpu.memory_space<vmem>>, vector<32x1xf32>
    %cst_295 = arith.constant dense<0.000000e+00> : vector<8x1xf32>
    %375 = tpu.matmul %373, %374, %cst_295 {dimension_numbers = #tpu.dot_dimension_numbers<[1], [0], [0], [1], [0, 0, 1, 1], [], []>, precision = #tpu.contract_precision<fp32>} : vector<8x32xf32>, vector<32x1xf32>, vector<8x1xf32> -> vector<8x1xf32>
    %c0_296 = arith.constant 0 : index
    %c0_297 = arith.constant 0 : index
    %376 = vector.load %arg12[%c0_296, %c0_297] : memref<1x1xf32, #tpu.memory_space<vmem>>, vector<1x1xf32>
    %377 = vector.broadcast %376 : vector<1x1xf32> to vector<8x1xf32>
    %378 = arith.addf %375, %377 : vector<8x1xf32>
    %cst_298 = arith.constant 0.000000e+00 : f32
    %379 = vector.broadcast %cst_298 : f32 to vector<8x1xf32>
    %380 = arith.cmpf ogt, %378, %379 : vector<8x1xf32>
    %cst_299 = arith.constant 0.00999999977 : f32
    %381 = vector.broadcast %cst_299 : f32 to vector<8x1xf32>
    %382 = arith.mulf %381, %378 : vector<8x1xf32>
    %383 = arith.select %380, %378, %382 : vector<8x1xi1>, vector<8x1xf32>
    %c0_300 = arith.constant 0 : index
    %c0_301 = arith.constant 0 : index
    %384 = vector.load %arg13[%c0_300, %c0_301] : memref<8x1xf32, #tpu.memory_space<vmem>>, vector<8x1xf32>
    tpu.vector_store %arg13[%c0_300, %c0_301], %383 {strides = array<i32>} : memref<8x1xf32, #tpu.memory_space<vmem>>, vector<8x1xf32>,
    return
  }
}

</mosaic_0001>

<bundles_post_ra>
// kernel: gcn_forward.1
= control target key start
LH: loop header
LB: loop body
LE: loop exit
PB: predicated region body
PF: predicated region fallthrough
CT: control target
= control target key end

     0   :  { %vm61_vm0 = vcmask 261120   ;;  %v26594_v38 = vmov 0.0   ;;  %vm26595_vm1 = vmmov 0   ;;  %vm596_vm2 = vcmask 64512   ;;  %s31290_s3 = inlined_call_operand.vmem [shape: f32[32,32], index: 3, kind: input, shape index: {}]   ;;  %s31291_s2 = inlined_call_operand.vmem [shape: f32[16,32], index: 2, kind: input, shape index: {}]   ;;  %s31292_s4 = inlined_call_operand.vmem [shape: f32[1,32], index: 4, kind: input, shape index: {}]   ;;  %s31293_s0 = inlined_call_operand.vmem [shape: f32[8,8], index: 0, kind: input, shape index: {}]   ;;  %s31294_s5 = inlined_call_operand.vmem [shape: f32[18,32,32], index: 5, kind: input, shape index: {}]   ;;  %s31295_s7 = inlined_call_operand.vmem [shape: f32[18,32,32], index: 7, kind: input, shape index: {}]   ;;  %s31296_s6 = inlined_call_operand.vmem [shape: f32[18,1,32], index: 6, kind: input, shape index: {}]   ;;  %s31297_s8 = inlined_call_operand.vmem [shape: f32[18,1,32], index: 8, kind: input, shape index: {}]   ;;  %s31298_s1 = inlined_call_operand.vmem [shape: f32[8,8], index: 1, kind: input, shape index: {}]   ;;  %s31299_s9 = inlined_call_operand.vmem [shape: f32[32,32], index: 9, kind: input, shape index: {}]   ;;  %s31300_s11 = inlined_call_operand.vmem [shape: f32[32,1], index: 11, kind: input, shape index: {}]   ;;  %s31301_s10 = inlined_call_operand.vmem [shape: f32[1,32], index: 10, kind: input, shape index: {}]   ;;  %s31302_s12 = inlined_call_operand.<no memory space> [shape: f32[1,1], index: 12, kind: input, shape index: {}]   ;;  %s31303_s13 = inlined_call_operand.vmem [shape: f32[8,1], index: 13, kind: output, shape index: {}]  }
   0x1   :  { %v53_v0 = vld [vmem:[%s31290_s3 + $0x18] sm:$0xff]  ;;  %v52_v1 = vld [vmem:[%s31290_s3 + $0x10] sm:$0xff]  ;;  %v51_v2 = vld [vmem:[%s31290_s3 + $0x8] sm:$0xff] }
   0x2   :  { %v26675_v3 = vand.u32 4294901760, %v53_v0  ;;  %v26677_v4 = vand.u32 4294901760, %v52_v1  ;;  %v26679_v5 = vand.u32 4294901760, %v51_v2  ;;  %v50_v6 = vld [vmem:[%s31290_s3] sm:$0xff]  ;;  %v49_v8 = vld [vmem:[%s31291_s2 + $0x8] sm:$0xff] }
   0x3   :  { %v48_v7 = vld [vmem:[%s31291_s2] sm:$0xff]  ;;  %v26690_v9 = vand.u32 4294901760, %v50_v6  ;;  %v66_v11 = vsel %vm61_vm0, %v49_v8, 0 }
   0x4   :  { %v63_v10 = vsel %vm61_vm0, %v48_v7, 0  ;;  %23838 = vmatprep.subr.mxu0 %v26675_v3  ;;  %v183_v12 = vsub.f32 %v53_v0, %v26675_v3  ;;  %v190_v14 = vsub.f32 %v52_v1, %v26677_v4  ;;  %v26699_v15 = vand.u32 4294901760, %v66_v11  ;;  %v22381_v39 = vld [vmem:[%s31292_s4] ss:$0 sm:$0xff] }
   0x5   :  { %v26696_v13 = vand.u32 4294901760, %v63_v10  ;;  %23839 = vmatpush3.msra.mxu0 %v26675_v3  ;;  %v197_v16 = vsub.f32 %v51_v2, %v26679_v5  ;;  %v204_v17 = vsub.f32 %v50_v6, %v26690_v9  ;;  %v46_v45 = vld [vmem:[%s31293_s0] sm:$0xff] }
   0x6   :  { %23840 = vmatprep.subr.mxu0 %v26677_v4  ;;  %v184_v18 = vand.u32 4294901760, %v183_v12  ;;  %v191_v20 = vand.u32 4294901760, %v190_v14  ;;  %v148_v21 = vsub.f32 %v66_v11, %v26699_v15  ;;  %v598_v48 = vsel %vm596_vm2, %v46_v45, 0 }
   0x7   :  { %v138_v19 = vsub.f32 %v63_v10, %v26696_v13  ;;  %23857 = vmatprep.mubr.f32.mxu1 %v26696_v13  ;;  %23841 = vmatpush3.msra.mxu0 %v26677_v4  ;;  %v198_v22 = vand.u32 4294901760, %v197_v16  ;;  %v205_v23 = vand.u32 4294901760, %v204_v17  ;;  %v26747_v51 = vand.u32 4294901760, %v598_v48 }
   0x8   :  { %23842 = vmatprep.subr.mxu0 %v26679_v5  ;;  %v185_v24 = vsub.f32 %v183_v12, %v184_v18  ;;  %v192_v26 = vsub.f32 %v190_v14, %v191_v20  ;;  %v149_v27 = vand.u32 4294901760, %v148_v21 }
   0x9   :  { %v139_v25 = vand.u32 4294901760, %v138_v19  ;;  %23843 = vmatpush3.msra.mxu0 %v26679_v5  ;;  %v199_v28 = vsub.f32 %v197_v16, %v198_v22  ;;  %v206_v29 = vsub.f32 %v204_v17, %v205_v23  ;;  %v26750_v56 = vsub.f32 %v598_v48, %v26747_v51 }
   0xa   :  { %23844 = vmatprep.subr.mxu0 %v26690_v9  ;;  %v186_v30 = vand.u32 4294901760, %v185_v24  ;;  %v193_v32 = vand.u32 4294901760, %v192_v26  ;;  %v150_v33 = vsub.f32 %v148_v21, %v149_v27 }
   0xb   :  { %v140_v31 = vsub.f32 %v138_v19, %v139_v25  ;;  %23845 = vmatpush3.msra.mxu0 %v26690_v9  ;;  %v200_v36 = vand.u32 4294901760, %v199_v28  ;;  %v207_v37 = vand.u32 4294901760, %v206_v29  ;;  %v26753_v61 = vand.u32 4294901760, %v26750_v56 }
   0xc   :  { %23849 = vmatprep.subr.mxu1 %v186_v30  ;;  %23860 = vmatprep.subr.mxu0 %v183_v12  ;;  %v151_v35 = vand.u32 4294901760, %v150_v33 }
   0xd   :  { %v141_v34 = vand.u32 4294901760, %v140_v31  ;;  %23850 = vmatpush3.msra.mxu1 %v186_v30  ;;  %v669_v1 = vsub.f32 %v26750_v56, %v26753_v61 }
   0xe   :  { %23851 = vmatprep.subr.mxu1 %v193_v32 }
   0xf   :  { %23846 = vmatprep.mubr.f32.mxu0 %v141_v34  ;;  %23852 = vmatpush3.msra.mxu1 %v193_v32  ;;  %v26761_v6 = vand.u32 4294901760, %v669_v1  ;;  %v1550_v1 = vld [vmem:[%s31295_s7 + $0x10] sm:$0xff] }
  0x10   :  { %23847 = vmatmul.mubr.f32.vlgmr.msra.gmra.mxu0 %v151_v35  ;;  %23853 = vmatprep.subr.mxu1 %v200_v36 }
  0x11   :  { %23861 = vmatpush3.msra.mxu0 %v183_v12  ;;  %23854 = vmatpush3.msra.mxu1 %v200_v36  ;;  %v1049_v12 = vld [vmem:[%s31294_s5 + $0x18] sm:$0xff] }
  0x12   :  { %23862 = vmatprep.subr.mxu0 %v190_v14  ;;  %23855 = vmatprep.subr.mxu1 %v207_v37 }
  0x13   :  { %23863 = vmatpush3.msra.mxu0 %v190_v14  ;;  %23856 = vmatpush3.msra.mxu1 %v207_v37  ;;  %v1048_v14 = vld [vmem:[%s31294_s5 + $0x10] sm:$0xff] }
  0x14   :  { %23864 = vmatprep.subr.mxu0 %v197_v16  ;;  %23858 = vmatmul.mubr.f32.vlgmr.msra.gmra.mxu1 %v26699_v15 }
  0x15   :  { %23865 = vmatpush3.msra.mxu0 %v197_v16  ;;  %23871 = vmatprep.subr.mxu1 %v26675_v3  ;;  %v26800_v16 = vand.u32 4294901760, %v1048_v14 }
  0x16   :  { %23866 = vmatprep.subr.mxu0 %v204_v17  ;;  %23868 = vmatprep.mubr.f32.mxu0 %v138_v19 }
  0x17   :  { %23867 = vmatpush3.msra.mxu0 %v204_v17  ;;  %23872 = vmatpush3.msra.mxu1 %v26675_v3  ;;  %v1047_v17 = vld [vmem:[%s31294_s5 + $0x8] sm:$0xff]  ;;  %v26809_v19 = vsub.f32 %v1048_v14, %v26800_v16 }
  0x18   :  { %23869 = vmatmul.mubr.f32.vlgmr.msra.gmra.mxu0 %v148_v21  ;;  %23873 = vmatprep.subr.mxu1 %v26677_v4  ;;  %v1046_v21 = vld [vmem:[%s31294_s5] sm:$0xff] }
  0x19   :  { %23882 = vmatprep.subr.mxu0 %v184_v18  ;;  %23874 = vmatpush3.msra.mxu1 %v26677_v4 }
  0x1a   :  { %23883 = vmatpush3.msra.mxu0 %v184_v18  ;;  %23875 = vmatprep.subr.mxu1 %v26679_v5 }
  0x1b   :  { %23884 = vmatprep.subr.mxu0 %v191_v20  ;;  %23876 = vmatpush3.msra.mxu1 %v26679_v5 }
  0x1c   :  { %23885 = vmatpush3.msra.mxu0 %v191_v20  ;;  %23877 = vmatprep.subr.mxu1 %v26690_v9  ;;  %v26811_v20 = vand.u32 4294901760, %v1047_v17 }
  0x1d   :  { %23886 = vmatprep.subr.mxu0 %v198_v22  ;;  %23878 = vmatpush3.msra.mxu1 %v26690_v9 }
  0x1e   :  { %23879 = vmatprep.mubr.f32.mxu1 %v139_v25  ;;  %23887 = vmatpush3.msra.mxu0 %v198_v22  ;;  %v26823_v24 = vsub.f32 %v1047_v17, %v26811_v20  ;;  %v26825_v25 = vand.u32 4294901760, %v1046_v21 }
  0x1f   :  { %23880 = vmatmul.mubr.f32.vlgmr.msra.gmra.mxu1 %v149_v27  ;;  %23888 = vmatprep.subr.mxu0 %v205_v23 }
  0x20   :  { %23893 = vmatprep.subr.mxu1 %v26675_v3  ;;  %23889 = vmatpush3.msra.mxu0 %v205_v23  ;;  %v1173_v23 = vand.u32 4294901760, %v26809_v19  ;;  %v1180_v28 = vand.u32 4294901760, %v26823_v24  ;;  %v26834_v29 = vsub.f32 %v1046_v21, %v26825_v25 }
  0x21   :  { %23890 = vmatprep.mubr.f32.mxu0 %v26696_v13  ;;  %23894 = vmatpush3.msra.mxu1 %v26675_v3 }
  0x22   :  { %23891 = vmatmul.mubr.f32.vlgmr.msra.gmra.mxu0 %v26699_v15  ;;  %23895 = vmatprep.subr.mxu1 %v26677_v4  ;;  %v1174_v27 = vsub.f32 %v26809_v19, %v1173_v23  ;;  %v1181_v31 = vsub.f32 %v26823_v24, %v1180_v28  ;;  %v1187_v32 = vand.u32 4294901760, %v26834_v29 }
  0x23   :  { %23901 = vmatprep.mubr.f32.mxu1 %v26696_v13  ;;  %23896 = vmatpush3.msra.mxu1 %v26677_v4  ;;  %v26792_v13 = vand.u32 4294901760, %v1049_v12 }
  0x24   :  { %23897 = vmatprep.subr.mxu1 %v26679_v5  ;;  %23904 = vmatprep.subr.mxu0 %v26594_v38  ;;  %v1175_v30 = vand.u32 4294901760, %v1174_v27  ;;  %v1182_v33 = vand.u32 4294901760, %v1181_v31  ;;  %v1188_v34 = vsub.f32 %v26834_v29, %v1187_v32 }
  0x25   :  { %23898 = vmatpush3.msra.mxu1 %v26679_v5  ;;  %23906 = vmatprep.mubr.msk.f32.mxu0 %vm26595_vm1, %v26594_v38 }
  0x26   :  { %23899 = vmatprep.subr.mxu1 %v26690_v9  ;;  %v1189_v35 = vand.u32 4294901760, %v1188_v34 }
  0x27   :  { %23900 = vmatpush3.msra.mxu1 %v26690_v9 }
  0x28   :  { %23902 = vmatmul.mubr.f32.vlgmr.msra.gmra.mxu1 %v26699_v15  ;;  %23909 = vmatprep.subr.mxu1 %v26594_v38  ;;  %v26798_v15 = vsub.f32 %v1049_v12, %v26792_v13 }
  0x29   :  { %23911 = vmatprep.mubr.msk.f32.mxu1 %vm26595_vm1, %v26594_v38 }
  0x2a   :  { %v1166_v18 = vand.u32 4294901760, %v26798_v15 }
  0x2c   :  { %v1167_v22 = vsub.f32 %v26798_v15, %v1166_v18 }
  0x2e   :  { %v1168_v26 = vand.u32 4294901760, %v1167_v22 }
  0xd0   :  { %v23848_v40 = vpop.f32.mrf.mxu0 }
  0xd1   :  { %v154_v41 = vadd.f32 %v23848_v40, %v22381_v39 }
  0xd2   :  { %v143_v42 = vpop.f32.mrf.mxu0 }
  0xd3   :  { %v144_v49 = vadd.f32 %v22381_v39, %v143_v42 }
  0xd4   :  { %v23859_v43 = vpop.f32.mrf.mxu1 }
  0xd5   :  { %v251_v44 = vadd.f32 %v23859_v43, %v154_v41 }
  0xd6   :  { %v244_v50 = vpop.f32.mrf.mxu1 }
  0xd7   :  { %v245_v53 = vadd.f32 %v244_v50, %v144_v49 }
  0xd8   :  { %v23870_v46 = vpop.f32.mrf.mxu0 }
  0xd9   :  { %v338_v47 = vadd.f32 %v23870_v46, %v251_v44 }
  0xda   :  { %v330_v54 = vpop.f32.mrf.mxu0 }
  0xdb   :  { %v331_v60 = vadd.f32 %v330_v54, %v245_v53 }
  0xdf   :  { %v23881_v52 = vpop.f32.mrf.mxu1 }
  0xe0   :  { %v423_v55 = vadd.f32 %v23881_v52, %v338_v47 }
  0xe1   :  { %v414_v58 = vpop.f32.mrf.mxu1 }
  0xe2   :  { %v23892_v57 = vpop.f32.mrf.mxu0  ;;  %v415_v62 = vadd.f32 %v414_v58, %v331_v60 }
  0xe3   :  { %v512_v59 = vadd.f32 %v23892_v57, %v423_v55 }
  0xe4   :  { %v505_v63 = vpop.f32.mrf.mxu0 }
  0xe5   :  { %v506_v2 = vadd.f32 %v505_v63, %v415_v62  ;;  %v1551_v63 = vld [vmem:[%s31295_s7 + $0x18] sm:$0xff] }
  0xe8   :  { %v23903_v0 = vpop.f32.mrf.mxu1 }
  0xe9   :  { %v26757_v3 = vadd.f32 %v23903_v0, %v512_v59  ;;  %v26901_v0 = vand.u32 4294901760, %v1551_v63 }
  0xea   :  { %v586_v4 = vpop.f32.mrf.mxu1 }
  0xeb   :  { %v26759_v5 = vadd.f32 %v586_v4, %v506_v2  ;;  %v26907_v2 = vsub.f32 %v1551_v63, %v26901_v0  ;;  %v26909_v4 = vand.u32 4294901760, %v1550_v1 }
  0xed   :  { %v631_v7 = vand.u32 4294901760, %v26759_v5 }
  0xef   :  { %v708_v8 = vsub.f32 %v26759_v5, %v631_v7  ;;  %23905 = vmatpush3.msra.mxu0 %v631_v7 }
  0xf0   :  { %23907 = vmatmul.mubr.f32.vlgmr.msra.gmra.mxu0 %v26761_v6  ;;  %23914 = vmatprep.subr.mxu0 %v26594_v38 }
  0xf1   :  { %23915 = vmatpush3.msra.mxu0 %v708_v8  ;;  %23916 = vmatprep.mubr.msk.f32.mxu0 %vm26595_vm1, %v26594_v38  ;;  %v709_v9 = vand.u32 4294901760, %v708_v8 }
  0xf2   :  { %23924 = vmatprep.subr.mxu0 %v26594_v38 }
  0xf3   :  { %v710_v10 = vsub.f32 %v708_v8, %v709_v9  ;;  %v1668_v8 = vand.u32 4294901760, %v26907_v2 }
  0xf4   :  { %23917 = vmatmul.mubr.f32.vlgmr.msra.gmra.mxu0 %v26750_v56 }
  0xf5   :  { %23925 = vmatpush3.msra.mxu0 %v709_v9  ;;  %v711_v11 = vand.u32 4294901760, %v710_v10  ;;  %23926 = vmatprep.mubr.msk.f32.mxu0 %vm26595_vm1, %v26594_v38  ;;  %v26918_v9 = vsub.f32 %v1550_v1, %v26909_v4  ;;  %v1669_v12 = vsub.f32 %v26907_v2, %v1668_v8 }
  0xf6   :  { %23934 = vmatprep.subr.mxu0 %v26594_v38 }
  0xf7   :  { %23910 = vmatpush3.msra.mxu1 %v711_v11  ;;  %v1548_v11 = vld [vmem:[%s31295_s7] sm:$0xff] }
  0xf8   :  { %23912 = vmatmul.mubr.f32.vlgmr.msra.gmra.mxu1 %v26747_v51  ;;  %23919 = vmatprep.subr.mxu1 %v26594_v38 }
  0xf9   :  { %23920 = vmatpush3.msra.mxu1 %v631_v7  ;;  %23921 = vmatprep.mubr.msk.f32.mxu1 %vm26595_vm1, %v26594_v38 }
  0xfa   :  { %23929 = vmatprep.subr.mxu1 %v26594_v38  ;;  %23927 = vmatmul.mubr.f32.vlgmr.msra.gmra.mxu0 %v26747_v51 }
  0xfb   :  { %23942 = vmatprep.mubr.msk.f32.mxu0 %vm26595_vm1, %v26594_v38  ;;  %23935 = vmatpush3.msra.mxu0 %v26792_v13 }
  0xfc   :  { %23922 = vmatmul.mubr.f32.vlgmr.msra.gmra.mxu1 %v26753_v61  ;;  %23936 = vmatprep.subr.mxu0 %v26594_v38 }
  0xfd   :  { %23930 = vmatpush3.msra.mxu1 %v631_v7  ;;  %23931 = vmatprep.mubr.msk.f32.mxu1 %vm26595_vm1, %v26594_v38  ;;  %v1549_v7 = vld [vmem:[%s31295_s7 + $0x8] sm:$0xff] }
  0xfe   :  { %23945 = vmatprep.subr.mxu1 %v26594_v38  ;;  %23937 = vmatpush3.msra.mxu0 %v26800_v16  ;;  %v26920_v10 = vand.u32 4294901760, %v1549_v7 }
  0xff   :  { %23938 = vmatprep.subr.mxu0 %v26594_v38 }
 0x100   :  { %23932 = vmatmul.mubr.f32.vlgmr.msra.gmra.mxu1 %v26747_v51  ;;  %23939 = vmatpush3.msra.mxu0 %v26811_v20  ;;  %v26932_v14 = vsub.f32 %v1549_v7, %v26920_v10 }
 0x101   :  { %23953 = vmatprep.mubr.msk.f32.mxu1 %vm26595_vm1, %v26594_v38  ;;  %23940 = vmatprep.subr.mxu0 %v26594_v38 }
 0x102   :  { %23941 = vmatpush3.msra.mxu0 %v26825_v25  ;;  %23946 = vmatpush3.msra.mxu1 %v1168_v26 }
 0x103   :  { %23956 = vmatprep.subr.mxu0 %v26594_v38  ;;  %23947 = vmatprep.subr.mxu1 %v26594_v38 }
 0x104   :  { %23948 = vmatpush3.msra.mxu1 %v1175_v30 }
 0x105   :  { %23949 = vmatprep.subr.mxu1 %v26594_v38 }
 0x106   :  { %23950 = vmatpush3.msra.mxu1 %v1182_v33 }
 0x107   :  { %23951 = vmatprep.subr.mxu1 %v26594_v38 }
 0x108   :  { %23952 = vmatpush3.msra.mxu1 %v1189_v35 }
 0x109   :  { %23967 = vmatprep.subr.mxu1 %v26594_v38 }
 0x1b0   :  { %v672_v36 = vpop.f32.mrf.mxu0 }
 0x1b2   :  { %v23908_v37 = vpop.f32.mrf.mxu0 }
 0x1b4   :  { %v822_v39 = vpop.f32.mrf.mxu0 }
 0x1b6   :  { %v23918_v40 = vpop.f32.mrf.mxu0 }
 0x1b8   :  { %v748_v41 = vpop.f32.mrf.mxu1 }
 0x1b9   :  { %v749_v42 = vadd.f32 %v748_v41, %v672_v36 }
 0x1ba   :  { %v23913_v43 = vpop.f32.mrf.mxu1  ;;  %v970_v44 = vpop.f32.mrf.mxu0 }
 0x1bb   :  { %v823_v45 = vadd.f32 %v822_v39, %v749_v42 }
 0x1bc   :  { %v896_v46 = vpop.f32.mrf.mxu1  ;;  %v23928_v47 = vpop.f32.mrf.mxu0 }
 0x1bd   :  { %v897_v48 = vadd.f32 %v896_v46, %v823_v45 }
 0x1be   :  { %v23923_v49 = vpop.f32.mrf.mxu1 }
 0x1bf   :  { %v971_v50 = vadd.f32 %v970_v44, %v897_v48  ;;  %v22387_v49 = vld [vmem:[%s31294_s5 + $0x38] sm:$0xff] }
 0x1c0   :  { %v1042_v52 = vpop.f32.mrf.mxu1 }
 0x1c1   :  { %v1043_v53 = vadd.f32 %v1042_v52, %v971_v50  ;;  %v22386_v52 = vld [vmem:[%s31294_s5 + $0x30] sm:$0xff] }
 0x1c2   :  { %v23933_v54 = vpop.f32.mrf.mxu1 }
 0x1c3   :  { %v1058_v55 = vsel %vm61_vm0, %v1043_v53, 0  ;;  %v26972_v54 = vand.u32 4294901760, %v22387_v49 }
 0x1c4   :  { %v1129_v57 = vand.u32 4294901760, %v1058_v55 }
 0x1c6   :  { %v1130_v58 = vsub.f32 %v1058_v55, %v1129_v57  ;;  %23954 = vmatmul.mubr.f32.vlgmr.msra.gmra.mxu1 %v1129_v57  ;;  %v22385_v55 = vld [vmem:[%s31294_s5 + $0x28] sm:$0xff] }
 0x1c7   :  { %23968 = vmatpush3.msra.mxu1 %v26792_v13  ;;  %23975 = vmatprep.mubr.msk.f32.mxu1 %vm26595_vm1, %v26594_v38  ;;  %v26991_v63 = vand.u32 4294901760, %v22385_v55 }
 0x1c8   :  { %23969 = vmatprep.subr.mxu1 %v26594_v38  ;;  %v1131_v59 = vand.u32 4294901760, %v1130_v58 }
 0x1c9   :  { %23970 = vmatpush3.msra.mxu1 %v26800_v16 }
 0x1ca   :  { %23971 = vmatprep.subr.mxu1 %v26594_v38  ;;  %v1132_v60 = vsub.f32 %v1130_v58, %v1131_v59 }
 0x1cb   :  { %23972 = vmatpush3.msra.mxu1 %v26811_v20 }
 0x1cc   :  { %23973 = vmatprep.subr.mxu1 %v26594_v38  ;;  %v1133_v62 = vand.u32 4294901760, %v1132_v60 }
 0x1cd   :  { %23974 = vmatpush3.msra.mxu1 %v26825_v25 }
 0x1ce   :  { %23976 = vmatmul.mubr.f32.vlgmr.msra.gmra.mxu1 %v1131_v59  ;;  %23989 = vmatprep.subr.mxu1 %v26594_v38  ;;  %v22384_v59 = vld [vmem:[%s31294_s5 + $0x20] sm:$0xff] }
 0x1cf   :  { %23943 = vmatmul.mubr.f32.vlgmr.msra.gmra.mxu0 %v1133_v62  ;;  %23990 = vmatpush3.msra.mxu1 %v26792_v13  ;;  %v1675_v13 = vand.u32 4294901760, %v26918_v9  ;;  %v26989_v62 = vsub.f32 %v22387_v49, %v26972_v54 }
 0x1d0   :  { %23957 = vmatpush3.msra.mxu0 %v26798_v15  ;;  %23991 = vmatprep.subr.mxu1 %v26594_v38  ;;  %v26934_v15 = vand.u32 4294901760, %v1548_v11 }
 0x1d1   :  { %23958 = vmatprep.subr.mxu0 %v26594_v38  ;;  %23992 = vmatpush3.msra.mxu1 %v26800_v16  ;;  %v1670_v16 = vand.u32 4294901760, %v1669_v12  ;;  %v1676_v17 = vsub.f32 %v26918_v9, %v1675_v13  ;;  %v2169_v12 = vand.u32 4294901760, %v26989_v62 }
 0x1d2   :  { %23959 = vmatpush3.msra.mxu0 %v26809_v19  ;;  %23993 = vmatprep.subr.mxu1 %v26594_v38  ;;  %v26943_v19 = vsub.f32 %v1548_v11, %v26934_v15  ;;  %v26998_v11 = vand.u32 4294901760, %v22384_v59 }
 0x1d3   :  { %23960 = vmatprep.subr.mxu0 %v26594_v38  ;;  %23994 = vmatpush3.msra.mxu1 %v26811_v20  ;;  %v1677_v20 = vand.u32 4294901760, %v1676_v17 }
 0x1d4   :  { %23961 = vmatpush3.msra.mxu0 %v26823_v24  ;;  %23995 = vmatprep.subr.mxu1 %v26594_v38  ;;  %v1689_v22 = vand.u32 4294901760, %v26943_v19 }
 0x1d5   :  { %23962 = vmatprep.subr.mxu0 %v26594_v38  ;;  %23964 = vmatprep.mubr.msk.f32.mxu0 %vm26595_vm1, %v26594_v38 }
 0x1d6   :  { %23963 = vmatpush3.msra.mxu0 %v26834_v29  ;;  %23996 = vmatpush3.msra.mxu1 %v26825_v25  ;;  %v1690_v24 = vsub.f32 %v26943_v19, %v1689_v22 }
 0x1d7   :  { %23997 = vmatprep.mubr.msk.f32.mxu1 %vm26595_vm1, %v26594_v38  ;;  %23965 = vmatmul.mubr.f32.vlgmr.msra.gmra.mxu0 %v1130_v58  ;;  %v26981_v58 = vand.u32 4294901760, %v22386_v52 }
 0x1d8   :  { %23978 = vmatprep.subr.mxu0 %v26594_v38  ;;  %23998 = vmatmul.mubr.f32.vlgmr.msra.gmra.mxu1 %v1129_v57  ;;  %v1691_v25 = vand.u32 4294901760, %v1690_v24  ;;  %v2061_v24 = vsel %vm61_vm0, %v26757_v3, 0 }
 0x1d9   :  { %23979 = vmatpush3.msra.mxu0 %v1166_v18  ;;  %23986 = vmatprep.mubr.msk.f32.mxu0 %vm26595_vm1, %v26594_v38  ;;  %v1682_v18 = vand.u32 4294901760, %v26932_v14  ;;  %v26996_v7 = vsub.f32 %v22386_v52, %v26981_v58 }
 0x1da   :  { %23980 = vmatprep.subr.mxu0 %v26594_v38  ;;  %24011 = vmatprep.subr.mxu1 %v26594_v38 }
 0x1db   :  { %23981 = vmatpush3.msra.mxu0 %v1173_v23  ;;  %24019 = vmatprep.mubr.msk.f32.mxu1 %vm26595_vm1, %v26594_v38  ;;  %v1683_v21 = vsub.f32 %v26932_v14, %v1682_v18  ;;  %v2176_v17 = vand.u32 4294901760, %v26996_v7 }
 0x1dc   :  { %23982 = vmatprep.subr.mxu0 %v26594_v38  ;;  %24012 = vmatpush3.msra.mxu1 %v1670_v16  ;;  %v27004_v16 = vsub.f32 %v22385_v55, %v26991_v63 }
 0x1dd   :  { %23983 = vmatpush3.msra.mxu0 %v1180_v28  ;;  %24013 = vmatprep.subr.mxu1 %v26594_v38  ;;  %v1684_v23 = vand.u32 4294901760, %v1683_v21 }
 0x1de   :  { %23984 = vmatprep.subr.mxu0 %v26594_v38  ;;  %24014 = vmatpush3.msra.mxu1 %v1677_v20  ;;  %v27011_v20 = vsub.f32 %v22384_v59, %v26998_v11  ;;  %v2183_v21 = vand.u32 4294901760, %v27004_v16 }
 0x1df   :  { %23985 = vmatpush3.msra.mxu0 %v1187_v32  ;;  %24015 = vmatprep.subr.mxu1 %v26594_v38  ;;  %v22382_v32 = vld [vmem:[%s31296_s6] ss:$0 sm:$0xff] }
 0x1e0   :  { %23987 = vmatmul.mubr.f32.vlgmr.msra.gmra.mxu0 %v1129_v57  ;;  %24000 = vmatprep.subr.mxu0 %v26594_v38 }
 0x1e1   :  { %24008 = vmatprep.mubr.msk.f32.mxu0 %vm26595_vm1, %v26594_v38  ;;  %24001 = vmatpush3.msra.mxu0 %v26901_v0 }
 0x1e2   :  { %24002 = vmatprep.subr.mxu0 %v26594_v38  ;;  %24016 = vmatpush3.msra.mxu1 %v1684_v23  ;;  %v2190_v23 = vand.u32 4294901760, %v27011_v20 }
 0x1e3   :  { %24003 = vmatpush3.msra.mxu0 %v26909_v4  ;;  %24017 = vmatprep.subr.mxu1 %v26594_v38 }
 0x1e4   :  { %24004 = vmatprep.subr.mxu0 %v26594_v38  ;;  %24018 = vmatpush3.msra.mxu1 %v1691_v25  ;;  %v2184_v25 = vsub.f32 %v27004_v16, %v2183_v21  ;;  %v2191_v3 = vsub.f32 %v27011_v20, %v2190_v23 }
 0x1e5   :  { %24005 = vmatpush3.msra.mxu0 %v26920_v10  ;;  %24033 = vmatprep.subr.mxu1 %v26594_v38 }
 0x1e6   :  { %24006 = vmatprep.subr.mxu0 %v26594_v38 }
 0x1e7   :  { %24007 = vmatpush3.msra.mxu0 %v26934_v15 }
 0x1e8   :  { %24022 = vmatprep.subr.mxu0 %v26594_v38 }
 0x286   :  { %v1226_v26 = vpop.f32.mrf.mxu1 }
 0x288   :  { %v23955_v27 = vpop.f32.mrf.mxu1 }
 0x289   :  { %v27046_v27 = vand.u32 4294901760, %v2061_v24 }
 0x28e   :  { %v1383_v28 = vpop.f32.mrf.mxu1 }
 0x28f   :  { %v1135_v29 = vpop.f32.mrf.mxu0 }
 0x290   :  { %v23977_v30 = vpop.f32.mrf.mxu1  ;;  %v1136_v33 = vadd.f32 %v22382_v32, %v1135_v29  ;;  %v2133_v29 = vsub.f32 %v2061_v24, %v27046_v27 }
 0x291   :  { %v23944_v31 = vpop.f32.mrf.mxu0  ;;  %v22391_v30 = vld [vmem:[%s31295_s7 + $0x28] sm:$0xff] }
 0x292   :  { %v1227_v36 = vadd.f32 %v1226_v26, %v1136_v33  ;;  %v27154_v33 = vand.u32 4294901760, %v22391_v30 }
 0x297   :  { %v1306_v34 = vpop.f32.mrf.mxu0 }
 0x298   :  { %v1541_v35 = vpop.f32.mrf.mxu1  ;;  %v1307_v40 = vadd.f32 %v1306_v34, %v1227_v36  ;;  %v22390_v34 = vld [vmem:[%s31295_s7 + $0x20] sm:$0xff] }
 0x299   :  { %v23966_v37 = vpop.f32.mrf.mxu0 }
 0x29a   :  { %v23999_v39 = vpop.f32.mrf.mxu1  ;;  %v1384_v41 = vadd.f32 %v1383_v28, %v1307_v40  ;;  %v2192_v28 = vand.u32 4294901760, %v2191_v3  ;;  %v27166_v37 = vsub.f32 %v22391_v30, %v27154_v33 }
 0x29b   :  { %v27168_v39 = vand.u32 4294901760, %v22390_v34 }
 0x2a0   :  { %v1466_v42 = vpop.f32.mrf.mxu0 }
 0x2a1   :  { %v1467_v43 = vadd.f32 %v1466_v42, %v1384_v41  ;;  %v2687_v42 = vand.u32 4294901760, %v27166_v37 }
 0x2a2   :  { %v23988_v44 = vpop.f32.mrf.mxu0 }
 0x2a3   :  { %v1542_v45 = vadd.f32 %v1541_v35, %v1467_v43  ;;  %v27177_v43 = vsub.f32 %v22390_v34, %v27168_v39 }
 0x2a5   :  { %vm1545_vm3 = vcmp.gt.f32.partialorder %v1542_v45, 0.0  ;;  %v1546_v46 = vmul.f32 0.01, %v1542_v45 }
 0x2a7   :  { %v1547_v47 = vsel %vm1545_vm3, %v1542_v45, %v1546_v46  ;;  %v2688_v45 = vsub.f32 %v27166_v37, %v2687_v42  ;;  %v2694_v46 = vand.u32 4294901760, %v27177_v43 }
 0x2a8   :  { %v1560_v48 = vsel %vm61_vm0, %v1547_v47, 0 }
 0x2a9   :  { %v26965_v50 = vand.u32 4294901760, %v1560_v48  ;;  %v2689_v47 = vand.u32 4294901760, %v2688_v45 }
 0x2ab   :  { %24020 = vmatmul.mubr.f32.vlgmr.msra.gmra.mxu1 %v26965_v50  ;;  %v1632_v53 = vsub.f32 %v1560_v48, %v26965_v50  ;;  %v2695_v48 = vsub.f32 %v27177_v43, %v2694_v46 }
 0x2ac   :  { %24034 = vmatpush3.msra.mxu1 %v26901_v0  ;;  %24041 = vmatprep.mubr.msk.f32.mxu1 %vm26595_vm1, %v26594_v38 }
 0x2ad   :  { %24035 = vmatprep.subr.mxu1 %v26594_v38  ;;  %v1633_v57 = vand.u32 4294901760, %v1632_v53  ;;  %v2696_v49 = vand.u32 4294901760, %v2695_v48 }
 0x2ae   :  { %24036 = vmatpush3.msra.mxu1 %v26909_v4 }
 0x2af   :  { %24037 = vmatprep.subr.mxu1 %v26594_v38  ;;  %v1634_v60 = vsub.f32 %v1632_v53, %v1633_v57 }
 0x2b0   :  { %24038 = vmatpush3.msra.mxu1 %v26920_v10 }
 0x2b1   :  { %24039 = vmatprep.subr.mxu1 %v26594_v38  ;;  %v1635_v1 = vand.u32 4294901760, %v1634_v60 }
 0x2b2   :  { %24040 = vmatpush3.msra.mxu1 %v26934_v15 }
 0x2b3   :  { %24042 = vmatmul.mubr.f32.vlgmr.msra.gmra.mxu1 %v1633_v57  ;;  %24055 = vmatprep.subr.mxu1 %v26594_v38 }
 0x2b4   :  { %24009 = vmatmul.mubr.f32.vlgmr.msra.gmra.mxu0 %v1635_v1  ;;  %24056 = vmatpush3.msra.mxu1 %v26901_v0  ;;  %v2170_v0 = vsub.f32 %v26989_v62, %v2169_v12 }
 0x2b5   :  { %24023 = vmatpush3.msra.mxu0 %v26907_v2  ;;  %24057 = vmatprep.subr.mxu1 %v26594_v38  ;;  %v2134_v2 = vand.u32 4294901760, %v2133_v29 }
 0x2b6   :  { %24024 = vmatprep.subr.mxu0 %v26594_v38  ;;  %24058 = vmatpush3.msra.mxu1 %v26909_v4  ;;  %v2177_v4 = vsub.f32 %v26996_v7, %v2176_v17 }
 0x2b7   :  { %24025 = vmatpush3.msra.mxu0 %v26918_v9  ;;  %24059 = vmatprep.subr.mxu1 %v26594_v38 }
 0x2b8   :  { %24026 = vmatprep.subr.mxu0 %v26594_v38  ;;  %24060 = vmatpush3.msra.mxu1 %v26920_v10  ;;  %v2171_v10 = vand.u32 4294901760, %v2170_v0  ;;  %v2178_v26 = vand.u32 4294901760, %v2177_v4 }
 0x2b9   :  { %24027 = vmatpush3.msra.mxu0 %v26932_v14  ;;  %24061 = vmatprep.subr.mxu1 %v26594_v38 }
 0x2ba   :  { %24028 = vmatprep.subr.mxu0 %v26594_v38  ;;  %24030 = vmatprep.mubr.msk.f32.mxu0 %vm26595_vm1, %v26594_v38 }
 0x2bb   :  { %24029 = vmatpush3.msra.mxu0 %v26943_v19  ;;  %24062 = vmatpush3.msra.mxu1 %v26934_v15  ;;  %v2185_v15 = vand.u32 4294901760, %v2184_v25 }
 0x2bc   :  { %24063 = vmatprep.mubr.msk.f32.mxu1 %vm26595_vm1, %v26594_v38  ;;  %24031 = vmatmul.mubr.f32.vlgmr.msra.gmra.mxu0 %v1632_v53  ;;  %v22383_v53 = vld [vmem:[%s31297_s8] ss:$0 sm:$0xff] }
 0x2bd   :  { %24044 = vmatprep.subr.mxu0 %v26594_v38  ;;  %24064 = vmatmul.mubr.f32.vlgmr.msra.gmra.mxu1 %v26965_v50 }
 0x2be   :  { %24077 = vmatprep.subr.mxu1 %v26594_v38  ;;  %24045 = vmatpush3.msra.mxu0 %v1668_v8  ;;  %v2135_v8 = vsub.f32 %v2133_v29, %v2134_v2 }
 0x2bf   :  { %24078 = vmatpush3.msra.mxu1 %v2171_v10  ;;  %24046 = vmatprep.subr.mxu0 %v26594_v38 }
 0x2c0   :  { %24079 = vmatprep.subr.mxu1 %v26594_v38  ;;  %24047 = vmatpush3.msra.mxu0 %v1675_v13  ;;  %v2136_v9 = vand.u32 4294901760, %v2135_v8  ;;  %v22393_v13 = vld [vmem:[%s31295_s7 + $0x38] sm:$0xff] }
 0x2c1   :  { %24080 = vmatpush3.msra.mxu1 %v2178_v26  ;;  %24048 = vmatprep.subr.mxu0 %v26594_v38  ;;  %v27135_v14 = vand.u32 4294901760, %v22393_v13  ;;  %v22389_v26 = vld [vmem:[%s31296_s6 + $0x1] ss:$0 sm:$0xff] }
 0x2c2   :  { %24081 = vmatprep.subr.mxu1 %v26594_v38  ;;  %24049 = vmatpush3.msra.mxu0 %v1682_v18  ;;  %v22392_v18 = vld [vmem:[%s31295_s7 + $0x30] sm:$0xff] }
 0x2c3   :  { %24082 = vmatpush3.msra.mxu1 %v2185_v15  ;;  %24050 = vmatprep.subr.mxu0 %v26594_v38  ;;  %v27141_v19 = vsub.f32 %v22393_v13, %v27135_v14 }
 0x2c4   :  { %24083 = vmatprep.subr.mxu1 %v26594_v38  ;;  %24051 = vmatpush3.msra.mxu0 %v1689_v22  ;;  %v27143_v22 = vand.u32 4294901760, %v22392_v18 }
 0x2c5   :  { %24052 = vmatprep.mubr.msk.f32.mxu0 %vm26595_vm1, %v26594_v38  ;;  %24084 = vmatpush3.msra.mxu1 %v2192_v28  ;;  %v2673_v31 = vand.u32 4294901760, %v27141_v19 }
 0x2c6   :  { %24085 = vmatprep.mubr.msk.f32.mxu1 %vm26595_vm1, %v26594_v38  ;;  %24053 = vmatmul.mubr.f32.vlgmr.msra.gmra.mxu0 %v26965_v50  ;;  %v27152_v32 = vsub.f32 %v22392_v18, %v27143_v22 }
 0x2c7   :  { %24066 = vmatprep.subr.mxu0 %v26594_v38  ;;  %24086 = vmatmul.mubr.f32.vlgmr.msra.gmra.mxu1 %v27046_v27  ;;  %v2674_v35 = vsub.f32 %v27141_v19, %v2673_v31 }
 0x2c8   :  { %24099 = vmatprep.subr.mxu1 %v26594_v38  ;;  %24067 = vmatpush3.msra.mxu0 %v26972_v54  ;;  %v2680_v36 = vand.u32 4294901760, %v27152_v32 }
 0x2c9   :  { %24100 = vmatpush3.msra.mxu1 %v26972_v54  ;;  %24068 = vmatprep.subr.mxu0 %v26594_v38  ;;  %v2675_v40 = vand.u32 4294901760, %v2674_v35 }
 0x2ca   :  { %24101 = vmatprep.subr.mxu1 %v26594_v38  ;;  %24069 = vmatpush3.msra.mxu0 %v26981_v58  ;;  %v2681_v41 = vsub.f32 %v27152_v32, %v2680_v36 }
 0x2cb   :  { %24102 = vmatpush3.msra.mxu1 %v26981_v58  ;;  %24070 = vmatprep.subr.mxu0 %v26594_v38 }
 0x2cc   :  { %24103 = vmatprep.subr.mxu1 %v26594_v38  ;;  %24071 = vmatpush3.msra.mxu0 %v26991_v63  ;;  %v2682_v44 = vand.u32 4294901760, %v2681_v41 }
 0x2cd   :  { %24104 = vmatpush3.msra.mxu1 %v26991_v63  ;;  %24072 = vmatprep.subr.mxu0 %v26594_v38 }
 0x2ce   :  { %24105 = vmatprep.subr.mxu1 %v26594_v38  ;;  %24073 = vmatpush3.msra.mxu0 %v26998_v11 }
 0x2cf   :  { %24074 = vmatprep.mubr.msk.f32.mxu0 %vm26595_vm1, %v26594_v38  ;;  %24106 = vmatpush3.msra.mxu1 %v26998_v11 }
 0x2d0   :  { %24107 = vmatprep.mubr.msk.f32.mxu1 %vm26595_vm1, %v26594_v38  ;;  %24075 = vmatmul.mubr.f32.vlgmr.msra.gmra.mxu0 %v2136_v9 }
 0x2d1   :  { %24088 = vmatprep.subr.mxu0 %v26594_v38  ;;  %24108 = vmatmul.mubr.f32.vlgmr.msra.gmra.mxu1 %v2134_v2 }
 0x2d2   :  { %24121 = vmatprep.subr.mxu1 %v26594_v38  ;;  %24089 = vmatpush3.msra.mxu0 %v26989_v62 }
 0x2d3   :  { %24122 = vmatpush3.msra.mxu1 %v26972_v54  ;;  %24090 = vmatprep.subr.mxu0 %v26594_v38 }
 0x2d4   :  { %24123 = vmatprep.subr.mxu1 %v26594_v38  ;;  %24091 = vmatpush3.msra.mxu0 %v26996_v7 }
 0x2d5   :  { %24124 = vmatpush3.msra.mxu1 %v26981_v58  ;;  %24092 = vmatprep.subr.mxu0 %v26594_v38 }
 0x2d6   :  { %24125 = vmatprep.subr.mxu1 %v26594_v38  ;;  %24093 = vmatpush3.msra.mxu0 %v27004_v16 }
 0x2d7   :  { %24126 = vmatpush3.msra.mxu1 %v26991_v63  ;;  %24094 = vmatprep.subr.mxu0 %v26594_v38 }
 0x2d8   :  { %24127 = vmatprep.subr.mxu1 %v26594_v38  ;;  %24095 = vmatpush3.msra.mxu0 %v27011_v20 }
 0x2d9   :  { %24096 = vmatprep.mubr.msk.f32.mxu0 %vm26595_vm1, %v26594_v38  ;;  %24128 = vmatpush3.msra.mxu1 %v26998_v11 }
 0x2da   :  { %24129 = vmatprep.mubr.msk.f32.mxu1 %vm26595_vm1, %v26594_v38  ;;  %24097 = vmatmul.mubr.f32.vlgmr.msra.gmra.mxu0 %v2133_v29 }
 0x2db   :  { %24110 = vmatprep.subr.mxu0 %v26594_v38  ;;  %24130 = vmatmul.mubr.f32.vlgmr.msra.gmra.mxu1 %v27046_v27 }
 0x2dc   :  { %24111 = vmatpush3.msra.mxu0 %v2169_v12  ;;  %24118 = vmatprep.mubr.msk.f32.mxu0 %vm26595_vm1, %v26594_v38 }
 0x2dd   :  { %24112 = vmatprep.subr.mxu0 %v26594_v38  ;;  %24143 = vmatprep.subr.mxu1 %v26594_v38 }
 0x2de   :  { %24113 = vmatpush3.msra.mxu0 %v2176_v17  ;;  %24151 = vmatprep.mubr.msk.f32.mxu1 %vm26595_vm1, %v26594_v38 }
 0x2df   :  { %24114 = vmatprep.subr.mxu0 %v26594_v38  ;;  %24144 = vmatpush3.msra.mxu1 %v2675_v40 }
 0x2e0   :  { %24115 = vmatpush3.msra.mxu0 %v2183_v21  ;;  %24145 = vmatprep.subr.mxu1 %v26594_v38 }
 0x2e1   :  { %24116 = vmatprep.subr.mxu0 %v26594_v38  ;;  %24146 = vmatpush3.msra.mxu1 %v2682_v44 }
 0x2e2   :  { %24117 = vmatpush3.msra.mxu0 %v2190_v23  ;;  %24147 = vmatprep.subr.mxu1 %v26594_v38 }
 0x2e3   :  { %24119 = vmatmul.mubr.f32.vlgmr.msra.gmra.mxu0 %v27046_v27  ;;  %24132 = vmatprep.subr.mxu0 %v26594_v38 }
 0x2e4   :  { %24140 = vmatprep.mubr.msk.f32.mxu0 %vm26595_vm1, %v26594_v38  ;;  %24133 = vmatpush3.msra.mxu0 %v27135_v14 }
 0x2e5   :  { %24134 = vmatprep.subr.mxu0 %v26594_v38  ;;  %24148 = vmatpush3.msra.mxu1 %v2689_v47 }
 0x2e6   :  { %24135 = vmatpush3.msra.mxu0 %v27143_v22  ;;  %24149 = vmatprep.subr.mxu1 %v26594_v38 }
 0x2e7   :  { %24136 = vmatprep.subr.mxu0 %v26594_v38  ;;  %24150 = vmatpush3.msra.mxu1 %v2696_v49 }
 0x2e8   :  { %24137 = vmatpush3.msra.mxu0 %v27154_v33  ;;  %24165 = vmatprep.subr.mxu1 %v26594_v38 }
 0x2e9   :  { %24138 = vmatprep.subr.mxu0 %v26594_v38 }
 0x2ea   :  { %24139 = vmatpush3.msra.mxu0 %v27168_v39 }
 0x2eb   :  { %24154 = vmatprep.subr.mxu0 %v26594_v38 }
 0x36b   :  { %v1728_v50 = vpop.f32.mrf.mxu1 }
 0x36d   :  { %v24021_v52 = vpop.f32.mrf.mxu1 }
 0x373   :  { %v1885_v54 = vpop.f32.mrf.mxu1 }
 0x374   :  { %v1637_v55 = vpop.f32.mrf.mxu0 }
 0x375   :  { %v1638_v57 = vadd.f32 %v22383_v53, %v1637_v55  ;;  %v24043_v58 = vpop.f32.mrf.mxu1 }
 0x376   :  { %v24010_v59 = vpop.f32.mrf.mxu0 }
 0x377   :  { %v1729_v60 = vadd.f32 %v1728_v50, %v1638_v57 }
 0x37c   :  { %v1808_v62 = vpop.f32.mrf.mxu0 }
 0x37d   :  { %v1809_v63 = vadd.f32 %v1808_v62, %v1729_v60  ;;  %v2043_v1 = vpop.f32.mrf.mxu1 }
 0x37e   :  { %v24032_v7 = vpop.f32.mrf.mxu0 }
 0x37f   :  { %v24065_v11 = vpop.f32.mrf.mxu1  ;;  %v1886_v12 = vadd.f32 %v1885_v54, %v1809_v63 }
 0x386   :  { %v1968_v16 = vpop.f32.mrf.mxu0 }
 0x387   :  { %v1969_v17 = vadd.f32 %v1968_v16, %v1886_v12  ;;  %v2229_v20 = vpop.f32.mrf.mxu1 }
 0x388   :  { %v24054_v0 = vpop.f32.mrf.mxu0 }
 0x389   :  { %v27195_v21 = vadd.f32 %v2043_v1, %v1969_v17  ;;  %v24087_v4 = vpop.f32.mrf.mxu1  ;;  %v22395_v0 = vld [vmem:[%s31297_s8 + $0x1] ss:$0 sm:$0xff] }
 0x390   :  { %v2138_v23 = vpop.f32.mrf.mxu0 }
 0x391   :  { %v2386_v24 = vpop.f32.mrf.mxu1  ;;  %v2139_v3 = vadd.f32 %v22389_v26, %v2138_v23 }
 0x392   :  { %v24076_v10 = vpop.f32.mrf.mxu0 }
 0x393   :  { %v24109_v25 = vpop.f32.mrf.mxu1  ;;  %v2230_v28 = vadd.f32 %v2229_v20, %v2139_v3 }
 0x39a   :  { %v2309_v27 = vpop.f32.mrf.mxu0 }
 0x39b   :  { %v2544_v15 = vpop.f32.mrf.mxu1  ;;  %v2310_v8 = vadd.f32 %v2309_v27, %v2230_v28 }
 0x39c   :  { %v24098_v29 = vpop.f32.mrf.mxu0 }
 0x39d   :  { %v24131_v2 = vpop.f32.mrf.mxu1  ;;  %v2387_v9 = vadd.f32 %v2386_v24, %v2310_v8 }
 0x3a3   :  { %v2469_v13 = vpop.f32.mrf.mxu0 }
 0x3a4   :  { %v2470_v18 = vadd.f32 %v2469_v13, %v2387_v9 }
 0x3a5   :  { %v24120_v30 = vpop.f32.mrf.mxu0 }
 0x3a6   :  { %v2545_v34 = vadd.f32 %v2544_v15, %v2470_v18 }
 0x3a8   :  { %vm2548_vm4 = vcmp.gt.f32.partialorder %v2545_v34, 0.0  ;;  %v2549_v35 = vmul.f32 0.01, %v2545_v34 }
 0x3aa   :  { %v2550_v40 = vsel %vm2548_vm4, %v2545_v34, %v2549_v35  ;;  %v22405_v35 = vld [vmem:[%s31295_s7 + $0x58] sm:$0xff] }
 0x3ab   :  { %v2565_v41 = vsel %vm61_vm0, %v2550_v40, 0  ;;  %v27365_v40 = vand.u32 4294901760, %v22405_v35 }
 0x3ac   :  { %v2636_v44 = vand.u32 4294901760, %v2565_v41 }
 0x3ae   :  { %24152 = vmatmul.mubr.f32.vlgmr.msra.gmra.mxu1 %v2636_v44  ;;  %v2637_v45 = vsub.f32 %v2565_v41, %v2636_v44  ;;  %v22404_v41 = vld [vmem:[%s31295_s7 + $0x50] sm:$0xff] }
 0x3af   :  { %24166 = vmatpush3.msra.mxu1 %v27135_v14  ;;  %24173 = vmatprep.mubr.msk.f32.mxu1 %vm26595_vm1, %v26594_v38 }
 0x3b0   :  { %24167 = vmatprep.subr.mxu1 %v26594_v38  ;;  %v2638_v47 = vand.u32 4294901760, %v2637_v45 }
 0x3b1   :  { %24168 = vmatpush3.msra.mxu1 %v27143_v22 }
 0x3b2   :  { %24169 = vmatprep.subr.mxu1 %v26594_v38  ;;  %v2639_v48 = vsub.f32 %v2637_v45, %v2638_v47 }
 0x3b3   :  { %24170 = vmatpush3.msra.mxu1 %v27154_v33 }
 0x3b4   :  { %24171 = vmatprep.subr.mxu1 %v26594_v38  ;;  %v2640_v49 = vand.u32 4294901760, %v2639_v48 }
 0x3b5   :  { %24172 = vmatpush3.msra.mxu1 %v27168_v39 }
 0x3b6   :  { %24174 = vmatmul.mubr.f32.vlgmr.msra.gmra.mxu1 %v2638_v47  ;;  %24187 = vmatprep.subr.mxu1 %v26594_v38  ;;  %v22403_v47 = vld [vmem:[%s31295_s7 + $0x48] sm:$0xff] }
 0x3b7   :  { %24141 = vmatmul.mubr.f32.vlgmr.msra.gmra.mxu0 %v2640_v49  ;;  %24188 = vmatpush3.msra.mxu1 %v27135_v14  ;;  %v22399_v14 = vld [vmem:[%s31294_s5 + $0x58] sm:$0xff] }
 0x3b8   :  { %24155 = vmatpush3.msra.mxu0 %v27141_v19  ;;  %24189 = vmatprep.subr.mxu1 %v26594_v38  ;;  %v27252_v19 = vand.u32 4294901760, %v22399_v14 }
 0x3b9   :  { %24156 = vmatprep.subr.mxu0 %v26594_v38  ;;  %24190 = vmatpush3.msra.mxu1 %v27143_v22  ;;  %v22398_v22 = vld [vmem:[%s31294_s5 + $0x50] sm:$0xff] }
 0x3ba   :  { %24157 = vmatpush3.msra.mxu0 %v27152_v32  ;;  %24191 = vmatprep.subr.mxu1 %v26594_v38  ;;  %v27260_v32 = vand.u32 4294901760, %v22398_v22 }
 0x3bb   :  { %24158 = vmatprep.subr.mxu0 %v26594_v38  ;;  %24192 = vmatpush3.msra.mxu1 %v27154_v33  ;;  %v22397_v33 = vld [vmem:[%s31294_s5 + $0x48] sm:$0xff] }
 0x3bc   :  { %24159 = vmatpush3.msra.mxu0 %v27166_v37  ;;  %24193 = vmatprep.subr.mxu1 %v26594_v38  ;;  %v27269_v37 = vsub.f32 %v22398_v22, %v27260_v32 }
 0x3bd   :  { %24160 = vmatprep.subr.mxu0 %v26594_v38  ;;  %24162 = vmatprep.mubr.msk.f32.mxu0 %vm26595_vm1, %v26594_v38 }
 0x3be   :  { %24161 = vmatpush3.msra.mxu0 %v27177_v43  ;;  %24194 = vmatpush3.msra.mxu1 %v27168_v39  ;;  %v27271_v39 = vand.u32 4294901760, %v22397_v33 }
 0x3bf   :  { %24195 = vmatprep.mubr.msk.f32.mxu1 %vm26595_vm1, %v26594_v38  ;;  %24163 = vmatmul.mubr.f32.vlgmr.msra.gmra.mxu0 %v2637_v45  ;;  %v27373_v45 = vand.u32 4294901760, %v22404_v41 }
 0x3c0   :  { %24176 = vmatprep.subr.mxu0 %v26594_v38  ;;  %24196 = vmatmul.mubr.f32.vlgmr.msra.gmra.mxu1 %v2636_v44  ;;  %v27283_v50 = vsub.f32 %v22397_v33, %v27271_v39 }
 0x3c1   :  { %24177 = vmatpush3.msra.mxu0 %v2673_v31  ;;  %24184 = vmatprep.mubr.msk.f32.mxu0 %vm26595_vm1, %v26594_v38  ;;  %v27258_v31 = vsub.f32 %v22399_v14, %v27252_v19  ;;  %v27382_v49 = vsub.f32 %v22404_v41, %v27373_v45  ;;  %v27384_v14 = vand.u32 4294901760, %v22403_v47 }
 0x3c2   :  { %24178 = vmatprep.subr.mxu0 %v26594_v38  ;;  %24209 = vmatprep.subr.mxu1 %v26594_v38  ;;  %v3189_v55 = vand.u32 4294901760, %v27283_v50 }
 0x3c3   :  { %24179 = vmatpush3.msra.mxu0 %v2680_v36  ;;  %24217 = vmatprep.mubr.msk.f32.mxu1 %vm26595_vm1, %v26594_v38  ;;  %v3175_v36 = vand.u32 4294901760, %v27258_v31 }
 0x3c4   :  { %24180 = vmatprep.subr.mxu0 %v26594_v38  ;;  %v3190_v59 = vsub.f32 %v27283_v50, %v3189_v55 }
 0x3c5   :  { %24181 = vmatpush3.msra.mxu0 %v2687_v42  ;;  %v22396_v42 = vld [vmem:[%s31294_s5 + $0x40] sm:$0xff]  ;;  %v3176_v43 = vsub.f32 %v27258_v31, %v3175_v36 }
 0x3c6   :  { %24182 = vmatprep.subr.mxu0 %v26594_v38  ;;  %v27285_v52 = vand.u32 4294901760, %v22396_v42  ;;  %v3191_v62 = vand.u32 4294901760, %v3190_v59 }
 0x3c7   :  { %24183 = vmatpush3.msra.mxu0 %v2694_v46  ;;  %v3182_v46 = vand.u32 4294901760, %v27269_v37  ;;  %v3177_v53 = vand.u32 4294901760, %v3176_v43 }
 0x3c8   :  { %24185 = vmatmul.mubr.f32.vlgmr.msra.gmra.mxu0 %v2636_v44  ;;  %24198 = vmatprep.subr.mxu0 %v26594_v38  ;;  %v27294_v57 = vsub.f32 %v22396_v42, %v27285_v52  ;;  %v27371_v44 = vsub.f32 %v22405_v35, %v27365_v40 }
 0x3c9   :  { %24206 = vmatprep.mubr.msk.f32.mxu0 %vm26595_vm1, %v26594_v38  ;;  %24199 = vmatpush3.msra.mxu0 %v27252_v19  ;;  %v3183_v54 = vsub.f32 %v27269_v37, %v3182_v46 }
 0x3ca   :  { %24200 = vmatprep.subr.mxu0 %v26594_v38  ;;  %24210 = vmatpush3.msra.mxu1 %v3177_v53  ;;  %v3196_v60 = vand.u32 4294901760, %v27294_v57  ;;  %v3679_v48 = vand.u32 4294901760, %v27371_v44 }
 0x3cb   :  { %24201 = vmatpush3.msra.mxu0 %v27260_v32  ;;  %v3184_v58 = vand.u32 4294901760, %v3183_v54  ;;  %24211 = vmatprep.subr.mxu1 %v26594_v38 }
 0x3cc   :  { %24202 = vmatprep.subr.mxu0 %v26594_v38  ;;  %v3197_v63 = vsub.f32 %v27294_v57, %v3196_v60  ;;  %v3680_v22 = vsub.f32 %v27371_v44, %v3679_v48 }
 0x3cd   :  { %24203 = vmatpush3.msra.mxu0 %v27271_v39  ;;  %24212 = vmatpush3.msra.mxu1 %v3184_v58 }
 0x3ce   :  { %24204 = vmatprep.subr.mxu0 %v26594_v38  ;;  %24213 = vmatprep.subr.mxu1 %v26594_v38  ;;  %v3198_v1 = vand.u32 4294901760, %v3197_v63  ;;  %v22401_v63 = vld [vmem:[%s31296_s6 + $0x2] ss:$0 sm:$0xff] }
 0x3cf   :  { %24205 = vmatpush3.msra.mxu0 %v27285_v52  ;;  %24214 = vmatpush3.msra.mxu1 %v3191_v62 }
 0x3d0   :  { %24220 = vmatprep.subr.mxu0 %v26594_v38  ;;  %24215 = vmatprep.subr.mxu1 %v26594_v38 }
 0x3d1   :  { %24216 = vmatpush3.msra.mxu1 %v3198_v1 }
 0x3d2   :  { %24231 = vmatprep.subr.mxu1 %v26594_v38 }
 0x46e   :  { %v2733_v7 = vpop.f32.mrf.mxu1 }
 0x470   :  { %v24153_v11 = vpop.f32.mrf.mxu1 }
 0x476   :  { %v2890_v12 = vpop.f32.mrf.mxu1 }
 0x477   :  { %v2642_v16 = vpop.f32.mrf.mxu0 }
 0x478   :  { %v24175_v17 = vpop.f32.mrf.mxu1  ;;  %v2643_v4 = vadd.f32 %v22395_v0, %v2642_v16 }
 0x479   :  { %v24142_v20 = vpop.f32.mrf.mxu0 }
 0x47a   :  { %v2734_v10 = vadd.f32 %v2733_v7, %v2643_v4 }
 0x47f   :  { %v2813_v23 = vpop.f32.mrf.mxu0 }
 0x480   :  { %v3048_v24 = vpop.f32.mrf.mxu1  ;;  %v2814_v3 = vadd.f32 %v2813_v23, %v2734_v10 }
 0x481   :  { %v24164_v25 = vpop.f32.mrf.mxu0 }
 0x482   :  { %v24197_v26 = vpop.f32.mrf.mxu1  ;;  %v2891_v27 = vadd.f32 %v2890_v12, %v2814_v3 }
 0x488   :  { %v2973_v15 = vpop.f32.mrf.mxu0 }
 0x489   :  { %v2974_v28 = vadd.f32 %v2973_v15, %v2891_v27 }
 0x48a   :  { %v24186_v29 = vpop.f32.mrf.mxu0 }
 0x48b   :  { %v3049_v2 = vadd.f32 %v3048_v24, %v2974_v28 }
 0x48d   :  { %v3052_v8 = vadd.f32 %v3049_v2, %v27195_v21 }
 0x48f   :  { %v3067_v9 = vsel %vm61_vm0, %v3052_v8, 0 }
 0x490   :  { %v3138_v13 = vand.u32 4294901760, %v3067_v9 }
 0x492   :  { %v3139_v18 = vsub.f32 %v3067_v9, %v3138_v13  ;;  %24218 = vmatmul.mubr.f32.vlgmr.msra.gmra.mxu1 %v3138_v13 }
 0x493   :  { %24232 = vmatpush3.msra.mxu1 %v27252_v19  ;;  %24239 = vmatprep.mubr.msk.f32.mxu1 %vm26595_vm1, %v26594_v38 }
 0x494   :  { %24233 = vmatprep.subr.mxu1 %v26594_v38  ;;  %v3140_v30 = vand.u32 4294901760, %v3139_v18 }
 0x495   :  { %24234 = vmatpush3.msra.mxu1 %v27260_v32 }
 0x496   :  { %24235 = vmatprep.subr.mxu1 %v26594_v38  ;;  %v3141_v34 = vsub.f32 %v3139_v18, %v3140_v30 }
 0x497   :  { %24236 = vmatpush3.msra.mxu1 %v27271_v39 }
 0x498   :  { %24237 = vmatprep.subr.mxu1 %v26594_v38  ;;  %v3142_v21 = vand.u32 4294901760, %v3141_v34 }
 0x499   :  { %24238 = vmatpush3.msra.mxu1 %v27285_v52 }
 0x49a   :  { %24240 = vmatmul.mubr.f32.vlgmr.msra.gmra.mxu1 %v3140_v30  ;;  %24253 = vmatprep.subr.mxu1 %v26594_v38 }
 0x49b   :  { %24207 = vmatmul.mubr.f32.vlgmr.msra.gmra.mxu0 %v3142_v21  ;;  %24254 = vmatpush3.msra.mxu1 %v27252_v19  ;;  %v22402_v19 = vld [vmem:[%s31295_s7 + $0x40] sm:$0xff] }
 0x49c   :  { %24221 = vmatpush3.msra.mxu0 %v27258_v31  ;;  %24255 = vmatprep.subr.mxu1 %v26594_v38  ;;  %v3686_v31 = vand.u32 4294901760, %v27382_v49  ;;  %v27398_v33 = vand.u32 4294901760, %v22402_v19 }
 0x49d   :  { %24222 = vmatprep.subr.mxu0 %v26594_v38  ;;  %24256 = vmatpush3.msra.mxu1 %v27260_v32  ;;  %v27396_v32 = vsub.f32 %v22403_v47, %v27384_v14 }
 0x49e   :  { %24223 = vmatpush3.msra.mxu0 %v27269_v37  ;;  %24257 = vmatprep.subr.mxu1 %v26594_v38  ;;  %v3687_v37 = vsub.f32 %v27382_v49, %v3686_v31  ;;  %v27407_v42 = vsub.f32 %v22402_v19, %v27398_v33 }
 0x49f   :  { %24224 = vmatprep.subr.mxu0 %v26594_v38  ;;  %24258 = vmatpush3.msra.mxu1 %v27271_v39  ;;  %v3693_v39 = vand.u32 4294901760, %v27396_v32 }
 0x4a0   :  { %24225 = vmatpush3.msra.mxu0 %v27283_v50  ;;  %24259 = vmatprep.subr.mxu1 %v26594_v38  ;;  %v3688_v43 = vand.u32 4294901760, %v3687_v37  ;;  %v3700_v50 = vand.u32 4294901760, %v27407_v42 }
 0x4a1   :  { %24226 = vmatprep.subr.mxu0 %v26594_v38  ;;  %24228 = vmatprep.mubr.msk.f32.mxu0 %vm26595_vm1, %v26594_v38 }
 0x4a2   :  { %24227 = vmatpush3.msra.mxu0 %v27294_v57  ;;  %24260 = vmatpush3.msra.mxu1 %v27285_v52  ;;  %v3701_v53 = vsub.f32 %v27407_v42, %v3700_v50 }
 0x4a3   :  { %24261 = vmatprep.mubr.msk.f32.mxu1 %vm26595_vm1, %v26594_v38  ;;  %24229 = vmatmul.mubr.f32.vlgmr.msra.gmra.mxu0 %v3139_v18  ;;  %v47_v18 = vld [vmem:[%s31298_s1] sm:$0xff] }
 0x4a4   :  { %24242 = vmatprep.subr.mxu0 %v26594_v38  ;;  %24262 = vmatmul.mubr.f32.vlgmr.msra.gmra.mxu1 %v3138_v13  ;;  %v3702_v54 = vand.u32 4294901760, %v3701_v53  ;;  %v4059_v35 = vsel %vm596_vm2, %v47_v18, 0 }
 0x4a5   :  { %24243 = vmatpush3.msra.mxu0 %v3175_v36  ;;  %24250 = vmatprep.mubr.msk.f32.mxu0 %vm26595_vm1, %v26594_v38  ;;  %v3681_v36 = vand.u32 4294901760, %v3680_v22  ;;  %v27481_v41 = vand.u32 4294901760, %v4059_v35 }
 0x4a6   :  { %24244 = vmatprep.subr.mxu0 %v26594_v38  ;;  %24275 = vmatprep.subr.mxu1 %v26594_v38 }
 0x4a7   :  { %24245 = vmatpush3.msra.mxu0 %v3182_v46  ;;  %24283 = vmatprep.mubr.msk.f32.mxu1 %vm26595_vm1, %v26594_v38  ;;  %v3694_v46 = vsub.f32 %v27396_v32, %v3693_v39 }
 0x4a8   :  { %24246 = vmatprep.subr.mxu0 %v26594_v38  ;;  %24276 = vmatpush3.msra.mxu1 %v3681_v36 }
 0x4a9   :  { %24247 = vmatpush3.msra.mxu0 %v3189_v55  ;;  %24277 = vmatprep.subr.mxu1 %v26594_v38  ;;  %v3695_v52 = vand.u32 4294901760, %v3694_v46 }
 0x4aa   :  { %24248 = vmatprep.subr.mxu0 %v26594_v38  ;;  %24278 = vmatpush3.msra.mxu1 %v3688_v43 }
 0x4ab   :  { %24249 = vmatpush3.msra.mxu0 %v3196_v60  ;;  %24279 = vmatprep.subr.mxu1 %v26594_v38 }
 0x4ac   :  { %24251 = vmatmul.mubr.f32.vlgmr.msra.gmra.mxu0 %v3138_v13  ;;  %24264 = vmatprep.subr.mxu0 %v26594_v38 }
 0x4ad   :  { %24272 = vmatprep.mubr.msk.f32.mxu0 %vm26595_vm1, %v26594_v38  ;;  %24265 = vmatpush3.msra.mxu0 %v27365_v40 }
 0x4ae   :  { %24266 = vmatprep.subr.mxu0 %v26594_v38  ;;  %24280 = vmatpush3.msra.mxu1 %v3695_v52 }
 0x4af   :  { %24267 = vmatpush3.msra.mxu0 %v27373_v45  ;;  %24281 = vmatprep.subr.mxu1 %v26594_v38 }
 0x4b0   :  { %24268 = vmatprep.subr.mxu0 %v26594_v38  ;;  %24282 = vmatpush3.msra.mxu1 %v3702_v54 }
 0x4b1   :  { %24269 = vmatpush3.msra.mxu0 %v27384_v14  ;;  %24297 = vmatprep.subr.mxu1 %v26594_v38 }
 0x4b2   :  { %24270 = vmatprep.subr.mxu0 %v26594_v38 }
 0x4b3   :  { %24271 = vmatpush3.msra.mxu0 %v27398_v33 }
 0x4b4   :  { %24286 = vmatprep.subr.mxu0 %v26594_v38 }
 0x552   :  { %v3235_v55 = vpop.f32.mrf.mxu1 }
 0x554   :  { %v24219_v57 = vpop.f32.mrf.mxu1 }
 0x55a   :  { %v3392_v58 = vpop.f32.mrf.mxu1 }
 0x55b   :  { %v3144_v59 = vpop.f32.mrf.mxu0 }
 0x55c   :  { %v24241_v60 = vpop.f32.mrf.mxu1  ;;  %v3145_v1 = vadd.f32 %v22401_v63, %v3144_v59 }
 0x55d   :  { %v24208_v62 = vpop.f32.mrf.mxu0 }
 0x55e   :  { %v3236_v12 = vadd.f32 %v3235_v55, %v3145_v1  ;;  %v22411_v55 = vld [vmem:[%s31294_s5 + $0x78] sm:$0xff]  ;;  %v22409_v62 = vld [vmem:[%s31294_s5 + $0x68] sm:$0xff] }
 0x55f   :  { %v27524_v57 = vand.u32 4294901760, %v22411_v55 }
 0x561   :  { %v27530_v59 = vsub.f32 %v22411_v55, %v27524_v57 }
 0x563   :  { %v3315_v7 = vpop.f32.mrf.mxu0  ;;  %v4629_v63 = vand.u32 4294901760, %v27530_v59 }
 0x564   :  { %v3550_v11 = vpop.f32.mrf.mxu1  ;;  %v3316_v20 = vadd.f32 %v3315_v7, %v3236_v12  ;;  %v27543_v7 = vand.u32 4294901760, %v22409_v62 }
 0x565   :  { %v24230_v16 = vpop.f32.mrf.mxu0  ;;  %v4630_v12 = vsub.f32 %v27530_v59, %v4629_v63 }
 0x566   :  { %v24263_v17 = vpop.f32.mrf.mxu1  ;;  %v3393_v0 = vadd.f32 %v3392_v58, %v3316_v20  ;;  %v22410_v58 = vld [vmem:[%s31294_s5 + $0x70] sm:$0xff] }
 0x567   :  { %v27532_v60 = vand.u32 4294901760, %v22410_v58  ;;  %v27555_v17 = vsub.f32 %v22409_v62, %v27543_v7 }
 0x569   :  { %v27541_v1 = vsub.f32 %v22410_v58, %v27532_v60 }
 0x56b   :  { %v4636_v16 = vand.u32 4294901760, %v27541_v1 }
 0x56c   :  { %v3475_v4 = vpop.f32.mrf.mxu0 }
 0x56d   :  { %v3476_v23 = vadd.f32 %v3475_v4, %v3393_v0  ;;  %v4631_v0 = vand.u32 4294901760, %v4630_v12  ;;  %v4637_v4 = vsub.f32 %v27541_v1, %v4636_v16 }
 0x56e   :  { %v24252_v24 = vpop.f32.mrf.mxu0 }
 0x56f   :  { %v3551_v10 = vadd.f32 %v3550_v11, %v3476_v23  ;;  %v22408_v11 = vld [vmem:[%s31294_s5 + $0x60] sm:$0xff]  ;;  %v4643_v23 = vand.u32 4294901760, %v27555_v17 }
 0x570   :  { %v27557_v20 = vand.u32 4294901760, %v22408_v11 }
 0x571   :  { %vm3554_vm5 = vcmp.gt.f32.partialorder %v3551_v10, 0.0  ;;  %v3555_v25 = vmul.f32 0.01, %v3551_v10 }
 0x572   :  { %v27566_v24 = vsub.f32 %v22408_v11, %v27557_v20 }
 0x573   :  { %v3556_v26 = vsel %vm3554_vm5, %v3551_v10, %v3555_v25  ;;  %v4638_v10 = vand.u32 4294901760, %v4637_v4  ;;  %v4644_v25 = vsub.f32 %v27555_v17, %v4643_v23 }
 0x574   :  { %v3571_v3 = vsel %vm61_vm0, %v3556_v26, 0  ;;  %v4650_v26 = vand.u32 4294901760, %v27566_v24 }
 0x575   :  { %v3642_v27 = vand.u32 4294901760, %v3571_v3 }
 0x577   :  { %24284 = vmatmul.mubr.f32.vlgmr.msra.gmra.mxu1 %v3642_v27  ;;  %v3643_v15 = vsub.f32 %v3571_v3, %v3642_v27  ;;  %v4645_v3 = vand.u32 4294901760, %v4644_v25 }
 0x578   :  { %24298 = vmatpush3.msra.mxu1 %v27365_v40  ;;  %24305 = vmatprep.mubr.msk.f32.mxu1 %vm26595_vm1, %v26594_v38 }
 0x579   :  { %24299 = vmatprep.subr.mxu1 %v26594_v38  ;;  %v3644_v28 = vand.u32 4294901760, %v3643_v15 }
 0x57a   :  { %24300 = vmatpush3.msra.mxu1 %v27373_v45 }
 0x57b   :  { %24301 = vmatprep.subr.mxu1 %v26594_v38  ;;  %v3645_v29 = vsub.f32 %v3643_v15, %v3644_v28 }
 0x57c   :  { %24302 = vmatpush3.msra.mxu1 %v27384_v14 }
 0x57d   :  { %24303 = vmatprep.subr.mxu1 %v26594_v38  ;;  %v3646_v2 = vand.u32 4294901760, %v3645_v29 }
 0x57e   :  { %24304 = vmatpush3.msra.mxu1 %v27398_v33 }
 0x57f   :  { %24306 = vmatmul.mubr.f32.vlgmr.msra.gmra.mxu1 %v3644_v28  ;;  %24319 = vmatprep.subr.mxu1 %v26594_v38 }
 0x580   :  { %24273 = vmatmul.mubr.f32.vlgmr.msra.gmra.mxu0 %v3646_v2  ;;  %24320 = vmatpush3.msra.mxu1 %v27365_v40  ;;  %v22407_v40 = vld [vmem:[%s31297_s8 + $0x2] ss:$0 sm:$0xff] }
 0x581   :  { %24287 = vmatpush3.msra.mxu0 %v27371_v44  ;;  %24321 = vmatprep.subr.mxu1 %v26594_v38 }
 0x582   :  { %24288 = vmatprep.subr.mxu0 %v26594_v38  ;;  %24322 = vmatpush3.msra.mxu1 %v27373_v45 }
 0x583   :  { %24289 = vmatpush3.msra.mxu0 %v27382_v49  ;;  %24323 = vmatprep.subr.mxu1 %v26594_v38 }
 0x584   :  { %24290 = vmatprep.subr.mxu0 %v26594_v38  ;;  %24324 = vmatpush3.msra.mxu1 %v27384_v14 }
 0x585   :  { %24291 = vmatpush3.msra.mxu0 %v27396_v32  ;;  %24325 = vmatprep.subr.mxu1 %v26594_v38 }
 0x586   :  { %24292 = vmatprep.subr.mxu0 %v26594_v38  ;;  %24294 = vmatprep.mubr.msk.f32.mxu0 %vm26595_vm1, %v26594_v38 }
 0x587   :  { %24293 = vmatpush3.msra.mxu0 %v27407_v42  ;;  %24326 = vmatpush3.msra.mxu1 %v27398_v33 }
 0x588   :  { %24327 = vmatprep.mubr.msk.f32.mxu1 %vm26595_vm1, %v26594_v38  ;;  %24295 = vmatmul.mubr.f32.vlgmr.msra.gmra.mxu0 %v3643_v15 }
 0x589   :  { %24308 = vmatprep.subr.mxu0 %v26594_v38  ;;  %24328 = vmatmul.mubr.f32.vlgmr.msra.gmra.mxu1 %v3642_v27 }
 0x58a   :  { %24309 = vmatpush3.msra.mxu0 %v3679_v48  ;;  %24316 = vmatprep.mubr.msk.f32.mxu0 %vm26595_vm1, %v26594_v38  ;;  %v27484_v48 = vsub.f32 %v4059_v35, %v27481_v41 }
 0x58b   :  { %24310 = vmatprep.subr.mxu0 %v26594_v38  ;;  %24335 = vmatprep.subr.mxu1 %v26594_v38 }
 0x58c   :  { %24311 = vmatpush3.msra.mxu0 %v3686_v31  ;;  %24337 = vmatprep.mubr.msk.f32.mxu1 %vm26595_vm1, %v26594_v38  ;;  %v27487_v31 = vand.u32 4294901760, %v27484_v48 }
 0x58d   :  { %24312 = vmatprep.subr.mxu0 %v26594_v38 }
 0x58e   :  { %24313 = vmatpush3.msra.mxu0 %v3693_v39  ;;  %v4130_v36 = vsub.f32 %v27484_v48, %v27487_v31 }
 0x58f   :  { %24314 = vmatprep.subr.mxu0 %v26594_v38 }
 0x590   :  { %24315 = vmatpush3.msra.mxu0 %v3700_v50  ;;  %v27493_v43 = vand.u32 4294901760, %v4130_v36 }
 0x591   :  { %24317 = vmatmul.mubr.f32.vlgmr.msra.gmra.mxu0 %v3642_v27  ;;  %24330 = vmatprep.subr.mxu0 %v26594_v38  ;;  %v4651_v27 = vsub.f32 %v27566_v24, %v4650_v26 }
 0x592   :  { %24332 = vmatprep.mubr.msk.f32.mxu0 %vm26595_vm1, %v26594_v38 }
 0x593   :  { %v4652_v15 = vand.u32 4294901760, %v4651_v27 }
 0x637   :  { %v3739_v8 = vpop.f32.mrf.mxu1 }
 0x639   :  { %v24285_v9 = vpop.f32.mrf.mxu1 }
 0x63f   :  { %v3896_v13 = vpop.f32.mrf.mxu1 }
 0x640   :  { %v3648_v30 = vpop.f32.mrf.mxu0 }
 0x641   :  { %v24307_v34 = vpop.f32.mrf.mxu1  ;;  %v3649_v44 = vadd.f32 %v22407_v40, %v3648_v30 }
 0x642   :  { %v24274_v21 = vpop.f32.mrf.mxu0 }
 0x643   :  { %v3740_v49 = vadd.f32 %v3739_v8, %v3649_v44 }
 0x648   :  { %v3819_v45 = vpop.f32.mrf.mxu0 }
 0x649   :  { %v4054_v47 = vpop.f32.mrf.mxu1  ;;  %v3820_v22 = vadd.f32 %v3819_v45, %v3740_v49 }
 0x64a   :  { %v24296_v14 = vpop.f32.mrf.mxu0 }
 0x64b   :  { %v24329_v19 = vpop.f32.mrf.mxu1  ;;  %v3897_v32 = vadd.f32 %v3896_v13, %v3820_v22 }
 0x651   :  { %v3979_v33 = vpop.f32.mrf.mxu0 }
 0x652   :  { %v3980_v37 = vadd.f32 %v3979_v33, %v3897_v32 }
 0x653   :  { %v24318_v39 = vpop.f32.mrf.mxu0 }
 0x654   :  { %v27491_v42 = vadd.f32 %v4054_v47, %v3980_v37  ;;  %v22417_v39 = vld [vmem:[%s31295_s7 + $0x78] sm:$0xff] }
 0x656   :  { %v4092_v46 = vand.u32 4294901760, %v27491_v42 }
 0x658   :  { %v4169_v50 = vsub.f32 %v27491_v42, %v4092_v46  ;;  %24331 = vmatpush3.msra.mxu0 %v4092_v46 }
 0x659   :  { %24333 = vmatmul.mubr.f32.vlgmr.msra.gmra.mxu0 %v27493_v43  ;;  %24340 = vmatprep.subr.mxu0 %v26594_v38 }
 0x65a   :  { %24341 = vmatpush3.msra.mxu0 %v4169_v50  ;;  %24342 = vmatprep.mubr.msk.f32.mxu0 %vm26595_vm1, %v26594_v38  ;;  %v4170_v52 = vand.u32 4294901760, %v4169_v50 }
 0x65b   :  { %24350 = vmatprep.subr.mxu0 %v26594_v38 }
 0x65c   :  { %v4171_v53 = vsub.f32 %v4169_v50, %v4170_v52  ;;  %v22416_v50 = vld [vmem:[%s31295_s7 + $0x70] sm:$0xff] }
 0x65d   :  { %24343 = vmatmul.mubr.f32.vlgmr.msra.gmra.mxu0 %v27484_v48 }
 0x65e   :  { %24351 = vmatpush3.msra.mxu0 %v4170_v52  ;;  %v4172_v54 = vand.u32 4294901760, %v4171_v53  ;;  %24352 = vmatprep.mubr.msk.f32.mxu0 %vm26595_vm1, %v26594_v38  ;;  %v27641_v53 = vand.u32 4294901760, %v22416_v50 }
 0x65f   :  { %24360 = vmatprep.subr.mxu0 %v26594_v38 }
 0x660   :  { %24336 = vmatpush3.msra.mxu1 %v4172_v54  ;;  %v22415_v54 = vld [vmem:[%s31295_s7 + $0x68] sm:$0xff] }
 0x661   :  { %24338 = vmatmul.mubr.f32.vlgmr.msra.gmra.mxu1 %v27481_v41  ;;  %24345 = vmatprep.subr.mxu1 %v26594_v38  ;;  %v27652_v58 = vand.u32 4294901760, %v22415_v54 }
 0x662   :  { %24346 = vmatpush3.msra.mxu1 %v4092_v46  ;;  %24347 = vmatprep.mubr.msk.f32.mxu1 %vm26595_vm1, %v26594_v38 }
 0x663   :  { %24355 = vmatprep.subr.mxu1 %v26594_v38  ;;  %24353 = vmatmul.mubr.f32.vlgmr.msra.gmra.mxu0 %v27481_v41 }
 0x664   :  { %24368 = vmatprep.mubr.msk.f32.mxu0 %vm26595_vm1, %v26594_v38  ;;  %24361 = vmatpush3.msra.mxu0 %v27524_v57 }
 0x665   :  { %24348 = vmatmul.mubr.f32.vlgmr.msra.gmra.mxu1 %v27487_v31  ;;  %24362 = vmatprep.subr.mxu0 %v26594_v38 }
 0x666   :  { %24356 = vmatpush3.msra.mxu1 %v4092_v46  ;;  %24357 = vmatprep.mubr.msk.f32.mxu1 %vm26595_vm1, %v26594_v38  ;;  %v27633_v46 = vand.u32 4294901760, %v22417_v39 }
 0x667   :  { %24371 = vmatprep.subr.mxu1 %v26594_v38  ;;  %24363 = vmatpush3.msra.mxu0 %v27532_v60 }
 0x668   :  { %24364 = vmatprep.subr.mxu0 %v26594_v38  ;;  %v27639_v52 = vsub.f32 %v22417_v39, %v27633_v46 }
 0x669   :  { %24358 = vmatmul.mubr.f32.vlgmr.msra.gmra.mxu1 %v27481_v41  ;;  %24365 = vmatpush3.msra.mxu0 %v27543_v7 }
 0x66a   :  { %24379 = vmatprep.mubr.msk.f32.mxu1 %vm26595_vm1, %v26594_v38  ;;  %24366 = vmatprep.subr.mxu0 %v26594_v38  ;;  %v5133_v55 = vand.u32 4294901760, %v27639_v52 }
 0x66b   :  { %24367 = vmatpush3.msra.mxu0 %v27557_v20  ;;  %24372 = vmatpush3.msra.mxu1 %v4631_v0 }
 0x66c   :  { %24382 = vmatprep.subr.mxu0 %v26594_v38  ;;  %24373 = vmatprep.subr.mxu1 %v26594_v38 }
 0x66d   :  { %24374 = vmatpush3.msra.mxu1 %v4638_v10 }
 0x66e   :  { %24375 = vmatprep.subr.mxu1 %v26594_v38 }
 0x66f   :  { %24376 = vmatpush3.msra.mxu1 %v4645_v3 }
 0x670   :  { %24377 = vmatprep.subr.mxu1 %v26594_v38 }
 0x671   :  { %24378 = vmatpush3.msra.mxu1 %v4652_v15 }
 0x672   :  { %24393 = vmatprep.subr.mxu1 %v26594_v38 }
 0x719   :  { %v4133_v28 = vpop.f32.mrf.mxu0 }
 0x71b   :  { %v24334_v29 = vpop.f32.mrf.mxu0 }
 0x71d   :  { %v4283_v2 = vpop.f32.mrf.mxu0 }
 0x71f   :  { %v24344_v8 = vpop.f32.mrf.mxu0 }
 0x721   :  { %v4209_v9 = vpop.f32.mrf.mxu1 }
 0x722   :  { %v4210_v13 = vadd.f32 %v4209_v9, %v4133_v28  ;;  %v22413_v28 = vld [vmem:[%s31296_s6 + $0x3] ss:$0 sm:$0xff] }
 0x723   :  { %v24339_v18 = vpop.f32.mrf.mxu1  ;;  %v4431_v30 = vpop.f32.mrf.mxu0 }
 0x724   :  { %v4284_v34 = vadd.f32 %v4283_v2, %v4210_v13 }
 0x725   :  { %v4357_v21 = vpop.f32.mrf.mxu1  ;;  %v24354_v35 = vpop.f32.mrf.mxu0 }
 0x726   :  { %v4358_v40 = vadd.f32 %v4357_v21, %v4284_v34 }
 0x727   :  { %v24349_v44 = vpop.f32.mrf.mxu1 }
 0x728   :  { %v4432_v45 = vadd.f32 %v4431_v30, %v4358_v40 }
 0x729   :  { %v4503_v47 = vpop.f32.mrf.mxu1 }
 0x72a   :  { %v4504_v49 = vadd.f32 %v4503_v47, %v4432_v45 }
 0x72b   :  { %v24359_v14 = vpop.f32.mrf.mxu1 }
 0x72c   :  { %v4521_v19 = vsel %vm61_vm0, %v4504_v49, 0  ;;  %v22423_v14 = vld [vmem:[%s31294_s5 + $0x98] sm:$0xff] }
 0x72d   :  { %v4592_v22 = vand.u32 4294901760, %v4521_v19 }
 0x72f   :  { %v4593_v32 = vsub.f32 %v4521_v19, %v4592_v22  ;;  %24380 = vmatmul.mubr.f32.vlgmr.msra.gmra.mxu1 %v4592_v22 }
 0x730   :  { %24394 = vmatpush3.msra.mxu1 %v27524_v57  ;;  %24401 = vmatprep.mubr.msk.f32.mxu1 %vm26595_vm1, %v26594_v38 }
 0x731   :  { %24395 = vmatprep.subr.mxu1 %v26594_v38  ;;  %v4594_v33 = vand.u32 4294901760, %v4593_v32 }
 0x732   :  { %24396 = vmatpush3.msra.mxu1 %v27532_v60 }
 0x733   :  { %24397 = vmatprep.subr.mxu1 %v26594_v38  ;;  %v4595_v36 = vsub.f32 %v4593_v32, %v4594_v33 }
 0x734   :  { %24398 = vmatpush3.msra.mxu1 %v27543_v7 }
 0x735   :  { %24399 = vmatprep.subr.mxu1 %v26594_v38  ;;  %v4596_v37 = vand.u32 4294901760, %v4595_v36  ;;  %v22421_v36 = vld [vmem:[%s31294_s5 + $0x88] sm:$0xff] }
 0x736   :  { %24400 = vmatpush3.msra.mxu1 %v27557_v20 }
 0x737   :  { %24402 = vmatmul.mubr.f32.vlgmr.msra.gmra.mxu1 %v4594_v33  ;;  %24415 = vmatprep.subr.mxu1 %v26594_v38  ;;  %v27704_v33 = vand.u32 4294901760, %v22423_v14 }
 0x738   :  { %24369 = vmatmul.mubr.f32.vlgmr.msra.gmra.mxu0 %v4596_v37  ;;  %24416 = vmatpush3.msra.mxu1 %v27524_v57  ;;  %v27650_v57 = vsub.f32 %v22416_v50, %v27641_v53  ;;  %v22420_v50 = vld [vmem:[%s31294_s5 + $0x80] sm:$0xff] }
 0x739   :  { %24383 = vmatpush3.msra.mxu0 %v27530_v59  ;;  %24417 = vmatprep.subr.mxu1 %v26594_v38  ;;  %v22414_v59 = vld [vmem:[%s31295_s7 + $0x60] sm:$0xff] }
 0x73a   :  { %24384 = vmatprep.subr.mxu0 %v26594_v38  ;;  %24418 = vmatpush3.msra.mxu1 %v27532_v60  ;;  %v5134_v60 = vsub.f32 %v27639_v52, %v5133_v55  ;;  %v5140_v62 = vand.u32 4294901760, %v27650_v57 }
 0x73b   :  { %24385 = vmatpush3.msra.mxu0 %v27541_v1  ;;  %24419 = vmatprep.subr.mxu1 %v26594_v38  ;;  %v27666_v1 = vand.u32 4294901760, %v22414_v59 }
 0x73c   :  { %24386 = vmatprep.subr.mxu0 %v26594_v38  ;;  %24420 = vmatpush3.msra.mxu1 %v27543_v7  ;;  %v5135_v7 = vand.u32 4294901760, %v5134_v60  ;;  %v5141_v11 = vsub.f32 %v27650_v57, %v5140_v62  ;;  %v27723_v60 = vand.u32 4294901760, %v22421_v36 }
 0x73d   :  { %24387 = vmatpush3.msra.mxu0 %v27555_v17  ;;  %24421 = vmatprep.subr.mxu1 %v26594_v38 }
 0x73e   :  { %24388 = vmatprep.subr.mxu0 %v26594_v38  ;;  %24390 = vmatprep.mubr.msk.f32.mxu0 %vm26595_vm1, %v26594_v38  ;;  %v5142_v17 = vand.u32 4294901760, %v5141_v11 }
 0x73f   :  { %24389 = vmatpush3.msra.mxu0 %v27566_v24  ;;  %24422 = vmatpush3.msra.mxu1 %v27557_v20 }
 0x740   :  { %24423 = vmatprep.mubr.msk.f32.mxu1 %vm26595_vm1, %v26594_v38  ;;  %24391 = vmatmul.mubr.f32.vlgmr.msra.gmra.mxu0 %v4593_v32 }
 0x741   :  { %24404 = vmatprep.subr.mxu0 %v26594_v38  ;;  %24424 = vmatmul.mubr.f32.vlgmr.msra.gmra.mxu1 %v4592_v22 }
 0x742   :  { %24405 = vmatpush3.msra.mxu0 %v4629_v63  ;;  %24412 = vmatprep.mubr.msk.f32.mxu0 %vm26595_vm1, %v26594_v38  ;;  %v27664_v63 = vsub.f32 %v22415_v54, %v27652_v58 }
 0x743   :  { %24406 = vmatprep.subr.mxu0 %v26594_v38  ;;  %24437 = vmatprep.subr.mxu1 %v26594_v38 }
 0x744   :  { %24407 = vmatpush3.msra.mxu0 %v4636_v16  ;;  %24445 = vmatprep.mubr.msk.f32.mxu1 %vm26595_vm1, %v26594_v38  ;;  %v5147_v12 = vand.u32 4294901760, %v27664_v63  ;;  %v27675_v16 = vsub.f32 %v22414_v59, %v27666_v1  ;;  %v27721_v59 = vsub.f32 %v22423_v14, %v27704_v33 }
 0x745   :  { %24408 = vmatprep.subr.mxu0 %v26594_v38  ;;  %24438 = vmatpush3.msra.mxu1 %v5135_v7 }
 0x746   :  { %24409 = vmatpush3.msra.mxu0 %v4643_v23  ;;  %v5148_v20 = vsub.f32 %v27664_v63, %v5147_v12  ;;  %v5154_v0 = vand.u32 4294901760, %v27675_v16  ;;  %24439 = vmatprep.subr.mxu1 %v26594_v38 }
 0x747   :  { %24410 = vmatprep.subr.mxu0 %v26594_v38  ;;  %24440 = vmatpush3.msra.mxu1 %v5142_v17  ;;  %v27730_v17 = vand.u32 4294901760, %v22420_v50 }
 0x748   :  { %24411 = vmatpush3.msra.mxu0 %v4650_v26  ;;  %v5149_v4 = vand.u32 4294901760, %v5148_v20  ;;  %v5155_v23 = vsub.f32 %v27675_v16, %v5154_v0  ;;  %24441 = vmatprep.subr.mxu1 %v26594_v38  ;;  %v5634_v20 = vand.u32 4294901760, %v27721_v59 }
 0x749   :  { %24413 = vmatmul.mubr.f32.vlgmr.msra.gmra.mxu0 %v4592_v22  ;;  %24426 = vmatprep.subr.mxu0 %v26594_v38  ;;  %v22422_v22 = vld [vmem:[%s31294_s5 + $0x90] sm:$0xff] }
 0x74a   :  { %24434 = vmatprep.mubr.msk.f32.mxu0 %vm26595_vm1, %v26594_v38  ;;  %24427 = vmatpush3.msra.mxu0 %v27633_v46  ;;  %v5156_v24 = vand.u32 4294901760, %v5155_v23  ;;  %v27713_v39 = vand.u32 4294901760, %v22422_v22 }
 0x74b   :  { %24428 = vmatprep.subr.mxu0 %v26594_v38  ;;  %24442 = vmatpush3.msra.mxu1 %v5149_v4  ;;  %v27736_v4 = vsub.f32 %v22421_v36, %v27723_v60 }
 0x74c   :  { %24429 = vmatpush3.msra.mxu0 %v27641_v53  ;;  %24443 = vmatprep.subr.mxu1 %v26594_v38  ;;  %v27728_v11 = vsub.f32 %v22422_v22, %v27713_v39 }
 0x74d   :  { %24430 = vmatprep.subr.mxu0 %v26594_v38  ;;  %24444 = vmatpush3.msra.mxu1 %v5156_v24  ;;  %v27743_v24 = vsub.f32 %v22420_v50, %v27730_v17 }
 0x74e   :  { %24431 = vmatpush3.msra.mxu0 %v27652_v58  ;;  %24459 = vmatprep.subr.mxu1 %v26594_v38  ;;  %v5641_v23 = vand.u32 4294901760, %v27728_v11 }
 0x74f   :  { %24432 = vmatprep.subr.mxu0 %v26594_v38 }
 0x750   :  { %24433 = vmatpush3.msra.mxu0 %v27666_v1 }
 0x751   :  { %24448 = vmatprep.subr.mxu0 %v26594_v38 }
 0x7ef   :  { %v4689_v10 = vpop.f32.mrf.mxu1 }
 0x7f1   :  { %v24381_v25 = vpop.f32.mrf.mxu1 }
 0x7f2   :  { %v5655_v25 = vand.u32 4294901760, %v27743_v24 }
 0x7f7   :  { %v4846_v26 = vpop.f32.mrf.mxu1 }
 0x7f8   :  { %v4598_v3 = vpop.f32.mrf.mxu0 }
 0x7f9   :  { %v24403_v27 = vpop.f32.mrf.mxu1  ;;  %v4599_v29 = vadd.f32 %v22413_v28, %v4598_v3 }
 0x7fa   :  { %v24370_v15 = vpop.f32.mrf.mxu0 }
 0x7fb   :  { %v4690_v9 = vadd.f32 %v4689_v10, %v4599_v29  ;;  %v5648_v10 = vand.u32 4294901760, %v27736_v4 }
 0x7fd   :  { %v5649_v3 = vsub.f32 %v27736_v4, %v5648_v10 }
 0x800   :  { %v4769_v2 = vpop.f32.mrf.mxu0 }
 0x801   :  { %v5004_v8 = vpop.f32.mrf.mxu1  ;;  %v4770_v30 = vadd.f32 %v4769_v2, %v4690_v9  ;;  %v22427_v2 = vld [vmem:[%s31295_s7 + $0x88] sm:$0xff] }
 0x802   :  { %v24392_v13 = vpop.f32.mrf.mxu0 }
 0x803   :  { %v24425_v18 = vpop.f32.mrf.mxu1  ;;  %v4847_v34 = vadd.f32 %v4846_v26, %v4770_v30  ;;  %v5526_v26 = vsel %vm61_vm0, %v26759_v5, 0  ;;  %v5656_v5 = vsub.f32 %v27743_v24, %v5655_v25  ;;  %v27886_v13 = vand.u32 4294901760, %v22427_v2 }
 0x804   :  { %v27778_v15 = vand.u32 4294901760, %v5526_v26  ;;  %v22426_v18 = vld [vmem:[%s31295_s7 + $0x80] sm:$0xff] }
 0x805   :  { %v5657_v28 = vand.u32 4294901760, %v5656_v5 }
 0x806   :  { %v5598_v29 = vsub.f32 %v5526_v26, %v27778_v15 }
 0x809   :  { %v4929_v21 = vpop.f32.mrf.mxu0 }
 0x80a   :  { %v4930_v35 = vadd.f32 %v4929_v21, %v4847_v34  ;;  %v27898_v21 = vsub.f32 %v22427_v2, %v27886_v13 }
 0x80b   :  { %v24414_v40 = vpop.f32.mrf.mxu0 }
 0x80c   :  { %v5005_v44 = vadd.f32 %v5004_v8, %v4930_v35  ;;  %v27900_v35 = vand.u32 4294901760, %v22426_v18 }
 0x80e   :  { %vm5008_vm6 = vcmp.gt.f32.partialorder %v5005_v44, 0.0  ;;  %v5009_v45 = vmul.f32 0.01, %v5005_v44 }
 0x810   :  { %v5010_v47 = vsel %vm5008_vm6, %v5005_v44, %v5009_v45  ;;  %v6152_v45 = vand.u32 4294901760, %v27898_v21 }
 0x811   :  { %v5025_v49 = vsel %vm61_vm0, %v5010_v47, 0  ;;  %v27909_v47 = vsub.f32 %v22426_v18, %v27900_v35 }
 0x812   :  { %v27697_v19 = vand.u32 4294901760, %v5025_v49  ;;  %v6153_v14 = vsub.f32 %v27898_v21, %v6152_v45 }
 0x814   :  { %24446 = vmatmul.mubr.f32.vlgmr.msra.gmra.mxu1 %v27697_v19  ;;  %v5097_v32 = vsub.f32 %v5025_v49, %v27697_v19  ;;  %v6154_v22 = vand.u32 4294901760, %v6153_v14 }
 0x815   :  { %24460 = vmatpush3.msra.mxu1 %v27633_v46  ;;  %24467 = vmatprep.mubr.msk.f32.mxu1 %vm26595_vm1, %v26594_v38 }
 0x816   :  { %24461 = vmatprep.subr.mxu1 %v26594_v38  ;;  %v5098_v37 = vand.u32 4294901760, %v5097_v32 }
 0x817   :  { %24462 = vmatpush3.msra.mxu1 %v27641_v53 }
 0x818   :  { %24463 = vmatprep.subr.mxu1 %v26594_v38  ;;  %v5099_v54 = vsub.f32 %v5097_v32, %v5098_v37 }
 0x819   :  { %24464 = vmatpush3.msra.mxu1 %v27652_v58 }
 0x81a   :  { %24465 = vmatprep.subr.mxu1 %v26594_v38  ;;  %v5100_v7 = vand.u32 4294901760, %v5099_v54 }
 0x81b   :  { %24466 = vmatpush3.msra.mxu1 %v27666_v1 }
 0x81c   :  { %24468 = vmatmul.mubr.f32.vlgmr.msra.gmra.mxu1 %v5098_v37  ;;  %24481 = vmatprep.subr.mxu1 %v26594_v38 }
 0x81d   :  { %24435 = vmatmul.mubr.f32.vlgmr.msra.gmra.mxu0 %v5100_v7  ;;  %24482 = vmatpush3.msra.mxu1 %v27633_v46  ;;  %v5635_v46 = vsub.f32 %v27721_v59, %v5634_v20 }
 0x81e   :  { %24449 = vmatpush3.msra.mxu0 %v27639_v52  ;;  %24483 = vmatprep.subr.mxu1 %v26594_v38  ;;  %v5599_v52 = vand.u32 4294901760, %v5598_v29 }
 0x81f   :  { %24450 = vmatprep.subr.mxu0 %v26594_v38  ;;  %24484 = vmatpush3.msra.mxu1 %v27641_v53  ;;  %v5642_v53 = vsub.f32 %v27728_v11, %v5641_v23 }
 0x820   :  { %24451 = vmatpush3.msra.mxu0 %v27650_v57  ;;  %24485 = vmatprep.subr.mxu1 %v26594_v38 }
 0x821   :  { %24452 = vmatprep.subr.mxu0 %v26594_v38  ;;  %24486 = vmatpush3.msra.mxu1 %v27652_v58  ;;  %v5636_v58 = vand.u32 4294901760, %v5635_v46  ;;  %v5643_v27 = vand.u32 4294901760, %v5642_v53 }
 0x822   :  { %24453 = vmatpush3.msra.mxu0 %v27664_v63  ;;  %24487 = vmatprep.subr.mxu1 %v26594_v38 }
 0x823   :  { %24454 = vmatprep.subr.mxu0 %v26594_v38  ;;  %24456 = vmatprep.mubr.msk.f32.mxu0 %vm26595_vm1, %v26594_v38 }
 0x824   :  { %24455 = vmatpush3.msra.mxu0 %v27675_v16  ;;  %24488 = vmatpush3.msra.mxu1 %v27666_v1  ;;  %v5650_v1 = vand.u32 4294901760, %v5649_v3 }
 0x825   :  { %24489 = vmatprep.mubr.msk.f32.mxu1 %vm26595_vm1, %v26594_v38  ;;  %24457 = vmatmul.mubr.f32.vlgmr.msra.gmra.mxu0 %v5097_v32 }
 0x826   :  { %24470 = vmatprep.subr.mxu0 %v26594_v38  ;;  %24490 = vmatmul.mubr.f32.vlgmr.msra.gmra.mxu1 %v27697_v19 }
 0x827   :  { %24503 = vmatprep.subr.mxu1 %v26594_v38  ;;  %24471 = vmatpush3.msra.mxu0 %v5133_v55  ;;  %v5600_v55 = vsub.f32 %v5598_v29, %v5599_v52 }
 0x828   :  { %24504 = vmatpush3.msra.mxu1 %v5636_v58  ;;  %24472 = vmatprep.subr.mxu0 %v26594_v38 }
 0x829   :  { %24505 = vmatprep.subr.mxu1 %v26594_v38  ;;  %24473 = vmatpush3.msra.mxu0 %v5140_v62  ;;  %v5601_v57 = vand.u32 4294901760, %v5600_v55  ;;  %v22429_v62 = vld [vmem:[%s31295_s7 + $0x98] sm:$0xff] }
 0x82a   :  { %24506 = vmatpush3.msra.mxu1 %v5643_v27  ;;  %24474 = vmatprep.subr.mxu0 %v26594_v38  ;;  %v27867_v63 = vand.u32 4294901760, %v22429_v62 }
 0x82b   :  { %24507 = vmatprep.subr.mxu1 %v26594_v38  ;;  %24475 = vmatpush3.msra.mxu0 %v5147_v12  ;;  %v22428_v12 = vld [vmem:[%s31295_s7 + $0x90] sm:$0xff] }
 0x82c   :  { %24508 = vmatpush3.msra.mxu1 %v5650_v1  ;;  %24476 = vmatprep.subr.mxu0 %v26594_v38  ;;  %v27873_v16 = vsub.f32 %v22429_v62, %v27867_v63 }
 0x82d   :  { %24509 = vmatprep.subr.mxu1 %v26594_v38  ;;  %24477 = vmatpush3.msra.mxu0 %v5154_v0  ;;  %v27875_v0 = vand.u32 4294901760, %v22428_v12 }
 0x82e   :  { %24478 = vmatprep.mubr.msk.f32.mxu0 %vm26595_vm1, %v26594_v38  ;;  %24510 = vmatpush3.msra.mxu1 %v5657_v28  ;;  %v6138_v8 = vand.u32 4294901760, %v27873_v16  ;;  %v22425_v28 = vld [vmem:[%s31296_s6 + $0x4] ss:$0 sm:$0xff] }
 0x82f   :  { %24511 = vmatprep.mubr.msk.f32.mxu1 %vm26595_vm1, %v26594_v38  ;;  %24479 = vmatmul.mubr.f32.vlgmr.msra.gmra.mxu0 %v27697_v19  ;;  %v27884_v9 = vsub.f32 %v22428_v12, %v27875_v0  ;;  %v6159_v19 = vand.u32 4294901760, %v27909_v47 }
 0x830   :  { %24492 = vmatprep.subr.mxu0 %v26594_v38  ;;  %24512 = vmatmul.mubr.f32.vlgmr.msra.gmra.mxu1 %v27778_v15  ;;  %v6139_v30 = vsub.f32 %v27873_v16, %v6138_v8 }
 0x831   :  { %24525 = vmatprep.subr.mxu1 %v26594_v38  ;;  %24493 = vmatpush3.msra.mxu0 %v27704_v33  ;;  %v6145_v34 = vand.u32 4294901760, %v27884_v9  ;;  %v6160_v32 = vsub.f32 %v27909_v47, %v6159_v19 }
 0x832   :  { %24526 = vmatpush3.msra.mxu1 %v27704_v33  ;;  %24494 = vmatprep.subr.mxu0 %v26594_v38  ;;  %v6140_v40 = vand.u32 4294901760, %v6139_v30 }
 0x833   :  { %24527 = vmatprep.subr.mxu1 %v26594_v38  ;;  %24495 = vmatpush3.msra.mxu0 %v27713_v39  ;;  %v6146_v44 = vsub.f32 %v27884_v9, %v6145_v34 }
 0x834   :  { %24528 = vmatpush3.msra.mxu1 %v27713_v39  ;;  %24496 = vmatprep.subr.mxu0 %v26594_v38 }
 0x835   :  { %24529 = vmatprep.subr.mxu1 %v26594_v38  ;;  %24497 = vmatpush3.msra.mxu0 %v27723_v60  ;;  %v6147_v49 = vand.u32 4294901760, %v6146_v44 }
 0x836   :  { %24530 = vmatpush3.msra.mxu1 %v27723_v60  ;;  %24498 = vmatprep.subr.mxu0 %v26594_v38 }
 0x837   :  { %24531 = vmatprep.subr.mxu1 %v26594_v38  ;;  %24499 = vmatpush3.msra.mxu0 %v27730_v17 }
 0x838   :  { %24500 = vmatprep.mubr.msk.f32.mxu0 %vm26595_vm1, %v26594_v38  ;;  %24532 = vmatpush3.msra.mxu1 %v27730_v17 }
 0x839   :  { %24533 = vmatprep.mubr.msk.f32.mxu1 %vm26595_vm1, %v26594_v38  ;;  %24501 = vmatmul.mubr.f32.vlgmr.msra.gmra.mxu0 %v5601_v57 }
 0x83a   :  { %24514 = vmatprep.subr.mxu0 %v26594_v38  ;;  %24534 = vmatmul.mubr.f32.vlgmr.msra.gmra.mxu1 %v5599_v52 }
 0x83b   :  { %24547 = vmatprep.subr.mxu1 %v26594_v38  ;;  %24515 = vmatpush3.msra.mxu0 %v27721_v59 }
 0x83c   :  { %24548 = vmatpush3.msra.mxu1 %v27704_v33  ;;  %24516 = vmatprep.subr.mxu0 %v26594_v38  ;;  %v6161_v33 = vand.u32 4294901760, %v6160_v32 }
 0x83d   :  { %24549 = vmatprep.subr.mxu1 %v26594_v38  ;;  %24517 = vmatpush3.msra.mxu0 %v27728_v11 }
 0x83e   :  { %24550 = vmatpush3.msra.mxu1 %v27713_v39  ;;  %24518 = vmatprep.subr.mxu0 %v26594_v38  ;;  %v22419_v39 = vld [vmem:[%s31297_s8 + $0x3] ss:$0 sm:$0xff] }
 0x83f   :  { %24551 = vmatprep.subr.mxu1 %v26594_v38  ;;  %24519 = vmatpush3.msra.mxu0 %v27736_v4 }
 0x840   :  { %24552 = vmatpush3.msra.mxu1 %v27723_v60  ;;  %24520 = vmatprep.subr.mxu0 %v26594_v38 }
 0x841   :  { %24553 = vmatprep.subr.mxu1 %v26594_v38  ;;  %24521 = vmatpush3.msra.mxu0 %v27743_v24 }
 0x842   :  { %24522 = vmatprep.mubr.msk.f32.mxu0 %vm26595_vm1, %v26594_v38  ;;  %24554 = vmatpush3.msra.mxu1 %v27730_v17 }
 0x843   :  { %24555 = vmatprep.mubr.msk.f32.mxu1 %vm26595_vm1, %v26594_v38  ;;  %24523 = vmatmul.mubr.f32.vlgmr.msra.gmra.mxu0 %v5598_v29 }
 0x844   :  { %24536 = vmatprep.subr.mxu0 %v26594_v38  ;;  %24556 = vmatmul.mubr.f32.vlgmr.msra.gmra.mxu1 %v27778_v15 }
 0x845   :  { %24537 = vmatpush3.msra.mxu0 %v5634_v20  ;;  %24544 = vmatprep.mubr.msk.f32.mxu0 %vm26595_vm1, %v26594_v38 }
 0x846   :  { %24538 = vmatprep.subr.mxu0 %v26594_v38  ;;  %24569 = vmatprep.subr.mxu1 %v26594_v38 }
 0x847   :  { %24539 = vmatpush3.msra.mxu0 %v5641_v23  ;;  %24577 = vmatprep.mubr.msk.f32.mxu1 %vm26595_vm1, %v26594_v38 }
 0x848   :  { %24540 = vmatprep.subr.mxu0 %v26594_v38  ;;  %24570 = vmatpush3.msra.mxu1 %v6140_v40 }
 0x849   :  { %24541 = vmatpush3.msra.mxu0 %v5648_v10  ;;  %24571 = vmatprep.subr.mxu1 %v26594_v38 }
 0x84a   :  { %24542 = vmatprep.subr.mxu0 %v26594_v38  ;;  %24572 = vmatpush3.msra.mxu1 %v6147_v49 }
 0x84b   :  { %24543 = vmatpush3.msra.mxu0 %v5655_v25  ;;  %24573 = vmatprep.subr.mxu1 %v26594_v38 }
 0x84c   :  { %24545 = vmatmul.mubr.f32.vlgmr.msra.gmra.mxu0 %v27778_v15  ;;  %24558 = vmatprep.subr.mxu0 %v26594_v38 }
 0x84d   :  { %24566 = vmatprep.mubr.msk.f32.mxu0 %vm26595_vm1, %v26594_v38  ;;  %24559 = vmatpush3.msra.mxu0 %v27867_v63 }
 0x84e   :  { %24560 = vmatprep.subr.mxu0 %v26594_v38  ;;  %24574 = vmatpush3.msra.mxu1 %v6154_v22 }
 0x84f   :  { %24561 = vmatpush3.msra.mxu0 %v27875_v0  ;;  %24575 = vmatprep.subr.mxu1 %v26594_v38 }
 0x850   :  { %24562 = vmatprep.subr.mxu0 %v26594_v38  ;;  %24576 = vmatpush3.msra.mxu1 %v6161_v33 }
 0x851   :  { %24563 = vmatpush3.msra.mxu0 %v27886_v13  ;;  %24591 = vmatprep.subr.mxu1 %v26594_v38 }
 0x852   :  { %24564 = vmatprep.subr.mxu0 %v26594_v38 }
 0x853   :  { %24565 = vmatpush3.msra.mxu0 %v27900_v35 }
 0x854   :  { %24580 = vmatprep.subr.mxu0 %v26594_v38 }
 0x8d4   :  { %v5193_v36 = vpop.f32.mrf.mxu1 }
 0x8d6   :  { %v24447_v37 = vpop.f32.mrf.mxu1 }
 0x8dc   :  { %v5350_v50 = vpop.f32.mrf.mxu1 }
 0x8dd   :  { %v5102_v54 = vpop.f32.mrf.mxu0 }
 0x8de   :  { %v5103_v59 = vadd.f32 %v22419_v39, %v5102_v54  ;;  %v24469_v60 = vpop.f32.mrf.mxu1 }
 0x8df   :  { %v24436_v7 = vpop.f32.mrf.mxu0 }
 0x8e0   :  { %v5194_v11 = vadd.f32 %v5193_v36, %v5103_v59 }
 0x8e5   :  { %v5273_v17 = vpop.f32.mrf.mxu0 }
 0x8e6   :  { %v5274_v20 = vadd.f32 %v5273_v17, %v5194_v11  ;;  %v5508_v4 = vpop.f32.mrf.mxu1 }
 0x8e7   :  { %v24458_v23 = vpop.f32.mrf.mxu0 }
 0x8e8   :  { %v24491_v24 = vpop.f32.mrf.mxu1  ;;  %v5351_v46 = vadd.f32 %v5350_v50, %v5274_v20 }
 0x8ef   :  { %v5433_v10 = vpop.f32.mrf.mxu0 }
 0x8f0   :  { %v5434_v53 = vadd.f32 %v5433_v10, %v5351_v46  ;;  %v5694_v25 = vpop.f32.mrf.mxu1 }
 0x8f1   :  { %v24480_v26 = vpop.f32.mrf.mxu0 }
 0x8f2   :  { %v27927_v58 = vadd.f32 %v5508_v4, %v5434_v53  ;;  %v24513_v3 = vpop.f32.mrf.mxu1 }
 0x8f9   :  { %v5603_v27 = vpop.f32.mrf.mxu0 }
 0x8fa   :  { %v5851_v5 = vpop.f32.mrf.mxu1  ;;  %v5604_v29 = vadd.f32 %v22425_v28, %v5603_v27 }
 0x8fb   :  { %v24502_v15 = vpop.f32.mrf.mxu0 }
 0x8fc   :  { %v24535_v1 = vpop.f32.mrf.mxu1  ;;  %v5695_v57 = vadd.f32 %v5694_v25, %v5604_v29  ;;  %v22431_v15 = vld [vmem:[%s31297_s8 + $0x4] ss:$0 sm:$0xff] }
 0x903   :  { %v5774_v52 = vpop.f32.mrf.mxu0 }
 0x904   :  { %v6009_v55 = vpop.f32.mrf.mxu1  ;;  %v5775_v2 = vadd.f32 %v5774_v52, %v5695_v57 }
 0x905   :  { %v24524_v62 = vpop.f32.mrf.mxu0 }
 0x906   :  { %v24557_v12 = vpop.f32.mrf.mxu1  ;;  %v5852_v18 = vadd.f32 %v5851_v5, %v5775_v2 }
 0x90c   :  { %v5934_v30 = vpop.f32.mrf.mxu0 }
 0x90d   :  { %v5935_v40 = vadd.f32 %v5934_v30, %v5852_v18 }
 0x90e   :  { %v24546_v44 = vpop.f32.mrf.mxu0 }
 0x90f   :  { %v6010_v49 = vadd.f32 %v6009_v55, %v5935_v40 }
 0x911   :  { %vm6013_vm7 = vcmp.gt.f32.partialorder %v6010_v49, 0.0  ;;  %v6014_v14 = vmul.f32 0.01, %v6010_v49 }
 0x913   :  { %v6015_v22 = vsel %vm6013_vm7, %v6010_v49, %v6014_v14 }
 0x914   :  { %v6030_v32 = vsel %vm61_vm0, %v6015_v22, 0 }
 0x915   :  { %v6101_v33 = vand.u32 4294901760, %v6030_v32 }
 0x917   :  { %24578 = vmatmul.mubr.f32.vlgmr.msra.gmra.mxu1 %v6101_v33  ;;  %v6102_v36 = vsub.f32 %v6030_v32, %v6101_v33 }
 0x918   :  { %24592 = vmatpush3.msra.mxu1 %v27867_v63  ;;  %24599 = vmatprep.mubr.msk.f32.mxu1 %vm26595_vm1, %v26594_v38 }
 0x919   :  { %24593 = vmatprep.subr.mxu1 %v26594_v38  ;;  %v6103_v37 = vand.u32 4294901760, %v6102_v36 }
 0x91a   :  { %24594 = vmatpush3.msra.mxu1 %v27875_v0 }
 0x91b   :  { %24595 = vmatprep.subr.mxu1 %v26594_v38  ;;  %v6104_v39 = vsub.f32 %v6102_v36, %v6103_v37 }
 0x91c   :  { %24596 = vmatpush3.msra.mxu1 %v27886_v13 }
 0x91d   :  { %24597 = vmatprep.subr.mxu1 %v26594_v38  ;;  %v6105_v50 = vand.u32 4294901760, %v6104_v39  ;;  %v22440_v39 = vld [vmem:[%s31295_s7 + $0xb0] sm:$0xff] }
 0x91e   :  { %24598 = vmatpush3.msra.mxu1 %v27900_v35 }
 0x91f   :  { %24600 = vmatmul.mubr.f32.vlgmr.msra.gmra.mxu1 %v6103_v37  ;;  %24613 = vmatprep.subr.mxu1 %v26594_v38 }
 0x920   :  { %24567 = vmatmul.mubr.f32.vlgmr.msra.gmra.mxu0 %v6105_v50  ;;  %24614 = vmatpush3.msra.mxu1 %v27867_v63  ;;  %v22435_v63 = vld [vmem:[%s31294_s5 + $0xb8] sm:$0xff] }
 0x921   :  { %24581 = vmatpush3.msra.mxu0 %v27873_v16  ;;  %24615 = vmatprep.subr.mxu1 %v26594_v38  ;;  %v27984_v16 = vand.u32 4294901760, %v22435_v63 }
 0x922   :  { %24582 = vmatprep.subr.mxu0 %v26594_v38  ;;  %24616 = vmatpush3.msra.mxu1 %v27875_v0  ;;  %v22434_v0 = vld [vmem:[%s31294_s5 + $0xb0] sm:$0xff] }
 0x923   :  { %24583 = vmatpush3.msra.mxu0 %v27884_v9  ;;  %24617 = vmatprep.subr.mxu1 %v26594_v38  ;;  %v27992_v9 = vand.u32 4294901760, %v22434_v0 }
 0x924   :  { %24584 = vmatprep.subr.mxu0 %v26594_v38  ;;  %24618 = vmatpush3.msra.mxu1 %v27886_v13  ;;  %v22433_v13 = vld [vmem:[%s31294_s5 + $0xa8] sm:$0xff] }
 0x925   :  { %24585 = vmatpush3.msra.mxu0 %v27898_v21  ;;  %24619 = vmatprep.subr.mxu1 %v26594_v38  ;;  %v28001_v21 = vsub.f32 %v22434_v0, %v27992_v9 }
 0x926   :  { %24586 = vmatprep.subr.mxu0 %v26594_v38  ;;  %24588 = vmatprep.mubr.msk.f32.mxu0 %vm26595_vm1, %v26594_v38 }
 0x927   :  { %24587 = vmatpush3.msra.mxu0 %v27909_v47  ;;  %24620 = vmatpush3.msra.mxu1 %v27900_v35  ;;  %v28003_v35 = vand.u32 4294901760, %v22433_v13 }
 0x928   :  { %24621 = vmatprep.mubr.msk.f32.mxu1 %vm26595_vm1, %v26594_v38  ;;  %24589 = vmatmul.mubr.f32.vlgmr.msra.gmra.mxu0 %v6102_v36  ;;  %v22441_v36 = vld [vmem:[%s31295_s7 + $0xb8] sm:$0xff] }
 0x929   :  { %24602 = vmatprep.subr.mxu0 %v26594_v38  ;;  %24622 = vmatmul.mubr.f32.vlgmr.msra.gmra.mxu1 %v6101_v33  ;;  %v28015_v54 = vsub.f32 %v22433_v13, %v28003_v35  ;;  %v28097_v37 = vand.u32 4294901760, %v22441_v36  ;;  %v22438_v13 = vld [vmem:[%s31295_s7 + $0xa0] sm:$0xff] }
 0x92a   :  { %24603 = vmatpush3.msra.mxu0 %v6138_v8  ;;  %24610 = vmatprep.mubr.msk.f32.mxu0 %vm26595_vm1, %v26594_v38  ;;  %v27990_v8 = vsub.f32 %v22435_v63, %v27984_v16  ;;  %v28105_v63 = vand.u32 4294901760, %v22440_v39 }
 0x92b   :  { %24604 = vmatprep.subr.mxu0 %v26594_v38  ;;  %24635 = vmatprep.subr.mxu1 %v26594_v38  ;;  %v6654_v11 = vand.u32 4294901760, %v28015_v54  ;;  %v28103_v50 = vsub.f32 %v22441_v36, %v28097_v37 }
 0x92c   :  { %24605 = vmatpush3.msra.mxu0 %v6145_v34  ;;  %24643 = vmatprep.mubr.msk.f32.mxu1 %vm26595_vm1, %v26594_v38  ;;  %v6640_v34 = vand.u32 4294901760, %v27990_v8 }
 0x92d   :  { %24606 = vmatprep.subr.mxu0 %v26594_v38  ;;  %v6655_v4 = vsub.f32 %v28015_v54, %v6654_v11  ;;  %v7144_v0 = vand.u32 4294901760, %v28103_v50 }
 0x92e   :  { %24607 = vmatpush3.msra.mxu0 %v6152_v45  ;;  %v22432_v45 = vld [vmem:[%s31294_s5 + $0xa0] sm:$0xff]  ;;  %v6641_v47 = vsub.f32 %v27990_v8, %v6640_v34 }
 0x92f   :  { %24608 = vmatprep.subr.mxu0 %v26594_v38  ;;  %v28017_v59 = vand.u32 4294901760, %v22432_v45  ;;  %v6656_v24 = vand.u32 4294901760, %v6655_v4 }
 0x930   :  { %24609 = vmatpush3.msra.mxu0 %v6159_v19  ;;  %v6647_v19 = vand.u32 4294901760, %v28001_v21  ;;  %v6642_v60 = vand.u32 4294901760, %v6641_v47 }
 0x931   :  { %24611 = vmatmul.mubr.f32.vlgmr.msra.gmra.mxu0 %v6101_v33  ;;  %24624 = vmatprep.subr.mxu0 %v26594_v38  ;;  %v28026_v17 = vsub.f32 %v22432_v45, %v28017_v59  ;;  %v28130_v45 = vand.u32 4294901760, %v22438_v13 }
 0x932   :  { %24632 = vmatprep.mubr.msk.f32.mxu0 %vm26595_vm1, %v26594_v38  ;;  %24625 = vmatpush3.msra.mxu0 %v27984_v16  ;;  %v6648_v7 = vsub.f32 %v28001_v21, %v6647_v19 }
 0x933   :  { %24626 = vmatprep.subr.mxu0 %v26594_v38  ;;  %24636 = vmatpush3.msra.mxu1 %v6642_v60  ;;  %v6661_v23 = vand.u32 4294901760, %v28026_v17 }
 0x934   :  { %24627 = vmatpush3.msra.mxu0 %v27992_v9  ;;  %v6649_v20 = vand.u32 4294901760, %v6648_v7  ;;  %24637 = vmatprep.subr.mxu1 %v26594_v38 }
 0x935   :  { %24628 = vmatprep.subr.mxu0 %v26594_v38  ;;  %v6662_v46 = vsub.f32 %v28026_v17, %v6661_v23 }
 0x936   :  { %24629 = vmatpush3.msra.mxu0 %v28003_v35  ;;  %24638 = vmatpush3.msra.mxu1 %v6649_v20 }
 0x937   :  { %24630 = vmatprep.subr.mxu0 %v26594_v38  ;;  %24639 = vmatprep.subr.mxu1 %v26594_v38  ;;  %v6663_v10 = vand.u32 4294901760, %v6662_v46 }
 0x938   :  { %24631 = vmatpush3.msra.mxu0 %v28017_v59  ;;  %24640 = vmatpush3.msra.mxu1 %v6656_v24 }
 0x939   :  { %24646 = vmatprep.subr.mxu0 %v26594_v38  ;;  %24641 = vmatprep.subr.mxu1 %v26594_v38 }
 0x93a   :  { %24642 = vmatpush3.msra.mxu1 %v6663_v10 }
 0x93b   :  { %24657 = vmatprep.subr.mxu1 %v26594_v38 }
 0x9d7   :  { %v6198_v53 = vpop.f32.mrf.mxu1 }
 0x9d9   :  { %v24579_v25 = vpop.f32.mrf.mxu1 }
 0x9df   :  { %v6355_v26 = vpop.f32.mrf.mxu1 }
 0x9e0   :  { %v6107_v3 = vpop.f32.mrf.mxu0 }
 0x9e1   :  { %v24601_v27 = vpop.f32.mrf.mxu1  ;;  %v6108_v1 = vadd.f32 %v22431_v15, %v6107_v3 }
 0x9e2   :  { %v24568_v5 = vpop.f32.mrf.mxu0 }
 0x9e3   :  { %v6199_v52 = vadd.f32 %v6198_v53, %v6108_v1 }
 0x9e8   :  { %v6278_v28 = vpop.f32.mrf.mxu0 }
 0x9e9   :  { %v6513_v29 = vpop.f32.mrf.mxu1  ;;  %v6279_v62 = vadd.f32 %v6278_v28, %v6199_v52 }
 0x9ea   :  { %v24590_v55 = vpop.f32.mrf.mxu0 }
 0x9eb   :  { %v24623_v57 = vpop.f32.mrf.mxu1  ;;  %v6356_v12 = vadd.f32 %v6355_v26, %v6279_v62  ;;  %v22437_v26 = vld [vmem:[%s31296_s6 + $0x5] ss:$0 sm:$0xff] }
 0x9f1   :  { %v6438_v2 = vpop.f32.mrf.mxu0 }
 0x9f2   :  { %v6439_v18 = vadd.f32 %v6438_v2, %v6356_v12 }
 0x9f3   :  { %v24612_v30 = vpop.f32.mrf.mxu0 }
 0x9f4   :  { %v6514_v40 = vadd.f32 %v6513_v29, %v6439_v18 }
 0x9f6   :  { %v6517_v44 = vadd.f32 %v6514_v40, %v27927_v58 }
 0x9f8   :  { %v6532_v49 = vsel %vm61_vm0, %v6517_v44, 0 }
 0x9f9   :  { %v6603_v14 = vand.u32 4294901760, %v6532_v49 }
 0x9fb   :  { %v6604_v22 = vsub.f32 %v6532_v49, %v6603_v14  ;;  %24644 = vmatmul.mubr.f32.vlgmr.msra.gmra.mxu1 %v6603_v14 }
 0x9fc   :  { %24658 = vmatpush3.msra.mxu1 %v27984_v16  ;;  %24665 = vmatprep.mubr.msk.f32.mxu1 %vm26595_vm1, %v26594_v38 }
 0x9fd   :  { %24659 = vmatprep.subr.mxu1 %v26594_v38  ;;  %v6605_v32 = vand.u32 4294901760, %v6604_v22 }
 0x9fe   :  { %24660 = vmatpush3.msra.mxu1 %v27992_v9 }
 0x9ff   :  { %24661 = vmatprep.subr.mxu1 %v26594_v38  ;;  %v6606_v33 = vsub.f32 %v6604_v22, %v6605_v32 }
 0xa00   :  { %24662 = vmatpush3.msra.mxu1 %v28003_v35 }
 0xa01   :  { %24663 = vmatprep.subr.mxu1 %v26594_v38  ;;  %v6607_v58 = vand.u32 4294901760, %v6606_v33 }
 0xa02   :  { %24664 = vmatpush3.msra.mxu1 %v28017_v59 }
 0xa03   :  { %24666 = vmatmul.mubr.f32.vlgmr.msra.gmra.mxu1 %v6605_v32  ;;  %24679 = vmatprep.subr.mxu1 %v26594_v38 }
 0xa04   :  { %24633 = vmatmul.mubr.f32.vlgmr.msra.gmra.mxu0 %v6607_v58  ;;  %24680 = vmatpush3.msra.mxu1 %v27984_v16  ;;  %v22439_v16 = vld [vmem:[%s31295_s7 + $0xa8] sm:$0xff] }
 0xa05   :  { %24647 = vmatpush3.msra.mxu0 %v27990_v8  ;;  %24681 = vmatprep.subr.mxu1 %v26594_v38  ;;  %v28114_v8 = vsub.f32 %v22440_v39, %v28105_v63 }
 0xa06   :  { %24648 = vmatprep.subr.mxu0 %v26594_v38  ;;  %24682 = vmatpush3.msra.mxu1 %v27992_v9  ;;  %v28116_v9 = vand.u32 4294901760, %v22439_v16 }
 0xa07   :  { %24649 = vmatpush3.msra.mxu0 %v28001_v21  ;;  %24683 = vmatprep.subr.mxu1 %v26594_v38  ;;  %v7151_v21 = vand.u32 4294901760, %v28114_v8 }
 0xa08   :  { %24650 = vmatprep.subr.mxu0 %v26594_v38  ;;  %24684 = vmatpush3.msra.mxu1 %v28003_v35  ;;  %v28128_v35 = vsub.f32 %v22439_v16, %v28116_v9 }
 0xa09   :  { %24651 = vmatpush3.msra.mxu0 %v28015_v54  ;;  %24685 = vmatprep.subr.mxu1 %v26594_v38 }
 0xa0a   :  { %24652 = vmatprep.subr.mxu0 %v26594_v38  ;;  %24654 = vmatprep.mubr.msk.f32.mxu0 %vm26595_vm1, %v26594_v38  ;;  %v7158_v54 = vand.u32 4294901760, %v28128_v35 }
 0xa0b   :  { %24653 = vmatpush3.msra.mxu0 %v28026_v17  ;;  %24686 = vmatpush3.msra.mxu1 %v28017_v59  ;;  %v28139_v59 = vsub.f32 %v22438_v13, %v28130_v45 }
 0xa0c   :  { %24687 = vmatprep.mubr.msk.f32.mxu1 %vm26595_vm1, %v26594_v38  ;;  %24655 = vmatmul.mubr.f32.vlgmr.msra.gmra.mxu0 %v6604_v22  ;;  %v7159_v7 = vsub.f32 %v28128_v35, %v7158_v54 }
 0xa0d   :  { %24668 = vmatprep.subr.mxu0 %v26594_v38  ;;  %24688 = vmatmul.mubr.f32.vlgmr.msra.gmra.mxu1 %v6603_v14 }
 0xa0e   :  { %24669 = vmatpush3.msra.mxu0 %v6640_v34  ;;  %24676 = vmatprep.mubr.msk.f32.mxu0 %vm26595_vm1, %v26594_v38  ;;  %v7145_v34 = vsub.f32 %v28103_v50, %v7144_v0  ;;  %v7160_v17 = vand.u32 4294901760, %v7159_v7 }
 0xa0f   :  { %24670 = vmatprep.subr.mxu0 %v26594_v38  ;;  %24701 = vmatprep.subr.mxu1 %v26594_v38 }
 0xa10   :  { %24671 = vmatpush3.msra.mxu0 %v6647_v19  ;;  %24709 = vmatprep.mubr.msk.f32.mxu1 %vm26595_vm1, %v26594_v38  ;;  %v7146_v47 = vand.u32 4294901760, %v7145_v34  ;;  %v7152_v19 = vsub.f32 %v28114_v8, %v7151_v21 }
 0xa11   :  { %24672 = vmatprep.subr.mxu0 %v26594_v38 }
 0xa12   :  { %24673 = vmatpush3.msra.mxu0 %v6654_v11  ;;  %24702 = vmatpush3.msra.mxu1 %v7146_v47  ;;  %v7153_v60 = vand.u32 4294901760, %v7152_v19  ;;  %v7165_v11 = vand.u32 4294901760, %v28139_v59 }
 0xa13   :  { %24674 = vmatprep.subr.mxu0 %v26594_v38  ;;  %24703 = vmatprep.subr.mxu1 %v26594_v38 }
 0xa14   :  { %24675 = vmatpush3.msra.mxu0 %v6661_v23  ;;  %24704 = vmatpush3.msra.mxu1 %v7153_v60  ;;  %v7166_v20 = vsub.f32 %v28139_v59, %v7165_v11 }
 0xa15   :  { %24677 = vmatmul.mubr.f32.vlgmr.msra.gmra.mxu0 %v6603_v14  ;;  %24690 = vmatprep.subr.mxu0 %v26594_v38 }
 0xa16   :  { %24698 = vmatprep.mubr.msk.f32.mxu0 %vm26595_vm1, %v26594_v38  ;;  %24691 = vmatpush3.msra.mxu0 %v28097_v37  ;;  %v7167_v4 = vand.u32 4294901760, %v7166_v20 }
 0xa17   :  { %24692 = vmatprep.subr.mxu0 %v26594_v38  ;;  %24705 = vmatprep.subr.mxu1 %v26594_v38 }
 0xa18   :  { %24693 = vmatpush3.msra.mxu0 %v28105_v63  ;;  %24706 = vmatpush3.msra.mxu1 %v7160_v17  ;;  %v22447_v17 = vld [vmem:[%s31294_s5 + $0xd8] sm:$0xff] }
 0xa19   :  { %24694 = vmatprep.subr.mxu0 %v26594_v38  ;;  %24707 = vmatprep.subr.mxu1 %v26594_v38  ;;  %v28240_v20 = vand.u32 4294901760, %v22447_v17 }
 0xa1a   :  { %24695 = vmatpush3.msra.mxu0 %v28116_v9  ;;  %24708 = vmatpush3.msra.mxu1 %v7167_v4  ;;  %v22446_v4 = vld [vmem:[%s31294_s5 + $0xd0] sm:$0xff] }
 0xa1b   :  { %24696 = vmatprep.subr.mxu0 %v26594_v38  ;;  %24723 = vmatprep.subr.mxu1 %v26594_v38 }
 0xa1c   :  { %24697 = vmatpush3.msra.mxu0 %v28130_v45 }
 0xa1d   :  { %24712 = vmatprep.subr.mxu0 %v26594_v38 }
 0xabb   :  { %v6700_v23 = vpop.f32.mrf.mxu1 }
 0xabd   :  { %v24645_v24 = vpop.f32.mrf.mxu1 }
 0xabe   :  { %v28248_v24 = vand.u32 4294901760, %v22446_v4 }
 0xac3   :  { %v6857_v46 = vpop.f32.mrf.mxu1 }
 0xac4   :  { %v6609_v10 = vpop.f32.mrf.mxu0 }
 0xac5   :  { %v24667_v53 = vpop.f32.mrf.mxu1  ;;  %v6610_v3 = vadd.f32 %v22437_v26, %v6609_v10  ;;  %v22444_v26 = vld [vmem:[%s31294_s5 + $0xc0] sm:$0xff] }
 0xac6   :  { %v24634_v25 = vpop.f32.mrf.mxu0  ;;  %v28257_v53 = vsub.f32 %v22446_v4, %v28248_v24 }
 0xac7   :  { %v6701_v15 = vadd.f32 %v6700_v23, %v6610_v3  ;;  %v28246_v23 = vsub.f32 %v22447_v17, %v28240_v20 }
 0xac9   :  { %v8091_v10 = vand.u32 4294901760, %v28246_v23 }
 0xacb   :  { %v8092_v3 = vsub.f32 %v28246_v23, %v8091_v10 }
 0xacc   :  { %v6780_v27 = vpop.f32.mrf.mxu0 }
 0xacd   :  { %v7015_v5 = vpop.f32.mrf.mxu1  ;;  %v6781_v29 = vadd.f32 %v6780_v27, %v6701_v15  ;;  %v8098_v27 = vand.u32 4294901760, %v28257_v53  ;;  %v28273_v15 = vand.u32 4294901760, %v22444_v26 }
 0xace   :  { %v24656_v1 = vpop.f32.mrf.mxu0 }
 0xacf   :  { %v24689_v28 = vpop.f32.mrf.mxu1  ;;  %v6858_v52 = vadd.f32 %v6857_v46, %v6781_v29  ;;  %v22445_v46 = vld [vmem:[%s31294_s5 + $0xc8] sm:$0xff]  ;;  %v8093_v1 = vand.u32 4294901760, %v8092_v3 }
 0xad0   :  { %v28259_v25 = vand.u32 4294901760, %v22445_v46  ;;  %v8099_v28 = vsub.f32 %v28257_v53, %v8098_v27 }
 0xad5   :  { %v6940_v55 = vpop.f32.mrf.mxu0 }
 0xad6   :  { %v6941_v57 = vadd.f32 %v6940_v55, %v6858_v52  ;;  %v28282_v52 = vsub.f32 %v22444_v26, %v28273_v15  ;;  %v8100_v55 = vand.u32 4294901760, %v8099_v28 }
 0xad7   :  { %v24678_v62 = vpop.f32.mrf.mxu0 }
 0xad8   :  { %v7016_v12 = vadd.f32 %v7015_v5, %v6941_v57  ;;  %v28271_v5 = vsub.f32 %v22445_v46, %v28259_v25  ;;  %v8112_v62 = vand.u32 4294901760, %v28282_v52 }
 0xada   :  { %vm7019_vm8 = vcmp.gt.f32.partialorder %v7016_v12, 0.0  ;;  %v7020_v2 = vmul.f32 0.01, %v7016_v12  ;;  %v8105_v29 = vand.u32 4294901760, %v28271_v5 }
 0xadc   :  { %v7021_v18 = vsel %vm7019_vm8, %v7016_v12, %v7020_v2  ;;  %v8106_v57 = vsub.f32 %v28271_v5, %v8105_v29  ;;  %v8113_v2 = vsub.f32 %v28282_v52, %v8112_v62 }
 0xadd   :  { %v7036_v30 = vsel %vm61_vm0, %v7021_v18, 0 }
 0xade   :  { %v7107_v40 = vand.u32 4294901760, %v7036_v30  ;;  %v8107_v12 = vand.u32 4294901760, %v8106_v57  ;;  %v8114_v18 = vand.u32 4294901760, %v8113_v2 }
 0xae0   :  { %24710 = vmatmul.mubr.f32.vlgmr.msra.gmra.mxu1 %v7107_v40  ;;  %v7108_v44 = vsub.f32 %v7036_v30, %v7107_v40 }
 0xae1   :  { %24724 = vmatpush3.msra.mxu1 %v28097_v37  ;;  %24731 = vmatprep.mubr.msk.f32.mxu1 %vm26595_vm1, %v26594_v38 }
 0xae2   :  { %24725 = vmatprep.subr.mxu1 %v26594_v38  ;;  %v7109_v49 = vand.u32 4294901760, %v7108_v44 }
 0xae3   :  { %24726 = vmatpush3.msra.mxu1 %v28105_v63 }
 0xae4   :  { %24727 = vmatprep.subr.mxu1 %v26594_v38  ;;  %v7110_v14 = vsub.f32 %v7108_v44, %v7109_v49 }
 0xae5   :  { %24728 = vmatpush3.msra.mxu1 %v28116_v9 }
 0xae6   :  { %24729 = vmatprep.subr.mxu1 %v26594_v38  ;;  %v7111_v22 = vand.u32 4294901760, %v7110_v14 }
 0xae7   :  { %24730 = vmatpush3.msra.mxu1 %v28130_v45 }
 0xae8   :  { %24732 = vmatmul.mubr.f32.vlgmr.msra.gmra.mxu1 %v7109_v49  ;;  %24745 = vmatprep.subr.mxu1 %v26594_v38 }
 0xae9   :  { %24699 = vmatmul.mubr.f32.vlgmr.msra.gmra.mxu0 %v7111_v22  ;;  %24746 = vmatpush3.msra.mxu1 %v28097_v37 }
 0xaea   :  { %24713 = vmatpush3.msra.mxu0 %v28103_v50  ;;  %24747 = vmatprep.subr.mxu1 %v26594_v38  ;;  %v22443_v50 = vld [vmem:[%s31297_s8 + $0x5] ss:$0 sm:$0xff] }
 0xaeb   :  { %24714 = vmatprep.subr.mxu0 %v26594_v38  ;;  %24748 = vmatpush3.msra.mxu1 %v28105_v63 }
 0xaec   :  { %24715 = vmatpush3.msra.mxu0 %v28114_v8  ;;  %24749 = vmatprep.subr.mxu1 %v26594_v38 }
 0xaed   :  { %24716 = vmatprep.subr.mxu0 %v26594_v38  ;;  %24750 = vmatpush3.msra.mxu1 %v28116_v9 }
 0xaee   :  { %24717 = vmatpush3.msra.mxu0 %v28128_v35  ;;  %24751 = vmatprep.subr.mxu1 %v26594_v38 }
 0xaef   :  { %24718 = vmatprep.subr.mxu0 %v26594_v38  ;;  %24720 = vmatprep.mubr.msk.f32.mxu0 %vm26595_vm1, %v26594_v38 }
 0xaf0   :  { %24719 = vmatpush3.msra.mxu0 %v28139_v59  ;;  %24752 = vmatpush3.msra.mxu1 %v28130_v45 }
 0xaf1   :  { %24753 = vmatprep.mubr.msk.f32.mxu1 %vm26595_vm1, %v26594_v38  ;;  %24721 = vmatmul.mubr.f32.vlgmr.msra.gmra.mxu0 %v7108_v44 }
 0xaf2   :  { %24734 = vmatprep.subr.mxu0 %v26594_v38  ;;  %24754 = vmatmul.mubr.f32.vlgmr.msra.gmra.mxu1 %v7107_v40 }
 0xaf3   :  { %24735 = vmatpush3.msra.mxu0 %v7144_v0  ;;  %24742 = vmatprep.mubr.msk.f32.mxu0 %vm26595_vm1, %v26594_v38 }
 0xaf4   :  { %24736 = vmatprep.subr.mxu0 %v26594_v38  ;;  %24761 = vmatprep.subr.mxu1 %v26594_v38 }
 0xaf5   :  { %24737 = vmatpush3.msra.mxu0 %v7151_v21  ;;  %24763 = vmatprep.mubr.msk.f32.mxu1 %vm26595_vm1, %v26594_v38 }
 0xaf6   :  { %24738 = vmatprep.subr.mxu0 %v26594_v38 }
 0xaf7   :  { %24739 = vmatpush3.msra.mxu0 %v7158_v54 }
 0xaf8   :  { %24740 = vmatprep.subr.mxu0 %v26594_v38 }
 0xaf9   :  { %24741 = vmatpush3.msra.mxu0 %v7165_v11 }
 0xafa   :  { %24743 = vmatmul.mubr.f32.vlgmr.msra.gmra.mxu0 %v7107_v40  ;;  %24756 = vmatprep.subr.mxu0 %v26594_v38 }
 0xafb   :  { %24758 = vmatprep.mubr.msk.f32.mxu0 %vm26595_vm1, %v26594_v38 }
 0xba0   :  { %v7204_v32 = vpop.f32.mrf.mxu1 }
 0xba2   :  { %v24711_v33 = vpop.f32.mrf.mxu1 }
 0xba8   :  { %v7361_v58 = vpop.f32.mrf.mxu1 }
 0xba9   :  { %v7113_v36 = vpop.f32.mrf.mxu0 }
 0xbaa   :  { %v24733_v37 = vpop.f32.mrf.mxu1  ;;  %v7114_v63 = vadd.f32 %v22443_v50, %v7113_v36 }
 0xbab   :  { %v24700_v39 = vpop.f32.mrf.mxu0 }
 0xbac   :  { %v7205_v8 = vadd.f32 %v7204_v32, %v7114_v63 }
 0xbb1   :  { %v7284_v16 = vpop.f32.mrf.mxu0 }
 0xbb2   :  { %v7519_v0 = vpop.f32.mrf.mxu1  ;;  %v7285_v34 = vadd.f32 %v7284_v16, %v7205_v8 }
 0xbb3   :  { %v24722_v9 = vpop.f32.mrf.mxu0 }
 0xbb4   :  { %v24755_v13 = vpop.f32.mrf.mxu1  ;;  %v7362_v21 = vadd.f32 %v7361_v58, %v7285_v34 }
 0xbba   :  { %v7444_v35 = vpop.f32.mrf.mxu0 }
 0xbbb   :  { %v7445_v45 = vadd.f32 %v7444_v35, %v7362_v21 }
 0xbbc   :  { %v24744_v47 = vpop.f32.mrf.mxu0 }
 0xbbd   :  { %v28209_v19 = vadd.f32 %v7519_v0, %v7445_v45  ;;  %v22453_v47 = vld [vmem:[%s31295_s7 + $0xd8] sm:$0xff] }
 0xbbf   :  { %v7554_v54 = vand.u32 4294901760, %v28209_v19 }
 0xbc1   :  { %v7631_v59 = vsub.f32 %v28209_v19, %v7554_v54  ;;  %24757 = vmatpush3.msra.mxu0 %v7554_v54 }
 0xbc2   :  { %24759 = vmatmul.mubr.f32.vlgmr.msra.gmra.mxu0 %v26761_v6  ;;  %24766 = vmatprep.subr.mxu0 %v26594_v38 }
 0xbc3   :  { %24767 = vmatpush3.msra.mxu0 %v7631_v59  ;;  %24768 = vmatprep.mubr.msk.f32.mxu0 %vm26595_vm1, %v26594_v38  ;;  %v7632_v60 = vand.u32 4294901760, %v7631_v59 }
 0xbc4   :  { %24776 = vmatprep.subr.mxu0 %v26594_v38 }
 0xbc5   :  { %v7633_v7 = vsub.f32 %v7631_v59, %v7632_v60  ;;  %v22452_v59 = vld [vmem:[%s31295_s7 + $0xd0] sm:$0xff] }
 0xbc6   :  { %24769 = vmatmul.mubr.f32.vlgmr.msra.gmra.mxu0 %v26750_v56 }
 0xbc7   :  { %24777 = vmatpush3.msra.mxu0 %v7632_v60  ;;  %v7634_v11 = vand.u32 4294901760, %v7633_v7  ;;  %24778 = vmatprep.mubr.msk.f32.mxu0 %vm26595_vm1, %v26594_v38  ;;  %v28357_v7 = vand.u32 4294901760, %v22452_v59 }
 0xbc8   :  { %24786 = vmatprep.subr.mxu0 %v26594_v38 }
 0xbc9   :  { %24762 = vmatpush3.msra.mxu1 %v7634_v11  ;;  %v22451_v11 = vld [vmem:[%s31295_s7 + $0xc8] sm:$0xff] }
 0xbca   :  { %24764 = vmatmul.mubr.f32.vlgmr.msra.gmra.mxu1 %v26747_v51  ;;  %24771 = vmatprep.subr.mxu1 %v26594_v38  ;;  %v28368_v4 = vand.u32 4294901760, %v22451_v11 }
 0xbcb   :  { %24772 = vmatpush3.msra.mxu1 %v7554_v54  ;;  %24773 = vmatprep.mubr.msk.f32.mxu1 %vm26595_vm1, %v26594_v38 }
 0xbcc   :  { %24781 = vmatprep.subr.mxu1 %v26594_v38  ;;  %24779 = vmatmul.mubr.f32.vlgmr.msra.gmra.mxu0 %v26747_v51 }
 0xbcd   :  { %24794 = vmatprep.mubr.msk.f32.mxu0 %vm26595_vm1, %v26594_v38  ;;  %24787 = vmatpush3.msra.mxu0 %v28240_v20 }
 0xbce   :  { %24774 = vmatmul.mubr.f32.vlgmr.msra.gmra.mxu1 %v26753_v61  ;;  %24788 = vmatprep.subr.mxu0 %v26594_v38 }
 0xbcf   :  { %24782 = vmatpush3.msra.mxu1 %v7554_v54  ;;  %24783 = vmatprep.mubr.msk.f32.mxu1 %vm26595_vm1, %v26594_v38  ;;  %v28349_v54 = vand.u32 4294901760, %v22453_v47 }
 0xbd0   :  { %24797 = vmatprep.subr.mxu1 %v26594_v38  ;;  %24789 = vmatpush3.msra.mxu0 %v28248_v24 }
 0xbd1   :  { %24790 = vmatprep.subr.mxu0 %v26594_v38  ;;  %v28355_v60 = vsub.f32 %v22453_v47, %v28349_v54 }
 0xbd2   :  { %24784 = vmatmul.mubr.f32.vlgmr.msra.gmra.mxu1 %v26747_v51  ;;  %24791 = vmatpush3.msra.mxu0 %v28259_v25 }
 0xbd3   :  { %24805 = vmatprep.mubr.msk.f32.mxu1 %vm26595_vm1, %v26594_v38  ;;  %24792 = vmatprep.subr.mxu0 %v26594_v38  ;;  %v8595_v17 = vand.u32 4294901760, %v28355_v60 }
 0xbd4   :  { %24793 = vmatpush3.msra.mxu0 %v28273_v15  ;;  %24798 = vmatpush3.msra.mxu1 %v8093_v1 }
 0xbd5   :  { %24808 = vmatprep.subr.mxu0 %v26594_v38  ;;  %24799 = vmatprep.subr.mxu1 %v26594_v38 }
 0xbd6   :  { %24800 = vmatpush3.msra.mxu1 %v8100_v55 }
 0xbd7   :  { %24801 = vmatprep.subr.mxu1 %v26594_v38 }
 0xbd8   :  { %24802 = vmatpush3.msra.mxu1 %v8107_v12 }
 0xbd9   :  { %24803 = vmatprep.subr.mxu1 %v26594_v38 }
 0xbda   :  { %24804 = vmatpush3.msra.mxu1 %v8114_v18 }
 0xbdb   :  { %24819 = vmatprep.subr.mxu1 %v26594_v38 }
 0xc82   :  { %v7595_v30 = vpop.f32.mrf.mxu0 }
 0xc84   :  { %v24760_v40 = vpop.f32.mrf.mxu0 }
 0xc86   :  { %v7745_v44 = vpop.f32.mrf.mxu0 }
 0xc88   :  { %v24770_v49 = vpop.f32.mrf.mxu0 }
 0xc8a   :  { %v7671_v14 = vpop.f32.mrf.mxu1 }
 0xc8b   :  { %v7672_v22 = vadd.f32 %v7671_v14, %v7595_v30  ;;  %v22449_v30 = vld [vmem:[%s31296_s6 + $0x6] ss:$0 sm:$0xff] }
 0xc8c   :  { %v24765_v32 = vpop.f32.mrf.mxu1  ;;  %v7893_v33 = vpop.f32.mrf.mxu0 }
 0xc8d   :  { %v7746_v58 = vadd.f32 %v7745_v44, %v7672_v22 }
 0xc8e   :  { %v7819_v36 = vpop.f32.mrf.mxu1  ;;  %v24780_v37 = vpop.f32.mrf.mxu0 }
 0xc8f   :  { %v7820_v39 = vadd.f32 %v7819_v36, %v7746_v58 }
 0xc90   :  { %v24775_v50 = vpop.f32.mrf.mxu1 }
 0xc91   :  { %v7894_v63 = vadd.f32 %v7893_v33, %v7820_v39 }
 0xc92   :  { %v7965_v16 = vpop.f32.mrf.mxu1 }
 0xc93   :  { %v7966_v0 = vadd.f32 %v7965_v16, %v7894_v63 }
 0xc94   :  { %v24785_v8 = vpop.f32.mrf.mxu1 }
 0xc95   :  { %v7983_v9 = vsel %vm61_vm0, %v7966_v0, 0  ;;  %v22459_v8 = vld [vmem:[%s31294_s5 + $0xf8] sm:$0xff] }
 0xc96   :  { %v8054_v13 = vand.u32 4294901760, %v7983_v9 }
 0xc98   :  { %v8055_v34 = vsub.f32 %v7983_v9, %v8054_v13  ;;  %24806 = vmatmul.mubr.f32.vlgmr.msra.gmra.mxu1 %v8054_v13 }
 0xc99   :  { %24820 = vmatpush3.msra.mxu1 %v28240_v20  ;;  %24827 = vmatprep.mubr.msk.f32.mxu1 %vm26595_vm1, %v26594_v38 }
 0xc9a   :  { %24821 = vmatprep.subr.mxu1 %v26594_v38  ;;  %v8056_v21 = vand.u32 4294901760, %v8055_v34 }
 0xc9b   :  { %24822 = vmatpush3.msra.mxu1 %v28248_v24 }
 0xc9c   :  { %24823 = vmatprep.subr.mxu1 %v26594_v38  ;;  %v8057_v35 = vsub.f32 %v8055_v34, %v8056_v21 }
 0xc9d   :  { %24824 = vmatpush3.msra.mxu1 %v28259_v25 }
 0xc9e   :  { %24825 = vmatprep.subr.mxu1 %v26594_v38  ;;  %v8058_v45 = vand.u32 4294901760, %v8057_v35  ;;  %v22457_v35 = vld [vmem:[%s31294_s5 + $0xe8] sm:$0xff] }
 0xc9f   :  { %24826 = vmatpush3.msra.mxu1 %v28273_v15 }
 0xca0   :  { %24828 = vmatmul.mubr.f32.vlgmr.msra.gmra.mxu1 %v8056_v21  ;;  %24841 = vmatprep.subr.mxu1 %v26594_v38  ;;  %v28420_v21 = vand.u32 4294901760, %v22459_v8 }
 0xca1   :  { %24795 = vmatmul.mubr.f32.vlgmr.msra.gmra.mxu0 %v8058_v45  ;;  %24842 = vmatpush3.msra.mxu1 %v28240_v20  ;;  %v28366_v20 = vsub.f32 %v22452_v59, %v28357_v7  ;;  %v22456_v59 = vld [vmem:[%s31294_s5 + $0xe0] sm:$0xff] }
 0xca2   :  { %24809 = vmatpush3.msra.mxu0 %v28246_v23  ;;  %24843 = vmatprep.subr.mxu1 %v26594_v38  ;;  %v22450_v23 = vld [vmem:[%s31295_s7 + $0xc0] sm:$0xff] }
 0xca3   :  { %24810 = vmatprep.subr.mxu0 %v26594_v38  ;;  %24844 = vmatpush3.msra.mxu1 %v28248_v24  ;;  %v8596_v24 = vsub.f32 %v28355_v60, %v8595_v17  ;;  %v8602_v46 = vand.u32 4294901760, %v28366_v20 }
 0xca4   :  { %24811 = vmatpush3.msra.mxu0 %v28257_v53  ;;  %24845 = vmatprep.subr.mxu1 %v26594_v38  ;;  %v28382_v53 = vand.u32 4294901760, %v22450_v23 }
 0xca5   :  { %24812 = vmatprep.subr.mxu0 %v26594_v38  ;;  %24846 = vmatpush3.msra.mxu1 %v28259_v25  ;;  %v8597_v25 = vand.u32 4294901760, %v8596_v24  ;;  %v8603_v26 = vsub.f32 %v28366_v20, %v8602_v46  ;;  %v28439_v24 = vand.u32 4294901760, %v22457_v35 }
 0xca6   :  { %24813 = vmatpush3.msra.mxu0 %v28271_v5  ;;  %24847 = vmatprep.subr.mxu1 %v26594_v38 }
 0xca7   :  { %24814 = vmatprep.subr.mxu0 %v26594_v38  ;;  %24816 = vmatprep.mubr.msk.f32.mxu0 %vm26595_vm1, %v26594_v38  ;;  %v8604_v5 = vand.u32 4294901760, %v8603_v26 }
 0xca8   :  { %24815 = vmatpush3.msra.mxu0 %v28282_v52  ;;  %24848 = vmatpush3.msra.mxu1 %v28273_v15 }
 0xca9   :  { %24849 = vmatprep.mubr.msk.f32.mxu1 %vm26595_vm1, %v26594_v38  ;;  %24817 = vmatmul.mubr.f32.vlgmr.msra.gmra.mxu0 %v8055_v34 }
 0xcaa   :  { %24830 = vmatprep.subr.mxu0 %v26594_v38  ;;  %24850 = vmatmul.mubr.f32.vlgmr.msra.gmra.mxu1 %v8054_v13 }
 0xcab   :  { %24831 = vmatpush3.msra.mxu0 %v8091_v10  ;;  %24838 = vmatprep.mubr.msk.f32.mxu0 %vm26595_vm1, %v26594_v38  ;;  %v28380_v10 = vsub.f32 %v22451_v11, %v28368_v4 }
 0xcac   :  { %24832 = vmatprep.subr.mxu0 %v26594_v38  ;;  %24863 = vmatprep.subr.mxu1 %v26594_v38 }
 0xcad   :  { %24833 = vmatpush3.msra.mxu0 %v8098_v27  ;;  %24871 = vmatprep.mubr.msk.f32.mxu1 %vm26595_vm1, %v26594_v38  ;;  %v8609_v3 = vand.u32 4294901760, %v28380_v10  ;;  %v28391_v27 = vsub.f32 %v22450_v23, %v28382_v53  ;;  %v28437_v23 = vsub.f32 %v22459_v8, %v28420_v21 }
 0xcae   :  { %24834 = vmatprep.subr.mxu0 %v26594_v38  ;;  %24864 = vmatpush3.msra.mxu1 %v8597_v25 }
 0xcaf   :  { %24835 = vmatpush3.msra.mxu0 %v8105_v29  ;;  %v8610_v15 = vsub.f32 %v28380_v10, %v8609_v3  ;;  %v8616_v1 = vand.u32 4294901760, %v28391_v27  ;;  %24865 = vmatprep.subr.mxu1 %v26594_v38 }
 0xcb0   :  { %24836 = vmatprep.subr.mxu0 %v26594_v38  ;;  %24866 = vmatpush3.msra.mxu1 %v8604_v5  ;;  %v28446_v5 = vand.u32 4294901760, %v22456_v59 }
 0xcb1   :  { %24837 = vmatpush3.msra.mxu0 %v8112_v62  ;;  %v8611_v28 = vand.u32 4294901760, %v8610_v15  ;;  %v8617_v29 = vsub.f32 %v28391_v27, %v8616_v1  ;;  %24867 = vmatprep.subr.mxu1 %v26594_v38  ;;  %v9096_v15 = vand.u32 4294901760, %v28437_v23 }
 0xcb2   :  { %24839 = vmatmul.mubr.f32.vlgmr.msra.gmra.mxu0 %v8054_v13  ;;  %24852 = vmatprep.subr.mxu0 %v26594_v38  ;;  %v22458_v13 = vld [vmem:[%s31294_s5 + $0xf0] sm:$0xff] }
 0xcb3   :  { %24860 = vmatprep.mubr.msk.f32.mxu0 %vm26595_vm1, %v26594_v38  ;;  %24853 = vmatpush3.msra.mxu0 %v28349_v54  ;;  %v8618_v52 = vand.u32 4294901760, %v8617_v29  ;;  %v28429_v47 = vand.u32 4294901760, %v22458_v13 }
 0xcb4   :  { %24854 = vmatprep.subr.mxu0 %v26594_v38  ;;  %24868 = vmatpush3.msra.mxu1 %v8611_v28  ;;  %v28452_v28 = vsub.f32 %v22457_v35, %v28439_v24 }
 0xcb5   :  { %24855 = vmatpush3.msra.mxu0 %v28357_v7  ;;  %24869 = vmatprep.subr.mxu1 %v26594_v38  ;;  %v28444_v26 = vsub.f32 %v22458_v13, %v28429_v47 }
 0xcb6   :  { %24856 = vmatprep.subr.mxu0 %v26594_v38  ;;  %24870 = vmatpush3.msra.mxu1 %v8618_v52  ;;  %v28459_v52 = vsub.f32 %v22456_v59, %v28446_v5 }
 0xcb7   :  { %24857 = vmatpush3.msra.mxu0 %v28368_v4  ;;  %24885 = vmatprep.subr.mxu1 %v26594_v38  ;;  %v9103_v29 = vand.u32 4294901760, %v28444_v26 }
 0xcb8   :  { %24858 = vmatprep.subr.mxu0 %v26594_v38 }
 0xcb9   :  { %24859 = vmatpush3.msra.mxu0 %v28382_v53 }
 0xcba   :  { %24874 = vmatprep.subr.mxu0 %v26594_v38 }
 0xd58   :  { %v8151_v55 = vpop.f32.mrf.mxu1 }
 0xd5a   :  { %v24807_v57 = vpop.f32.mrf.mxu1 }
 0xd5b   :  { %v9117_v57 = vand.u32 4294901760, %v28459_v52 }
 0xd60   :  { %v8308_v62 = vpop.f32.mrf.mxu1 }
 0xd61   :  { %v8060_v12 = vpop.f32.mrf.mxu0 }
 0xd62   :  { %v24829_v2 = vpop.f32.mrf.mxu1  ;;  %v8061_v40 = vadd.f32 %v22449_v30, %v8060_v12 }
 0xd63   :  { %v24796_v18 = vpop.f32.mrf.mxu0 }
 0xd64   :  { %v8152_v14 = vadd.f32 %v8151_v55, %v8061_v40  ;;  %v9110_v55 = vand.u32 4294901760, %v28452_v28 }
 0xd66   :  { %v9111_v12 = vsub.f32 %v28452_v28, %v9110_v55 }
 0xd68   :  { %v9112_v18 = vand.u32 4294901760, %v9111_v12 }
 0xd69   :  { %v8231_v44 = vpop.f32.mrf.mxu0 }
 0xd6a   :  { %v8466_v49 = vpop.f32.mrf.mxu1  ;;  %v8232_v33 = vadd.f32 %v8231_v44, %v8152_v14  ;;  %v22463_v44 = vld [vmem:[%s31295_s7 + $0xe8] sm:$0xff] }
 0xd6b   :  { %v24818_v22 = vpop.f32.mrf.mxu0 }
 0xd6c   :  { %v24851_v32 = vpop.f32.mrf.mxu1  ;;  %v8309_v58 = vadd.f32 %v8308_v62, %v8232_v33  ;;  %v8988_v62 = vsel %vm61_vm0, %v27491_v42, 0  ;;  %v9118_v42 = vsub.f32 %v28459_v52, %v9117_v57  ;;  %v28602_v22 = vand.u32 4294901760, %v22463_v44 }
 0xd6d   :  { %v22462_v32 = vld [vmem:[%s31295_s7 + $0xe0] sm:$0xff] }
 0xd6e   :  { %v9119_v30 = vand.u32 4294901760, %v9118_v42 }
 0xd72   :  { %v8391_v36 = vpop.f32.mrf.mxu0 }
 0xd73   :  { %v8392_v37 = vadd.f32 %v8391_v36, %v8309_v58  ;;  %v28614_v36 = vsub.f32 %v22463_v44, %v28602_v22 }
 0xd74   :  { %v24840_v39 = vpop.f32.mrf.mxu0 }
 0xd75   :  { %v8467_v50 = vadd.f32 %v8466_v49, %v8392_v37  ;;  %v28616_v37 = vand.u32 4294901760, %v22462_v32 }
 0xd77   :  { %vm8470_vm9 = vcmp.gt.f32.partialorder %v8467_v50, 0.0  ;;  %v8471_v63 = vmul.f32 0.01, %v8467_v50 }
 0xd79   :  { %v8472_v16 = vsel %vm8470_vm9, %v8467_v50, %v8471_v63  ;;  %v9614_v63 = vand.u32 4294901760, %v28614_v36 }
 0xd7a   :  { %v8487_v0 = vsel %vm61_vm0, %v8472_v16, 0  ;;  %v28625_v16 = vsub.f32 %v22462_v32, %v28616_v37 }
 0xd7b   :  { %v28413_v9 = vand.u32 4294901760, %v8487_v0  ;;  %v9615_v8 = vsub.f32 %v28614_v36, %v9614_v63 }
 0xd7d   :  { %24872 = vmatmul.mubr.f32.vlgmr.msra.gmra.mxu1 %v28413_v9  ;;  %v8559_v34 = vsub.f32 %v8487_v0, %v28413_v9  ;;  %v9616_v13 = vand.u32 4294901760, %v9615_v8 }
 0xd7e   :  { %24886 = vmatpush3.msra.mxu1 %v28349_v54  ;;  %24893 = vmatprep.mubr.msk.f32.mxu1 %vm26595_vm1, %v26594_v38 }
 0xd7f   :  { %24887 = vmatprep.subr.mxu1 %v26594_v38  ;;  %v8560_v45 = vand.u32 4294901760, %v8559_v34 }
 0xd80   :  { %24888 = vmatpush3.msra.mxu1 %v28357_v7 }
 0xd81   :  { %24889 = vmatprep.subr.mxu1 %v26594_v38  ;;  %v8561_v11 = vsub.f32 %v8559_v34, %v8560_v45 }
 0xd82   :  { %24890 = vmatpush3.msra.mxu1 %v28368_v4 }
 0xd83   :  { %24891 = vmatprep.subr.mxu1 %v26594_v38  ;;  %v8562_v25 = vand.u32 4294901760, %v8561_v11 }
 0xd84   :  { %24892 = vmatpush3.msra.mxu1 %v28382_v53 }
 0xd85   :  { %24894 = vmatmul.mubr.f32.vlgmr.msra.gmra.mxu1 %v8560_v45  ;;  %24907 = vmatprep.subr.mxu1 %v26594_v38 }
 0xd86   :  { %24861 = vmatmul.mubr.f32.vlgmr.msra.gmra.mxu0 %v8562_v25  ;;  %24908 = vmatpush3.msra.mxu1 %v28349_v54  ;;  %v9097_v54 = vsub.f32 %v28437_v23, %v9096_v15 }
 0xd87   :  { %24875 = vmatpush3.msra.mxu0 %v28355_v60  ;;  %24909 = vmatprep.subr.mxu1 %v26594_v38 }
 0xd88   :  { %24876 = vmatprep.subr.mxu0 %v26594_v38  ;;  %24910 = vmatpush3.msra.mxu1 %v28357_v7  ;;  %v9104_v7 = vsub.f32 %v28444_v26, %v9103_v29 }
 0xd89   :  { %24877 = vmatpush3.msra.mxu0 %v28366_v20  ;;  %24911 = vmatprep.subr.mxu1 %v26594_v38 }
 0xd8a   :  { %24878 = vmatprep.subr.mxu0 %v26594_v38  ;;  %24912 = vmatpush3.msra.mxu1 %v28368_v4  ;;  %v9098_v4 = vand.u32 4294901760, %v9097_v54  ;;  %v9105_v2 = vand.u32 4294901760, %v9104_v7 }
 0xd8b   :  { %24879 = vmatpush3.msra.mxu0 %v28380_v10  ;;  %24913 = vmatprep.subr.mxu1 %v26594_v38  ;;  %v22465_v10 = vld [vmem:[%s31295_s7 + $0xf8] sm:$0xff] }
 0xd8c   :  { %24880 = vmatprep.subr.mxu0 %v26594_v38  ;;  %24882 = vmatprep.mubr.msk.f32.mxu0 %vm26595_vm1, %v26594_v38 }
 0xd8d   :  { %24881 = vmatpush3.msra.mxu0 %v28391_v27  ;;  %24914 = vmatpush3.msra.mxu1 %v28382_v53  ;;  %v28497_v53 = vand.u32 4294901760, %v8988_v62  ;;  %v22464_v27 = vld [vmem:[%s31295_s7 + $0xf0] sm:$0xff] }
 0xd8e   :  { %24915 = vmatprep.mubr.msk.f32.mxu1 %vm26595_vm1, %v26594_v38  ;;  %24883 = vmatmul.mubr.f32.vlgmr.msra.gmra.mxu0 %v8559_v34  ;;  %v28591_v40 = vand.u32 4294901760, %v22464_v27 }
 0xd8f   :  { %24896 = vmatprep.subr.mxu0 %v26594_v38  ;;  %24916 = vmatmul.mubr.f32.vlgmr.msra.gmra.mxu1 %v28413_v9  ;;  %v9060_v60 = vsub.f32 %v8988_v62, %v28497_v53 }
 0xd90   :  { %24929 = vmatprep.subr.mxu1 %v26594_v38  ;;  %24897 = vmatpush3.msra.mxu0 %v8595_v17  ;;  %v28600_v14 = vsub.f32 %v22464_v27, %v28591_v40 }
 0xd91   :  { %24930 = vmatpush3.msra.mxu1 %v9098_v4  ;;  %24898 = vmatprep.subr.mxu0 %v26594_v38  ;;  %v9061_v17 = vand.u32 4294901760, %v9060_v60 }
 0xd92   :  { %24931 = vmatprep.subr.mxu1 %v26594_v38  ;;  %24899 = vmatpush3.msra.mxu0 %v8602_v46  ;;  %v9607_v58 = vand.u32 4294901760, %v28600_v14 }
 0xd93   :  { %24932 = vmatpush3.msra.mxu1 %v9105_v2  ;;  %24900 = vmatprep.subr.mxu0 %v26594_v38  ;;  %v9062_v20 = vsub.f32 %v9060_v60, %v9061_v17 }
 0xd94   :  { %24933 = vmatprep.subr.mxu1 %v26594_v38  ;;  %24901 = vmatpush3.msra.mxu0 %v8609_v3  ;;  %v28583_v3 = vand.u32 4294901760, %v22465_v10  ;;  %v9608_v50 = vsub.f32 %v28600_v14, %v9607_v58 }
 0xd95   :  { %24934 = vmatpush3.msra.mxu1 %v9112_v18  ;;  %24902 = vmatprep.subr.mxu0 %v26594_v38  ;;  %v9063_v46 = vand.u32 4294901760, %v9062_v20 }
 0xd96   :  { %24935 = vmatprep.subr.mxu1 %v26594_v38  ;;  %24903 = vmatpush3.msra.mxu0 %v8616_v1  ;;  %v28589_v1 = vsub.f32 %v22465_v10, %v28583_v3  ;;  %v9609_v0 = vand.u32 4294901760, %v9608_v50 }
 0xd97   :  { %24904 = vmatprep.mubr.msk.f32.mxu0 %vm26595_vm1, %v26594_v38  ;;  %24936 = vmatpush3.msra.mxu1 %v9119_v30  ;;  %v22461_v30 = vld [vmem:[%s31296_s6 + $0x7] ss:$0 sm:$0xff] }
 0xd98   :  { %24937 = vmatprep.mubr.msk.f32.mxu1 %vm26595_vm1, %v26594_v38  ;;  %24905 = vmatmul.mubr.f32.vlgmr.msra.gmra.mxu0 %v28413_v9  ;;  %v9600_v49 = vand.u32 4294901760, %v28589_v1  ;;  %v9621_v9 = vand.u32 4294901760, %v28625_v16 }
 0xd99   :  { %24918 = vmatprep.subr.mxu0 %v26594_v38  ;;  %24938 = vmatmul.mubr.f32.vlgmr.msra.gmra.mxu1 %v28497_v53 }
 0xd9a   :  { %24951 = vmatprep.subr.mxu1 %v26594_v38  ;;  %24919 = vmatpush3.msra.mxu0 %v28420_v21  ;;  %v9601_v33 = vsub.f32 %v28589_v1, %v9600_v49  ;;  %v9622_v34 = vsub.f32 %v28625_v16, %v9621_v9 }
 0xd9b   :  { %24952 = vmatpush3.msra.mxu1 %v28420_v21  ;;  %24920 = vmatprep.subr.mxu0 %v26594_v38 }
 0xd9c   :  { %24953 = vmatprep.subr.mxu1 %v26594_v38  ;;  %24921 = vmatpush3.msra.mxu0 %v28429_v47  ;;  %v9602_v39 = vand.u32 4294901760, %v9601_v33 }
 0xd9d   :  { %24954 = vmatpush3.msra.mxu1 %v28429_v47  ;;  %24922 = vmatprep.subr.mxu0 %v26594_v38 }
 0xd9e   :  { %24955 = vmatprep.subr.mxu1 %v26594_v38  ;;  %24923 = vmatpush3.msra.mxu0 %v28439_v24 }
 0xd9f   :  { %24956 = vmatpush3.msra.mxu1 %v28439_v24  ;;  %24924 = vmatprep.subr.mxu0 %v26594_v38 }
 0xda0   :  { %24957 = vmatprep.subr.mxu1 %v26594_v38  ;;  %24925 = vmatpush3.msra.mxu0 %v28446_v5 }
 0xda1   :  { %24926 = vmatprep.mubr.msk.f32.mxu0 %vm26595_vm1, %v26594_v38  ;;  %24958 = vmatpush3.msra.mxu1 %v28446_v5 }
 0xda2   :  { %24959 = vmatprep.mubr.msk.f32.mxu1 %vm26595_vm1, %v26594_v38  ;;  %24927 = vmatmul.mubr.f32.vlgmr.msra.gmra.mxu0 %v9063_v46 }
 0xda3   :  { %24940 = vmatprep.subr.mxu0 %v26594_v38  ;;  %24960 = vmatmul.mubr.f32.vlgmr.msra.gmra.mxu1 %v9061_v17 }
 0xda4   :  { %24973 = vmatprep.subr.mxu1 %v26594_v38  ;;  %24941 = vmatpush3.msra.mxu0 %v28437_v23 }
 0xda5   :  { %24974 = vmatpush3.msra.mxu1 %v28420_v21  ;;  %24942 = vmatprep.subr.mxu0 %v26594_v38  ;;  %v9623_v21 = vand.u32 4294901760, %v9622_v34 }
 0xda6   :  { %24975 = vmatprep.subr.mxu1 %v26594_v38  ;;  %24943 = vmatpush3.msra.mxu0 %v28444_v26 }
 0xda7   :  { %24976 = vmatpush3.msra.mxu1 %v28429_v47  ;;  %24944 = vmatprep.subr.mxu0 %v26594_v38  ;;  %v22455_v47 = vld [vmem:[%s31297_s8 + $0x6] ss:$0 sm:$0xff] }
 0xda8   :  { %24977 = vmatprep.subr.mxu1 %v26594_v38  ;;  %24945 = vmatpush3.msra.mxu0 %v28452_v28 }
 0xda9   :  { %24978 = vmatpush3.msra.mxu1 %v28439_v24  ;;  %24946 = vmatprep.subr.mxu0 %v26594_v38 }
 0xdaa   :  { %24979 = vmatprep.subr.mxu1 %v26594_v38  ;;  %24947 = vmatpush3.msra.mxu0 %v28459_v52 }
 0xdab   :  { %24948 = vmatprep.mubr.msk.f32.mxu0 %vm26595_vm1, %v26594_v38  ;;  %24980 = vmatpush3.msra.mxu1 %v28446_v5 }
 0xdac   :  { %24981 = vmatprep.mubr.msk.f32.mxu1 %vm26595_vm1, %v26594_v38  ;;  %24949 = vmatmul.mubr.f32.vlgmr.msra.gmra.mxu0 %v9060_v60 }
 0xdad   :  { %24962 = vmatprep.subr.mxu0 %v26594_v38  ;;  %24982 = vmatmul.mubr.f32.vlgmr.msra.gmra.mxu1 %v28497_v53 }
 0xdae   :  { %24963 = vmatpush3.msra.mxu0 %v9096_v15  ;;  %24970 = vmatprep.mubr.msk.f32.mxu0 %vm26595_vm1, %v26594_v38 }
 0xdaf   :  { %24964 = vmatprep.subr.mxu0 %v26594_v38  ;;  %24995 = vmatprep.subr.mxu1 %v26594_v38 }
 0xdb0   :  { %24965 = vmatpush3.msra.mxu0 %v9103_v29  ;;  %25003 = vmatprep.mubr.msk.f32.mxu1 %vm26595_vm1, %v26594_v38 }
 0xdb1   :  { %24966 = vmatprep.subr.mxu0 %v26594_v38  ;;  %24996 = vmatpush3.msra.mxu1 %v9602_v39 }
 0xdb2   :  { %24967 = vmatpush3.msra.mxu0 %v9110_v55  ;;  %24997 = vmatprep.subr.mxu1 %v26594_v38 }
 0xdb3   :  { %24968 = vmatprep.subr.mxu0 %v26594_v38  ;;  %24998 = vmatpush3.msra.mxu1 %v9609_v0 }
 0xdb4   :  { %24969 = vmatpush3.msra.mxu0 %v9117_v57  ;;  %24999 = vmatprep.subr.mxu1 %v26594_v38 }
 0xdb5   :  { %24971 = vmatmul.mubr.f32.vlgmr.msra.gmra.mxu0 %v28497_v53  ;;  %24984 = vmatprep.subr.mxu0 %v26594_v38 }
 0xdb6   :  { %24992 = vmatprep.mubr.msk.f32.mxu0 %vm26595_vm1, %v26594_v38  ;;  %24985 = vmatpush3.msra.mxu0 %v28583_v3 }
 0xdb7   :  { %24986 = vmatprep.subr.mxu0 %v26594_v38  ;;  %25000 = vmatpush3.msra.mxu1 %v9616_v13 }
 0xdb8   :  { %24987 = vmatpush3.msra.mxu0 %v28591_v40  ;;  %25001 = vmatprep.subr.mxu1 %v26594_v38 }
 0xdb9   :  { %24988 = vmatprep.subr.mxu0 %v26594_v38  ;;  %25002 = vmatpush3.msra.mxu1 %v9623_v21 }
 0xdba   :  { %24989 = vmatpush3.msra.mxu0 %v28602_v22  ;;  %25017 = vmatprep.subr.mxu1 %v26594_v38 }
 0xdbb   :  { %24990 = vmatprep.subr.mxu0 %v26594_v38 }
 0xdbc   :  { %24991 = vmatpush3.msra.mxu0 %v28616_v37 }
 0xdbd   :  { %25006 = vmatprep.subr.mxu0 %v26594_v38 }
 0xe3d   :  { %v8655_v35 = vpop.f32.mrf.mxu1 }
 0xe3f   :  { %v24873_v45 = vpop.f32.mrf.mxu1 }
 0xe45   :  { %v8812_v59 = vpop.f32.mrf.mxu1 }
 0xe46   :  { %v8564_v11 = vpop.f32.mrf.mxu0 }
 0xe47   :  { %v8565_v23 = vadd.f32 %v22455_v47, %v8564_v11  ;;  %v24895_v24 = vpop.f32.mrf.mxu1 }
 0xe48   :  { %v24862_v25 = vpop.f32.mrf.mxu0 }
 0xe49   :  { %v8656_v26 = vadd.f32 %v8655_v35, %v8565_v23 }
 0xe4e   :  { %v8735_v5 = vpop.f32.mrf.mxu0 }
 0xe4f   :  { %v8736_v15 = vadd.f32 %v8735_v5, %v8656_v26  ;;  %v8970_v28 = vpop.f32.mrf.mxu1 }
 0xe50   :  { %v24884_v29 = vpop.f32.mrf.mxu0 }
 0xe51   :  { %v24917_v52 = vpop.f32.mrf.mxu1  ;;  %v8813_v54 = vadd.f32 %v8812_v59, %v8736_v15 }
 0xe58   :  { %v8895_v55 = vpop.f32.mrf.mxu0 }
 0xe59   :  { %v8896_v7 = vadd.f32 %v8895_v55, %v8813_v54  ;;  %v9156_v57 = vpop.f32.mrf.mxu1 }
 0xe5a   :  { %v24906_v62 = vpop.f32.mrf.mxu0 }
 0xe5b   :  { %v28643_v4 = vadd.f32 %v8970_v28, %v8896_v7  ;;  %v24939_v12 = vpop.f32.mrf.mxu1 }
 0xe62   :  { %v9065_v2 = vpop.f32.mrf.mxu0 }
 0xe63   :  { %v9313_v42 = vpop.f32.mrf.mxu1  ;;  %v9066_v60 = vadd.f32 %v22461_v30, %v9065_v2 }
 0xe64   :  { %v24928_v53 = vpop.f32.mrf.mxu0 }
 0xe65   :  { %v24961_v18 = vpop.f32.mrf.mxu1  ;;  %v9157_v46 = vadd.f32 %v9156_v57, %v9066_v60  ;;  %v22467_v53 = vld [vmem:[%s31297_s8 + $0x7] ss:$0 sm:$0xff] }
 0xe6c   :  { %v9236_v17 = vpop.f32.mrf.mxu0 }
 0xe6d   :  { %v9471_v20 = vpop.f32.mrf.mxu1  ;;  %v9237_v44 = vadd.f32 %v9236_v17, %v9157_v46 }
 0xe6e   :  { %v24950_v10 = vpop.f32.mrf.mxu0 }
 0xe6f   :  { %v24983_v27 = vpop.f32.mrf.mxu1  ;;  %v9314_v32 = vadd.f32 %v9313_v42, %v9237_v44 }
 0xe75   :  { %v9396_v33 = vpop.f32.mrf.mxu0 }
 0xe76   :  { %v9397_v39 = vadd.f32 %v9396_v33, %v9314_v32 }
 0xe77   :  { %v24972_v50 = vpop.f32.mrf.mxu0 }
 0xe78   :  { %v9472_v0 = vadd.f32 %v9471_v20, %v9397_v39 }
 0xe7a   :  { %vm9475_vm10 = vcmp.gt.f32.partialorder %v9472_v0, 0.0  ;;  %v9476_v8 = vmul.f32 0.01, %v9472_v0 }
 0xe7c   :  { %v9477_v13 = vsel %vm9475_vm10, %v9472_v0, %v9476_v8 }
 0xe7d   :  { %v9492_v34 = vsel %vm61_vm0, %v9477_v13, 0 }
 0xe7e   :  { %v9563_v21 = vand.u32 4294901760, %v9492_v34 }
 0xe80   :  { %v9564_v35 = vsub.f32 %v9492_v34, %v9563_v21  ;;  %25004 = vmatmul.mubr.f32.vlgmr.msra.gmra.mxu1 %v9563_v21 }
 0xe81   :  { %25018 = vmatpush3.msra.mxu1 %v28583_v3  ;;  %25025 = vmatprep.mubr.msk.f32.mxu1 %vm26595_vm1, %v26594_v38 }
 0xe82   :  { %25019 = vmatprep.subr.mxu1 %v26594_v38  ;;  %v9565_v45 = vand.u32 4294901760, %v9564_v35 }
 0xe83   :  { %25020 = vmatpush3.msra.mxu1 %v28591_v40 }
 0xe84   :  { %25021 = vmatprep.subr.mxu1 %v26594_v38  ;;  %v9566_v47 = vsub.f32 %v9564_v35, %v9565_v45 }
 0xe85   :  { %25022 = vmatpush3.msra.mxu1 %v28602_v22 }
 0xe86   :  { %25023 = vmatprep.subr.mxu1 %v26594_v38  ;;  %v9567_v59 = vand.u32 4294901760, %v9566_v47  ;;  %v22476_v47 = vld [vmem:[%s31295_s7 + $0x110] sm:$0xff] }
 0xe87   :  { %25024 = vmatpush3.msra.mxu1 %v28616_v37 }
 0xe88   :  { %25026 = vmatmul.mubr.f32.vlgmr.msra.gmra.mxu1 %v9565_v45  ;;  %25039 = vmatprep.subr.mxu1 %v26594_v38 }
 0xe89   :  { %24993 = vmatmul.mubr.f32.vlgmr.msra.gmra.mxu0 %v9567_v59  ;;  %25040 = vmatpush3.msra.mxu1 %v28583_v3  ;;  %v22471_v3 = vld [vmem:[%s31294_s5 + $0x118] sm:$0xff] }
 0xe8a   :  { %25007 = vmatpush3.msra.mxu0 %v28589_v1  ;;  %25041 = vmatprep.subr.mxu1 %v26594_v38  ;;  %v28700_v1 = vand.u32 4294901760, %v22471_v3 }
 0xe8b   :  { %25008 = vmatprep.subr.mxu0 %v26594_v38  ;;  %25042 = vmatpush3.msra.mxu1 %v28591_v40  ;;  %v22470_v40 = vld [vmem:[%s31294_s5 + $0x110] sm:$0xff] }
 0xe8c   :  { %25009 = vmatpush3.msra.mxu0 %v28600_v14  ;;  %25043 = vmatprep.subr.mxu1 %v26594_v38  ;;  %v28708_v14 = vand.u32 4294901760, %v22470_v40 }
 0xe8d   :  { %25010 = vmatprep.subr.mxu0 %v26594_v38  ;;  %25044 = vmatpush3.msra.mxu1 %v28602_v22  ;;  %v22469_v22 = vld [vmem:[%s31294_s5 + $0x108] sm:$0xff] }
 0xe8e   :  { %25011 = vmatpush3.msra.mxu0 %v28614_v36  ;;  %25045 = vmatprep.subr.mxu1 %v26594_v38  ;;  %v28717_v36 = vsub.f32 %v22470_v40, %v28708_v14 }
 0xe8f   :  { %25012 = vmatprep.subr.mxu0 %v26594_v38  ;;  %25014 = vmatprep.mubr.msk.f32.mxu0 %vm26595_vm1, %v26594_v38 }
 0xe90   :  { %25013 = vmatpush3.msra.mxu0 %v28625_v16  ;;  %25046 = vmatpush3.msra.mxu1 %v28616_v37  ;;  %v28719_v37 = vand.u32 4294901760, %v22469_v22 }
 0xe91   :  { %25047 = vmatprep.mubr.msk.f32.mxu1 %vm26595_vm1, %v26594_v38  ;;  %25015 = vmatmul.mubr.f32.vlgmr.msra.gmra.mxu0 %v9564_v35  ;;  %v22477_v35 = vld [vmem:[%s31295_s7 + $0x118] sm:$0xff] }
 0xe92   :  { %25028 = vmatprep.subr.mxu0 %v26594_v38  ;;  %25048 = vmatmul.mubr.f32.vlgmr.msra.gmra.mxu1 %v9563_v21  ;;  %v28731_v11 = vsub.f32 %v22469_v22, %v28719_v37  ;;  %v28813_v45 = vand.u32 4294901760, %v22477_v35  ;;  %v22474_v22 = vld [vmem:[%s31295_s7 + $0x100] sm:$0xff] }
 0xe93   :  { %25029 = vmatpush3.msra.mxu0 %v9600_v49  ;;  %25036 = vmatprep.mubr.msk.f32.mxu0 %vm26595_vm1, %v26594_v38  ;;  %v28706_v49 = vsub.f32 %v22471_v3, %v28700_v1  ;;  %v28821_v3 = vand.u32 4294901760, %v22476_v47 }
 0xe94   :  { %25030 = vmatprep.subr.mxu0 %v26594_v38  ;;  %25061 = vmatprep.subr.mxu1 %v26594_v38  ;;  %v10116_v26 = vand.u32 4294901760, %v28731_v11  ;;  %v28819_v59 = vsub.f32 %v22477_v35, %v28813_v45 }
 0xe95   :  { %25031 = vmatpush3.msra.mxu0 %v9607_v58  ;;  %25069 = vmatprep.mubr.msk.f32.mxu1 %vm26595_vm1, %v26594_v38  ;;  %v10102_v58 = vand.u32 4294901760, %v28706_v49 }
 0xe96   :  { %25032 = vmatprep.subr.mxu0 %v26594_v38  ;;  %v10117_v28 = vsub.f32 %v28731_v11, %v10116_v26  ;;  %v10606_v40 = vand.u32 4294901760, %v28819_v59 }
 0xe97   :  { %25033 = vmatpush3.msra.mxu0 %v9614_v63  ;;  %v22468_v63 = vld [vmem:[%s31294_s5 + $0x100] sm:$0xff]  ;;  %v10103_v16 = vsub.f32 %v28706_v49, %v10102_v58 }
 0xe98   :  { %25034 = vmatprep.subr.mxu0 %v26594_v38  ;;  %v28733_v23 = vand.u32 4294901760, %v22468_v63  ;;  %v10118_v52 = vand.u32 4294901760, %v10117_v28 }
 0xe99   :  { %25035 = vmatpush3.msra.mxu0 %v9621_v9  ;;  %v10109_v9 = vand.u32 4294901760, %v28717_v36  ;;  %v10104_v24 = vand.u32 4294901760, %v10103_v16 }
 0xe9a   :  { %25037 = vmatmul.mubr.f32.vlgmr.msra.gmra.mxu0 %v9563_v21  ;;  %25050 = vmatprep.subr.mxu0 %v26594_v38  ;;  %v28742_v5 = vsub.f32 %v22468_v63, %v28733_v23  ;;  %v28846_v63 = vand.u32 4294901760, %v22474_v22 }
 0xe9b   :  { %25058 = vmatprep.mubr.msk.f32.mxu0 %vm26595_vm1, %v26594_v38  ;;  %25051 = vmatpush3.msra.mxu0 %v28700_v1  ;;  %v10110_v25 = vsub.f32 %v28717_v36, %v10109_v9 }
 0xe9c   :  { %25052 = vmatprep.subr.mxu0 %v26594_v38  ;;  %25062 = vmatpush3.msra.mxu1 %v10104_v24  ;;  %v10123_v29 = vand.u32 4294901760, %v28742_v5 }
 0xe9d   :  { %25053 = vmatpush3.msra.mxu0 %v28708_v14  ;;  %v10111_v15 = vand.u32 4294901760, %v10110_v25  ;;  %25063 = vmatprep.subr.mxu1 %v26594_v38 }
 0xe9e   :  { %25054 = vmatprep.subr.mxu0 %v26594_v38  ;;  %v10124_v54 = vsub.f32 %v28742_v5, %v10123_v29 }
 0xe9f   :  { %25055 = vmatpush3.msra.mxu0 %v28719_v37  ;;  %25064 = vmatpush3.msra.mxu1 %v10111_v15 }
 0xea0   :  { %25056 = vmatprep.subr.mxu0 %v26594_v38  ;;  %25065 = vmatprep.subr.mxu1 %v26594_v38  ;;  %v10125_v55 = vand.u32 4294901760, %v10124_v54 }
 0xea1   :  { %25057 = vmatpush3.msra.mxu0 %v28733_v23  ;;  %25066 = vmatpush3.msra.mxu1 %v10118_v52 }
 0xea2   :  { %25072 = vmatprep.subr.mxu0 %v26594_v38  ;;  %25067 = vmatprep.subr.mxu1 %v26594_v38 }
 0xea3   :  { %25068 = vmatpush3.msra.mxu1 %v10125_v55 }
 0xea4   :  { %25083 = vmatprep.subr.mxu1 %v26594_v38 }
 0xf40   :  { %v9660_v7 = vpop.f32.mrf.mxu1 }
 0xf42   :  { %v25005_v57 = vpop.f32.mrf.mxu1 }
 0xf48   :  { %v9817_v62 = vpop.f32.mrf.mxu1 }
 0xf49   :  { %v9569_v12 = vpop.f32.mrf.mxu0 }
 0xf4a   :  { %v25027_v2 = vpop.f32.mrf.mxu1  ;;  %v9570_v18 = vadd.f32 %v22467_v53, %v9569_v12 }
 0xf4b   :  { %v24994_v42 = vpop.f32.mrf.mxu0 }
 0xf4c   :  { %v9661_v17 = vadd.f32 %v9660_v7, %v9570_v18 }
 0xf51   :  { %v9740_v30 = vpop.f32.mrf.mxu0 }
 0xf52   :  { %v9975_v60 = vpop.f32.mrf.mxu1  ;;  %v9741_v10 = vadd.f32 %v9740_v30, %v9661_v17 }
 0xf53   :  { %v25016_v20 = vpop.f32.mrf.mxu0 }
 0xf54   :  { %v25049_v46 = vpop.f32.mrf.mxu1  ;;  %v9818_v27 = vadd.f32 %v9817_v62, %v9741_v10  ;;  %v22473_v62 = vld [vmem:[%s31296_s6 + $0x8] ss:$0 sm:$0xff] }
 0xf5a   :  { %v9900_v44 = vpop.f32.mrf.mxu0 }
 0xf5b   :  { %v9901_v32 = vadd.f32 %v9900_v44, %v9818_v27 }
 0xf5c   :  { %v25038_v33 = vpop.f32.mrf.mxu0 }
 0xf5d   :  { %v9976_v39 = vadd.f32 %v9975_v60, %v9901_v32 }
 0xf5f   :  { %v9979_v50 = vadd.f32 %v9976_v39, %v28643_v4 }
 0xf61   :  { %v9994_v0 = vsel %vm61_vm0, %v9979_v50, 0 }
 0xf62   :  { %v10065_v8 = vand.u32 4294901760, %v9994_v0 }
 0xf64   :  { %v10066_v13 = vsub.f32 %v9994_v0, %v10065_v8  ;;  %25070 = vmatmul.mubr.f32.vlgmr.msra.gmra.mxu1 %v10065_v8 }
 0xf65   :  { %25084 = vmatpush3.msra.mxu1 %v28700_v1  ;;  %25091 = vmatprep.mubr.msk.f32.mxu1 %vm26595_vm1, %v26594_v38 }
 0xf66   :  { %v10067_v34 = vand.u32 4294901760, %v10066_v13  ;;  %25085 = vmatprep.subr.mxu1 %v26594_v38 }
 0xf67   :  { %25086 = vmatpush3.msra.mxu1 %v28708_v14 }
 0xf68   :  { %v10068_v21 = vsub.f32 %v10066_v13, %v10067_v34  ;;  %25087 = vmatprep.subr.mxu1 %v26594_v38 }
 0xf69   :  { %25088 = vmatpush3.msra.mxu1 %v28719_v37 }
 0xf6a   :  { %25089 = vmatprep.subr.mxu1 %v26594_v38  ;;  %v10069_v4 = vand.u32 4294901760, %v10068_v21 }
 0xf6b   :  { %25090 = vmatpush3.msra.mxu1 %v28733_v23 }
 0xf6c   :  { %25092 = vmatmul.mubr.f32.vlgmr.msra.gmra.mxu1 %v10067_v34  ;;  %25105 = vmatprep.subr.mxu1 %v26594_v38 }
 0xf6d   :  { %25059 = vmatmul.mubr.f32.vlgmr.msra.gmra.mxu0 %v10069_v4  ;;  %25106 = vmatpush3.msra.mxu1 %v28700_v1  ;;  %v22475_v1 = vld [vmem:[%s31295_s7 + $0x108] sm:$0xff] }
 0xf6e   :  { %25073 = vmatpush3.msra.mxu0 %v28706_v49  ;;  %25107 = vmatprep.subr.mxu1 %v26594_v38  ;;  %v28830_v49 = vsub.f32 %v22476_v47, %v28821_v3 }
 0xf6f   :  { %25074 = vmatprep.subr.mxu0 %v26594_v38  ;;  %25108 = vmatpush3.msra.mxu1 %v28708_v14  ;;  %v28832_v14 = vand.u32 4294901760, %v22475_v1 }
 0xf70   :  { %25075 = vmatpush3.msra.mxu0 %v28717_v36  ;;  %25109 = vmatprep.subr.mxu1 %v26594_v38  ;;  %v10613_v36 = vand.u32 4294901760, %v28830_v49 }
 0xf71   :  { %25076 = vmatprep.subr.mxu0 %v26594_v38  ;;  %25110 = vmatpush3.msra.mxu1 %v28719_v37  ;;  %v28844_v37 = vsub.f32 %v22475_v1, %v28832_v14 }
 0xf72   :  { %25077 = vmatpush3.msra.mxu0 %v28731_v11  ;;  %25111 = vmatprep.subr.mxu1 %v26594_v38 }
 0xf73   :  { %25078 = vmatprep.subr.mxu0 %v26594_v38  ;;  %25080 = vmatprep.mubr.msk.f32.mxu0 %vm26595_vm1, %v26594_v38  ;;  %v10620_v11 = vand.u32 4294901760, %v28844_v37 }
 0xf74   :  { %25079 = vmatpush3.msra.mxu0 %v28742_v5  ;;  %25112 = vmatpush3.msra.mxu1 %v28733_v23  ;;  %v28855_v23 = vsub.f32 %v22474_v22, %v28846_v63 }
 0xf75   :  { %25113 = vmatprep.mubr.msk.f32.mxu1 %vm26595_vm1, %v26594_v38  ;;  %25081 = vmatmul.mubr.f32.vlgmr.msra.gmra.mxu0 %v10066_v13  ;;  %v10621_v25 = vsub.f32 %v28844_v37, %v10620_v11 }
 0xf76   :  { %25094 = vmatprep.subr.mxu0 %v26594_v38  ;;  %25114 = vmatmul.mubr.f32.vlgmr.msra.gmra.mxu1 %v10065_v8 }
 0xf77   :  { %25095 = vmatpush3.msra.mxu0 %v10102_v58  ;;  %25102 = vmatprep.mubr.msk.f32.mxu0 %vm26595_vm1, %v26594_v38  ;;  %v10607_v58 = vsub.f32 %v28819_v59, %v10606_v40  ;;  %v10622_v5 = vand.u32 4294901760, %v10621_v25 }
 0xf78   :  { %25096 = vmatprep.subr.mxu0 %v26594_v38  ;;  %25127 = vmatprep.subr.mxu1 %v26594_v38 }
 0xf79   :  { %25097 = vmatpush3.msra.mxu0 %v10109_v9  ;;  %25135 = vmatprep.mubr.msk.f32.mxu1 %vm26595_vm1, %v26594_v38  ;;  %v10608_v16 = vand.u32 4294901760, %v10607_v58  ;;  %v10614_v9 = vsub.f32 %v28830_v49, %v10613_v36 }
 0xf7a   :  { %25098 = vmatprep.subr.mxu0 %v26594_v38 }
 0xf7b   :  { %25099 = vmatpush3.msra.mxu0 %v10116_v26  ;;  %25128 = vmatpush3.msra.mxu1 %v10608_v16  ;;  %v10615_v24 = vand.u32 4294901760, %v10614_v9  ;;  %v10627_v26 = vand.u32 4294901760, %v28855_v23 }
 0xf7c   :  { %25100 = vmatprep.subr.mxu0 %v26594_v38  ;;  %25129 = vmatprep.subr.mxu1 %v26594_v38 }
 0xf7d   :  { %25101 = vmatpush3.msra.mxu0 %v10123_v29  ;;  %25130 = vmatpush3.msra.mxu1 %v10615_v24  ;;  %v10628_v15 = vsub.f32 %v28855_v23, %v10627_v26 }
 0xf7e   :  { %25103 = vmatmul.mubr.f32.vlgmr.msra.gmra.mxu0 %v10065_v8  ;;  %25116 = vmatprep.subr.mxu0 %v26594_v38 }
 0xf7f   :  { %25124 = vmatprep.mubr.msk.f32.mxu0 %vm26595_vm1, %v26594_v38  ;;  %25117 = vmatpush3.msra.mxu0 %v28813_v45  ;;  %v10629_v28 = vand.u32 4294901760, %v10628_v15 }
 0xf80   :  { %25118 = vmatprep.subr.mxu0 %v26594_v38  ;;  %25131 = vmatprep.subr.mxu1 %v26594_v38 }
 0xf81   :  { %25119 = vmatpush3.msra.mxu0 %v28821_v3  ;;  %25132 = vmatpush3.msra.mxu1 %v10622_v5  ;;  %v22483_v5 = vld [vmem:[%s31294_s5 + $0x138] sm:$0xff] }
 0xf82   :  { %25120 = vmatprep.subr.mxu0 %v26594_v38  ;;  %25133 = vmatprep.subr.mxu1 %v26594_v38  ;;  %v28956_v15 = vand.u32 4294901760, %v22483_v5 }
 0xf83   :  { %25121 = vmatpush3.msra.mxu0 %v28832_v14  ;;  %25134 = vmatpush3.msra.mxu1 %v10629_v28  ;;  %v22482_v28 = vld [vmem:[%s31294_s5 + $0x130] sm:$0xff] }
 0xf84   :  { %25122 = vmatprep.subr.mxu0 %v26594_v38  ;;  %25149 = vmatprep.subr.mxu1 %v26594_v38 }
 0xf85   :  { %25123 = vmatpush3.msra.mxu0 %v28846_v63 }
 0xf86   :  { %25138 = vmatprep.subr.mxu0 %v26594_v38 }
0x1024   :  { %v10162_v29 = vpop.f32.mrf.mxu1 }
0x1026   :  { %v25071_v52 = vpop.f32.mrf.mxu1 }
0x1027   :  { %v28964_v52 = vand.u32 4294901760, %v22482_v28 }
0x102c   :  { %v10319_v54 = vpop.f32.mrf.mxu1 }
0x102d   :  { %v10071_v55 = vpop.f32.mrf.mxu0 }
0x102e   :  { %v25093_v7 = vpop.f32.mrf.mxu1  ;;  %v10072_v12 = vadd.f32 %v22473_v62, %v10071_v55  ;;  %v22480_v62 = vld [vmem:[%s31294_s5 + $0x120] sm:$0xff] }
0x102f   :  { %v25060_v57 = vpop.f32.mrf.mxu0  ;;  %v28973_v7 = vsub.f32 %v22482_v28, %v28964_v52 }
0x1030   :  { %v10163_v53 = vadd.f32 %v10162_v29, %v10072_v12  ;;  %v28962_v29 = vsub.f32 %v22483_v5, %v28956_v15 }
0x1032   :  { %v11553_v55 = vand.u32 4294901760, %v28962_v29 }
0x1034   :  { %v11554_v12 = vsub.f32 %v28962_v29, %v11553_v55 }
0x1035   :  { %v10242_v2 = vpop.f32.mrf.mxu0 }
0x1036   :  { %v10477_v42 = vpop.f32.mrf.mxu1  ;;  %v10243_v60 = vadd.f32 %v10242_v2, %v10163_v53  ;;  %v11560_v2 = vand.u32 4294901760, %v28973_v7  ;;  %v28989_v53 = vand.u32 4294901760, %v22480_v62 }
0x1037   :  { %v25082_v18 = vpop.f32.mrf.mxu0 }
0x1038   :  { %v25115_v30 = vpop.f32.mrf.mxu1  ;;  %v10320_v17 = vadd.f32 %v10319_v54, %v10243_v60  ;;  %v22481_v54 = vld [vmem:[%s31294_s5 + $0x128] sm:$0xff]  ;;  %v11555_v18 = vand.u32 4294901760, %v11554_v12 }
0x1039   :  { %v28975_v57 = vand.u32 4294901760, %v22481_v54  ;;  %v11561_v30 = vsub.f32 %v28973_v7, %v11560_v2 }
0x103e   :  { %v10402_v20 = vpop.f32.mrf.mxu0 }
0x103f   :  { %v10403_v46 = vadd.f32 %v10402_v20, %v10320_v17  ;;  %v28998_v17 = vsub.f32 %v22480_v62, %v28989_v53  ;;  %v11562_v20 = vand.u32 4294901760, %v11561_v30 }
0x1040   :  { %v25104_v10 = vpop.f32.mrf.mxu0 }
0x1041   :  { %v10478_v27 = vadd.f32 %v10477_v42, %v10403_v46  ;;  %v28987_v42 = vsub.f32 %v22481_v54, %v28975_v57  ;;  %v11574_v10 = vand.u32 4294901760, %v28998_v17 }
0x1043   :  { %vm10481_vm11 = vcmp.gt.f32.partialorder %v10478_v27, 0.0  ;;  %v10482_v44 = vmul.f32 0.01, %v10478_v27  ;;  %v11567_v60 = vand.u32 4294901760, %v28987_v42 }
0x1045   :  { %v10483_v32 = vsel %vm10481_vm11, %v10478_v27, %v10482_v44  ;;  %v11568_v46 = vsub.f32 %v28987_v42, %v11567_v60  ;;  %v11575_v44 = vsub.f32 %v28998_v17, %v11574_v10 }
0x1046   :  { %v10498_v33 = vsel %vm61_vm0, %v10483_v32, 0 }
0x1047   :  { %v10569_v39 = vand.u32 4294901760, %v10498_v33  ;;  %v11569_v27 = vand.u32 4294901760, %v11568_v46  ;;  %v11576_v32 = vand.u32 4294901760, %v11575_v44 }
0x1049   :  { %v10570_v50 = vsub.f32 %v10498_v33, %v10569_v39  ;;  %25136 = vmatmul.mubr.f32.vlgmr.msra.gmra.mxu1 %v10569_v39 }
0x104a   :  { %25150 = vmatpush3.msra.mxu1 %v28813_v45  ;;  %25157 = vmatprep.mubr.msk.f32.mxu1 %vm26595_vm1, %v26594_v38 }
0x104b   :  { %25151 = vmatprep.subr.mxu1 %v26594_v38  ;;  %v10571_v0 = vand.u32 4294901760, %v10570_v50 }
0x104c   :  { %25152 = vmatpush3.msra.mxu1 %v28821_v3 }
0x104d   :  { %25153 = vmatprep.subr.mxu1 %v26594_v38  ;;  %v10572_v8 = vsub.f32 %v10570_v50, %v10571_v0 }
0x104e   :  { %25154 = vmatpush3.msra.mxu1 %v28832_v14 }
0x104f   :  { %25155 = vmatprep.subr.mxu1 %v26594_v38  ;;  %v10573_v13 = vand.u32 4294901760, %v10572_v8 }
0x1050   :  { %25156 = vmatpush3.msra.mxu1 %v28846_v63 }
0x1051   :  { %25158 = vmatmul.mubr.f32.vlgmr.msra.gmra.mxu1 %v10571_v0  ;;  %25171 = vmatprep.subr.mxu1 %v26594_v38 }
0x1052   :  { %25125 = vmatmul.mubr.f32.vlgmr.msra.gmra.mxu0 %v10573_v13  ;;  %25172 = vmatpush3.msra.mxu1 %v28813_v45 }
0x1053   :  { %25139 = vmatpush3.msra.mxu0 %v28819_v59  ;;  %25173 = vmatprep.subr.mxu1 %v26594_v38  ;;  %v22479_v59 = vld [vmem:[%s31297_s8 + $0x8] ss:$0 sm:$0xff] }
0x1054   :  { %25140 = vmatprep.subr.mxu0 %v26594_v38  ;;  %25174 = vmatpush3.msra.mxu1 %v28821_v3 }
0x1055   :  { %25141 = vmatpush3.msra.mxu0 %v28830_v49  ;;  %25175 = vmatprep.subr.mxu1 %v26594_v38 }
0x1056   :  { %25142 = vmatprep.subr.mxu0 %v26594_v38  ;;  %25176 = vmatpush3.msra.mxu1 %v28832_v14 }
0x1057   :  { %25143 = vmatpush3.msra.mxu0 %v28844_v37  ;;  %25177 = vmatprep.subr.mxu1 %v26594_v38 }
0x1058   :  { %25144 = vmatprep.subr.mxu0 %v26594_v38  ;;  %25146 = vmatprep.mubr.msk.f32.mxu0 %vm26595_vm1, %v26594_v38 }
0x1059   :  { %25145 = vmatpush3.msra.mxu0 %v28855_v23  ;;  %25178 = vmatpush3.msra.mxu1 %v28846_v63 }
0x105a   :  { %25179 = vmatprep.mubr.msk.f32.mxu1 %vm26595_vm1, %v26594_v38  ;;  %25147 = vmatmul.mubr.f32.vlgmr.msra.gmra.mxu0 %v10570_v50 }
0x105b   :  { %25160 = vmatprep.subr.mxu0 %v26594_v38  ;;  %25180 = vmatmul.mubr.f32.vlgmr.msra.gmra.mxu1 %v10569_v39 }
0x105c   :  { %25161 = vmatpush3.msra.mxu0 %v10606_v40  ;;  %25168 = vmatprep.mubr.msk.f32.mxu0 %vm26595_vm1, %v26594_v38 }
0x105d   :  { %25162 = vmatprep.subr.mxu0 %v26594_v38  ;;  %25187 = vmatprep.subr.mxu1 %v26594_v38 }
0x105e   :  { %25163 = vmatpush3.msra.mxu0 %v10613_v36  ;;  %25189 = vmatprep.mubr.msk.f32.mxu1 %vm26595_vm1, %v26594_v38 }
0x105f   :  { %25164 = vmatprep.subr.mxu0 %v26594_v38 }
0x1060   :  { %25165 = vmatpush3.msra.mxu0 %v10620_v11 }
0x1061   :  { %25166 = vmatprep.subr.mxu0 %v26594_v38 }
0x1062   :  { %25167 = vmatpush3.msra.mxu0 %v10627_v26 }
0x1063   :  { %25169 = vmatmul.mubr.f32.vlgmr.msra.gmra.mxu0 %v10569_v39  ;;  %25182 = vmatprep.subr.mxu0 %v26594_v38 }
0x1064   :  { %25184 = vmatprep.mubr.msk.f32.mxu0 %vm26595_vm1, %v26594_v38 }
0x1109   :  { %v10666_v34 = vpop.f32.mrf.mxu1 }
0x110b   :  { %v25137_v21 = vpop.f32.mrf.mxu1 }
0x1111   :  { %v10823_v4 = vpop.f32.mrf.mxu1 }
0x1112   :  { %v10575_v35 = vpop.f32.mrf.mxu0 }
0x1113   :  { %v25159_v45 = vpop.f32.mrf.mxu1  ;;  %v10576_v3 = vadd.f32 %v22479_v59, %v10575_v35 }
0x1114   :  { %v25126_v47 = vpop.f32.mrf.mxu0 }
0x1115   :  { %v10667_v49 = vadd.f32 %v10666_v34, %v10576_v3 }
0x111a   :  { %v10746_v1 = vpop.f32.mrf.mxu0 }
0x111b   :  { %v10981_v40 = vpop.f32.mrf.mxu1  ;;  %v10747_v58 = vadd.f32 %v10746_v1, %v10667_v49 }
0x111c   :  { %v25148_v14 = vpop.f32.mrf.mxu0 }
0x111d   :  { %v25181_v22 = vpop.f32.mrf.mxu1  ;;  %v10824_v36 = vadd.f32 %v10823_v4, %v10747_v58 }
0x1123   :  { %v10906_v37 = vpop.f32.mrf.mxu0 }
0x1124   :  { %v10907_v63 = vadd.f32 %v10906_v37, %v10824_v36 }
0x1125   :  { %v25170_v16 = vpop.f32.mrf.mxu0 }
0x1126   :  { %v28925_v9 = vadd.f32 %v10981_v40, %v10907_v63  ;;  %v22489_v16 = vld [vmem:[%s31295_s7 + $0x138] sm:$0xff] }
0x1128   :  { %v11016_v11 = vand.u32 4294901760, %v28925_v9 }
0x112a   :  { %v11093_v23 = vsub.f32 %v28925_v9, %v11016_v11  ;;  %25183 = vmatpush3.msra.mxu0 %v11016_v11 }
0x112b   :  { %25185 = vmatmul.mubr.f32.vlgmr.msra.gmra.mxu0 %v27493_v43  ;;  %25192 = vmatprep.subr.mxu0 %v26594_v38 }
0x112c   :  { %25193 = vmatpush3.msra.mxu0 %v11093_v23  ;;  %25194 = vmatprep.mubr.msk.f32.mxu0 %vm26595_vm1, %v26594_v38  ;;  %v11094_v24 = vand.u32 4294901760, %v11093_v23 }
0x112d   :  { %25202 = vmatprep.subr.mxu0 %v26594_v38 }
0x112e   :  { %v11095_v25 = vsub.f32 %v11093_v23, %v11094_v24  ;;  %v22488_v23 = vld [vmem:[%s31295_s7 + $0x130] sm:$0xff] }
0x112f   :  { %25195 = vmatmul.mubr.f32.vlgmr.msra.gmra.mxu0 %v27484_v48 }
0x1130   :  { %25203 = vmatpush3.msra.mxu0 %v11094_v24  ;;  %v11096_v26 = vand.u32 4294901760, %v11095_v25  ;;  %25204 = vmatprep.mubr.msk.f32.mxu0 %vm26595_vm1, %v26594_v38  ;;  %v29073_v25 = vand.u32 4294901760, %v22488_v23 }
0x1131   :  { %25212 = vmatprep.subr.mxu0 %v26594_v38 }
0x1132   :  { %25188 = vmatpush3.msra.mxu1 %v11096_v26  ;;  %v22487_v26 = vld [vmem:[%s31295_s7 + $0x128] sm:$0xff] }
0x1133   :  { %25190 = vmatmul.mubr.f32.vlgmr.msra.gmra.mxu1 %v27481_v41  ;;  %25197 = vmatprep.subr.mxu1 %v26594_v38  ;;  %v29084_v28 = vand.u32 4294901760, %v22487_v26 }
0x1134   :  { %25198 = vmatpush3.msra.mxu1 %v11016_v11  ;;  %25199 = vmatprep.mubr.msk.f32.mxu1 %vm26595_vm1, %v26594_v38 }
0x1135   :  { %25207 = vmatprep.subr.mxu1 %v26594_v38  ;;  %25205 = vmatmul.mubr.f32.vlgmr.msra.gmra.mxu0 %v27481_v41 }
0x1136   :  { %25220 = vmatprep.mubr.msk.f32.mxu0 %vm26595_vm1, %v26594_v38  ;;  %25213 = vmatpush3.msra.mxu0 %v28956_v15 }
0x1137   :  { %25200 = vmatmul.mubr.f32.vlgmr.msra.gmra.mxu1 %v27487_v31  ;;  %25214 = vmatprep.subr.mxu0 %v26594_v38 }
0x1138   :  { %25208 = vmatpush3.msra.mxu1 %v11016_v11  ;;  %25209 = vmatprep.mubr.msk.f32.mxu1 %vm26595_vm1, %v26594_v38  ;;  %v29065_v11 = vand.u32 4294901760, %v22489_v16 }
0x1139   :  { %25223 = vmatprep.subr.mxu1 %v26594_v38  ;;  %25215 = vmatpush3.msra.mxu0 %v28964_v52 }
0x113a   :  { %25216 = vmatprep.subr.mxu0 %v26594_v38  ;;  %v29071_v24 = vsub.f32 %v22489_v16, %v29065_v11 }
0x113b   :  { %25210 = vmatmul.mubr.f32.vlgmr.msra.gmra.mxu1 %v27481_v41  ;;  %25217 = vmatpush3.msra.mxu0 %v28975_v57 }
0x113c   :  { %25231 = vmatprep.mubr.msk.f32.mxu1 %vm26595_vm1, %v26594_v38  ;;  %25218 = vmatprep.subr.mxu0 %v26594_v38  ;;  %v12057_v5 = vand.u32 4294901760, %v29071_v24 }
0x113d   :  { %25219 = vmatpush3.msra.mxu0 %v28989_v53  ;;  %25224 = vmatpush3.msra.mxu1 %v11555_v18 }
0x113e   :  { %25234 = vmatprep.subr.mxu0 %v26594_v38  ;;  %25225 = vmatprep.subr.mxu1 %v26594_v38 }
0x113f   :  { %25226 = vmatpush3.msra.mxu1 %v11562_v20 }
0x1140   :  { %25227 = vmatprep.subr.mxu1 %v26594_v38 }
0x1141   :  { %25228 = vmatpush3.msra.mxu1 %v11569_v27 }
0x1142   :  { %25229 = vmatprep.subr.mxu1 %v26594_v38 }
0x1143   :  { %25230 = vmatpush3.msra.mxu1 %v11576_v32 }
0x1144   :  { %25245 = vmatprep.subr.mxu1 %v26594_v38 }
0x11eb   :  { %v11057_v33 = vpop.f32.mrf.mxu0 }
0x11ed   :  { %v25186_v39 = vpop.f32.mrf.mxu0 }
0x11ef   :  { %v11207_v50 = vpop.f32.mrf.mxu0 }
0x11f1   :  { %v25196_v0 = vpop.f32.mrf.mxu0 }
0x11f3   :  { %v11133_v8 = vpop.f32.mrf.mxu1 }
0x11f4   :  { %v11134_v13 = vadd.f32 %v11133_v8, %v11057_v33  ;;  %v22485_v33 = vld [vmem:[%s31296_s6 + $0x9] ss:$0 sm:$0xff] }
0x11f5   :  { %v25191_v34 = vpop.f32.mrf.mxu1  ;;  %v11355_v21 = vpop.f32.mrf.mxu0 }
0x11f6   :  { %v11208_v4 = vadd.f32 %v11207_v50, %v11134_v13 }
0x11f7   :  { %v11281_v35 = vpop.f32.mrf.mxu1  ;;  %v25206_v45 = vpop.f32.mrf.mxu0 }
0x11f8   :  { %v11282_v47 = vadd.f32 %v11281_v35, %v11208_v4 }
0x11f9   :  { %v25201_v59 = vpop.f32.mrf.mxu1 }
0x11fa   :  { %v11356_v3 = vadd.f32 %v11355_v21, %v11282_v47 }
0x11fb   :  { %v11427_v1 = vpop.f32.mrf.mxu1 }
0x11fc   :  { %v11428_v40 = vadd.f32 %v11427_v1, %v11356_v3 }
0x11fd   :  { %v25211_v49 = vpop.f32.mrf.mxu1 }
0x11fe   :  { %v11445_v14 = vsel %vm61_vm0, %v11428_v40, 0  ;;  %v22495_v49 = vld [vmem:[%s31294_s5 + $0x158] sm:$0xff] }
0x11ff   :  { %v11516_v22 = vand.u32 4294901760, %v11445_v14 }
0x1201   :  { %v11517_v58 = vsub.f32 %v11445_v14, %v11516_v22  ;;  %25232 = vmatmul.mubr.f32.vlgmr.msra.gmra.mxu1 %v11516_v22 }
0x1202   :  { %25246 = vmatpush3.msra.mxu1 %v28956_v15  ;;  %25253 = vmatprep.mubr.msk.f32.mxu1 %vm26595_vm1, %v26594_v38 }
0x1203   :  { %v11518_v36 = vand.u32 4294901760, %v11517_v58  ;;  %25247 = vmatprep.subr.mxu1 %v26594_v38 }
0x1204   :  { %25248 = vmatpush3.msra.mxu1 %v28964_v52 }
0x1205   :  { %v11519_v37 = vsub.f32 %v11517_v58, %v11518_v36  ;;  %25249 = vmatprep.subr.mxu1 %v26594_v38 }
0x1206   :  { %25250 = vmatpush3.msra.mxu1 %v28975_v57 }
0x1207   :  { %v11520_v63 = vand.u32 4294901760, %v11519_v37  ;;  %25251 = vmatprep.subr.mxu1 %v26594_v38  ;;  %v22493_v37 = vld [vmem:[%s31294_s5 + $0x148] sm:$0xff] }
0x1208   :  { %25252 = vmatpush3.msra.mxu1 %v28989_v53 }
0x1209   :  { %25254 = vmatmul.mubr.f32.vlgmr.msra.gmra.mxu1 %v11518_v36  ;;  %25267 = vmatprep.subr.mxu1 %v26594_v38  ;;  %v29136_v36 = vand.u32 4294901760, %v22495_v49 }
0x120a   :  { %25221 = vmatmul.mubr.f32.vlgmr.msra.gmra.mxu0 %v11520_v63  ;;  %25268 = vmatpush3.msra.mxu1 %v28956_v15  ;;  %v29082_v15 = vsub.f32 %v22488_v23, %v29073_v25  ;;  %v22492_v23 = vld [vmem:[%s31294_s5 + $0x140] sm:$0xff] }
0x120b   :  { %25235 = vmatpush3.msra.mxu0 %v28962_v29  ;;  %25269 = vmatprep.subr.mxu1 %v26594_v38  ;;  %v22486_v29 = vld [vmem:[%s31295_s7 + $0x120] sm:$0xff] }
0x120c   :  { %25236 = vmatprep.subr.mxu0 %v26594_v38  ;;  %25270 = vmatpush3.msra.mxu1 %v28964_v52  ;;  %v12058_v52 = vsub.f32 %v29071_v24, %v12057_v5  ;;  %v12064_v54 = vand.u32 4294901760, %v29082_v15 }
0x120d   :  { %25237 = vmatpush3.msra.mxu0 %v28973_v7  ;;  %25271 = vmatprep.subr.mxu1 %v26594_v38  ;;  %v29098_v7 = vand.u32 4294901760, %v22486_v29 }
0x120e   :  { %25238 = vmatprep.subr.mxu0 %v26594_v38  ;;  %25272 = vmatpush3.msra.mxu1 %v28975_v57  ;;  %v12059_v57 = vand.u32 4294901760, %v12058_v52  ;;  %v12065_v62 = vsub.f32 %v29082_v15, %v12064_v54  ;;  %v29155_v52 = vand.u32 4294901760, %v22493_v37 }
0x120f   :  { %25239 = vmatpush3.msra.mxu0 %v28987_v42  ;;  %25273 = vmatprep.subr.mxu1 %v26594_v38 }
0x1210   :  { %25240 = vmatprep.subr.mxu0 %v26594_v38  ;;  %25242 = vmatprep.mubr.msk.f32.mxu0 %vm26595_vm1, %v26594_v38  ;;  %v12066_v42 = vand.u32 4294901760, %v12065_v62 }
0x1211   :  { %25241 = vmatpush3.msra.mxu0 %v28998_v17  ;;  %25274 = vmatpush3.msra.mxu1 %v28989_v53 }
0x1212   :  { %25275 = vmatprep.mubr.msk.f32.mxu1 %vm26595_vm1, %v26594_v38  ;;  %25243 = vmatmul.mubr.f32.vlgmr.msra.gmra.mxu0 %v11517_v58 }
0x1213   :  { %25256 = vmatprep.subr.mxu0 %v26594_v38  ;;  %25276 = vmatmul.mubr.f32.vlgmr.msra.gmra.mxu1 %v11516_v22 }
0x1214   :  { %25257 = vmatpush3.msra.mxu0 %v11553_v55  ;;  %25264 = vmatprep.mubr.msk.f32.mxu0 %vm26595_vm1, %v26594_v38  ;;  %v29096_v55 = vsub.f32 %v22487_v26, %v29084_v28 }
0x1215   :  { %25258 = vmatprep.subr.mxu0 %v26594_v38  ;;  %25289 = vmatprep.subr.mxu1 %v26594_v38 }
0x1216   :  { %25259 = vmatpush3.msra.mxu0 %v11560_v2  ;;  %25297 = vmatprep.mubr.msk.f32.mxu1 %vm26595_vm1, %v26594_v38  ;;  %v12071_v12 = vand.u32 4294901760, %v29096_v55  ;;  %v29107_v2 = vsub.f32 %v22486_v29, %v29098_v7  ;;  %v29153_v29 = vsub.f32 %v22495_v49, %v29136_v36 }
0x1217   :  { %25260 = vmatprep.subr.mxu0 %v26594_v38  ;;  %25290 = vmatpush3.msra.mxu1 %v12059_v57 }
0x1218   :  { %25261 = vmatpush3.msra.mxu0 %v11567_v60  ;;  %v12072_v53 = vsub.f32 %v29096_v55, %v12071_v12  ;;  %v12078_v18 = vand.u32 4294901760, %v29107_v2  ;;  %25291 = vmatprep.subr.mxu1 %v26594_v38 }
0x1219   :  { %25262 = vmatprep.subr.mxu0 %v26594_v38  ;;  %25292 = vmatpush3.msra.mxu1 %v12066_v42  ;;  %v29162_v42 = vand.u32 4294901760, %v22492_v23 }
0x121a   :  { %25263 = vmatpush3.msra.mxu0 %v11574_v10  ;;  %v12073_v30 = vand.u32 4294901760, %v12072_v53  ;;  %v12079_v60 = vsub.f32 %v29107_v2, %v12078_v18  ;;  %25293 = vmatprep.subr.mxu1 %v26594_v38  ;;  %v12558_v53 = vand.u32 4294901760, %v29153_v29 }
0x121b   :  { %25265 = vmatmul.mubr.f32.vlgmr.msra.gmra.mxu0 %v11516_v22  ;;  %25278 = vmatprep.subr.mxu0 %v26594_v38  ;;  %v22494_v22 = vld [vmem:[%s31294_s5 + $0x150] sm:$0xff] }
0x121c   :  { %25286 = vmatprep.mubr.msk.f32.mxu0 %vm26595_vm1, %v26594_v38  ;;  %25279 = vmatpush3.msra.mxu0 %v29065_v11  ;;  %v12080_v17 = vand.u32 4294901760, %v12079_v60  ;;  %v29145_v16 = vand.u32 4294901760, %v22494_v22 }
0x121d   :  { %25280 = vmatprep.subr.mxu0 %v26594_v38  ;;  %25294 = vmatpush3.msra.mxu1 %v12073_v30  ;;  %v29168_v30 = vsub.f32 %v22493_v37, %v29155_v52 }
0x121e   :  { %25281 = vmatpush3.msra.mxu0 %v29073_v25  ;;  %25295 = vmatprep.subr.mxu1 %v26594_v38  ;;  %v29160_v62 = vsub.f32 %v22494_v22, %v29145_v16 }
0x121f   :  { %25282 = vmatprep.subr.mxu0 %v26594_v38  ;;  %25296 = vmatpush3.msra.mxu1 %v12080_v17  ;;  %v29175_v17 = vsub.f32 %v22492_v23, %v29162_v42 }
0x1220   :  { %25283 = vmatpush3.msra.mxu0 %v29084_v28  ;;  %25311 = vmatprep.subr.mxu1 %v26594_v38  ;;  %v12565_v60 = vand.u32 4294901760, %v29160_v62 }
0x1221   :  { %25284 = vmatprep.subr.mxu0 %v26594_v38 }
0x1222   :  { %25285 = vmatpush3.msra.mxu0 %v29098_v7 }
0x1223   :  { %25300 = vmatprep.subr.mxu0 %v26594_v38 }
0x12c1   :  { %v11613_v20 = vpop.f32.mrf.mxu1 }
0x12c3   :  { %v25233_v46 = vpop.f32.mrf.mxu1 }
0x12c4   :  { %v12579_v46 = vand.u32 4294901760, %v29175_v17 }
0x12c9   :  { %v11770_v10 = vpop.f32.mrf.mxu1 }
0x12ca   :  { %v11522_v27 = vpop.f32.mrf.mxu0 }
0x12cb   :  { %v25255_v44 = vpop.f32.mrf.mxu1  ;;  %v11523_v39 = vadd.f32 %v22485_v33, %v11522_v27 }
0x12cc   :  { %v25222_v32 = vpop.f32.mrf.mxu0 }
0x12cd   :  { %v11614_v8 = vadd.f32 %v11613_v20, %v11523_v39  ;;  %v12572_v20 = vand.u32 4294901760, %v29168_v30 }
0x12cf   :  { %v12573_v27 = vsub.f32 %v29168_v30, %v12572_v20 }
0x12d2   :  { %v11693_v50 = vpop.f32.mrf.mxu0 }
0x12d3   :  { %v11928_v0 = vpop.f32.mrf.mxu1  ;;  %v11694_v21 = vadd.f32 %v11693_v50, %v11614_v8  ;;  %v22499_v50 = vld [vmem:[%s31295_s7 + $0x148] sm:$0xff] }
0x12d4   :  { %v25244_v13 = vpop.f32.mrf.mxu0 }
0x12d5   :  { %v25277_v34 = vpop.f32.mrf.mxu1  ;;  %v11771_v4 = vadd.f32 %v11770_v10, %v11694_v21  ;;  %v12450_v10 = vsel %vm61_vm0, %v28209_v19, 0  ;;  %v12580_v19 = vsub.f32 %v29175_v17, %v12579_v46  ;;  %v29318_v13 = vand.u32 4294901760, %v22499_v50 }
0x12d6   :  { %v29210_v32 = vand.u32 4294901760, %v12450_v10  ;;  %v22498_v34 = vld [vmem:[%s31295_s7 + $0x140] sm:$0xff] }
0x12d7   :  { %v12581_v33 = vand.u32 4294901760, %v12580_v19 }
0x12d8   :  { %v12522_v39 = vsub.f32 %v12450_v10, %v29210_v32 }
0x12db   :  { %v11853_v35 = vpop.f32.mrf.mxu0 }
0x12dc   :  { %v11854_v45 = vadd.f32 %v11853_v35, %v11771_v4  ;;  %v29330_v35 = vsub.f32 %v22499_v50, %v29318_v13 }
0x12dd   :  { %v25266_v47 = vpop.f32.mrf.mxu0 }
0x12de   :  { %v11929_v59 = vadd.f32 %v11928_v0, %v11854_v45  ;;  %v29332_v45 = vand.u32 4294901760, %v22498_v34 }
0x12e0   :  { %vm11932_vm12 = vcmp.gt.f32.partialorder %v11929_v59, 0.0  ;;  %v11933_v3 = vmul.f32 0.01, %v11929_v59 }
0x12e2   :  { %v11934_v1 = vsel %vm11932_vm12, %v11929_v59, %v11933_v3  ;;  %v13076_v3 = vand.u32 4294901760, %v29330_v35 }
0x12e3   :  { %v11949_v40 = vsel %vm61_vm0, %v11934_v1, 0  ;;  %v29341_v1 = vsub.f32 %v22498_v34, %v29332_v45 }
0x12e4   :  { %v29129_v14 = vand.u32 4294901760, %v11949_v40  ;;  %v13077_v49 = vsub.f32 %v29330_v35, %v13076_v3 }
0x12e6   :  { %v12021_v58 = vsub.f32 %v11949_v40, %v29129_v14  ;;  %25298 = vmatmul.mubr.f32.vlgmr.msra.gmra.mxu1 %v29129_v14  ;;  %v13078_v22 = vand.u32 4294901760, %v13077_v49 }
0x12e7   :  { %25312 = vmatpush3.msra.mxu1 %v29065_v11  ;;  %25319 = vmatprep.mubr.msk.f32.mxu1 %vm26595_vm1, %v26594_v38 }
0x12e8   :  { %25313 = vmatprep.subr.mxu1 %v26594_v38  ;;  %v12022_v63 = vand.u32 4294901760, %v12021_v58 }
0x12e9   :  { %25314 = vmatpush3.msra.mxu1 %v29073_v25 }
0x12ea   :  { %25315 = vmatprep.subr.mxu1 %v26594_v38  ;;  %v12023_v26 = vsub.f32 %v12021_v58, %v12022_v63 }
0x12eb   :  { %25316 = vmatpush3.msra.mxu1 %v29084_v28 }
0x12ec   :  { %25317 = vmatprep.subr.mxu1 %v26594_v38  ;;  %v12024_v57 = vand.u32 4294901760, %v12023_v26 }
0x12ed   :  { %25318 = vmatpush3.msra.mxu1 %v29098_v7 }
0x12ee   :  { %25320 = vmatmul.mubr.f32.vlgmr.msra.gmra.mxu1 %v12022_v63  ;;  %25333 = vmatprep.subr.mxu1 %v26594_v38 }
0x12ef   :  { %25287 = vmatmul.mubr.f32.vlgmr.msra.gmra.mxu0 %v12024_v57  ;;  %25334 = vmatpush3.msra.mxu1 %v29065_v11  ;;  %v12559_v11 = vsub.f32 %v29153_v29, %v12558_v53 }
0x12f0   :  { %25301 = vmatpush3.msra.mxu0 %v29071_v24  ;;  %25335 = vmatprep.subr.mxu1 %v26594_v38  ;;  %v12523_v24 = vand.u32 4294901760, %v12522_v39 }
0x12f1   :  { %25302 = vmatprep.subr.mxu0 %v26594_v38  ;;  %25336 = vmatpush3.msra.mxu1 %v29073_v25  ;;  %v12566_v25 = vsub.f32 %v29160_v62, %v12565_v60 }
0x12f2   :  { %25303 = vmatpush3.msra.mxu0 %v29082_v15  ;;  %25337 = vmatprep.subr.mxu1 %v26594_v38 }
0x12f3   :  { %25304 = vmatprep.subr.mxu0 %v26594_v38  ;;  %25338 = vmatpush3.msra.mxu1 %v29084_v28  ;;  %v12560_v28 = vand.u32 4294901760, %v12559_v11  ;;  %v12567_v44 = vand.u32 4294901760, %v12566_v25 }
0x12f4   :  { %25305 = vmatpush3.msra.mxu0 %v29096_v55  ;;  %25339 = vmatprep.subr.mxu1 %v26594_v38 }
0x12f5   :  { %25306 = vmatprep.subr.mxu0 %v26594_v38  ;;  %25308 = vmatprep.mubr.msk.f32.mxu0 %vm26595_vm1, %v26594_v38 }
0x12f6   :  { %25307 = vmatpush3.msra.mxu0 %v29107_v2  ;;  %25340 = vmatpush3.msra.mxu1 %v29098_v7  ;;  %v12574_v7 = vand.u32 4294901760, %v12573_v27 }
0x12f7   :  { %25341 = vmatprep.mubr.msk.f32.mxu1 %vm26595_vm1, %v26594_v38  ;;  %25309 = vmatmul.mubr.f32.vlgmr.msra.gmra.mxu0 %v12021_v58 }
0x12f8   :  { %25322 = vmatprep.subr.mxu0 %v26594_v38  ;;  %25342 = vmatmul.mubr.f32.vlgmr.msra.gmra.mxu1 %v29129_v14 }
0x12f9   :  { %25355 = vmatprep.subr.mxu1 %v26594_v38  ;;  %25323 = vmatpush3.msra.mxu0 %v12057_v5  ;;  %v12524_v5 = vsub.f32 %v12522_v39, %v12523_v24 }
0x12fa   :  { %25356 = vmatpush3.msra.mxu1 %v12560_v28  ;;  %25324 = vmatprep.subr.mxu0 %v26594_v38 }
0x12fb   :  { %25357 = vmatprep.subr.mxu1 %v26594_v38  ;;  %25325 = vmatpush3.msra.mxu0 %v12064_v54  ;;  %v12525_v15 = vand.u32 4294901760, %v12524_v5  ;;  %v22501_v54 = vld [vmem:[%s31295_s7 + $0x158] sm:$0xff] }
0x12fc   :  { %25358 = vmatpush3.msra.mxu1 %v12567_v44  ;;  %25326 = vmatprep.subr.mxu0 %v26594_v38  ;;  %v29299_v55 = vand.u32 4294901760, %v22501_v54 }
0x12fd   :  { %25359 = vmatprep.subr.mxu1 %v26594_v38  ;;  %25327 = vmatpush3.msra.mxu0 %v12071_v12  ;;  %v22500_v12 = vld [vmem:[%s31295_s7 + $0x150] sm:$0xff] }
0x12fe   :  { %25360 = vmatpush3.msra.mxu1 %v12574_v7  ;;  %25328 = vmatprep.subr.mxu0 %v26594_v38  ;;  %v29305_v2 = vsub.f32 %v22501_v54, %v29299_v55 }
0x12ff   :  { %25361 = vmatprep.subr.mxu1 %v26594_v38  ;;  %25329 = vmatpush3.msra.mxu0 %v12078_v18  ;;  %v29307_v18 = vand.u32 4294901760, %v22500_v12 }
0x1300   :  { %25330 = vmatprep.mubr.msk.f32.mxu0 %vm26595_vm1, %v26594_v38  ;;  %25362 = vmatpush3.msra.mxu1 %v12581_v33  ;;  %v13062_v0 = vand.u32 4294901760, %v29305_v2  ;;  %v22497_v33 = vld [vmem:[%s31296_s6 + $0xa] ss:$0 sm:$0xff] }
0x1301   :  { %25363 = vmatprep.mubr.msk.f32.mxu1 %vm26595_vm1, %v26594_v38  ;;  %25331 = vmatmul.mubr.f32.vlgmr.msra.gmra.mxu0 %v29129_v14  ;;  %v29316_v8 = vsub.f32 %v22500_v12, %v29307_v18  ;;  %v13083_v14 = vand.u32 4294901760, %v29341_v1 }
0x1302   :  { %25344 = vmatprep.subr.mxu0 %v26594_v38  ;;  %25364 = vmatmul.mubr.f32.vlgmr.msra.gmra.mxu1 %v29210_v32  ;;  %v13063_v21 = vsub.f32 %v29305_v2, %v13062_v0 }
0x1303   :  { %25377 = vmatprep.subr.mxu1 %v26594_v38  ;;  %25345 = vmatpush3.msra.mxu0 %v29136_v36  ;;  %v13069_v4 = vand.u32 4294901760, %v29316_v8  ;;  %v13084_v58 = vsub.f32 %v29341_v1, %v13083_v14 }
0x1304   :  { %25378 = vmatpush3.msra.mxu1 %v29136_v36  ;;  %25346 = vmatprep.subr.mxu0 %v26594_v38  ;;  %v13064_v47 = vand.u32 4294901760, %v13063_v21 }
0x1305   :  { %25379 = vmatprep.subr.mxu1 %v26594_v38  ;;  %25347 = vmatpush3.msra.mxu0 %v29145_v16  ;;  %v13070_v59 = vsub.f32 %v29316_v8, %v13069_v4 }
0x1306   :  { %25380 = vmatpush3.msra.mxu1 %v29145_v16  ;;  %25348 = vmatprep.subr.mxu0 %v26594_v38 }
0x1307   :  { %25381 = vmatprep.subr.mxu1 %v26594_v38  ;;  %25349 = vmatpush3.msra.mxu0 %v29155_v52  ;;  %v13071_v40 = vand.u32 4294901760, %v13070_v59 }
0x1308   :  { %25382 = vmatpush3.msra.mxu1 %v29155_v52  ;;  %25350 = vmatprep.subr.mxu0 %v26594_v38 }
0x1309   :  { %25383 = vmatprep.subr.mxu1 %v26594_v38  ;;  %25351 = vmatpush3.msra.mxu0 %v29162_v42 }
0x130a   :  { %25352 = vmatprep.mubr.msk.f32.mxu0 %vm26595_vm1, %v26594_v38  ;;  %25384 = vmatpush3.msra.mxu1 %v29162_v42 }
0x130b   :  { %25385 = vmatprep.mubr.msk.f32.mxu1 %vm26595_vm1, %v26594_v38  ;;  %25353 = vmatmul.mubr.f32.vlgmr.msra.gmra.mxu0 %v12525_v15 }
0x130c   :  { %25366 = vmatprep.subr.mxu0 %v26594_v38  ;;  %25386 = vmatmul.mubr.f32.vlgmr.msra.gmra.mxu1 %v12523_v24 }
0x130d   :  { %25399 = vmatprep.subr.mxu1 %v26594_v38  ;;  %25367 = vmatpush3.msra.mxu0 %v29153_v29 }
0x130e   :  { %25400 = vmatpush3.msra.mxu1 %v29136_v36  ;;  %25368 = vmatprep.subr.mxu0 %v26594_v38  ;;  %v13085_v36 = vand.u32 4294901760, %v13084_v58 }
0x130f   :  { %25401 = vmatprep.subr.mxu1 %v26594_v38  ;;  %25369 = vmatpush3.msra.mxu0 %v29160_v62 }
0x1310   :  { %25402 = vmatpush3.msra.mxu1 %v29145_v16  ;;  %25370 = vmatprep.subr.mxu0 %v26594_v38  ;;  %v22491_v16 = vld [vmem:[%s31297_s8 + $0x9] ss:$0 sm:$0xff] }
0x1311   :  { %25403 = vmatprep.subr.mxu1 %v26594_v38  ;;  %25371 = vmatpush3.msra.mxu0 %v29168_v30 }
0x1312   :  { %25404 = vmatpush3.msra.mxu1 %v29155_v52  ;;  %25372 = vmatprep.subr.mxu0 %v26594_v38 }
0x1313   :  { %25405 = vmatprep.subr.mxu1 %v26594_v38  ;;  %25373 = vmatpush3.msra.mxu0 %v29175_v17 }
0x1314   :  { %25374 = vmatprep.mubr.msk.f32.mxu0 %vm26595_vm1, %v26594_v38  ;;  %25406 = vmatpush3.msra.mxu1 %v29162_v42 }
0x1315   :  { %25407 = vmatprep.mubr.msk.f32.mxu1 %vm26595_vm1, %v26594_v38  ;;  %25375 = vmatmul.mubr.f32.vlgmr.msra.gmra.mxu0 %v12522_v39 }
0x1316   :  { %25388 = vmatprep.subr.mxu0 %v26594_v38  ;;  %25408 = vmatmul.mubr.f32.vlgmr.msra.gmra.mxu1 %v29210_v32 }
0x1317   :  { %25389 = vmatpush3.msra.mxu0 %v12558_v53  ;;  %25396 = vmatprep.mubr.msk.f32.mxu0 %vm26595_vm1, %v26594_v38 }
0x1318   :  { %25390 = vmatprep.subr.mxu0 %v26594_v38  ;;  %25421 = vmatprep.subr.mxu1 %v26594_v38 }
0x1319   :  { %25391 = vmatpush3.msra.mxu0 %v12565_v60  ;;  %25429 = vmatprep.mubr.msk.f32.mxu1 %vm26595_vm1, %v26594_v38 }
0x131a   :  { %25392 = vmatprep.subr.mxu0 %v26594_v38  ;;  %25422 = vmatpush3.msra.mxu1 %v13064_v47 }
0x131b   :  { %25393 = vmatpush3.msra.mxu0 %v12572_v20  ;;  %25423 = vmatprep.subr.mxu1 %v26594_v38 }
0x131c   :  { %25394 = vmatprep.subr.mxu0 %v26594_v38  ;;  %25424 = vmatpush3.msra.mxu1 %v13071_v40 }
0x131d   :  { %25395 = vmatpush3.msra.mxu0 %v12579_v46  ;;  %25425 = vmatprep.subr.mxu1 %v26594_v38 }
0x131e   :  { %25397 = vmatmul.mubr.f32.vlgmr.msra.gmra.mxu0 %v29210_v32  ;;  %25410 = vmatprep.subr.mxu0 %v26594_v38 }
0x131f   :  { %25418 = vmatprep.mubr.msk.f32.mxu0 %vm26595_vm1, %v26594_v38  ;;  %25411 = vmatpush3.msra.mxu0 %v29299_v55 }
0x1320   :  { %25412 = vmatprep.subr.mxu0 %v26594_v38  ;;  %25426 = vmatpush3.msra.mxu1 %v13078_v22 }
0x1321   :  { %25413 = vmatpush3.msra.mxu0 %v29307_v18  ;;  %25427 = vmatprep.subr.mxu1 %v26594_v38 }
0x1322   :  { %25414 = vmatprep.subr.mxu0 %v26594_v38  ;;  %25428 = vmatpush3.msra.mxu1 %v13085_v36 }
0x1323   :  { %25415 = vmatpush3.msra.mxu0 %v29318_v13  ;;  %25443 = vmatprep.subr.mxu1 %v26594_v38 }
0x1324   :  { %25416 = vmatprep.subr.mxu0 %v26594_v38 }
0x1325   :  { %25417 = vmatpush3.msra.mxu0 %v29332_v45 }
0x1326   :  { %25432 = vmatprep.subr.mxu0 %v26594_v38 }
0x13a6   :  { %v12117_v37 = vpop.f32.mrf.mxu1 }
0x13a8   :  { %v25299_v63 = vpop.f32.mrf.mxu1 }
0x13ae   :  { %v12274_v23 = vpop.f32.mrf.mxu1 }
0x13af   :  { %v12026_v26 = vpop.f32.mrf.mxu0 }
0x13b0   :  { %v12027_v29 = vadd.f32 %v22491_v16, %v12026_v26  ;;  %v25321_v52 = vpop.f32.mrf.mxu1 }
0x13b1   :  { %v25288_v57 = vpop.f32.mrf.mxu0 }
0x13b2   :  { %v12118_v62 = vadd.f32 %v12117_v37, %v12027_v29 }
0x13b7   :  { %v12197_v42 = vpop.f32.mrf.mxu0 }
0x13b8   :  { %v12198_v53 = vadd.f32 %v12197_v42, %v12118_v62  ;;  %v12432_v30 = vpop.f32.mrf.mxu1 }
0x13b9   :  { %v25310_v60 = vpop.f32.mrf.mxu0 }
0x13ba   :  { %v25343_v17 = vpop.f32.mrf.mxu1  ;;  %v12275_v11 = vadd.f32 %v12274_v23, %v12198_v53 }
0x13c1   :  { %v12357_v20 = vpop.f32.mrf.mxu0 }
0x13c2   :  { %v12358_v25 = vadd.f32 %v12357_v20, %v12275_v11  ;;  %v12618_v46 = vpop.f32.mrf.mxu1 }
0x13c3   :  { %v25332_v10 = vpop.f32.mrf.mxu0 }
0x13c4   :  { %v29359_v28 = vadd.f32 %v12432_v30, %v12358_v25  ;;  %v25365_v27 = vpop.f32.mrf.mxu1 }
0x13cb   :  { %v12527_v44 = vpop.f32.mrf.mxu0 }
0x13cc   :  { %v12775_v19 = vpop.f32.mrf.mxu1  ;;  %v12528_v39 = vadd.f32 %v22497_v33, %v12527_v44 }
0x13cd   :  { %v25354_v32 = vpop.f32.mrf.mxu0 }
0x13ce   :  { %v25387_v7 = vpop.f32.mrf.mxu1  ;;  %v12619_v15 = vadd.f32 %v12618_v46, %v12528_v39  ;;  %v22503_v32 = vld [vmem:[%s31297_s8 + $0xa] ss:$0 sm:$0xff] }
0x13d5   :  { %v12698_v24 = vpop.f32.mrf.mxu0 }
0x13d6   :  { %v12933_v5 = vpop.f32.mrf.mxu1  ;;  %v12699_v50 = vadd.f32 %v12698_v24, %v12619_v15 }
0x13d7   :  { %v25376_v54 = vpop.f32.mrf.mxu0 }
0x13d8   :  { %v25409_v12 = vpop.f32.mrf.mxu1  ;;  %v12776_v34 = vadd.f32 %v12775_v19, %v12699_v50 }
0x13de   :  { %v12858_v21 = vpop.f32.mrf.mxu0 }
0x13df   :  { %v12859_v47 = vadd.f32 %v12858_v21, %v12776_v34 }
0x13e0   :  { %v25398_v59 = vpop.f32.mrf.mxu0 }
0x13e1   :  { %v12934_v40 = vadd.f32 %v12933_v5, %v12859_v47 }
0x13e3   :  { %vm12937_vm13 = vcmp.gt.f32.partialorder %v12934_v40, 0.0  ;;  %v12938_v49 = vmul.f32 0.01, %v12934_v40 }
0x13e5   :  { %v12939_v22 = vsel %vm12937_vm13, %v12934_v40, %v12938_v49 }
0x13e6   :  { %v12954_v58 = vsel %vm61_vm0, %v12939_v22, 0 }
0x13e7   :  { %v13025_v36 = vand.u32 4294901760, %v12954_v58 }
0x13e9   :  { %v13026_v37 = vsub.f32 %v12954_v58, %v13025_v36  ;;  %25430 = vmatmul.mubr.f32.vlgmr.msra.gmra.mxu1 %v13025_v36 }
0x13ea   :  { %25444 = vmatpush3.msra.mxu1 %v29299_v55  ;;  %25451 = vmatprep.mubr.msk.f32.mxu1 %vm26595_vm1, %v26594_v38 }
0x13eb   :  { %25445 = vmatprep.subr.mxu1 %v26594_v38  ;;  %v13027_v63 = vand.u32 4294901760, %v13026_v37 }
0x13ec   :  { %25446 = vmatpush3.msra.mxu1 %v29307_v18 }
0x13ed   :  { %25447 = vmatprep.subr.mxu1 %v26594_v38  ;;  %v13028_v16 = vsub.f32 %v13026_v37, %v13027_v63 }
0x13ee   :  { %25448 = vmatpush3.msra.mxu1 %v29318_v13 }
0x13ef   :  { %25449 = vmatprep.subr.mxu1 %v26594_v38  ;;  %v13029_v23 = vand.u32 4294901760, %v13028_v16  ;;  %v22512_v16 = vld [vmem:[%s31295_s7 + $0x170] sm:$0xff] }
0x13f0   :  { %25450 = vmatpush3.msra.mxu1 %v29332_v45 }
0x13f1   :  { %25452 = vmatmul.mubr.f32.vlgmr.msra.gmra.mxu1 %v13027_v63  ;;  %25465 = vmatprep.subr.mxu1 %v26594_v38 }
0x13f2   :  { %25419 = vmatmul.mubr.f32.vlgmr.msra.gmra.mxu0 %v13029_v23  ;;  %25466 = vmatpush3.msra.mxu1 %v29299_v55  ;;  %v22507_v55 = vld [vmem:[%s31294_s5 + $0x178] sm:$0xff] }
0x13f3   :  { %25433 = vmatpush3.msra.mxu0 %v29305_v2  ;;  %25467 = vmatprep.subr.mxu1 %v26594_v38  ;;  %v29416_v2 = vand.u32 4294901760, %v22507_v55 }
0x13f4   :  { %25434 = vmatprep.subr.mxu0 %v26594_v38  ;;  %25468 = vmatpush3.msra.mxu1 %v29307_v18  ;;  %v22506_v18 = vld [vmem:[%s31294_s5 + $0x170] sm:$0xff] }
0x13f5   :  { %25435 = vmatpush3.msra.mxu0 %v29316_v8  ;;  %25469 = vmatprep.subr.mxu1 %v26594_v38  ;;  %v29424_v8 = vand.u32 4294901760, %v22506_v18 }
0x13f6   :  { %25436 = vmatprep.subr.mxu0 %v26594_v38  ;;  %25470 = vmatpush3.msra.mxu1 %v29318_v13  ;;  %v22505_v13 = vld [vmem:[%s31294_s5 + $0x168] sm:$0xff] }
0x13f7   :  { %25437 = vmatpush3.msra.mxu0 %v29330_v35  ;;  %25471 = vmatprep.subr.mxu1 %v26594_v38  ;;  %v29433_v35 = vsub.f32 %v22506_v18, %v29424_v8 }
0x13f8   :  { %25438 = vmatprep.subr.mxu0 %v26594_v38  ;;  %25440 = vmatprep.mubr.msk.f32.mxu0 %vm26595_vm1, %v26594_v38 }
0x13f9   :  { %25439 = vmatpush3.msra.mxu0 %v29341_v1  ;;  %25472 = vmatpush3.msra.mxu1 %v29332_v45  ;;  %v29435_v45 = vand.u32 4294901760, %v22505_v13 }
0x13fa   :  { %25473 = vmatprep.mubr.msk.f32.mxu1 %vm26595_vm1, %v26594_v38  ;;  %25441 = vmatmul.mubr.f32.vlgmr.msra.gmra.mxu0 %v13026_v37  ;;  %v22513_v37 = vld [vmem:[%s31295_s7 + $0x178] sm:$0xff] }
0x13fb   :  { %25454 = vmatprep.subr.mxu0 %v26594_v38  ;;  %25474 = vmatmul.mubr.f32.vlgmr.msra.gmra.mxu1 %v13025_v36  ;;  %v29447_v26 = vsub.f32 %v22505_v13, %v29435_v45  ;;  %v29529_v63 = vand.u32 4294901760, %v22513_v37  ;;  %v22510_v13 = vld [vmem:[%s31295_s7 + $0x160] sm:$0xff] }
0x13fc   :  { %25455 = vmatpush3.msra.mxu0 %v13062_v0  ;;  %25462 = vmatprep.mubr.msk.f32.mxu0 %vm26595_vm1, %v26594_v38  ;;  %v29422_v0 = vsub.f32 %v22507_v55, %v29416_v2  ;;  %v29537_v55 = vand.u32 4294901760, %v22512_v16 }
0x13fd   :  { %25456 = vmatprep.subr.mxu0 %v26594_v38  ;;  %25487 = vmatprep.subr.mxu1 %v26594_v38  ;;  %v13578_v62 = vand.u32 4294901760, %v29447_v26  ;;  %v29535_v23 = vsub.f32 %v22513_v37, %v29529_v63 }
0x13fe   :  { %25457 = vmatpush3.msra.mxu0 %v13069_v4  ;;  %25495 = vmatprep.mubr.msk.f32.mxu1 %vm26595_vm1, %v26594_v38  ;;  %v13564_v4 = vand.u32 4294901760, %v29422_v0 }
0x13ff   :  { %25458 = vmatprep.subr.mxu0 %v26594_v38  ;;  %v13579_v30 = vsub.f32 %v29447_v26, %v13578_v62  ;;  %v14068_v18 = vand.u32 4294901760, %v29535_v23 }
0x1400   :  { %25459 = vmatpush3.msra.mxu0 %v13076_v3  ;;  %v22504_v3 = vld [vmem:[%s31294_s5 + $0x160] sm:$0xff]  ;;  %v13565_v1 = vsub.f32 %v29422_v0, %v13564_v4 }
0x1401   :  { %25460 = vmatprep.subr.mxu0 %v26594_v38  ;;  %v29449_v29 = vand.u32 4294901760, %v22504_v3  ;;  %v13580_v17 = vand.u32 4294901760, %v13579_v30 }
0x1402   :  { %25461 = vmatpush3.msra.mxu0 %v13083_v14  ;;  %v13571_v14 = vand.u32 4294901760, %v29433_v35  ;;  %v13566_v52 = vand.u32 4294901760, %v13565_v1 }
0x1403   :  { %25463 = vmatmul.mubr.f32.vlgmr.msra.gmra.mxu0 %v13025_v36  ;;  %25476 = vmatprep.subr.mxu0 %v26594_v38  ;;  %v29458_v42 = vsub.f32 %v22504_v3, %v29449_v29  ;;  %v29562_v3 = vand.u32 4294901760, %v22510_v13 }
0x1404   :  { %25484 = vmatprep.mubr.msk.f32.mxu0 %vm26595_vm1, %v26594_v38  ;;  %25477 = vmatpush3.msra.mxu0 %v29416_v2  ;;  %v13572_v57 = vsub.f32 %v29433_v35, %v13571_v14 }
0x1405   :  { %25478 = vmatprep.subr.mxu0 %v26594_v38  ;;  %25488 = vmatpush3.msra.mxu1 %v13566_v52  ;;  %v13585_v60 = vand.u32 4294901760, %v29458_v42 }
0x1406   :  { %25479 = vmatpush3.msra.mxu0 %v29424_v8  ;;  %v13573_v53 = vand.u32 4294901760, %v13572_v57  ;;  %25489 = vmatprep.subr.mxu1 %v26594_v38 }
0x1407   :  { %25480 = vmatprep.subr.mxu0 %v26594_v38  ;;  %v13586_v11 = vsub.f32 %v29458_v42, %v13585_v60 }
0x1408   :  { %25481 = vmatpush3.msra.mxu0 %v29435_v45  ;;  %25490 = vmatpush3.msra.mxu1 %v13573_v53 }
0x1409   :  { %25482 = vmatprep.subr.mxu0 %v26594_v38  ;;  %25491 = vmatprep.subr.mxu1 %v26594_v38  ;;  %v13587_v20 = vand.u32 4294901760, %v13586_v11 }
0x140a   :  { %25483 = vmatpush3.msra.mxu0 %v29449_v29  ;;  %25492 = vmatpush3.msra.mxu1 %v13580_v17 }
0x140b   :  { %25498 = vmatprep.subr.mxu0 %v26594_v38  ;;  %25493 = vmatprep.subr.mxu1 %v26594_v38 }
0x140c   :  { %25494 = vmatpush3.msra.mxu1 %v13587_v20 }
0x140d   :  { %25509 = vmatprep.subr.mxu1 %v26594_v38 }
0x14a9   :  { %v13122_v25 = vpop.f32.mrf.mxu1 }
0x14ab   :  { %v25431_v46 = vpop.f32.mrf.mxu1 }
0x14b1   :  { %v13279_v10 = vpop.f32.mrf.mxu1 }
0x14b2   :  { %v13031_v27 = vpop.f32.mrf.mxu0 }
0x14b3   :  { %v25453_v44 = vpop.f32.mrf.mxu1  ;;  %v13032_v7 = vadd.f32 %v22503_v32, %v13031_v27 }
0x14b4   :  { %v25420_v19 = vpop.f32.mrf.mxu0 }
0x14b5   :  { %v13123_v24 = vadd.f32 %v13122_v25, %v13032_v7 }
0x14ba   :  { %v13202_v33 = vpop.f32.mrf.mxu0 }
0x14bb   :  { %v13437_v39 = vpop.f32.mrf.mxu1  ;;  %v13203_v54 = vadd.f32 %v13202_v33, %v13123_v24 }
0x14bc   :  { %v25442_v5 = vpop.f32.mrf.mxu0 }
0x14bd   :  { %v25475_v15 = vpop.f32.mrf.mxu1  ;;  %v13280_v12 = vadd.f32 %v13279_v10, %v13203_v54  ;;  %v22509_v10 = vld [vmem:[%s31296_s6 + $0xb] ss:$0 sm:$0xff] }
0x14c3   :  { %v13362_v50 = vpop.f32.mrf.mxu0 }
0x14c4   :  { %v13363_v34 = vadd.f32 %v13362_v50, %v13280_v12 }
0x14c5   :  { %v25464_v21 = vpop.f32.mrf.mxu0 }
0x14c6   :  { %v13438_v47 = vadd.f32 %v13437_v39, %v13363_v34 }
0x14c8   :  { %v13441_v59 = vadd.f32 %v13438_v47, %v29359_v28 }
0x14ca   :  { %v13456_v40 = vsel %vm61_vm0, %v13441_v59, 0 }
0x14cb   :  { %v13527_v49 = vand.u32 4294901760, %v13456_v40 }
0x14cd   :  { %v13528_v22 = vsub.f32 %v13456_v40, %v13527_v49  ;;  %25496 = vmatmul.mubr.f32.vlgmr.msra.gmra.mxu1 %v13527_v49 }
0x14ce   :  { %25510 = vmatpush3.msra.mxu1 %v29416_v2  ;;  %25517 = vmatprep.mubr.msk.f32.mxu1 %vm26595_vm1, %v26594_v38 }
0x14cf   :  { %v13529_v58 = vand.u32 4294901760, %v13528_v22  ;;  %25511 = vmatprep.subr.mxu1 %v26594_v38 }
0x14d0   :  { %25512 = vmatpush3.msra.mxu1 %v29424_v8 }
0x14d1   :  { %v13530_v36 = vsub.f32 %v13528_v22, %v13529_v58  ;;  %25513 = vmatprep.subr.mxu1 %v26594_v38 }
0x14d2   :  { %25514 = vmatpush3.msra.mxu1 %v29435_v45 }
0x14d3   :  { %25515 = vmatprep.subr.mxu1 %v26594_v38  ;;  %v13531_v28 = vand.u32 4294901760, %v13530_v36 }
0x14d4   :  { %25516 = vmatpush3.msra.mxu1 %v29449_v29 }
0x14d5   :  { %25518 = vmatmul.mubr.f32.vlgmr.msra.gmra.mxu1 %v13529_v58  ;;  %25531 = vmatprep.subr.mxu1 %v26594_v38 }
0x14d6   :  { %25485 = vmatmul.mubr.f32.vlgmr.msra.gmra.mxu0 %v13531_v28  ;;  %25532 = vmatpush3.msra.mxu1 %v29416_v2  ;;  %v22511_v2 = vld [vmem:[%s31295_s7 + $0x168] sm:$0xff] }
0x14d7   :  { %25499 = vmatpush3.msra.mxu0 %v29422_v0  ;;  %25533 = vmatprep.subr.mxu1 %v26594_v38  ;;  %v29546_v0 = vsub.f32 %v22512_v16, %v29537_v55 }
0x14d8   :  { %25500 = vmatprep.subr.mxu0 %v26594_v38  ;;  %25534 = vmatpush3.msra.mxu1 %v29424_v8  ;;  %v29548_v8 = vand.u32 4294901760, %v22511_v2 }
0x14d9   :  { %25501 = vmatpush3.msra.mxu0 %v29433_v35  ;;  %25535 = vmatprep.subr.mxu1 %v26594_v38  ;;  %v14075_v35 = vand.u32 4294901760, %v29546_v0 }
0x14da   :  { %25502 = vmatprep.subr.mxu0 %v26594_v38  ;;  %25536 = vmatpush3.msra.mxu1 %v29435_v45  ;;  %v29560_v45 = vsub.f32 %v22511_v2, %v29548_v8 }
0x14db   :  { %25503 = vmatpush3.msra.mxu0 %v29447_v26  ;;  %25537 = vmatprep.subr.mxu1 %v26594_v38 }
0x14dc   :  { %25504 = vmatprep.subr.mxu0 %v26594_v38  ;;  %25506 = vmatprep.mubr.msk.f32.mxu0 %vm26595_vm1, %v26594_v38  ;;  %v14082_v26 = vand.u32 4294901760, %v29560_v45 }
0x14dd   :  { %25505 = vmatpush3.msra.mxu0 %v29458_v42  ;;  %25538 = vmatpush3.msra.mxu1 %v29449_v29  ;;  %v29571_v29 = vsub.f32 %v22510_v13, %v29562_v3 }
0x14de   :  { %25539 = vmatprep.mubr.msk.f32.mxu1 %vm26595_vm1, %v26594_v38  ;;  %25507 = vmatmul.mubr.f32.vlgmr.msra.gmra.mxu0 %v13528_v22  ;;  %v14083_v57 = vsub.f32 %v29560_v45, %v14082_v26 }
0x14df   :  { %25520 = vmatprep.subr.mxu0 %v26594_v38  ;;  %25540 = vmatmul.mubr.f32.vlgmr.msra.gmra.mxu1 %v13527_v49 }
0x14e0   :  { %25521 = vmatpush3.msra.mxu0 %v13564_v4  ;;  %25528 = vmatprep.mubr.msk.f32.mxu0 %vm26595_vm1, %v26594_v38  ;;  %v14069_v4 = vsub.f32 %v29535_v23, %v14068_v18  ;;  %v14084_v42 = vand.u32 4294901760, %v14083_v57 }
0x14e1   :  { %25522 = vmatprep.subr.mxu0 %v26594_v38  ;;  %25553 = vmatprep.subr.mxu1 %v26594_v38 }
0x14e2   :  { %25523 = vmatpush3.msra.mxu0 %v13571_v14  ;;  %25561 = vmatprep.mubr.msk.f32.mxu1 %vm26595_vm1, %v26594_v38  ;;  %v14070_v1 = vand.u32 4294901760, %v14069_v4  ;;  %v14076_v14 = vsub.f32 %v29546_v0, %v14075_v35 }
0x14e3   :  { %25524 = vmatprep.subr.mxu0 %v26594_v38 }
0x14e4   :  { %25525 = vmatpush3.msra.mxu0 %v13578_v62  ;;  %25554 = vmatpush3.msra.mxu1 %v14070_v1  ;;  %v14077_v52 = vand.u32 4294901760, %v14076_v14  ;;  %v14089_v62 = vand.u32 4294901760, %v29571_v29 }
0x14e5   :  { %25526 = vmatprep.subr.mxu0 %v26594_v38  ;;  %25555 = vmatprep.subr.mxu1 %v26594_v38 }
0x14e6   :  { %25527 = vmatpush3.msra.mxu0 %v13585_v60  ;;  %25556 = vmatpush3.msra.mxu1 %v14077_v52  ;;  %v14090_v53 = vsub.f32 %v29571_v29, %v14089_v62 }
0x14e7   :  { %25529 = vmatmul.mubr.f32.vlgmr.msra.gmra.mxu0 %v13527_v49  ;;  %25542 = vmatprep.subr.mxu0 %v26594_v38 }
0x14e8   :  { %25550 = vmatprep.mubr.msk.f32.mxu0 %vm26595_vm1, %v26594_v38  ;;  %25543 = vmatpush3.msra.mxu0 %v29529_v63  ;;  %v14091_v30 = vand.u32 4294901760, %v14090_v53 }
0x14e9   :  { %25544 = vmatprep.subr.mxu0 %v26594_v38  ;;  %25557 = vmatprep.subr.mxu1 %v26594_v38 }
0x14ea   :  { %25545 = vmatpush3.msra.mxu0 %v29537_v55  ;;  %25558 = vmatpush3.msra.mxu1 %v14084_v42 }
0x14eb   :  { %25546 = vmatprep.subr.mxu0 %v26594_v38  ;;  %25559 = vmatprep.subr.mxu1 %v26594_v38 }
0x14ec   :  { %25547 = vmatpush3.msra.mxu0 %v29548_v8  ;;  %25560 = vmatpush3.msra.mxu1 %v14091_v30 }
0x14ed   :  { %25548 = vmatprep.subr.mxu0 %v26594_v38  ;;  %25575 = vmatprep.subr.mxu1 %v26594_v38 }
0x14ee   :  { %25549 = vmatpush3.msra.mxu0 %v29562_v3 }
0x14ef   :  { %25564 = vmatprep.subr.mxu0 %v26594_v38 }
0x158d   :  { %v13624_v60 = vpop.f32.mrf.mxu1 }
0x158f   :  { %v25497_v17 = vpop.f32.mrf.mxu1 }
0x1595   :  { %v13781_v11 = vpop.f32.mrf.mxu1 }
0x1596   :  { %v13533_v20 = vpop.f32.mrf.mxu0 }
0x1597   :  { %v25519_v25 = vpop.f32.mrf.mxu1  ;;  %v13534_v27 = vadd.f32 %v22509_v10, %v13533_v20 }
0x1598   :  { %v25486_v46 = vpop.f32.mrf.mxu0 }
0x1599   :  { %v13625_v32 = vadd.f32 %v13624_v60, %v13534_v27 }
0x159e   :  { %v13704_v44 = vpop.f32.mrf.mxu0 }
0x159f   :  { %v13939_v19 = vpop.f32.mrf.mxu1  ;;  %v13705_v39 = vadd.f32 %v13704_v44, %v13625_v32 }
0x15a0   :  { %v25508_v7 = vpop.f32.mrf.mxu0 }
0x15a1   :  { %v25541_v33 = vpop.f32.mrf.mxu1  ;;  %v13782_v24 = vadd.f32 %v13781_v11, %v13705_v39  ;;  %v22516_v11 = vld [vmem:[%s31294_s5 + $0x180] sm:$0xff] }
0x15a2   :  { %v29705_v10 = vand.u32 4294901760, %v22516_v11 }
0x15a4   :  { %v29714_v32 = vsub.f32 %v22516_v11, %v29705_v10 }
0x15a6   :  { %v15036_v39 = vand.u32 4294901760, %v29714_v32 }
0x15a7   :  { %v13864_v5 = vpop.f32.mrf.mxu0 }
0x15a8   :  { %v13865_v15 = vadd.f32 %v13864_v5, %v13782_v24  ;;  %v15037_v5 = vsub.f32 %v29714_v32, %v15036_v39 }
0x15a9   :  { %v25530_v54 = vpop.f32.mrf.mxu0 }
0x15aa   :  { %v13940_v12 = vadd.f32 %v13939_v19, %v13865_v15  ;;  %v15038_v15 = vand.u32 4294901760, %v15037_v5 }
0x15ac   :  { %vm13943_vm14 = vcmp.gt.f32.partialorder %v13940_v12, 0.0  ;;  %v13944_v50 = vmul.f32 0.01, %v13940_v12 }
0x15ae   :  { %v13945_v34 = vsel %vm13943_vm14, %v13940_v12, %v13944_v50 }
0x15af   :  { %v13960_v21 = vsel %vm61_vm0, %v13945_v34, 0 }
0x15b0   :  { %v14031_v47 = vand.u32 4294901760, %v13960_v21 }
0x15b2   :  { %v14032_v59 = vsub.f32 %v13960_v21, %v14031_v47  ;;  %25562 = vmatmul.mubr.f32.vlgmr.msra.gmra.mxu1 %v14031_v47 }
0x15b3   :  { %25576 = vmatpush3.msra.mxu1 %v29529_v63  ;;  %25583 = vmatprep.mubr.msk.f32.mxu1 %vm26595_vm1, %v26594_v38 }
0x15b4   :  { %25577 = vmatprep.subr.mxu1 %v26594_v38  ;;  %v14033_v40 = vand.u32 4294901760, %v14032_v59 }
0x15b5   :  { %25578 = vmatpush3.msra.mxu1 %v29537_v55 }
0x15b6   :  { %25579 = vmatprep.subr.mxu1 %v26594_v38  ;;  %v14034_v49 = vsub.f32 %v14032_v59, %v14033_v40 }
0x15b7   :  { %25580 = vmatpush3.msra.mxu1 %v29548_v8 }
0x15b8   :  { %25581 = vmatprep.subr.mxu1 %v26594_v38  ;;  %v14035_v22 = vand.u32 4294901760, %v14034_v49 }
0x15b9   :  { %25582 = vmatpush3.msra.mxu1 %v29562_v3 }
0x15ba   :  { %25584 = vmatmul.mubr.f32.vlgmr.msra.gmra.mxu1 %v14033_v40  ;;  %25597 = vmatprep.subr.mxu1 %v26594_v38 }
0x15bb   :  { %25551 = vmatmul.mubr.f32.vlgmr.msra.gmra.mxu0 %v14035_v22  ;;  %25598 = vmatpush3.msra.mxu1 %v29529_v63 }
0x15bc   :  { %25565 = vmatpush3.msra.mxu0 %v29535_v23  ;;  %25599 = vmatprep.subr.mxu1 %v26594_v38  ;;  %v22515_v23 = vld [vmem:[%s31297_s8 + $0xb] ss:$0 sm:$0xff] }
0x15bd   :  { %25566 = vmatprep.subr.mxu0 %v26594_v38  ;;  %25600 = vmatpush3.msra.mxu1 %v29537_v55 }
0x15be   :  { %25567 = vmatpush3.msra.mxu0 %v29546_v0  ;;  %25601 = vmatprep.subr.mxu1 %v26594_v38 }
0x15bf   :  { %25568 = vmatprep.subr.mxu0 %v26594_v38  ;;  %25602 = vmatpush3.msra.mxu1 %v29548_v8 }
0x15c0   :  { %25569 = vmatpush3.msra.mxu0 %v29560_v45  ;;  %25603 = vmatprep.subr.mxu1 %v26594_v38 }
0x15c1   :  { %25570 = vmatprep.subr.mxu0 %v26594_v38  ;;  %25572 = vmatprep.mubr.msk.f32.mxu0 %vm26595_vm1, %v26594_v38 }
0x15c2   :  { %25571 = vmatpush3.msra.mxu0 %v29571_v29  ;;  %25604 = vmatpush3.msra.mxu1 %v29562_v3 }
0x15c3   :  { %25605 = vmatprep.mubr.msk.f32.mxu1 %vm26595_vm1, %v26594_v38  ;;  %25573 = vmatmul.mubr.f32.vlgmr.msra.gmra.mxu0 %v14032_v59 }
0x15c4   :  { %25586 = vmatprep.subr.mxu0 %v26594_v38  ;;  %25606 = vmatmul.mubr.f32.vlgmr.msra.gmra.mxu1 %v14031_v47 }
0x15c5   :  { %25587 = vmatpush3.msra.mxu0 %v14068_v18  ;;  %25594 = vmatprep.mubr.msk.f32.mxu0 %vm26595_vm1, %v26594_v38 }
0x15c6   :  { %25588 = vmatprep.subr.mxu0 %v26594_v38  ;;  %25613 = vmatprep.subr.mxu1 %v26594_v38 }
0x15c7   :  { %25589 = vmatpush3.msra.mxu0 %v14075_v35  ;;  %25615 = vmatprep.mubr.msk.f32.mxu1 %vm26595_vm1, %v26594_v38 }
0x15c8   :  { %25590 = vmatprep.subr.mxu0 %v26594_v38 }
0x15c9   :  { %25591 = vmatpush3.msra.mxu0 %v14082_v26 }
0x15ca   :  { %25592 = vmatprep.subr.mxu0 %v26594_v38 }
0x15cb   :  { %25593 = vmatpush3.msra.mxu0 %v14089_v62 }
0x15cc   :  { %25595 = vmatmul.mubr.f32.vlgmr.msra.gmra.mxu0 %v14031_v47  ;;  %25608 = vmatprep.subr.mxu0 %v26594_v38 }
0x15cd   :  { %25610 = vmatprep.mubr.msk.f32.mxu0 %vm26595_vm1, %v26594_v38 }
0x1672   :  { %v14128_v58 = vpop.f32.mrf.mxu1 }
0x1674   :  { %v25563_v36 = vpop.f32.mrf.mxu1 }
0x167a   :  { %v14285_v28 = vpop.f32.mrf.mxu1 }
0x167b   :  { %v14037_v37 = vpop.f32.mrf.mxu0 }
0x167c   :  { %v25585_v63 = vpop.f32.mrf.mxu1  ;;  %v14038_v55 = vadd.f32 %v22515_v23, %v14037_v37 }
0x167d   :  { %v25552_v16 = vpop.f32.mrf.mxu0 }
0x167e   :  { %v14129_v0 = vadd.f32 %v14128_v58, %v14038_v55 }
0x1683   :  { %v14208_v2 = vpop.f32.mrf.mxu0 }
0x1684   :  { %v14443_v18 = vpop.f32.mrf.mxu1  ;;  %v14209_v4 = vadd.f32 %v14208_v2, %v14129_v0 }
0x1685   :  { %v25574_v8 = vpop.f32.mrf.mxu0 }
0x1686   :  { %v25607_v13 = vpop.f32.mrf.mxu1  ;;  %v14286_v35 = vadd.f32 %v14285_v28, %v14209_v4  ;;  %v22525_v4 = vld [vmem:[%s31295_s7 + $0x198] sm:$0xff] }
0x168c   :  { %v14368_v45 = vpop.f32.mrf.mxu0 }
0x168d   :  { %v14369_v3 = vadd.f32 %v14368_v45, %v14286_v35  ;;  %v29781_v35 = vand.u32 4294901760, %v22525_v4  ;;  %v22524_v45 = vld [vmem:[%s31295_s7 + $0x190] sm:$0xff] }
0x168e   :  { %v25596_v1 = vpop.f32.mrf.mxu0 }
0x168f   :  { %v29641_v14 = vadd.f32 %v14443_v18, %v14369_v3  ;;  %v29787_v3 = vsub.f32 %v22525_v4, %v29781_v35  ;;  %v29789_v1 = vand.u32 4294901760, %v22524_v45 }
0x1691   :  { %v14478_v26 = vand.u32 4294901760, %v29641_v14 }
0x1693   :  { %v14555_v29 = vsub.f32 %v29641_v14, %v14478_v26  ;;  %25609 = vmatpush3.msra.mxu0 %v14478_v26 }
0x1694   :  { %25611 = vmatmul.mubr.f32.vlgmr.msra.gmra.mxu0 %v26761_v6  ;;  %25618 = vmatprep.subr.mxu0 %v26594_v38 }
0x1695   :  { %25619 = vmatpush3.msra.mxu0 %v14555_v29  ;;  %25620 = vmatprep.mubr.msk.f32.mxu0 %vm26595_vm1, %v26594_v38  ;;  %v14556_v52 = vand.u32 4294901760, %v14555_v29 }
0x1696   :  { %25628 = vmatprep.subr.mxu0 %v26594_v38 }
0x1697   :  { %v14557_v57 = vsub.f32 %v14555_v29, %v14556_v52  ;;  %v15519_v29 = vand.u32 4294901760, %v29787_v3 }
0x1698   :  { %25621 = vmatmul.mubr.f32.vlgmr.msra.gmra.mxu0 %v26750_v56  ;;  %v22519_v56 = vld [vmem:[%s31294_s5 + $0x198] sm:$0xff] }
0x1699   :  { %25629 = vmatpush3.msra.mxu0 %v14556_v52  ;;  %v14558_v62 = vand.u32 4294901760, %v14557_v57  ;;  %25630 = vmatprep.mubr.msk.f32.mxu0 %vm26595_vm1, %v26594_v38  ;;  %v29672_v6 = vand.u32 4294901760, %v22519_v56  ;;  %v29798_v52 = vsub.f32 %v22524_v45, %v29789_v1 }
0x169a   :  { %25638 = vmatprep.subr.mxu0 %v26594_v38 }
0x169b   :  { %25614 = vmatpush3.msra.mxu1 %v14558_v62  ;;  %v29678_v42 = vsub.f32 %v22519_v56, %v29672_v6  ;;  %v22522_v62 = vld [vmem:[%s31295_s7 + $0x180] sm:$0xff]  ;;  %v15520_v56 = vsub.f32 %v29787_v3, %v15519_v29 }
0x169c   :  { %25616 = vmatmul.mubr.f32.vlgmr.msra.gmra.mxu1 %v26747_v51  ;;  %25623 = vmatprep.subr.mxu1 %v26594_v38 }
0x169d   :  { %25624 = vmatpush3.msra.mxu1 %v14478_v26  ;;  %25625 = vmatprep.mubr.msk.f32.mxu1 %vm26595_vm1, %v26594_v38  ;;  %v15015_v30 = vand.u32 4294901760, %v29678_v42 }
0x169e   :  { %25633 = vmatprep.subr.mxu1 %v26594_v38  ;;  %25631 = vmatmul.mubr.f32.vlgmr.msra.gmra.mxu0 %v26747_v51 }
0x169f   :  { %25646 = vmatprep.mubr.msk.f32.mxu0 %vm26595_vm1, %v26594_v38  ;;  %25639 = vmatpush3.msra.mxu0 %v29672_v6  ;;  %v15016_v20 = vsub.f32 %v29678_v42, %v15015_v30 }
0x16a0   :  { %25626 = vmatmul.mubr.f32.vlgmr.msra.gmra.mxu1 %v26753_v61  ;;  %v22518_v61 = vld [vmem:[%s31294_s5 + $0x190] sm:$0xff]  ;;  %25640 = vmatprep.subr.mxu0 %v26594_v38 }
0x16a1   :  { %25634 = vmatpush3.msra.mxu1 %v14478_v26  ;;  %25635 = vmatprep.mubr.msk.f32.mxu1 %vm26595_vm1, %v26594_v38  ;;  %v29680_v53 = vand.u32 4294901760, %v22518_v61  ;;  %v15017_v27 = vand.u32 4294901760, %v15016_v20  ;;  %v22523_v26 = vld [vmem:[%s31295_s7 + $0x188] sm:$0xff] }
0x16a2   :  { %25649 = vmatprep.subr.mxu1 %v26594_v38  ;;  %v29800_v57 = vand.u32 4294901760, %v22523_v26 }
0x16a3   :  { %v29689_v60 = vsub.f32 %v22518_v61, %v29680_v53  ;;  %25641 = vmatpush3.msra.mxu0 %v29680_v53 }
0x16a4   :  { %25636 = vmatmul.mubr.f32.vlgmr.msra.gmra.mxu1 %v26747_v51  ;;  %v22517_v51 = vld [vmem:[%s31294_s5 + $0x188] sm:$0xff]  ;;  %25642 = vmatprep.subr.mxu0 %v26594_v38  ;;  %v29812_v61 = vsub.f32 %v22523_v26, %v29800_v57 }
0x16a5   :  { %25657 = vmatprep.mubr.msk.f32.mxu1 %vm26595_vm1, %v26594_v38  ;;  %v29691_v17 = vand.u32 4294901760, %v22517_v51  ;;  %v15022_v25 = vand.u32 4294901760, %v29689_v60  ;;  %25650 = vmatpush3.msra.mxu1 %v15017_v27 }
0x16a6   :  { %25651 = vmatprep.subr.mxu1 %v26594_v38 }
0x16a7   :  { %v29703_v46 = vsub.f32 %v22517_v51, %v29691_v17  ;;  %25643 = vmatpush3.msra.mxu0 %v29691_v17  ;;  %v15023_v44 = vsub.f32 %v29689_v60, %v15022_v25 }
0x16a8   :  { %25644 = vmatprep.subr.mxu0 %v26594_v38 }
0x16a9   :  { %v15029_v19 = vand.u32 4294901760, %v29703_v46  ;;  %25645 = vmatpush3.msra.mxu0 %v29705_v10  ;;  %v15024_v7 = vand.u32 4294901760, %v15023_v44 }
0x16aa   :  { %25660 = vmatprep.subr.mxu0 %v26594_v38 }
0x16ab   :  { %v15030_v33 = vsub.f32 %v29703_v46, %v15029_v19  ;;  %25652 = vmatpush3.msra.mxu1 %v15024_v7 }
0x16ac   :  { %25653 = vmatprep.subr.mxu1 %v26594_v38 }
0x16ad   :  { %v15031_v24 = vand.u32 4294901760, %v15030_v33 }
0x16af   :  { %25654 = vmatpush3.msra.mxu1 %v15031_v24 }
0x16b0   :  { %25655 = vmatprep.subr.mxu1 %v26594_v38 }
0x16b1   :  { %25656 = vmatpush3.msra.mxu1 %v15038_v15 }
0x16b2   :  { %25671 = vmatprep.subr.mxu1 %v26594_v38 }
0x1754   :  { %v14519_v54 = vpop.f32.mrf.mxu0 }
0x1756   :  { %v25612_v12 = vpop.f32.mrf.mxu0 }
0x1758   :  { %v14669_v50 = vpop.f32.mrf.mxu0 }
0x175a   :  { %v25622_v34 = vpop.f32.mrf.mxu0 }
0x175c   :  { %v14595_v21 = vpop.f32.mrf.mxu1 }
0x175d   :  { %v14596_v47 = vadd.f32 %v14595_v21, %v14519_v54 }
0x175e   :  { %v25617_v59 = vpop.f32.mrf.mxu1  ;;  %v14817_v40 = vpop.f32.mrf.mxu0 }
0x175f   :  { %v14670_v49 = vadd.f32 %v14669_v50, %v14596_v47 }
0x1760   :  { %v14743_v22 = vpop.f32.mrf.mxu1  ;;  %v25632_v58 = vpop.f32.mrf.mxu0 }
0x1761   :  { %v14744_v36 = vadd.f32 %v14743_v22, %v14670_v49 }
0x1762   :  { %v25627_v28 = vpop.f32.mrf.mxu1 }
0x1763   :  { %v14818_v37 = vadd.f32 %v14817_v40, %v14744_v36  ;;  %v22531_v28 = vld [vmem:[%s31294_s5 + $0x1b8] sm:$0xff] }
0x1764   :  { %v14889_v63 = vpop.f32.mrf.mxu1 }
0x1765   :  { %v14890_v16 = vadd.f32 %v14889_v63, %v14818_v37  ;;  %v22530_v63 = vld [vmem:[%s31294_s5 + $0x1b0] sm:$0xff] }
0x1766   :  { %v25637_v23 = vpop.f32.mrf.mxu1 }
0x1767   :  { %v14907_v55 = vsel %vm61_vm0, %v14890_v16, 0  ;;  %v29852_v23 = vand.u32 4294901760, %v22531_v28 }
0x1768   :  { %v14978_v2 = vand.u32 4294901760, %v14907_v55 }
0x176a   :  { %v14979_v18 = vsub.f32 %v14907_v55, %v14978_v2  ;;  %25658 = vmatmul.mubr.f32.vlgmr.msra.gmra.mxu1 %v14978_v2  ;;  %v22529_v55 = vld [vmem:[%s31294_s5 + $0x1a8] sm:$0xff] }
0x176b   :  { %25672 = vmatpush3.msra.mxu1 %v29672_v6  ;;  %25679 = vmatprep.mubr.msk.f32.mxu1 %vm26595_vm1, %v26594_v38  ;;  %v29871_v4 = vand.u32 4294901760, %v22529_v55 }
0x176c   :  { %v14980_v0 = vand.u32 4294901760, %v14979_v18  ;;  %25673 = vmatprep.subr.mxu1 %v26594_v38 }
0x176d   :  { %25674 = vmatpush3.msra.mxu1 %v29680_v53 }
0x176e   :  { %v14981_v8 = vsub.f32 %v14979_v18, %v14980_v0  ;;  %25675 = vmatprep.subr.mxu1 %v26594_v38 }
0x176f   :  { %25676 = vmatpush3.msra.mxu1 %v29691_v17 }
0x1770   :  { %v14982_v13 = vand.u32 4294901760, %v14981_v8  ;;  %25677 = vmatprep.subr.mxu1 %v26594_v38 }
0x1771   :  { %25678 = vmatpush3.msra.mxu1 %v29705_v10 }
0x1772   :  { %25680 = vmatmul.mubr.f32.vlgmr.msra.gmra.mxu1 %v14980_v0  ;;  %25693 = vmatprep.subr.mxu1 %v26594_v38  ;;  %v22528_v0 = vld [vmem:[%s31294_s5 + $0x1a0] sm:$0xff] }
0x1773   :  { %25647 = vmatmul.mubr.f32.vlgmr.msra.gmra.mxu0 %v14982_v13  ;;  %25694 = vmatpush3.msra.mxu1 %v29672_v6  ;;  %v15526_v6 = vand.u32 4294901760, %v29798_v52  ;;  %v29869_v13 = vsub.f32 %v22531_v28, %v29852_v23 }
0x1774   :  { %25661 = vmatpush3.msra.mxu0 %v29678_v42  ;;  %25695 = vmatprep.subr.mxu1 %v26594_v38  ;;  %v29814_v42 = vand.u32 4294901760, %v22522_v62 }
0x1775   :  { %25662 = vmatprep.subr.mxu0 %v26594_v38  ;;  %25696 = vmatpush3.msra.mxu1 %v29680_v53  ;;  %v15521_v53 = vand.u32 4294901760, %v15520_v56  ;;  %v15527_v51 = vsub.f32 %v29798_v52, %v15526_v6  ;;  %v16020_v56 = vand.u32 4294901760, %v29869_v13 }
0x1776   :  { %25663 = vmatpush3.msra.mxu0 %v29689_v60  ;;  %25697 = vmatprep.subr.mxu1 %v26594_v38  ;;  %v29823_v60 = vsub.f32 %v22522_v62, %v29814_v42  ;;  %v29878_v62 = vand.u32 4294901760, %v22528_v0 }
0x1777   :  { %25664 = vmatprep.subr.mxu0 %v26594_v38  ;;  %25698 = vmatpush3.msra.mxu1 %v29691_v17  ;;  %v15528_v17 = vand.u32 4294901760, %v15527_v51 }
0x1778   :  { %25665 = vmatpush3.msra.mxu0 %v29703_v46  ;;  %25699 = vmatprep.subr.mxu1 %v26594_v38  ;;  %v15540_v20 = vand.u32 4294901760, %v29823_v60 }
0x1779   :  { %25666 = vmatprep.subr.mxu0 %v26594_v38  ;;  %25668 = vmatprep.mubr.msk.f32.mxu0 %vm26595_vm1, %v26594_v38 }
0x177a   :  { %25667 = vmatpush3.msra.mxu0 %v29714_v32  ;;  %25700 = vmatpush3.msra.mxu1 %v29705_v10  ;;  %v15541_v46 = vsub.f32 %v29823_v60, %v15540_v20 }
0x177b   :  { %25701 = vmatprep.mubr.msk.f32.mxu1 %vm26595_vm1, %v26594_v38  ;;  %25669 = vmatmul.mubr.f32.vlgmr.msra.gmra.mxu0 %v14979_v18  ;;  %v29861_v18 = vand.u32 4294901760, %v22530_v63 }
0x177c   :  { %25682 = vmatprep.subr.mxu0 %v26594_v38  ;;  %25702 = vmatmul.mubr.f32.vlgmr.msra.gmra.mxu1 %v14978_v2  ;;  %v15542_v10 = vand.u32 4294901760, %v15541_v46  ;;  %v15912_v46 = vsel %vm61_vm0, %v28925_v9, 0 }
0x177d   :  { %25683 = vmatpush3.msra.mxu0 %v15015_v30  ;;  %25690 = vmatprep.mubr.msk.f32.mxu0 %vm26595_vm1, %v26594_v38  ;;  %v15533_v30 = vand.u32 4294901760, %v29812_v61  ;;  %v29876_v26 = vsub.f32 %v22530_v63, %v29861_v18 }
0x177e   :  { %25684 = vmatprep.subr.mxu0 %v26594_v38  ;;  %25715 = vmatprep.subr.mxu1 %v26594_v38 }
0x177f   :  { %25685 = vmatpush3.msra.mxu0 %v15022_v25  ;;  %25723 = vmatprep.mubr.msk.f32.mxu1 %vm26595_vm1, %v26594_v38  ;;  %v15534_v11 = vsub.f32 %v29812_v61, %v15533_v30  ;;  %v16027_v51 = vand.u32 4294901760, %v29876_v26 }
0x1780   :  { %25686 = vmatprep.subr.mxu0 %v26594_v38  ;;  %25716 = vmatpush3.msra.mxu1 %v15521_v53  ;;  %v29884_v53 = vsub.f32 %v22529_v55, %v29871_v4 }
0x1781   :  { %25687 = vmatpush3.msra.mxu0 %v15029_v19  ;;  %25717 = vmatprep.subr.mxu1 %v26594_v38  ;;  %v15535_v25 = vand.u32 4294901760, %v15534_v11 }
0x1782   :  { %25688 = vmatprep.subr.mxu0 %v26594_v38  ;;  %25718 = vmatpush3.msra.mxu1 %v15528_v17  ;;  %v29891_v17 = vsub.f32 %v22528_v0, %v29878_v62  ;;  %v16034_v11 = vand.u32 4294901760, %v29884_v53 }
0x1783   :  { %25689 = vmatpush3.msra.mxu0 %v15036_v39  ;;  %25719 = vmatprep.subr.mxu1 %v26594_v38  ;;  %v22521_v39 = vld [vmem:[%s31296_s6 + $0xc] ss:$0 sm:$0xff] }
0x1784   :  { %25691 = vmatmul.mubr.f32.vlgmr.msra.gmra.mxu0 %v14978_v2  ;;  %25704 = vmatprep.subr.mxu0 %v26594_v38 }
0x1785   :  { %25712 = vmatprep.mubr.msk.f32.mxu0 %vm26595_vm1, %v26594_v38  ;;  %25705 = vmatpush3.msra.mxu0 %v29781_v35 }
0x1786   :  { %25706 = vmatprep.subr.mxu0 %v26594_v38  ;;  %25720 = vmatpush3.msra.mxu1 %v15535_v25  ;;  %v16041_v25 = vand.u32 4294901760, %v29891_v17 }
0x1787   :  { %25707 = vmatpush3.msra.mxu0 %v29789_v1  ;;  %25721 = vmatprep.subr.mxu1 %v26594_v38 }
0x1788   :  { %25708 = vmatprep.subr.mxu0 %v26594_v38  ;;  %25722 = vmatpush3.msra.mxu1 %v15542_v10  ;;  %v16035_v10 = vsub.f32 %v29884_v53, %v16034_v11  ;;  %v16042_v9 = vsub.f32 %v29891_v17, %v16041_v25 }
0x1789   :  { %25709 = vmatpush3.msra.mxu0 %v29800_v57  ;;  %25737 = vmatprep.subr.mxu1 %v26594_v38 }
0x178a   :  { %25710 = vmatprep.subr.mxu0 %v26594_v38 }
0x178b   :  { %25711 = vmatpush3.msra.mxu0 %v29814_v42 }
0x178c   :  { %25726 = vmatprep.subr.mxu0 %v26594_v38 }
0x182a   :  { %v15075_v27 = vpop.f32.mrf.mxu1 }
0x182c   :  { %v25659_v44 = vpop.f32.mrf.mxu1 }
0x182d   :  { %v29926_v44 = vand.u32 4294901760, %v15912_v46 }
0x1832   :  { %v15232_v19 = vpop.f32.mrf.mxu1 }
0x1833   :  { %v14984_v32 = vpop.f32.mrf.mxu0 }
0x1834   :  { %v25681_v7 = vpop.f32.mrf.mxu1  ;;  %v14985_v24 = vadd.f32 %v22521_v39, %v14984_v32  ;;  %v15984_v32 = vsub.f32 %v15912_v46, %v29926_v44 }
0x1835   :  { %v25648_v33 = vpop.f32.mrf.mxu0  ;;  %v22535_v7 = vld [vmem:[%s31295_s7 + $0x1a8] sm:$0xff] }
0x1836   :  { %v15076_v54 = vadd.f32 %v15075_v27, %v14985_v24  ;;  %v30034_v24 = vand.u32 4294901760, %v22535_v7 }
0x183b   :  { %v15155_v5 = vpop.f32.mrf.mxu0 }
0x183c   :  { %v15390_v15 = vpop.f32.mrf.mxu1  ;;  %v15156_v34 = vadd.f32 %v15155_v5, %v15076_v54  ;;  %v22534_v5 = vld [vmem:[%s31295_s7 + $0x1a0] sm:$0xff] }
0x183d   :  { %v25670_v12 = vpop.f32.mrf.mxu0 }
0x183e   :  { %v25703_v50 = vpop.f32.mrf.mxu1  ;;  %v15233_v21 = vadd.f32 %v15232_v19, %v15156_v34  ;;  %v16043_v19 = vand.u32 4294901760, %v16042_v9  ;;  %v30046_v12 = vsub.f32 %v22535_v7, %v30034_v24 }
0x183f   :  { %v30048_v50 = vand.u32 4294901760, %v22534_v5 }
0x1844   :  { %v15315_v47 = vpop.f32.mrf.mxu0 }
0x1845   :  { %v15316_v59 = vadd.f32 %v15315_v47, %v15233_v21  ;;  %v16538_v47 = vand.u32 4294901760, %v30046_v12 }
0x1846   :  { %v25692_v40 = vpop.f32.mrf.mxu0 }
0x1847   :  { %v15391_v49 = vadd.f32 %v15390_v15, %v15316_v59  ;;  %v30057_v59 = vsub.f32 %v22534_v5, %v30048_v50 }
0x1849   :  { %vm15394_vm15 = vcmp.gt.f32.partialorder %v15391_v49, 0.0  ;;  %v15395_v22 = vmul.f32 0.01, %v15391_v49 }
0x184b   :  { %v15396_v58 = vsel %vm15394_vm15, %v15391_v49, %v15395_v22  ;;  %v16539_v49 = vsub.f32 %v30046_v12, %v16538_v47  ;;  %v16545_v22 = vand.u32 4294901760, %v30057_v59 }
0x184c   :  { %v15411_v36 = vsel %vm61_vm0, %v15396_v58, 0 }
0x184d   :  { %v29845_v37 = vand.u32 4294901760, %v15411_v36  ;;  %v16540_v58 = vand.u32 4294901760, %v16539_v49 }
0x184f   :  { %v15483_v16 = vsub.f32 %v15411_v36, %v29845_v37  ;;  %25724 = vmatmul.mubr.f32.vlgmr.msra.gmra.mxu1 %v29845_v37  ;;  %v16546_v36 = vsub.f32 %v30057_v59, %v16545_v22 }
0x1850   :  { %25738 = vmatpush3.msra.mxu1 %v29781_v35  ;;  %25745 = vmatprep.mubr.msk.f32.mxu1 %vm26595_vm1, %v26594_v38 }
0x1851   :  { %25739 = vmatprep.subr.mxu1 %v26594_v38  ;;  %v15484_v2 = vand.u32 4294901760, %v15483_v16  ;;  %v16547_v28 = vand.u32 4294901760, %v16546_v36 }
0x1852   :  { %25740 = vmatpush3.msra.mxu1 %v29789_v1 }
0x1853   :  { %25741 = vmatprep.subr.mxu1 %v26594_v38  ;;  %v15485_v8 = vsub.f32 %v15483_v16, %v15484_v2 }
0x1854   :  { %25742 = vmatpush3.msra.mxu1 %v29800_v57 }
0x1855   :  { %25743 = vmatprep.subr.mxu1 %v26594_v38  ;;  %v15486_v45 = vand.u32 4294901760, %v15485_v8 }
0x1856   :  { %25744 = vmatpush3.msra.mxu1 %v29814_v42 }
0x1857   :  { %25746 = vmatmul.mubr.f32.vlgmr.msra.gmra.mxu1 %v15484_v2  ;;  %25759 = vmatprep.subr.mxu1 %v26594_v38 }
0x1858   :  { %25713 = vmatmul.mubr.f32.vlgmr.msra.gmra.mxu0 %v15486_v45  ;;  %25760 = vmatpush3.msra.mxu1 %v29781_v35  ;;  %v16021_v35 = vsub.f32 %v29869_v13, %v16020_v56 }
0x1859   :  { %25727 = vmatpush3.msra.mxu0 %v29787_v3  ;;  %25761 = vmatprep.subr.mxu1 %v26594_v38  ;;  %v15985_v3 = vand.u32 4294901760, %v15984_v32 }
0x185a   :  { %25728 = vmatprep.subr.mxu0 %v26594_v38  ;;  %25762 = vmatpush3.msra.mxu1 %v29789_v1  ;;  %v16028_v1 = vsub.f32 %v29876_v26, %v16027_v51 }
0x185b   :  { %25729 = vmatpush3.msra.mxu0 %v29798_v52  ;;  %25763 = vmatprep.subr.mxu1 %v26594_v38 }
0x185c   :  { %25730 = vmatprep.subr.mxu0 %v26594_v38  ;;  %25764 = vmatpush3.msra.mxu1 %v29800_v57  ;;  %v16022_v57 = vand.u32 4294901760, %v16021_v35  ;;  %v16029_v27 = vand.u32 4294901760, %v16028_v1 }
0x185d   :  { %25731 = vmatpush3.msra.mxu0 %v29812_v61  ;;  %25765 = vmatprep.subr.mxu1 %v26594_v38 }
0x185e   :  { %25732 = vmatprep.subr.mxu0 %v26594_v38  ;;  %25734 = vmatprep.mubr.msk.f32.mxu0 %vm26595_vm1, %v26594_v38 }
0x185f   :  { %25733 = vmatpush3.msra.mxu0 %v29823_v60  ;;  %25766 = vmatpush3.msra.mxu1 %v29814_v42  ;;  %v16036_v42 = vand.u32 4294901760, %v16035_v10 }
0x1860   :  { %25767 = vmatprep.mubr.msk.f32.mxu1 %vm26595_vm1, %v26594_v38  ;;  %25735 = vmatmul.mubr.f32.vlgmr.msra.gmra.mxu0 %v15483_v16  ;;  %v22527_v16 = vld [vmem:[%s31297_s8 + $0xc] ss:$0 sm:$0xff] }
0x1861   :  { %25748 = vmatprep.subr.mxu0 %v26594_v38  ;;  %25768 = vmatmul.mubr.f32.vlgmr.msra.gmra.mxu1 %v29845_v37 }
0x1862   :  { %25781 = vmatprep.subr.mxu1 %v26594_v38  ;;  %25749 = vmatpush3.msra.mxu0 %v15519_v29  ;;  %v15986_v29 = vsub.f32 %v15984_v32, %v15985_v3 }
0x1863   :  { %25782 = vmatpush3.msra.mxu1 %v16022_v57  ;;  %25750 = vmatprep.subr.mxu0 %v26594_v38 }
0x1864   :  { %25783 = vmatprep.subr.mxu1 %v26594_v38  ;;  %25751 = vmatpush3.msra.mxu0 %v15526_v6  ;;  %v15987_v52 = vand.u32 4294901760, %v15986_v29  ;;  %v22537_v6 = vld [vmem:[%s31295_s7 + $0x1b8] sm:$0xff] }
0x1865   :  { %25784 = vmatpush3.msra.mxu1 %v16029_v27  ;;  %25752 = vmatprep.subr.mxu0 %v26594_v38  ;;  %v30015_v61 = vand.u32 4294901760, %v22537_v6  ;;  %v22533_v27 = vld [vmem:[%s31296_s6 + $0xd] ss:$0 sm:$0xff] }
0x1866   :  { %25785 = vmatprep.subr.mxu1 %v26594_v38  ;;  %25753 = vmatpush3.msra.mxu0 %v15533_v30  ;;  %v22536_v30 = vld [vmem:[%s31295_s7 + $0x1b0] sm:$0xff] }
0x1867   :  { %25786 = vmatpush3.msra.mxu1 %v16036_v42  ;;  %25754 = vmatprep.subr.mxu0 %v26594_v38  ;;  %v30021_v60 = vsub.f32 %v22537_v6, %v30015_v61 }
0x1868   :  { %25787 = vmatprep.subr.mxu1 %v26594_v38  ;;  %25755 = vmatpush3.msra.mxu0 %v15540_v20  ;;  %v30023_v20 = vand.u32 4294901760, %v22536_v30 }
0x1869   :  { %25756 = vmatprep.mubr.msk.f32.mxu0 %vm26595_vm1, %v26594_v38  ;;  %25788 = vmatpush3.msra.mxu1 %v16043_v19  ;;  %v16524_v33 = vand.u32 4294901760, %v30021_v60 }
0x186a   :  { %25789 = vmatprep.mubr.msk.f32.mxu1 %vm26595_vm1, %v26594_v38  ;;  %25757 = vmatmul.mubr.f32.vlgmr.msra.gmra.mxu0 %v29845_v37  ;;  %v30032_v39 = vsub.f32 %v22536_v30, %v30023_v20 }
0x186b   :  { %25770 = vmatprep.subr.mxu0 %v26594_v38  ;;  %25790 = vmatmul.mubr.f32.vlgmr.msra.gmra.mxu1 %v29926_v44  ;;  %v16525_v15 = vsub.f32 %v30021_v60, %v16524_v33 }
0x186c   :  { %25803 = vmatprep.subr.mxu1 %v26594_v38  ;;  %25771 = vmatpush3.msra.mxu0 %v29852_v23  ;;  %v16531_v54 = vand.u32 4294901760, %v30032_v39 }
0x186d   :  { %25804 = vmatpush3.msra.mxu1 %v29852_v23  ;;  %25772 = vmatprep.subr.mxu0 %v26594_v38  ;;  %v16526_v34 = vand.u32 4294901760, %v16525_v15 }
0x186e   :  { %25805 = vmatprep.subr.mxu1 %v26594_v38  ;;  %25773 = vmatpush3.msra.mxu0 %v29861_v18  ;;  %v16532_v21 = vsub.f32 %v30032_v39, %v16531_v54 }
0x186f   :  { %25806 = vmatpush3.msra.mxu1 %v29861_v18  ;;  %25774 = vmatprep.subr.mxu0 %v26594_v38 }
0x1870   :  { %25807 = vmatprep.subr.mxu1 %v26594_v38  ;;  %25775 = vmatpush3.msra.mxu0 %v29871_v4  ;;  %v16533_v40 = vand.u32 4294901760, %v16532_v21 }
0x1871   :  { %25808 = vmatpush3.msra.mxu1 %v29871_v4  ;;  %25776 = vmatprep.subr.mxu0 %v26594_v38 }
0x1872   :  { %25809 = vmatprep.subr.mxu1 %v26594_v38  ;;  %25777 = vmatpush3.msra.mxu0 %v29878_v62 }
0x1873   :  { %25778 = vmatprep.mubr.msk.f32.mxu0 %vm26595_vm1, %v26594_v38  ;;  %25810 = vmatpush3.msra.mxu1 %v29878_v62 }
0x1874   :  { %25811 = vmatprep.mubr.msk.f32.mxu1 %vm26595_vm1, %v26594_v38  ;;  %25779 = vmatmul.mubr.f32.vlgmr.msra.gmra.mxu0 %v15987_v52 }
0x1875   :  { %25792 = vmatprep.subr.mxu0 %v26594_v38  ;;  %25812 = vmatmul.mubr.f32.vlgmr.msra.gmra.mxu1 %v15985_v3 }
0x1876   :  { %25825 = vmatprep.subr.mxu1 %v26594_v38  ;;  %25793 = vmatpush3.msra.mxu0 %v29869_v13 }
0x1877   :  { %25826 = vmatpush3.msra.mxu1 %v29852_v23  ;;  %25794 = vmatprep.subr.mxu0 %v26594_v38 }
0x1878   :  { %25827 = vmatprep.subr.mxu1 %v26594_v38  ;;  %25795 = vmatpush3.msra.mxu0 %v29876_v26 }
0x1879   :  { %25828 = vmatpush3.msra.mxu1 %v29861_v18  ;;  %25796 = vmatprep.subr.mxu0 %v26594_v38 }
0x187a   :  { %25829 = vmatprep.subr.mxu1 %v26594_v38  ;;  %25797 = vmatpush3.msra.mxu0 %v29884_v53 }
0x187b   :  { %25830 = vmatpush3.msra.mxu1 %v29871_v4  ;;  %25798 = vmatprep.subr.mxu0 %v26594_v38 }
0x187c   :  { %25831 = vmatprep.subr.mxu1 %v26594_v38  ;;  %25799 = vmatpush3.msra.mxu0 %v29891_v17 }
0x187d   :  { %25800 = vmatprep.mubr.msk.f32.mxu0 %vm26595_vm1, %v26594_v38  ;;  %25832 = vmatpush3.msra.mxu1 %v29878_v62 }
0x187e   :  { %25833 = vmatprep.mubr.msk.f32.mxu1 %vm26595_vm1, %v26594_v38  ;;  %25801 = vmatmul.mubr.f32.vlgmr.msra.gmra.mxu0 %v15984_v32 }
0x187f   :  { %25814 = vmatprep.subr.mxu0 %v26594_v38  ;;  %25834 = vmatmul.mubr.f32.vlgmr.msra.gmra.mxu1 %v29926_v44 }
0x1880   :  { %25815 = vmatpush3.msra.mxu0 %v16020_v56  ;;  %25822 = vmatprep.mubr.msk.f32.mxu0 %vm26595_vm1, %v26594_v38 }
0x1881   :  { %25816 = vmatprep.subr.mxu0 %v26594_v38  ;;  %25847 = vmatprep.subr.mxu1 %v26594_v38 }
0x1882   :  { %25817 = vmatpush3.msra.mxu0 %v16027_v51  ;;  %25855 = vmatprep.mubr.msk.f32.mxu1 %vm26595_vm1, %v26594_v38 }
0x1883   :  { %25818 = vmatprep.subr.mxu0 %v26594_v38  ;;  %25848 = vmatpush3.msra.mxu1 %v16526_v34 }
0x1884   :  { %25819 = vmatpush3.msra.mxu0 %v16034_v11  ;;  %25849 = vmatprep.subr.mxu1 %v26594_v38 }
0x1885   :  { %25820 = vmatprep.subr.mxu0 %v26594_v38  ;;  %25850 = vmatpush3.msra.mxu1 %v16533_v40 }
0x1886   :  { %25821 = vmatpush3.msra.mxu0 %v16041_v25  ;;  %25851 = vmatprep.subr.mxu1 %v26594_v38 }
0x1887   :  { %25823 = vmatmul.mubr.f32.vlgmr.msra.gmra.mxu0 %v29926_v44  ;;  %25836 = vmatprep.subr.mxu0 %v26594_v38 }
0x1888   :  { %25844 = vmatprep.mubr.msk.f32.mxu0 %vm26595_vm1, %v26594_v38  ;;  %25837 = vmatpush3.msra.mxu0 %v30015_v61 }
0x1889   :  { %25838 = vmatprep.subr.mxu0 %v26594_v38  ;;  %25852 = vmatpush3.msra.mxu1 %v16540_v58 }
0x188a   :  { %25839 = vmatpush3.msra.mxu0 %v30023_v20  ;;  %25853 = vmatprep.subr.mxu1 %v26594_v38 }
0x188b   :  { %25840 = vmatprep.subr.mxu0 %v26594_v38  ;;  %25854 = vmatpush3.msra.mxu1 %v16547_v28 }
0x188c   :  { %25841 = vmatpush3.msra.mxu0 %v30034_v24  ;;  %25869 = vmatprep.subr.mxu1 %v26594_v38 }
0x188d   :  { %25842 = vmatprep.subr.mxu0 %v26594_v38 }
0x188e   :  { %25843 = vmatpush3.msra.mxu0 %v30048_v50 }
0x188f   :  { %25858 = vmatprep.subr.mxu0 %v26594_v38 }
0x190f   :  { %v15579_v37 = vpop.f32.mrf.mxu1 }
0x1911   :  { %v25725_v63 = vpop.f32.mrf.mxu1 }
0x1917   :  { %v15736_v23 = vpop.f32.mrf.mxu1 }
0x1918   :  { %v15488_v55 = vpop.f32.mrf.mxu0 }
0x1919   :  { %v15489_v2 = vadd.f32 %v22527_v16, %v15488_v55  ;;  %v25747_v18 = vpop.f32.mrf.mxu1 }
0x191a   :  { %v25714_v0 = vpop.f32.mrf.mxu0 }
0x191b   :  { %v15580_v8 = vadd.f32 %v15579_v37, %v15489_v2 }
0x1920   :  { %v15659_v13 = vpop.f32.mrf.mxu0 }
0x1921   :  { %v15660_v4 = vadd.f32 %v15659_v13, %v15580_v8  ;;  %v15894_v45 = vpop.f32.mrf.mxu1 }
0x1922   :  { %v25736_v26 = vpop.f32.mrf.mxu0 }
0x1923   :  { %v25769_v62 = vpop.f32.mrf.mxu1  ;;  %v15737_v56 = vadd.f32 %v15736_v23, %v15660_v4 }
0x192a   :  { %v15819_v53 = vpop.f32.mrf.mxu0 }
0x192b   :  { %v15820_v51 = vadd.f32 %v15819_v53, %v15737_v56  ;;  %v16080_v17 = vpop.f32.mrf.mxu1 }
0x192c   :  { %v25758_v35 = vpop.f32.mrf.mxu0 }
0x192d   :  { %v30075_v11 = vadd.f32 %v15894_v45, %v15820_v51  ;;  %v25791_v1 = vpop.f32.mrf.mxu1  ;;  %v22539_v35 = vld [vmem:[%s31297_s8 + $0xd] ss:$0 sm:$0xff] }
0x1934   :  { %v15989_v25 = vpop.f32.mrf.mxu0 }
0x1935   :  { %v16237_v46 = vpop.f32.mrf.mxu1  ;;  %v15990_v9 = vadd.f32 %v22533_v27, %v15989_v25 }
0x1936   :  { %v25780_v57 = vpop.f32.mrf.mxu0 }
0x1937   :  { %v25813_v10 = vpop.f32.mrf.mxu1  ;;  %v16081_v19 = vadd.f32 %v16080_v17, %v15990_v9 }
0x193e   :  { %v16160_v44 = vpop.f32.mrf.mxu0 }
0x193f   :  { %v16395_v42 = vpop.f32.mrf.mxu1  ;;  %v16161_v29 = vadd.f32 %v16160_v44, %v16081_v19 }
0x1940   :  { %v25802_v32 = vpop.f32.mrf.mxu0 }
0x1941   :  { %v25835_v3 = vpop.f32.mrf.mxu1  ;;  %v16238_v52 = vadd.f32 %v16237_v46, %v16161_v29 }
0x1947   :  { %v16320_v6 = vpop.f32.mrf.mxu0 }
0x1948   :  { %v16321_v30 = vadd.f32 %v16320_v6, %v16238_v52 }
0x1949   :  { %v25824_v7 = vpop.f32.mrf.mxu0 }
0x194a   :  { %v16396_v5 = vadd.f32 %v16395_v42, %v16321_v30 }
0x194c   :  { %vm16399_vm2 = vcmp.gt.f32.partialorder %v16396_v5, 0.0  ;;  %v16400_v15 = vmul.f32 0.01, %v16396_v5 }
0x194e   :  { %v16401_v34 = vsel %vm16399_vm2, %v16396_v5, %v16400_v15  ;;  %v22549_v15 = vld [vmem:[%s31295_s7 + $0x1d8] sm:$0xff] }
0x194f   :  { %v16416_v21 = vsel %vm61_vm0, %v16401_v34, 0  ;;  %v30245_v34 = vand.u32 4294901760, %v22549_v15 }
0x1950   :  { %v16487_v40 = vand.u32 4294901760, %v16416_v21 }
0x1952   :  { %v16488_v49 = vsub.f32 %v16416_v21, %v16487_v40  ;;  %25856 = vmatmul.mubr.f32.vlgmr.msra.gmra.mxu1 %v16487_v40  ;;  %v22548_v21 = vld [vmem:[%s31295_s7 + $0x1d0] sm:$0xff] }
0x1953   :  { %25870 = vmatpush3.msra.mxu1 %v30015_v61  ;;  %25877 = vmatprep.mubr.msk.f32.mxu1 %vm26595_vm1, %v26594_v38 }
0x1954   :  { %25871 = vmatprep.subr.mxu1 %v26594_v38  ;;  %v16489_v58 = vand.u32 4294901760, %v16488_v49 }
0x1955   :  { %25872 = vmatpush3.msra.mxu1 %v30023_v20 }
0x1956   :  { %25873 = vmatprep.subr.mxu1 %v26594_v38  ;;  %v16490_v36 = vsub.f32 %v16488_v49, %v16489_v58 }
0x1957   :  { %25874 = vmatpush3.msra.mxu1 %v30034_v24 }
0x1958   :  { %25875 = vmatprep.subr.mxu1 %v26594_v38  ;;  %v16491_v28 = vand.u32 4294901760, %v16490_v36 }
0x1959   :  { %25876 = vmatpush3.msra.mxu1 %v30048_v50 }
0x195a   :  { %25878 = vmatmul.mubr.f32.vlgmr.msra.gmra.mxu1 %v16489_v58  ;;  %25891 = vmatprep.subr.mxu1 %v26594_v38  ;;  %v22547_v58 = vld [vmem:[%s31295_s7 + $0x1c8] sm:$0xff] }
0x195b   :  { %25845 = vmatmul.mubr.f32.vlgmr.msra.gmra.mxu0 %v16491_v28  ;;  %25892 = vmatpush3.msra.mxu1 %v30015_v61  ;;  %v22543_v61 = vld [vmem:[%s31294_s5 + $0x1d8] sm:$0xff] }
0x195c   :  { %25859 = vmatpush3.msra.mxu0 %v30021_v60  ;;  %25893 = vmatprep.subr.mxu1 %v26594_v38  ;;  %v30132_v60 = vand.u32 4294901760, %v22543_v61 }
0x195d   :  { %25860 = vmatprep.subr.mxu0 %v26594_v38  ;;  %25894 = vmatpush3.msra.mxu1 %v30023_v20  ;;  %v22542_v20 = vld [vmem:[%s31294_s5 + $0x1d0] sm:$0xff] }
0x195e   :  { %25861 = vmatpush3.msra.mxu0 %v30032_v39  ;;  %25895 = vmatprep.subr.mxu1 %v26594_v38  ;;  %v30140_v39 = vand.u32 4294901760, %v22542_v20 }
0x195f   :  { %25862 = vmatprep.subr.mxu0 %v26594_v38  ;;  %25896 = vmatpush3.msra.mxu1 %v30034_v24  ;;  %v22541_v24 = vld [vmem:[%s31294_s5 + $0x1c8] sm:$0xff] }
0x1960   :  { %25863 = vmatpush3.msra.mxu0 %v30046_v12  ;;  %25897 = vmatprep.subr.mxu1 %v26594_v38  ;;  %v30149_v12 = vsub.f32 %v22542_v20, %v30140_v39 }
0x1961   :  { %25864 = vmatprep.subr.mxu0 %v26594_v38  ;;  %25866 = vmatprep.mubr.msk.f32.mxu0 %vm26595_vm1, %v26594_v38 }
0x1962   :  { %25865 = vmatpush3.msra.mxu0 %v30057_v59  ;;  %25898 = vmatpush3.msra.mxu1 %v30048_v50  ;;  %v30151_v50 = vand.u32 4294901760, %v22541_v24 }
0x1963   :  { %25899 = vmatprep.mubr.msk.f32.mxu1 %vm26595_vm1, %v26594_v38  ;;  %25867 = vmatmul.mubr.f32.vlgmr.msra.gmra.mxu0 %v16488_v49  ;;  %v30253_v49 = vand.u32 4294901760, %v22548_v21 }
0x1964   :  { %25880 = vmatprep.subr.mxu0 %v26594_v38  ;;  %25900 = vmatmul.mubr.f32.vlgmr.msra.gmra.mxu1 %v16487_v40  ;;  %v30163_v37 = vsub.f32 %v22541_v24, %v30151_v50 }
0x1965   :  { %25881 = vmatpush3.msra.mxu0 %v16524_v33  ;;  %25888 = vmatprep.mubr.msk.f32.mxu0 %vm26595_vm1, %v26594_v38  ;;  %v30138_v33 = vsub.f32 %v22543_v61, %v30132_v60  ;;  %v30262_v28 = vsub.f32 %v22548_v21, %v30253_v49  ;;  %v30264_v61 = vand.u32 4294901760, %v22547_v58 }
0x1966   :  { %25882 = vmatprep.subr.mxu0 %v26594_v38  ;;  %25913 = vmatprep.subr.mxu1 %v26594_v38  ;;  %v17040_v55 = vand.u32 4294901760, %v30163_v37 }
0x1967   :  { %25883 = vmatpush3.msra.mxu0 %v16531_v54  ;;  %25921 = vmatprep.mubr.msk.f32.mxu1 %vm26595_vm1, %v26594_v38  ;;  %v17026_v54 = vand.u32 4294901760, %v30138_v33 }
0x1968   :  { %25884 = vmatprep.subr.mxu0 %v26594_v38  ;;  %v17041_v0 = vsub.f32 %v30163_v37, %v17040_v55 }
0x1969   :  { %25885 = vmatpush3.msra.mxu0 %v16538_v47  ;;  %v22540_v47 = vld [vmem:[%s31294_s5 + $0x1c0] sm:$0xff]  ;;  %v17027_v59 = vsub.f32 %v30138_v33, %v17026_v54 }
0x196a   :  { %25886 = vmatprep.subr.mxu0 %v26594_v38  ;;  %v30165_v63 = vand.u32 4294901760, %v22540_v47  ;;  %v17042_v13 = vand.u32 4294901760, %v17041_v0 }
0x196b   :  { %25887 = vmatpush3.msra.mxu0 %v16545_v22  ;;  %v17033_v22 = vand.u32 4294901760, %v30149_v12  ;;  %v17028_v16 = vand.u32 4294901760, %v17027_v59 }
0x196c   :  { %25889 = vmatmul.mubr.f32.vlgmr.msra.gmra.mxu0 %v16487_v40  ;;  %25902 = vmatprep.subr.mxu0 %v26594_v38  ;;  %v30174_v2 = vsub.f32 %v22540_v47, %v30165_v63  ;;  %v30251_v40 = vsub.f32 %v22549_v15, %v30245_v34 }
0x196d   :  { %25910 = vmatprep.mubr.msk.f32.mxu0 %vm26595_vm1, %v26594_v38  ;;  %25903 = vmatpush3.msra.mxu0 %v30132_v60  ;;  %v17034_v23 = vsub.f32 %v30149_v12, %v17033_v22 }
0x196e   :  { %25904 = vmatprep.subr.mxu0 %v26594_v38  ;;  %25914 = vmatpush3.msra.mxu1 %v17028_v16  ;;  %v17047_v8 = vand.u32 4294901760, %v30174_v2  ;;  %v17530_v36 = vand.u32 4294901760, %v30251_v40 }
0x196f   :  { %25905 = vmatpush3.msra.mxu0 %v30140_v39  ;;  %v17035_v18 = vand.u32 4294901760, %v17034_v23  ;;  %25915 = vmatprep.subr.mxu1 %v26594_v38 }
0x1970   :  { %25906 = vmatprep.subr.mxu0 %v26594_v38  ;;  %v17048_v4 = vsub.f32 %v30174_v2, %v17047_v8  ;;  %v17531_v20 = vsub.f32 %v30251_v40, %v17530_v36 }
0x1971   :  { %25907 = vmatpush3.msra.mxu0 %v30151_v50  ;;  %25916 = vmatpush3.msra.mxu1 %v17035_v18 }
0x1972   :  { %25908 = vmatprep.subr.mxu0 %v26594_v38  ;;  %25917 = vmatprep.subr.mxu1 %v26594_v38  ;;  %v17049_v45 = vand.u32 4294901760, %v17048_v4  ;;  %v22545_v4 = vld [vmem:[%s31296_s6 + $0xe] ss:$0 sm:$0xff] }
0x1973   :  { %25909 = vmatpush3.msra.mxu0 %v30165_v63  ;;  %25918 = vmatpush3.msra.mxu1 %v17042_v13 }
0x1974   :  { %25924 = vmatprep.subr.mxu0 %v26594_v38  ;;  %25919 = vmatprep.subr.mxu1 %v26594_v38 }
0x1975   :  { %25920 = vmatpush3.msra.mxu1 %v17049_v45 }
0x1976   :  { %25935 = vmatprep.subr.mxu1 %v26594_v38 }
0x1a12   :  { %v16584_v26 = vpop.f32.mrf.mxu1 }
0x1a14   :  { %v25857_v62 = vpop.f32.mrf.mxu1 }
0x1a1a   :  { %v16741_v56 = vpop.f32.mrf.mxu1 }
0x1a1b   :  { %v16493_v53 = vpop.f32.mrf.mxu0 }
0x1a1c   :  { %v25879_v51 = vpop.f32.mrf.mxu1  ;;  %v16494_v1 = vadd.f32 %v22539_v35, %v16493_v53 }
0x1a1d   :  { %v25846_v17 = vpop.f32.mrf.mxu0 }
0x1a1e   :  { %v16585_v57 = vadd.f32 %v16584_v26, %v16494_v1 }
0x1a23   :  { %v16664_v25 = vpop.f32.mrf.mxu0 }
0x1a24   :  { %v16899_v46 = vpop.f32.mrf.mxu1  ;;  %v16665_v9 = vadd.f32 %v16664_v25, %v16585_v57 }
0x1a25   :  { %v25868_v10 = vpop.f32.mrf.mxu0 }
0x1a26   :  { %v25901_v27 = vpop.f32.mrf.mxu1  ;;  %v16742_v44 = vadd.f32 %v16741_v56, %v16665_v9 }
0x1a2c   :  { %v16824_v42 = vpop.f32.mrf.mxu0 }
0x1a2d   :  { %v16825_v19 = vadd.f32 %v16824_v42, %v16742_v44 }
0x1a2e   :  { %v25890_v32 = vpop.f32.mrf.mxu0 }
0x1a2f   :  { %v16900_v3 = vadd.f32 %v16899_v46, %v16825_v19 }
0x1a31   :  { %v16903_v29 = vadd.f32 %v16900_v3, %v30075_v11 }
0x1a33   :  { %v16918_v52 = vsel %vm61_vm0, %v16903_v29, 0 }
0x1a34   :  { %v16989_v6 = vand.u32 4294901760, %v16918_v52 }
0x1a36   :  { %v16990_v30 = vsub.f32 %v16918_v52, %v16989_v6  ;;  %25922 = vmatmul.mubr.f32.vlgmr.msra.gmra.mxu1 %v16989_v6 }
0x1a37   :  { %25936 = vmatpush3.msra.mxu1 %v30132_v60  ;;  %25943 = vmatprep.mubr.msk.f32.mxu1 %vm26595_vm1, %v26594_v38 }
0x1a38   :  { %v16991_v7 = vand.u32 4294901760, %v16990_v30  ;;  %25937 = vmatprep.subr.mxu1 %v26594_v38 }
0x1a39   :  { %25938 = vmatpush3.msra.mxu1 %v30140_v39 }
0x1a3a   :  { %v16992_v5 = vsub.f32 %v16990_v30, %v16991_v7  ;;  %25939 = vmatprep.subr.mxu1 %v26594_v38 }
0x1a3b   :  { %25940 = vmatpush3.msra.mxu1 %v30151_v50 }
0x1a3c   :  { %25941 = vmatprep.subr.mxu1 %v26594_v38  ;;  %v16993_v11 = vand.u32 4294901760, %v16992_v5 }
0x1a3d   :  { %25942 = vmatpush3.msra.mxu1 %v30165_v63 }
0x1a3e   :  { %25944 = vmatmul.mubr.f32.vlgmr.msra.gmra.mxu1 %v16991_v7  ;;  %25957 = vmatprep.subr.mxu1 %v26594_v38 }
0x1a3f   :  { %25911 = vmatmul.mubr.f32.vlgmr.msra.gmra.mxu0 %v16993_v11  ;;  %25958 = vmatpush3.msra.mxu1 %v30132_v60  ;;  %v22546_v60 = vld [vmem:[%s31295_s7 + $0x1c0] sm:$0xff]  ;;  %v22551_v11 = vld [vmem:[%s31297_s8 + $0xe] ss:$0 sm:$0xff] }
0x1a40   :  { %25925 = vmatpush3.msra.mxu0 %v30138_v33  ;;  %25959 = vmatprep.subr.mxu1 %v26594_v38  ;;  %v17537_v33 = vand.u32 4294901760, %v30262_v28  ;;  %v30278_v24 = vand.u32 4294901760, %v22546_v60 }
0x1a41   :  { %25926 = vmatprep.subr.mxu0 %v26594_v38  ;;  %25960 = vmatpush3.msra.mxu1 %v30140_v39  ;;  %v30276_v39 = vsub.f32 %v22547_v58, %v30264_v61 }
0x1a42   :  { %25927 = vmatpush3.msra.mxu0 %v30149_v12  ;;  %25961 = vmatprep.subr.mxu1 %v26594_v38  ;;  %v17538_v12 = vsub.f32 %v30262_v28, %v17537_v33  ;;  %v30287_v47 = vsub.f32 %v22546_v60, %v30278_v24 }
0x1a43   :  { %25928 = vmatprep.subr.mxu0 %v26594_v38  ;;  %25962 = vmatpush3.msra.mxu1 %v30151_v50  ;;  %v17544_v50 = vand.u32 4294901760, %v30276_v39 }
0x1a44   :  { %25929 = vmatpush3.msra.mxu0 %v30163_v37  ;;  %25963 = vmatprep.subr.mxu1 %v26594_v38  ;;  %v17539_v59 = vand.u32 4294901760, %v17538_v12  ;;  %v17551_v37 = vand.u32 4294901760, %v30287_v47 }
0x1a45   :  { %25930 = vmatprep.subr.mxu0 %v26594_v38  ;;  %25932 = vmatprep.mubr.msk.f32.mxu0 %vm26595_vm1, %v26594_v38 }
0x1a46   :  { %25931 = vmatpush3.msra.mxu0 %v30174_v2  ;;  %25964 = vmatpush3.msra.mxu1 %v30165_v63  ;;  %v17552_v16 = vsub.f32 %v30287_v47, %v17551_v37 }
0x1a47   :  { %25965 = vmatprep.mubr.msk.f32.mxu1 %vm26595_vm1, %v26594_v38  ;;  %25933 = vmatmul.mubr.f32.vlgmr.msra.gmra.mxu0 %v16990_v30 }
0x1a48   :  { %25946 = vmatprep.subr.mxu0 %v26594_v38  ;;  %25966 = vmatmul.mubr.f32.vlgmr.msra.gmra.mxu1 %v16989_v6  ;;  %v17553_v23 = vand.u32 4294901760, %v17552_v16  ;;  %v22552_v16 = vld [vmem:[%s31294_s5 + $0x1e0] sm:$0xff] }
0x1a49   :  { %25947 = vmatpush3.msra.mxu0 %v17026_v54  ;;  %25954 = vmatprep.mubr.msk.f32.mxu0 %vm26595_vm1, %v26594_v38  ;;  %v17532_v54 = vand.u32 4294901760, %v17531_v20 }
0x1a4a   :  { %25948 = vmatprep.subr.mxu0 %v26594_v38  ;;  %25979 = vmatprep.subr.mxu1 %v26594_v38 }
0x1a4b   :  { %25949 = vmatpush3.msra.mxu0 %v17033_v22  ;;  %25987 = vmatprep.mubr.msk.f32.mxu1 %vm26595_vm1, %v26594_v38  ;;  %v17545_v22 = vsub.f32 %v30276_v39, %v17544_v50 }
0x1a4c   :  { %25950 = vmatprep.subr.mxu0 %v26594_v38  ;;  %25980 = vmatpush3.msra.mxu1 %v17532_v54 }
0x1a4d   :  { %25951 = vmatpush3.msra.mxu0 %v17040_v55  ;;  %25981 = vmatprep.subr.mxu1 %v26594_v38  ;;  %v17546_v63 = vand.u32 4294901760, %v17545_v22 }
0x1a4e   :  { %25952 = vmatprep.subr.mxu0 %v26594_v38  ;;  %25982 = vmatpush3.msra.mxu1 %v17539_v59 }
0x1a4f   :  { %25953 = vmatpush3.msra.mxu0 %v17047_v8  ;;  %25983 = vmatprep.subr.mxu1 %v26594_v38 }
0x1a50   :  { %25955 = vmatmul.mubr.f32.vlgmr.msra.gmra.mxu0 %v16989_v6  ;;  %25968 = vmatprep.subr.mxu0 %v26594_v38 }
0x1a51   :  { %25976 = vmatprep.mubr.msk.f32.mxu0 %vm26595_vm1, %v26594_v38  ;;  %25969 = vmatpush3.msra.mxu0 %v30245_v34 }
0x1a52   :  { %25970 = vmatprep.subr.mxu0 %v26594_v38  ;;  %25984 = vmatpush3.msra.mxu1 %v17546_v63 }
0x1a53   :  { %25971 = vmatpush3.msra.mxu0 %v30253_v49  ;;  %25985 = vmatprep.subr.mxu1 %v26594_v38 }
0x1a54   :  { %25972 = vmatprep.subr.mxu0 %v26594_v38  ;;  %25986 = vmatpush3.msra.mxu1 %v17553_v23 }
0x1a55   :  { %25973 = vmatpush3.msra.mxu0 %v30264_v61  ;;  %26001 = vmatprep.subr.mxu1 %v26594_v38 }
0x1a56   :  { %25974 = vmatprep.subr.mxu0 %v26594_v38 }
0x1a57   :  { %25975 = vmatpush3.msra.mxu0 %v30278_v24 }
0x1a58   :  { %25990 = vmatprep.subr.mxu0 %v26594_v38 }
0x1af6   :  { %v17086_v55 = vpop.f32.mrf.mxu1 }
0x1af8   :  { %v25923_v2 = vpop.f32.mrf.mxu1 }
0x1afe   :  { %v17243_v18 = vpop.f32.mrf.mxu1 }
0x1aff   :  { %v16995_v0 = vpop.f32.mrf.mxu0 }
0x1b00   :  { %v25945_v8 = vpop.f32.mrf.mxu1  ;;  %v16996_v45 = vadd.f32 %v22545_v4, %v16995_v0 }
0x1b01   :  { %v25912_v13 = vpop.f32.mrf.mxu0 }
0x1b02   :  { %v17087_v56 = vadd.f32 %v17086_v55, %v16996_v45 }
0x1b07   :  { %v17166_v26 = vpop.f32.mrf.mxu0 }
0x1b08   :  { %v17401_v62 = vpop.f32.mrf.mxu1  ;;  %v17167_v17 = vadd.f32 %v17166_v26, %v17087_v56 }
0x1b09   :  { %v25934_v53 = vpop.f32.mrf.mxu0 }
0x1b0a   :  { %v25967_v51 = vpop.f32.mrf.mxu1  ;;  %v17244_v35 = vadd.f32 %v17243_v18, %v17167_v17  ;;  %v30417_v18 = vand.u32 4294901760, %v22552_v16 }
0x1b0c   :  { %v30426_v4 = vsub.f32 %v22552_v16, %v30417_v18 }
0x1b10   :  { %v17326_v1 = vpop.f32.mrf.mxu0 }
0x1b11   :  { %v17327_v25 = vadd.f32 %v17326_v1, %v17244_v35 }
0x1b12   :  { %v25956_v46 = vpop.f32.mrf.mxu0 }
0x1b13   :  { %v17402_v57 = vadd.f32 %v17401_v62, %v17327_v25  ;;  %v18498_v62 = vand.u32 4294901760, %v30426_v4 }
0x1b15   :  { %vm17405_vm3 = vcmp.gt.f32.partialorder %v17402_v57, 0.0  ;;  %v17406_v10 = vmul.f32 0.01, %v17402_v57  ;;  %v18499_v53 = vsub.f32 %v30426_v4, %v18498_v62 }
0x1b17   :  { %v17407_v27 = vsel %vm17405_vm3, %v17402_v57, %v17406_v10  ;;  %v18500_v51 = vand.u32 4294901760, %v18499_v53 }
0x1b18   :  { %v17422_v9 = vsel %vm61_vm0, %v17407_v27, 0 }
0x1b19   :  { %v17493_v44 = vand.u32 4294901760, %v17422_v9 }
0x1b1b   :  { %v17494_v42 = vsub.f32 %v17422_v9, %v17493_v44  ;;  %25988 = vmatmul.mubr.f32.vlgmr.msra.gmra.mxu1 %v17493_v44 }
0x1b1c   :  { %26002 = vmatpush3.msra.mxu1 %v30245_v34  ;;  %26009 = vmatprep.mubr.msk.f32.mxu1 %vm26595_vm1, %v26594_v38 }
0x1b1d   :  { %26003 = vmatprep.subr.mxu1 %v26594_v38  ;;  %v17495_v19 = vand.u32 4294901760, %v17494_v42 }
0x1b1e   :  { %26004 = vmatpush3.msra.mxu1 %v30253_v49 }
0x1b1f   :  { %26005 = vmatprep.subr.mxu1 %v26594_v38  ;;  %v17496_v32 = vsub.f32 %v17494_v42, %v17495_v19 }
0x1b20   :  { %26006 = vmatpush3.msra.mxu1 %v30264_v61 }
0x1b21   :  { %26007 = vmatprep.subr.mxu1 %v26594_v38  ;;  %v17497_v3 = vand.u32 4294901760, %v17496_v32 }
0x1b22   :  { %26008 = vmatpush3.msra.mxu1 %v30278_v24 }
0x1b23   :  { %26010 = vmatmul.mubr.f32.vlgmr.msra.gmra.mxu1 %v17495_v19  ;;  %26023 = vmatprep.subr.mxu1 %v26594_v38 }
0x1b24   :  { %25977 = vmatmul.mubr.f32.vlgmr.msra.gmra.mxu0 %v17497_v3  ;;  %26024 = vmatpush3.msra.mxu1 %v30245_v34 }
0x1b25   :  { %25991 = vmatpush3.msra.mxu0 %v30251_v40  ;;  %26025 = vmatprep.subr.mxu1 %v26594_v38 }
0x1b26   :  { %25992 = vmatprep.subr.mxu0 %v26594_v38  ;;  %26026 = vmatpush3.msra.mxu1 %v30253_v49 }
0x1b27   :  { %25993 = vmatpush3.msra.mxu0 %v30262_v28  ;;  %26027 = vmatprep.subr.mxu1 %v26594_v38 }
0x1b28   :  { %25994 = vmatprep.subr.mxu0 %v26594_v38  ;;  %26028 = vmatpush3.msra.mxu1 %v30264_v61 }
0x1b29   :  { %25995 = vmatpush3.msra.mxu0 %v30276_v39  ;;  %26029 = vmatprep.subr.mxu1 %v26594_v38 }
0x1b2a   :  { %25996 = vmatprep.subr.mxu0 %v26594_v38  ;;  %25998 = vmatprep.mubr.msk.f32.mxu0 %vm26595_vm1, %v26594_v38 }
0x1b2b   :  { %25997 = vmatpush3.msra.mxu0 %v30287_v47  ;;  %26030 = vmatpush3.msra.mxu1 %v30278_v24 }
0x1b2c   :  { %26031 = vmatprep.mubr.msk.f32.mxu1 %vm26595_vm1, %v26594_v38  ;;  %25999 = vmatmul.mubr.f32.vlgmr.msra.gmra.mxu0 %v17494_v42 }
0x1b2d   :  { %26012 = vmatprep.subr.mxu0 %v26594_v38  ;;  %26032 = vmatmul.mubr.f32.vlgmr.msra.gmra.mxu1 %v17493_v44 }
0x1b2e   :  { %26013 = vmatpush3.msra.mxu0 %v17530_v36  ;;  %26020 = vmatprep.mubr.msk.f32.mxu0 %vm26595_vm1, %v26594_v38 }
0x1b2f   :  { %26014 = vmatprep.subr.mxu0 %v26594_v38  ;;  %26039 = vmatprep.subr.mxu1 %v26594_v38 }
0x1b30   :  { %26015 = vmatpush3.msra.mxu0 %v17537_v33  ;;  %26041 = vmatprep.mubr.msk.f32.mxu1 %vm26595_vm1, %v26594_v38 }
0x1b31   :  { %26016 = vmatprep.subr.mxu0 %v26594_v38 }
0x1b32   :  { %26017 = vmatpush3.msra.mxu0 %v17544_v50 }
0x1b33   :  { %26018 = vmatprep.subr.mxu0 %v26594_v38 }
0x1b34   :  { %26019 = vmatpush3.msra.mxu0 %v17551_v37 }
0x1b35   :  { %26021 = vmatmul.mubr.f32.vlgmr.msra.gmra.mxu0 %v17493_v44  ;;  %26034 = vmatprep.subr.mxu0 %v26594_v38 }
0x1b36   :  { %26036 = vmatprep.mubr.msk.f32.mxu0 %vm26595_vm1, %v26594_v38 }
0x1bdb   :  { %v17590_v29 = vpop.f32.mrf.mxu1 }
0x1bdd   :  { %v25989_v52 = vpop.f32.mrf.mxu1 }
0x1be3   :  { %v17747_v6 = vpop.f32.mrf.mxu1 }
0x1be4   :  { %v17499_v30 = vpop.f32.mrf.mxu0 }
0x1be5   :  { %v26011_v7 = vpop.f32.mrf.mxu1  ;;  %v17500_v15 = vadd.f32 %v22551_v11, %v17499_v30 }
0x1be6   :  { %v25978_v5 = vpop.f32.mrf.mxu0 }
0x1be7   :  { %v17591_v40 = vadd.f32 %v17590_v29, %v17500_v15 }
0x1bec   :  { %v17670_v34 = vpop.f32.mrf.mxu0 }
0x1bed   :  { %v17905_v21 = vpop.f32.mrf.mxu1  ;;  %v17671_v36 = vadd.f32 %v17670_v34, %v17591_v40 }
0x1bee   :  { %v26000_v49 = vpop.f32.mrf.mxu0 }
0x1bef   :  { %v26033_v58 = vpop.f32.mrf.mxu1  ;;  %v17748_v28 = vadd.f32 %v17747_v6, %v17671_v36  ;;  %v22560_v49 = vld [vmem:[%s31295_s7 + $0x1f0] sm:$0xff] }
0x1bf0   :  { %v30501_v36 = vand.u32 4294901760, %v22560_v49 }
0x1bf5   :  { %v17830_v61 = vpop.f32.mrf.mxu0 }
0x1bf6   :  { %v17831_v60 = vadd.f32 %v17830_v61, %v17748_v28  ;;  %v22559_v28 = vld [vmem:[%s31295_s7 + $0x1e8] sm:$0xff] }
0x1bf7   :  { %v26022_v20 = vpop.f32.mrf.mxu0 }
0x1bf8   :  { %v17906_v33 = vadd.f32 %v17905_v21, %v17831_v60  ;;  %v22561_v21 = vld [vmem:[%s31295_s7 + $0x1f8] sm:$0xff]  ;;  %v30510_v60 = vsub.f32 %v22560_v49, %v30501_v36  ;;  %v30512_v20 = vand.u32 4294901760, %v22559_v28 }
0x1bf9   :  { %v30493_v40 = vand.u32 4294901760, %v22561_v21 }
0x1bfa   :  { %v17940_v39 = vand.u32 4294901760, %v17906_v33 }
0x1bfb   :  { %v30499_v58 = vsub.f32 %v22561_v21, %v30493_v40 }
0x1bfc   :  { %v18017_v24 = vsub.f32 %v17906_v33, %v17940_v39  ;;  %26035 = vmatpush3.msra.mxu0 %v17940_v39  ;;  %v22558_v33 = vld [vmem:[%s31295_s7 + $0x1e0] sm:$0xff] }
0x1bfd   :  { %26037 = vmatmul.mubr.f32.vlgmr.msra.gmra.mxu0 %v27493_v43  ;;  %26044 = vmatprep.subr.mxu0 %v26594_v38  ;;  %v18981_v61 = vand.u32 4294901760, %v30499_v58 }
0x1bfe   :  { %26045 = vmatpush3.msra.mxu0 %v18017_v24  ;;  %26046 = vmatprep.mubr.msk.f32.mxu0 %vm26595_vm1, %v26594_v38  ;;  %v18018_v54 = vand.u32 4294901760, %v18017_v24 }
0x1bff   :  { %26054 = vmatprep.subr.mxu0 %v26594_v38 }
0x1c00   :  { %v18019_v12 = vsub.f32 %v18017_v24, %v18018_v54  ;;  %v18988_v24 = vand.u32 4294901760, %v30510_v60 }
0x1c01   :  { %26047 = vmatmul.mubr.f32.vlgmr.msra.gmra.mxu0 %v27484_v48  ;;  %v22555_v48 = vld [vmem:[%s31294_s5 + $0x1f8] sm:$0xff] }
0x1c02   :  { %26055 = vmatpush3.msra.mxu0 %v18018_v54  ;;  %v18020_v50 = vand.u32 4294901760, %v18019_v12  ;;  %26056 = vmatprep.mubr.msk.f32.mxu0 %vm26595_vm1, %v26594_v38  ;;  %v30384_v43 = vand.u32 4294901760, %v22555_v48  ;;  %v30524_v54 = vsub.f32 %v22559_v28, %v30512_v20  ;;  %v30526_v12 = vand.u32 4294901760, %v22558_v33 }
0x1c03   :  { %26064 = vmatprep.subr.mxu0 %v26594_v38 }
0x1c04   :  { %26040 = vmatpush3.msra.mxu1 %v18020_v50  ;;  %v30390_v47 = vsub.f32 %v22555_v48, %v30384_v43  ;;  %v18989_v48 = vsub.f32 %v30510_v60, %v18988_v24 }
0x1c05   :  { %26042 = vmatmul.mubr.f32.vlgmr.msra.gmra.mxu1 %v27481_v41  ;;  %26049 = vmatprep.subr.mxu1 %v26594_v38 }
0x1c06   :  { %26050 = vmatpush3.msra.mxu1 %v17940_v39  ;;  %26051 = vmatprep.mubr.msk.f32.mxu1 %vm26595_vm1, %v26594_v38  ;;  %v18477_v22 = vand.u32 4294901760, %v30390_v47 }
0x1c07   :  { %26059 = vmatprep.subr.mxu1 %v26594_v38  ;;  %26057 = vmatmul.mubr.f32.vlgmr.msra.gmra.mxu0 %v27481_v41 }
0x1c08   :  { %26072 = vmatprep.mubr.msk.f32.mxu0 %vm26595_vm1, %v26594_v38  ;;  %26065 = vmatpush3.msra.mxu0 %v30384_v43  ;;  %v18478_v23 = vsub.f32 %v30390_v47, %v18477_v22 }
0x1c09   :  { %26052 = vmatmul.mubr.f32.vlgmr.msra.gmra.mxu1 %v27487_v31  ;;  %v22554_v31 = vld [vmem:[%s31294_s5 + $0x1f0] sm:$0xff]  ;;  %26066 = vmatprep.subr.mxu0 %v26594_v38 }
0x1c0a   :  { %26060 = vmatpush3.msra.mxu1 %v17940_v39  ;;  %26061 = vmatprep.mubr.msk.f32.mxu1 %vm26595_vm1, %v26594_v38  ;;  %v30392_v59 = vand.u32 4294901760, %v22554_v31  ;;  %v18479_v0 = vand.u32 4294901760, %v18478_v23  ;;  %v18982_v39 = vsub.f32 %v30499_v58, %v18981_v61 }
0x1c0b   :  { %26075 = vmatprep.subr.mxu1 %v26594_v38 }
0x1c0c   :  { %v30401_v37 = vsub.f32 %v22554_v31, %v30392_v59  ;;  %26067 = vmatpush3.msra.mxu0 %v30392_v59  ;;  %v18983_v50 = vand.u32 4294901760, %v18982_v39  ;;  %v30535_v31 = vsub.f32 %v22558_v33, %v30526_v12 }
0x1c0d   :  { %26062 = vmatmul.mubr.f32.vlgmr.msra.gmra.mxu1 %v27481_v41  ;;  %v22553_v41 = vld [vmem:[%s31294_s5 + $0x1e8] sm:$0xff]  ;;  %26068 = vmatprep.subr.mxu0 %v26594_v38 }
0x1c0e   :  { %26083 = vmatprep.mubr.msk.f32.mxu1 %vm26595_vm1, %v26594_v38  ;;  %v30403_v63 = vand.u32 4294901760, %v22553_v41  ;;  %v18484_v55 = vand.u32 4294901760, %v30401_v37  ;;  %26076 = vmatpush3.msra.mxu1 %v18479_v0 }
0x1c0f   :  { %26077 = vmatprep.subr.mxu1 %v26594_v38 }
0x1c10   :  { %v30415_v2 = vsub.f32 %v22553_v41, %v30403_v63  ;;  %26069 = vmatpush3.msra.mxu0 %v30403_v63  ;;  %v18485_v8 = vsub.f32 %v30401_v37, %v18484_v55  ;;  %v19002_v41 = vand.u32 4294901760, %v30535_v31 }
0x1c11   :  { %26070 = vmatprep.subr.mxu0 %v26594_v38 }
0x1c12   :  { %v18491_v13 = vand.u32 4294901760, %v30415_v2  ;;  %26071 = vmatpush3.msra.mxu0 %v30417_v18  ;;  %v18486_v45 = vand.u32 4294901760, %v18485_v8  ;;  %v22557_v8 = vld [vmem:[%s31296_s6 + $0xf] ss:$0 sm:$0xff] }
0x1c13   :  { %26086 = vmatprep.subr.mxu0 %v26594_v38 }
0x1c14   :  { %v18492_v26 = vsub.f32 %v30415_v2, %v18491_v13  ;;  %26078 = vmatpush3.msra.mxu1 %v18486_v45 }
0x1c15   :  { %26079 = vmatprep.subr.mxu1 %v26594_v38 }
0x1c16   :  { %v18493_v56 = vand.u32 4294901760, %v18492_v26 }
0x1c18   :  { %26080 = vmatpush3.msra.mxu1 %v18493_v56 }
0x1c19   :  { %26081 = vmatprep.subr.mxu1 %v26594_v38 }
0x1c1a   :  { %26082 = vmatpush3.msra.mxu1 %v18500_v51 }
0x1c1b   :  { %26097 = vmatprep.subr.mxu1 %v26594_v38 }
0x1cbd   :  { %v17981_v17 = vpop.f32.mrf.mxu0 }
0x1cbf   :  { %v26038_v35 = vpop.f32.mrf.mxu0 }
0x1cc1   :  { %v18131_v1 = vpop.f32.mrf.mxu0 }
0x1cc3   :  { %v26048_v25 = vpop.f32.mrf.mxu0 }
0x1cc5   :  { %v18057_v46 = vpop.f32.mrf.mxu1 }
0x1cc6   :  { %v18058_v57 = vadd.f32 %v18057_v46, %v17981_v17 }
0x1cc7   :  { %v26043_v10 = vpop.f32.mrf.mxu1  ;;  %v18279_v27 = vpop.f32.mrf.mxu0 }
0x1cc8   :  { %v18132_v9 = vadd.f32 %v18131_v1, %v18058_v57 }
0x1cc9   :  { %v18205_v44 = vpop.f32.mrf.mxu1  ;;  %v26058_v42 = vpop.f32.mrf.mxu0 }
0x1cca   :  { %v18206_v19 = vadd.f32 %v18205_v44, %v18132_v9  ;;  %v22566_v44 = vld [vmem:[%s31294_s5 + $0x210] sm:$0xff] }
0x1ccb   :  { %v26053_v32 = vpop.f32.mrf.mxu1 }
0x1ccc   :  { %v18280_v3 = vadd.f32 %v18279_v27, %v18206_v19  ;;  %v22567_v27 = vld [vmem:[%s31294_s5 + $0x218] sm:$0xff]  ;;  %v22565_v32 = vld [vmem:[%s31294_s5 + $0x208] sm:$0xff] }
0x1ccd   :  { %v18351_v29 = vpop.f32.mrf.mxu1  ;;  %v30564_v19 = vand.u32 4294901760, %v22567_v27 }
0x1cce   :  { %v18352_v52 = vadd.f32 %v18351_v29, %v18280_v3  ;;  %v30573_v29 = vand.u32 4294901760, %v22566_v44 }
0x1ccf   :  { %v26063_v6 = vpop.f32.mrf.mxu1 }
0x1cd0   :  { %v18369_v30 = vsel %vm61_vm0, %v18352_v52, 0  ;;  %v22564_v52 = vld [vmem:[%s31294_s5 + $0x200] sm:$0xff] }
0x1cd1   :  { %v18440_v7 = vand.u32 4294901760, %v18369_v30 }
0x1cd3   :  { %v18441_v5 = vsub.f32 %v18369_v30, %v18440_v7  ;;  %26084 = vmatmul.mubr.f32.vlgmr.msra.gmra.mxu1 %v18440_v7  ;;  %v30581_v30 = vsub.f32 %v22567_v27, %v30564_v19 }
0x1cd4   :  { %26098 = vmatpush3.msra.mxu1 %v30384_v43  ;;  %26105 = vmatprep.mubr.msk.f32.mxu1 %vm26595_vm1, %v26594_v38 }
0x1cd5   :  { %v18442_v11 = vand.u32 4294901760, %v18441_v5  ;;  %26099 = vmatprep.subr.mxu1 %v26594_v38 }
0x1cd6   :  { %26100 = vmatpush3.msra.mxu1 %v30392_v59 }
0x1cd7   :  { %v18443_v15 = vsub.f32 %v18441_v5, %v18442_v11  ;;  %26101 = vmatprep.subr.mxu1 %v26594_v38 }
0x1cd8   :  { %26102 = vmatpush3.msra.mxu1 %v30403_v63 }
0x1cd9   :  { %v18444_v34 = vand.u32 4294901760, %v18443_v15  ;;  %26103 = vmatprep.subr.mxu1 %v26594_v38  ;;  %v30590_v15 = vand.u32 4294901760, %v22564_v52 }
0x1cda   :  { %26104 = vmatpush3.msra.mxu1 %v30417_v18 }
0x1cdb   :  { %26106 = vmatmul.mubr.f32.vlgmr.msra.gmra.mxu1 %v18442_v11  ;;  %26119 = vmatprep.subr.mxu1 %v26594_v38  ;;  %v30588_v11 = vsub.f32 %v22566_v44, %v30573_v29  ;;  %v30603_v28 = vsub.f32 %v22564_v52, %v30590_v15 }
0x1cdc   :  { %26073 = vmatmul.mubr.f32.vlgmr.msra.gmra.mxu0 %v18444_v34  ;;  %26120 = vmatpush3.msra.mxu1 %v30384_v43  ;;  %v18995_v43 = vand.u32 4294901760, %v30524_v54  ;;  %v19482_v34 = vand.u32 4294901760, %v30581_v30 }
0x1cdd   :  { %26087 = vmatpush3.msra.mxu0 %v30390_v47  ;;  %26121 = vmatprep.subr.mxu1 %v26594_v38  ;;  %v18990_v47 = vand.u32 4294901760, %v18989_v48  ;;  %v19489_v49 = vand.u32 4294901760, %v30588_v11  ;;  %v19503_v39 = vand.u32 4294901760, %v30603_v28 }
0x1cde   :  { %26088 = vmatprep.subr.mxu0 %v26594_v38  ;;  %26122 = vmatpush3.msra.mxu1 %v30392_v59  ;;  %v18996_v59 = vsub.f32 %v30524_v54, %v18995_v43 }
0x1cdf   :  { %26089 = vmatpush3.msra.mxu0 %v30401_v37  ;;  %26123 = vmatprep.subr.mxu1 %v26594_v38  ;;  %v19003_v37 = vsub.f32 %v30535_v31, %v19002_v41 }
0x1ce0   :  { %26090 = vmatprep.subr.mxu0 %v26594_v38  ;;  %26124 = vmatpush3.msra.mxu1 %v30403_v63 }
0x1ce1   :  { %26091 = vmatpush3.msra.mxu0 %v30415_v2  ;;  %26125 = vmatprep.subr.mxu1 %v26594_v38  ;;  %v19004_v63 = vand.u32 4294901760, %v19003_v37 }
0x1ce2   :  { %26092 = vmatprep.subr.mxu0 %v26594_v38  ;;  %26094 = vmatprep.mubr.msk.f32.mxu0 %vm26595_vm1, %v26594_v38 }
0x1ce3   :  { %26093 = vmatpush3.msra.mxu0 %v30426_v4  ;;  %26126 = vmatpush3.msra.mxu1 %v30417_v18 }
0x1ce4   :  { %26127 = vmatprep.mubr.msk.f32.mxu1 %vm26595_vm1, %v26594_v38  ;;  %26095 = vmatmul.mubr.f32.vlgmr.msra.gmra.mxu0 %v18441_v5 }
0x1ce5   :  { %26108 = vmatprep.subr.mxu0 %v26594_v38  ;;  %26128 = vmatmul.mubr.f32.vlgmr.msra.gmra.mxu1 %v18440_v7 }
0x1ce6   :  { %26109 = vmatpush3.msra.mxu0 %v18477_v22  ;;  %26116 = vmatprep.mubr.msk.f32.mxu0 %vm26595_vm1, %v26594_v38  ;;  %v18997_v22 = vand.u32 4294901760, %v18996_v59 }
0x1ce7   :  { %26110 = vmatprep.subr.mxu0 %v26594_v38  ;;  %26141 = vmatprep.subr.mxu1 %v26594_v38 }
0x1ce8   :  { %26111 = vmatpush3.msra.mxu0 %v18484_v55  ;;  %26149 = vmatprep.mubr.msk.f32.mxu1 %vm26595_vm1, %v26594_v38 }
0x1ce9   :  { %26112 = vmatprep.subr.mxu0 %v26594_v38  ;;  %26142 = vmatpush3.msra.mxu1 %v18983_v50  ;;  %v19374_v50 = vsel %vm61_vm0, %v29641_v14, 0  ;;  %v19504_v14 = vsub.f32 %v30603_v28, %v19503_v39 }
0x1cea   :  { %26113 = vmatpush3.msra.mxu0 %v18491_v13  ;;  %26143 = vmatprep.subr.mxu1 %v26594_v38  ;;  %v30638_v59 = vand.u32 4294901760, %v19374_v50 }
0x1ceb   :  { %26114 = vmatprep.subr.mxu0 %v26594_v38  ;;  %26144 = vmatpush3.msra.mxu1 %v18990_v47 }
0x1cec   :  { %26115 = vmatpush3.msra.mxu0 %v18498_v62  ;;  %26145 = vmatprep.subr.mxu1 %v26594_v38  ;;  %v19446_v37 = vsub.f32 %v19374_v50, %v30638_v59 }
0x1ced   :  { %26117 = vmatmul.mubr.f32.vlgmr.msra.gmra.mxu0 %v18440_v7  ;;  %26130 = vmatprep.subr.mxu0 %v26594_v38  ;;  %v30583_v7 = vand.u32 4294901760, %v22565_v32 }
0x1cee   :  { %26138 = vmatprep.mubr.msk.f32.mxu0 %vm26595_vm1, %v26594_v38  ;;  %26131 = vmatpush3.msra.mxu0 %v30493_v40 }
0x1cef   :  { %26132 = vmatprep.subr.mxu0 %v26594_v38  ;;  %26146 = vmatpush3.msra.mxu1 %v18997_v22  ;;  %v30596_v21 = vsub.f32 %v22565_v32, %v30583_v7  ;;  %v19505_v22 = vand.u32 4294901760, %v19504_v14 }
0x1cf0   :  { %26133 = vmatpush3.msra.mxu0 %v30501_v36  ;;  %26147 = vmatprep.subr.mxu1 %v26594_v38 }
0x1cf1   :  { %26134 = vmatprep.subr.mxu0 %v26594_v38  ;;  %26148 = vmatpush3.msra.mxu1 %v19004_v63  ;;  %v19496_v33 = vand.u32 4294901760, %v30596_v21  ;;  %v22571_v63 = vld [vmem:[%s31295_s7 + $0x208] sm:$0xff] }
0x1cf2   :  { %26135 = vmatpush3.msra.mxu0 %v30512_v20  ;;  %26163 = vmatprep.subr.mxu1 %v26594_v38 }
0x1cf3   :  { %26136 = vmatprep.subr.mxu0 %v26594_v38  ;;  %v19497_v48 = vsub.f32 %v30596_v21, %v19496_v33 }
0x1cf4   :  { %26137 = vmatpush3.msra.mxu0 %v30526_v12 }
0x1cf5   :  { %26152 = vmatprep.subr.mxu0 %v26594_v38 }
0x1d93   :  { %v18537_v16 = vpop.f32.mrf.mxu1 }
0x1d95   :  { %v26085_v23 = vpop.f32.mrf.mxu1 }
0x1d9b   :  { %v18694_v55 = vpop.f32.mrf.mxu1 }
0x1d9c   :  { %v18446_v2 = vpop.f32.mrf.mxu0 }
0x1d9d   :  { %v26107_v18 = vpop.f32.mrf.mxu1  ;;  %v18447_v13 = vadd.f32 %v22557_v8, %v18446_v2  ;;  %v22570_v2 = vld [vmem:[%s31295_s7 + $0x200] sm:$0xff] }
0x1d9e   :  { %v26074_v0 = vpop.f32.mrf.mxu0 }
0x1d9f   :  { %v18538_v26 = vadd.f32 %v18537_v16, %v18447_v13  ;;  %v30760_v13 = vand.u32 4294901760, %v22570_v2 }
0x1da4   :  { %v18617_v4 = vpop.f32.mrf.mxu0 }
0x1da5   :  { %v18852_v45 = vpop.f32.mrf.mxu1  ;;  %v18618_v53 = vadd.f32 %v18617_v4, %v18538_v26 }
0x1da6   :  { %v26096_v62 = vpop.f32.mrf.mxu0 }
0x1da7   :  { %v26129_v56 = vpop.f32.mrf.mxu1  ;;  %v18695_v51 = vadd.f32 %v18694_v55, %v18618_v53  ;;  %v30746_v55 = vand.u32 4294901760, %v22571_v63  ;;  %v30769_v62 = vsub.f32 %v22570_v2, %v30760_v13 }
0x1da9   :  { %v30758_v8 = vsub.f32 %v22571_v63, %v30746_v55 }
0x1dab   :  { %v20000_v26 = vand.u32 4294901760, %v30758_v8 }
0x1dad   :  { %v18777_v17 = vpop.f32.mrf.mxu0  ;;  %v20001_v53 = vsub.f32 %v30758_v8, %v20000_v26 }
0x1dae   :  { %v18778_v35 = vadd.f32 %v18777_v17, %v18695_v51  ;;  %v20007_v51 = vand.u32 4294901760, %v30769_v62 }
0x1daf   :  { %v26118_v1 = vpop.f32.mrf.mxu0  ;;  %v20002_v17 = vand.u32 4294901760, %v20001_v53 }
0x1db0   :  { %v18853_v25 = vadd.f32 %v18852_v45, %v18778_v35  ;;  %v20008_v35 = vsub.f32 %v30769_v62, %v20007_v51 }
0x1db2   :  { %vm18856_vm4 = vcmp.gt.f32.partialorder %v18853_v25, 0.0  ;;  %v18857_v46 = vmul.f32 0.01, %v18853_v25  ;;  %v20009_v1 = vand.u32 4294901760, %v20008_v35 }
0x1db4   :  { %v18858_v57 = vsel %vm18856_vm4, %v18853_v25, %v18857_v46 }
0x1db5   :  { %v18873_v10 = vsel %vm61_vm0, %v18858_v57, 0  ;;  %v22563_v57 = vld [vmem:[%s31297_s8 + $0xf] ss:$0 sm:$0xff] }
0x1db6   :  { %v30557_v9 = vand.u32 4294901760, %v18873_v10 }
0x1db8   :  { %v18945_v42 = vsub.f32 %v18873_v10, %v30557_v9  ;;  %26150 = vmatmul.mubr.f32.vlgmr.msra.gmra.mxu1 %v30557_v9 }
0x1db9   :  { %26164 = vmatpush3.msra.mxu1 %v30493_v40  ;;  %26171 = vmatprep.mubr.msk.f32.mxu1 %vm26595_vm1, %v26594_v38 }
0x1dba   :  { %26165 = vmatprep.subr.mxu1 %v26594_v38  ;;  %v18946_v3 = vand.u32 4294901760, %v18945_v42 }
0x1dbb   :  { %26166 = vmatpush3.msra.mxu1 %v30501_v36 }
0x1dbc   :  { %26167 = vmatprep.subr.mxu1 %v26594_v38  ;;  %v18947_v6 = vsub.f32 %v18945_v42, %v18946_v3 }
0x1dbd   :  { %26168 = vmatpush3.msra.mxu1 %v30512_v20 }
0x1dbe   :  { %26169 = vmatprep.subr.mxu1 %v26594_v38  ;;  %v18948_v5 = vand.u32 4294901760, %v18947_v6 }
0x1dbf   :  { %26170 = vmatpush3.msra.mxu1 %v30526_v12 }
0x1dc0   :  { %26172 = vmatmul.mubr.f32.vlgmr.msra.gmra.mxu1 %v18946_v3  ;;  %26185 = vmatprep.subr.mxu1 %v26594_v38 }
0x1dc1   :  { %26139 = vmatmul.mubr.f32.vlgmr.msra.gmra.mxu0 %v18948_v5  ;;  %26186 = vmatpush3.msra.mxu1 %v30493_v40  ;;  %v19483_v40 = vsub.f32 %v30581_v30, %v19482_v34 }
0x1dc2   :  { %26153 = vmatpush3.msra.mxu0 %v30499_v58  ;;  %26187 = vmatprep.subr.mxu1 %v26594_v38  ;;  %v19447_v58 = vand.u32 4294901760, %v19446_v37 }
0x1dc3   :  { %26154 = vmatprep.subr.mxu0 %v26594_v38  ;;  %26188 = vmatpush3.msra.mxu1 %v30501_v36  ;;  %v19490_v36 = vsub.f32 %v30588_v11, %v19489_v49 }
0x1dc4   :  { %26155 = vmatpush3.msra.mxu0 %v30510_v60  ;;  %26189 = vmatprep.subr.mxu1 %v26594_v38 }
0x1dc5   :  { %26156 = vmatprep.subr.mxu0 %v26594_v38  ;;  %26190 = vmatpush3.msra.mxu1 %v30512_v20  ;;  %v19484_v20 = vand.u32 4294901760, %v19483_v40  ;;  %v19491_v47 = vand.u32 4294901760, %v19490_v36  ;;  %v22569_v36 = vld [vmem:[%s31296_s6 + $0x10] ss:$0 sm:$0xff] }
0x1dc6   :  { %26157 = vmatpush3.msra.mxu0 %v30524_v54  ;;  %26191 = vmatprep.subr.mxu1 %v26594_v38 }
0x1dc7   :  { %26158 = vmatprep.subr.mxu0 %v26594_v38  ;;  %26160 = vmatprep.mubr.msk.f32.mxu0 %vm26595_vm1, %v26594_v38 }
0x1dc8   :  { %26159 = vmatpush3.msra.mxu0 %v30535_v31  ;;  %26192 = vmatpush3.msra.mxu1 %v30526_v12  ;;  %v19498_v12 = vand.u32 4294901760, %v19497_v48 }
0x1dc9   :  { %26193 = vmatprep.mubr.msk.f32.mxu1 %vm26595_vm1, %v26594_v38  ;;  %26161 = vmatmul.mubr.f32.vlgmr.msra.gmra.mxu0 %v18945_v42 }
0x1dca   :  { %26174 = vmatprep.subr.mxu0 %v26594_v38  ;;  %26194 = vmatmul.mubr.f32.vlgmr.msra.gmra.mxu1 %v30557_v9 }
0x1dcb   :  { %26207 = vmatprep.subr.mxu1 %v26594_v38  ;;  %26175 = vmatpush3.msra.mxu0 %v18981_v61  ;;  %v19448_v61 = vsub.f32 %v19446_v37, %v19447_v58 }
0x1dcc   :  { %26208 = vmatpush3.msra.mxu1 %v19484_v20  ;;  %26176 = vmatprep.subr.mxu0 %v26594_v38 }
0x1dcd   :  { %26209 = vmatprep.subr.mxu1 %v26594_v38  ;;  %26177 = vmatpush3.msra.mxu0 %v18988_v24  ;;  %v19449_v60 = vand.u32 4294901760, %v19448_v61  ;;  %v22573_v24 = vld [vmem:[%s31295_s7 + $0x218] sm:$0xff] }
0x1dce   :  { %26210 = vmatpush3.msra.mxu1 %v19491_v47  ;;  %26178 = vmatprep.subr.mxu0 %v26594_v38  ;;  %v30727_v54 = vand.u32 4294901760, %v22573_v24 }
0x1dcf   :  { %26211 = vmatprep.subr.mxu1 %v26594_v38  ;;  %26179 = vmatpush3.msra.mxu0 %v18995_v43  ;;  %v22572_v43 = vld [vmem:[%s31295_s7 + $0x210] sm:$0xff] }
0x1dd0   :  { %26212 = vmatpush3.msra.mxu1 %v19498_v12  ;;  %26180 = vmatprep.subr.mxu0 %v26594_v38  ;;  %v30733_v31 = vsub.f32 %v22573_v24, %v30727_v54 }
0x1dd1   :  { %26213 = vmatprep.subr.mxu1 %v26594_v38  ;;  %26181 = vmatpush3.msra.mxu0 %v19002_v41  ;;  %v30735_v41 = vand.u32 4294901760, %v22572_v43 }
0x1dd2   :  { %26182 = vmatprep.mubr.msk.f32.mxu0 %vm26595_vm1, %v26594_v38  ;;  %26214 = vmatpush3.msra.mxu1 %v19505_v22  ;;  %v19986_v16 = vand.u32 4294901760, %v30733_v31 }
0x1dd3   :  { %26215 = vmatprep.mubr.msk.f32.mxu1 %vm26595_vm1, %v26594_v38  ;;  %26183 = vmatmul.mubr.f32.vlgmr.msra.gmra.mxu0 %v30557_v9  ;;  %v30744_v23 = vsub.f32 %v22572_v43, %v30735_v41 }
0x1dd4   :  { %26196 = vmatprep.subr.mxu0 %v26594_v38  ;;  %26216 = vmatmul.mubr.f32.vlgmr.msra.gmra.mxu1 %v30638_v59  ;;  %v19987_v18 = vsub.f32 %v30733_v31, %v19986_v16 }
0x1dd5   :  { %26229 = vmatprep.subr.mxu1 %v26594_v38  ;;  %26197 = vmatpush3.msra.mxu0 %v30564_v19  ;;  %v19993_v0 = vand.u32 4294901760, %v30744_v23 }
0x1dd6   :  { %26230 = vmatpush3.msra.mxu1 %v30564_v19  ;;  %26198 = vmatprep.subr.mxu0 %v26594_v38  ;;  %v19988_v4 = vand.u32 4294901760, %v19987_v18 }
0x1dd7   :  { %26231 = vmatprep.subr.mxu1 %v26594_v38  ;;  %26199 = vmatpush3.msra.mxu0 %v30573_v29  ;;  %v19994_v45 = vsub.f32 %v30744_v23, %v19993_v0 }
0x1dd8   :  { %26232 = vmatpush3.msra.mxu1 %v30573_v29  ;;  %26200 = vmatprep.subr.mxu0 %v26594_v38 }
0x1dd9   :  { %26233 = vmatprep.subr.mxu1 %v26594_v38  ;;  %26201 = vmatpush3.msra.mxu0 %v30583_v7  ;;  %v19995_v56 = vand.u32 4294901760, %v19994_v45 }
0x1dda   :  { %26234 = vmatpush3.msra.mxu1 %v30583_v7  ;;  %26202 = vmatprep.subr.mxu0 %v26594_v38 }
0x1ddb   :  { %26235 = vmatprep.subr.mxu1 %v26594_v38  ;;  %26203 = vmatpush3.msra.mxu0 %v30590_v15 }
0x1ddc   :  { %26204 = vmatprep.mubr.msk.f32.mxu0 %vm26595_vm1, %v26594_v38  ;;  %26236 = vmatpush3.msra.mxu1 %v30590_v15 }
0x1ddd   :  { %26237 = vmatprep.mubr.msk.f32.mxu1 %vm26595_vm1, %v26594_v38  ;;  %26205 = vmatmul.mubr.f32.vlgmr.msra.gmra.mxu0 %v19449_v60 }
0x1dde   :  { %26218 = vmatprep.subr.mxu0 %v26594_v38  ;;  %26238 = vmatmul.mubr.f32.vlgmr.msra.gmra.mxu1 %v19447_v58 }
0x1ddf   :  { %26251 = vmatprep.subr.mxu1 %v26594_v38  ;;  %26219 = vmatpush3.msra.mxu0 %v30581_v30 }
0x1de0   :  { %26252 = vmatpush3.msra.mxu1 %v30564_v19  ;;  %26220 = vmatprep.subr.mxu0 %v26594_v38 }
0x1de1   :  { %26253 = vmatprep.subr.mxu1 %v26594_v38  ;;  %26221 = vmatpush3.msra.mxu0 %v30588_v11 }
0x1de2   :  { %26254 = vmatpush3.msra.mxu1 %v30573_v29  ;;  %26222 = vmatprep.subr.mxu0 %v26594_v38 }
0x1de3   :  { %26255 = vmatprep.subr.mxu1 %v26594_v38  ;;  %26223 = vmatpush3.msra.mxu0 %v30596_v21 }
0x1de4   :  { %26256 = vmatpush3.msra.mxu1 %v30583_v7  ;;  %26224 = vmatprep.subr.mxu0 %v26594_v38 }
0x1de5   :  { %26257 = vmatprep.subr.mxu1 %v26594_v38  ;;  %26225 = vmatpush3.msra.mxu0 %v30603_v28 }
0x1de6   :  { %26226 = vmatprep.mubr.msk.f32.mxu0 %vm26595_vm1, %v26594_v38  ;;  %26258 = vmatpush3.msra.mxu1 %v30590_v15 }
0x1de7   :  { %26259 = vmatprep.mubr.msk.f32.mxu1 %vm26595_vm1, %v26594_v38  ;;  %26227 = vmatmul.mubr.f32.vlgmr.msra.gmra.mxu0 %v19446_v37 }
0x1de8   :  { %26240 = vmatprep.subr.mxu0 %v26594_v38  ;;  %26260 = vmatmul.mubr.f32.vlgmr.msra.gmra.mxu1 %v30638_v59 }
0x1de9   :  { %26241 = vmatpush3.msra.mxu0 %v19482_v34  ;;  %26248 = vmatprep.mubr.msk.f32.mxu0 %vm26595_vm1, %v26594_v38 }
0x1dea   :  { %26242 = vmatprep.subr.mxu0 %v26594_v38  ;;  %26273 = vmatprep.subr.mxu1 %v26594_v38 }
0x1deb   :  { %26243 = vmatpush3.msra.mxu0 %v19489_v49  ;;  %26281 = vmatprep.mubr.msk.f32.mxu1 %vm26595_vm1, %v26594_v38 }
0x1dec   :  { %26244 = vmatprep.subr.mxu0 %v26594_v38  ;;  %26274 = vmatpush3.msra.mxu1 %v19988_v4 }
0x1ded   :  { %26245 = vmatpush3.msra.mxu0 %v19496_v33  ;;  %26275 = vmatprep.subr.mxu1 %v26594_v38 }
0x1dee   :  { %26246 = vmatprep.subr.mxu0 %v26594_v38  ;;  %26276 = vmatpush3.msra.mxu1 %v19995_v56 }
0x1def   :  { %26247 = vmatpush3.msra.mxu0 %v19503_v39  ;;  %26277 = vmatprep.subr.mxu1 %v26594_v38 }
0x1df0   :  { %26249 = vmatmul.mubr.f32.vlgmr.msra.gmra.mxu0 %v30638_v59  ;;  %26262 = vmatprep.subr.mxu0 %v26594_v38 }
0x1df1   :  { %26270 = vmatprep.mubr.msk.f32.mxu0 %vm26595_vm1, %v26594_v38  ;;  %26263 = vmatpush3.msra.mxu0 %v30727_v54 }
0x1df2   :  { %26264 = vmatprep.subr.mxu0 %v26594_v38  ;;  %26278 = vmatpush3.msra.mxu1 %v20002_v17 }
0x1df3   :  { %26265 = vmatpush3.msra.mxu0 %v30735_v41  ;;  %26279 = vmatprep.subr.mxu1 %v26594_v38 }
0x1df4   :  { %26266 = vmatprep.subr.mxu0 %v26594_v38  ;;  %26280 = vmatpush3.msra.mxu1 %v20009_v1 }
0x1df5   :  { %26267 = vmatpush3.msra.mxu0 %v30746_v55  ;;  %26295 = vmatprep.subr.mxu1 %v26594_v38 }
0x1df6   :  { %26268 = vmatprep.subr.mxu0 %v26594_v38 }
0x1df7   :  { %26269 = vmatpush3.msra.mxu0 %v30760_v13 }
0x1df8   :  { %26284 = vmatprep.subr.mxu0 %v26594_v38 }
0x1e78   :  { %v19041_v25 = vpop.f32.mrf.mxu1 }
0x1e7a   :  { %v26151_v46 = vpop.f32.mrf.mxu1 }
0x1e80   :  { %v19198_v10 = vpop.f32.mrf.mxu1 }
0x1e81   :  { %v18950_v27 = vpop.f32.mrf.mxu0 }
0x1e82   :  { %v18951_v9 = vadd.f32 %v22563_v57, %v18950_v27  ;;  %v26173_v44 = vpop.f32.mrf.mxu1 }
0x1e83   :  { %v26140_v42 = vpop.f32.mrf.mxu0 }
0x1e84   :  { %v19042_v19 = vadd.f32 %v19041_v25, %v18951_v9 }
0x1e89   :  { %v19121_v32 = vpop.f32.mrf.mxu0 }
0x1e8a   :  { %v19122_v3 = vadd.f32 %v19121_v32, %v19042_v19  ;;  %v19356_v29 = vpop.f32.mrf.mxu1 }
0x1e8b   :  { %v26162_v52 = vpop.f32.mrf.mxu0 }
0x1e8c   :  { %v26195_v6 = vpop.f32.mrf.mxu1  ;;  %v19199_v30 = vadd.f32 %v19198_v10, %v19122_v3 }
0x1e8d   :  { %v22575_v6 = vld [vmem:[%s31297_s8 + $0x10] ss:$0 sm:$0xff] }
0x1e93   :  { %v19281_v7 = vpop.f32.mrf.mxu0 }
0x1e94   :  { %v19282_v5 = vadd.f32 %v19281_v7, %v19199_v30  ;;  %v19542_v11 = vpop.f32.mrf.mxu1 }
0x1e95   :  { %v26184_v15 = vpop.f32.mrf.mxu0 }
0x1e96   :  { %v30787_v34 = vadd.f32 %v19356_v29, %v19282_v5  ;;  %v26217_v21 = vpop.f32.mrf.mxu1 }
0x1e9d   :  { %v19451_v49 = vpop.f32.mrf.mxu0 }
0x1e9e   :  { %v19699_v28 = vpop.f32.mrf.mxu1  ;;  %v19452_v39 = vadd.f32 %v22569_v36, %v19451_v49 }
0x1e9f   :  { %v26206_v40 = vpop.f32.mrf.mxu0 }
0x1ea0   :  { %v26239_v33 = vpop.f32.mrf.mxu1  ;;  %v19543_v48 = vadd.f32 %v19542_v11, %v19452_v39 }
0x1ea7   :  { %v19622_v50 = vpop.f32.mrf.mxu0 }
0x1ea8   :  { %v19857_v20 = vpop.f32.mrf.mxu1  ;;  %v19623_v59 = vadd.f32 %v19622_v50, %v19543_v48 }
0x1ea9   :  { %v26228_v47 = vpop.f32.mrf.mxu0 }
0x1eaa   :  { %v26261_v14 = vpop.f32.mrf.mxu1  ;;  %v19700_v12 = vadd.f32 %v19699_v28, %v19623_v59 }
0x1eb0   :  { %v19782_v22 = vpop.f32.mrf.mxu0 }
0x1eb1   :  { %v19783_v37 = vadd.f32 %v19782_v22, %v19700_v12  ;;  %v22585_v12 = vld [vmem:[%s31295_s7 + $0x238] sm:$0xff] }
0x1eb2   :  { %v26250_v58 = vpop.f32.mrf.mxu0  ;;  %v30957_v22 = vand.u32 4294901760, %v22585_v12 }
0x1eb3   :  { %v19858_v61 = vadd.f32 %v19857_v20, %v19783_v37  ;;  %v22584_v37 = vld [vmem:[%s31295_s7 + $0x230] sm:$0xff] }
0x1eb4   :  { %v30963_v58 = vsub.f32 %v22585_v12, %v30957_v22 }
0x1eb5   :  { %vm19861_vm5 = vcmp.gt.f32.partialorder %v19858_v61, 0.0  ;;  %v19862_v60 = vmul.f32 0.01, %v19858_v61 }
0x1eb7   :  { %v19863_v24 = vsel %vm19861_vm5, %v19858_v61, %v19862_v60  ;;  %v30965_v61 = vand.u32 4294901760, %v22584_v37  ;;  %v22583_v60 = vld [vmem:[%s31295_s7 + $0x228] sm:$0xff] }
0x1eb8   :  { %v19878_v43 = vsel %vm61_vm0, %v19863_v24, 0  ;;  %v20992_v24 = vand.u32 4294901760, %v30963_v58 }
0x1eb9   :  { %v19949_v63 = vand.u32 4294901760, %v19878_v43 }
0x1ebb   :  { %v19950_v2 = vsub.f32 %v19878_v43, %v19949_v63  ;;  %26282 = vmatmul.mubr.f32.vlgmr.msra.gmra.mxu1 %v19949_v63  ;;  %v30974_v43 = vsub.f32 %v22584_v37, %v30965_v61 }
0x1ebc   :  { %26296 = vmatpush3.msra.mxu1 %v30727_v54  ;;  %26303 = vmatprep.mubr.msk.f32.mxu1 %vm26595_vm1, %v26594_v38 }
0x1ebd   :  { %26297 = vmatprep.subr.mxu1 %v26594_v38  ;;  %v19951_v18 = vand.u32 4294901760, %v19950_v2 }
0x1ebe   :  { %26298 = vmatpush3.msra.mxu1 %v30735_v41 }
0x1ebf   :  { %26299 = vmatprep.subr.mxu1 %v26594_v38  ;;  %v19952_v4 = vsub.f32 %v19950_v2, %v19951_v18 }
0x1ec0   :  { %26300 = vmatpush3.msra.mxu1 %v30746_v55 }
0x1ec1   :  { %26301 = vmatprep.subr.mxu1 %v26594_v38  ;;  %v19953_v45 = vand.u32 4294901760, %v19952_v4  ;;  %v20999_v4 = vand.u32 4294901760, %v30974_v43 }
0x1ec2   :  { %26302 = vmatpush3.msra.mxu1 %v30760_v13 }
0x1ec3   :  { %26304 = vmatmul.mubr.f32.vlgmr.msra.gmra.mxu1 %v19951_v18  ;;  %26317 = vmatprep.subr.mxu1 %v26594_v38  ;;  %v20993_v18 = vsub.f32 %v30963_v58, %v20992_v24 }
0x1ec4   :  { %26271 = vmatmul.mubr.f32.vlgmr.msra.gmra.mxu0 %v19953_v45  ;;  %26318 = vmatpush3.msra.mxu1 %v30727_v54  ;;  %v22579_v54 = vld [vmem:[%s31294_s5 + $0x238] sm:$0xff] }
0x1ec5   :  { %26285 = vmatpush3.msra.mxu0 %v30733_v31  ;;  %26319 = vmatprep.subr.mxu1 %v26594_v38  ;;  %v30844_v31 = vand.u32 4294901760, %v22579_v54 }
0x1ec6   :  { %26286 = vmatprep.subr.mxu0 %v26594_v38  ;;  %26320 = vmatpush3.msra.mxu1 %v30735_v41  ;;  %v22578_v41 = vld [vmem:[%s31294_s5 + $0x230] sm:$0xff] }
0x1ec7   :  { %26287 = vmatpush3.msra.mxu0 %v30744_v23  ;;  %26321 = vmatprep.subr.mxu1 %v26594_v38  ;;  %v30852_v23 = vand.u32 4294901760, %v22578_v41 }
0x1ec8   :  { %26288 = vmatprep.subr.mxu0 %v26594_v38  ;;  %26322 = vmatpush3.msra.mxu1 %v30746_v55  ;;  %v22577_v55 = vld [vmem:[%s31294_s5 + $0x228] sm:$0xff] }
0x1ec9   :  { %26289 = vmatpush3.msra.mxu0 %v30758_v8  ;;  %26323 = vmatprep.subr.mxu1 %v26594_v38  ;;  %v30861_v8 = vsub.f32 %v22578_v41, %v30852_v23  ;;  %v21000_v41 = vsub.f32 %v30974_v43, %v20999_v4 }
0x1eca   :  { %26290 = vmatprep.subr.mxu0 %v26594_v38  ;;  %26292 = vmatprep.mubr.msk.f32.mxu0 %vm26595_vm1, %v26594_v38 }
0x1ecb   :  { %26291 = vmatpush3.msra.mxu0 %v30769_v62  ;;  %26324 = vmatpush3.msra.mxu1 %v30760_v13  ;;  %v30863_v13 = vand.u32 4294901760, %v22577_v55  ;;  %v20495_v56 = vand.u32 4294901760, %v30861_v8 }
0x1ecc   :  { %26325 = vmatprep.mubr.msk.f32.mxu1 %vm26595_vm1, %v26594_v38  ;;  %26293 = vmatmul.mubr.f32.vlgmr.msra.gmra.mxu0 %v19950_v2  ;;  %v22582_v2 = vld [vmem:[%s31295_s7 + $0x220] sm:$0xff] }
0x1ecd   :  { %26306 = vmatprep.subr.mxu0 %v26594_v38  ;;  %26326 = vmatmul.mubr.f32.vlgmr.msra.gmra.mxu1 %v19949_v63  ;;  %v30875_v53 = vsub.f32 %v22577_v55, %v30863_v13  ;;  %v20496_v35 = vsub.f32 %v30861_v8, %v20495_v56  ;;  %v21001_v55 = vand.u32 4294901760, %v21000_v41 }
0x1ece   :  { %26307 = vmatpush3.msra.mxu0 %v19986_v16  ;;  %26314 = vmatprep.mubr.msk.f32.mxu0 %vm26595_vm1, %v26594_v38  ;;  %v30850_v16 = vsub.f32 %v22579_v54, %v30844_v31  ;;  %v30990_v54 = vand.u32 4294901760, %v22582_v2 }
0x1ecf   :  { %26308 = vmatprep.subr.mxu0 %v26594_v38  ;;  %26339 = vmatprep.subr.mxu1 %v26594_v38  ;;  %v20502_v1 = vand.u32 4294901760, %v30875_v53  ;;  %v20497_v46 = vand.u32 4294901760, %v20496_v35 }
0x1ed0   :  { %26309 = vmatpush3.msra.mxu0 %v19993_v0  ;;  %26347 = vmatprep.mubr.msk.f32.mxu1 %vm26595_vm1, %v26594_v38  ;;  %v20488_v0 = vand.u32 4294901760, %v30850_v16 }
0x1ed1   :  { %26310 = vmatprep.subr.mxu0 %v26594_v38  ;;  %v20503_v57 = vsub.f32 %v30875_v53, %v20502_v1 }
0x1ed2   :  { %26311 = vmatpush3.msra.mxu0 %v20000_v26  ;;  %v22576_v26 = vld [vmem:[%s31294_s5 + $0x220] sm:$0xff]  ;;  %v20489_v62 = vsub.f32 %v30850_v16, %v20488_v0 }
0x1ed3   :  { %26312 = vmatprep.subr.mxu0 %v26594_v38  ;;  %v20504_v27 = vand.u32 4294901760, %v20503_v57 }
0x1ed4   :  { %26313 = vmatpush3.msra.mxu0 %v20007_v51  ;;  %v30877_v51 = vand.u32 4294901760, %v22576_v26  ;;  %v20490_v17 = vand.u32 4294901760, %v20489_v62 }
0x1ed5   :  { %26315 = vmatmul.mubr.f32.vlgmr.msra.gmra.mxu0 %v19949_v63  ;;  %26328 = vmatprep.subr.mxu0 %v26594_v38  ;;  %v30976_v63 = vand.u32 4294901760, %v22583_v60 }
0x1ed6   :  { %26336 = vmatprep.mubr.msk.f32.mxu0 %vm26595_vm1, %v26594_v38  ;;  %26329 = vmatpush3.msra.mxu0 %v30844_v31  ;;  %v30886_v25 = vsub.f32 %v22576_v26, %v30877_v51 }
0x1ed7   :  { %26330 = vmatprep.subr.mxu0 %v26594_v38  ;;  %26340 = vmatpush3.msra.mxu1 %v20490_v17  ;;  %v30988_v45 = vsub.f32 %v22583_v60, %v30976_v63 }
0x1ed8   :  { %26331 = vmatpush3.msra.mxu0 %v30852_v23  ;;  %v20509_v10 = vand.u32 4294901760, %v30886_v25  ;;  %26341 = vmatprep.subr.mxu1 %v26594_v38 }
0x1ed9   :  { %26332 = vmatprep.subr.mxu0 %v26594_v38  ;;  %26342 = vmatpush3.msra.mxu1 %v20497_v46 }
0x1eda   :  { %26333 = vmatpush3.msra.mxu0 %v30863_v13  ;;  %v20510_v9 = vsub.f32 %v30886_v25, %v20509_v10  ;;  %26343 = vmatprep.subr.mxu1 %v26594_v38 }
0x1edb   :  { %26334 = vmatprep.subr.mxu0 %v26594_v38  ;;  %26344 = vmatpush3.msra.mxu1 %v20504_v27 }
0x1edc   :  { %26335 = vmatpush3.msra.mxu0 %v30877_v51  ;;  %v20511_v44 = vand.u32 4294901760, %v20510_v9  ;;  %26345 = vmatprep.subr.mxu1 %v26594_v38 }
0x1edd   :  { %26350 = vmatprep.subr.mxu0 %v26594_v38 }
0x1ede   :  { %26346 = vmatpush3.msra.mxu1 %v20511_v44 }
0x1edf   :  { %26361 = vmatprep.subr.mxu1 %v26594_v38 }
0x1f7b   :  { %v20046_v42 = vpop.f32.mrf.mxu1 }
0x1f7d   :  { %v26283_v19 = vpop.f32.mrf.mxu1 }
0x1f83   :  { %v20203_v32 = vpop.f32.mrf.mxu1 }
0x1f84   :  { %v19955_v3 = vpop.f32.mrf.mxu0 }
0x1f85   :  { %v26305_v29 = vpop.f32.mrf.mxu1  ;;  %v19956_v30 = vadd.f32 %v22575_v6, %v19955_v3 }
0x1f86   :  { %v26272_v52 = vpop.f32.mrf.mxu0 }
0x1f87   :  { %v20047_v11 = vadd.f32 %v20046_v42, %v19956_v30 }
0x1f8c   :  { %v20126_v7 = vpop.f32.mrf.mxu0 }
0x1f8d   :  { %v20361_v5 = vpop.f32.mrf.mxu1  ;;  %v20127_v49 = vadd.f32 %v20126_v7, %v20047_v11 }
0x1f8e   :  { %v26294_v15 = vpop.f32.mrf.mxu0 }
0x1f8f   :  { %v26327_v21 = vpop.f32.mrf.mxu1  ;;  %v20204_v28 = vadd.f32 %v20203_v32, %v20127_v49 }
0x1f95   :  { %v20286_v40 = vpop.f32.mrf.mxu0 }
0x1f96   :  { %v20287_v33 = vadd.f32 %v20286_v40, %v20204_v28  ;;  %v21374_v28 = vld [vmem:[%s31299_s9 + $0x18] sm:$0xff] }
0x1f97   :  { %v26316_v36 = vpop.f32.mrf.mxu0  ;;  %v31069_v40 = vand.u32 4294901760, %v21374_v28 }
0x1f98   :  { %v20362_v39 = vadd.f32 %v20361_v5, %v20287_v33  ;;  %v21373_v33 = vld [vmem:[%s31299_s9 + $0x10] sm:$0xff] }
0x1f99   :  { %v31075_v36 = vsub.f32 %v21374_v28, %v31069_v40 }
0x1f9a   :  { %v20365_v50 = vadd.f32 %v20362_v39, %v30787_v34  ;;  %v31077_v39 = vand.u32 4294901760, %v21373_v33 }
0x1f9c   :  { %v20380_v20 = vsel %vm61_vm0, %v20365_v50, 0  ;;  %v21372_v50 = vld [vmem:[%s31299_s9 + $0x8] sm:$0xff] }
0x1f9d   :  { %v20451_v48 = vand.u32 4294901760, %v20380_v20 }
0x1f9f   :  { %v20452_v47 = vsub.f32 %v20380_v20, %v20451_v48  ;;  %26348 = vmatmul.mubr.f32.vlgmr.msra.gmra.mxu1 %v20451_v48  ;;  %v21491_v20 = vand.u32 4294901760, %v31075_v36 }
0x1fa0   :  { %26362 = vmatpush3.msra.mxu1 %v30844_v31  ;;  %26369 = vmatprep.mubr.msk.f32.mxu1 %vm26595_vm1, %v26594_v38 }
0x1fa1   :  { %v20453_v14 = vand.u32 4294901760, %v20452_v47  ;;  %26363 = vmatprep.subr.mxu1 %v26594_v38 }
0x1fa2   :  { %26364 = vmatpush3.msra.mxu1 %v30852_v23 }
0x1fa3   :  { %v20454_v59 = vsub.f32 %v20452_v47, %v20453_v14  ;;  %26365 = vmatprep.subr.mxu1 %v26594_v38 }
0x1fa4   :  { %26366 = vmatpush3.msra.mxu1 %v30863_v13 }
0x1fa5   :  { %26367 = vmatprep.subr.mxu1 %v26594_v38  ;;  %v20455_v34 = vand.u32 4294901760, %v20454_v59  ;;  %v21492_v59 = vsub.f32 %v31075_v36, %v21491_v20 }
0x1fa6   :  { %26368 = vmatpush3.msra.mxu1 %v30877_v51 }
0x1fa7   :  { %26370 = vmatmul.mubr.f32.vlgmr.msra.gmra.mxu1 %v20453_v14  ;;  %26383 = vmatprep.subr.mxu1 %v26594_v38  ;;  %v21371_v14 = vld [vmem:[%s31299_s9] sm:$0xff]  ;;  %v21493_v37 = vand.u32 4294901760, %v21492_v59 }
0x1fa8   :  { %26337 = vmatmul.mubr.f32.vlgmr.msra.gmra.mxu0 %v20455_v34  ;;  %26384 = vmatpush3.msra.mxu1 %v30844_v31  ;;  %v20994_v31 = vand.u32 4294901760, %v20993_v18 }
0x1fa9   :  { %26351 = vmatpush3.msra.mxu0 %v30850_v16  ;;  %26385 = vmatprep.subr.mxu1 %v26594_v38  ;;  %v21006_v16 = vand.u32 4294901760, %v30988_v45 }
0x1faa   :  { %26352 = vmatprep.subr.mxu0 %v26594_v38  ;;  %26386 = vmatpush3.msra.mxu1 %v30852_v23  ;;  %v30999_v23 = vsub.f32 %v22582_v2, %v30990_v54 }
0x1fab   :  { %26353 = vmatpush3.msra.mxu0 %v30861_v8  ;;  %26387 = vmatprep.subr.mxu1 %v26594_v38 }
0x1fac   :  { %26354 = vmatprep.subr.mxu0 %v26594_v38  ;;  %26388 = vmatpush3.msra.mxu1 %v30863_v13  ;;  %v21013_v8 = vand.u32 4294901760, %v30999_v23 }
0x1fad   :  { %26355 = vmatpush3.msra.mxu0 %v30875_v53  ;;  %26389 = vmatprep.subr.mxu1 %v26594_v38 }
0x1fae   :  { %26356 = vmatprep.subr.mxu0 %v26594_v38  ;;  %26358 = vmatprep.mubr.msk.f32.mxu0 %vm26595_vm1, %v26594_v38  ;;  %v21014_v26 = vsub.f32 %v30999_v23, %v21013_v8 }
0x1faf   :  { %26357 = vmatpush3.msra.mxu0 %v30886_v25  ;;  %26390 = vmatpush3.msra.mxu1 %v30877_v51  ;;  %v22581_v25 = vld [vmem:[%s31296_s6 + $0x11] ss:$0 sm:$0xff] }
0x1fb0   :  { %26391 = vmatprep.mubr.msk.f32.mxu1 %vm26595_vm1, %v26594_v38  ;;  %26359 = vmatmul.mubr.f32.vlgmr.msra.gmra.mxu0 %v20452_v47  ;;  %v21015_v62 = vand.u32 4294901760, %v21014_v26  ;;  %v31088_v47 = vand.u32 4294901760, %v21372_v50 }
0x1fb1   :  { %26372 = vmatprep.subr.mxu0 %v26594_v38  ;;  %26392 = vmatmul.mubr.f32.vlgmr.msra.gmra.mxu1 %v20451_v48 }
0x1fb2   :  { %26373 = vmatpush3.msra.mxu0 %v20488_v0  ;;  %26380 = vmatprep.mubr.msk.f32.mxu0 %vm26595_vm1, %v26594_v38  ;;  %v21007_v0 = vsub.f32 %v30988_v45, %v21006_v16  ;;  %v31100_v12 = vsub.f32 %v21372_v50, %v31088_v47 }
0x1fb3   :  { %26374 = vmatprep.subr.mxu0 %v26594_v38  ;;  %26405 = vmatprep.subr.mxu1 %v26594_v38 }
0x1fb4   :  { %26375 = vmatpush3.msra.mxu0 %v20495_v56  ;;  %26413 = vmatprep.mubr.msk.f32.mxu1 %vm26595_vm1, %v26594_v38  ;;  %v21008_v13 = vand.u32 4294901760, %v21007_v0 }
0x1fb5   :  { %26376 = vmatprep.subr.mxu0 %v26594_v38  ;;  %26406 = vmatpush3.msra.mxu1 %v20994_v31 }
0x1fb6   :  { %26377 = vmatpush3.msra.mxu0 %v20502_v1  ;;  %26407 = vmatprep.subr.mxu1 %v26594_v38 }
0x1fb7   :  { %26378 = vmatprep.subr.mxu0 %v26594_v38  ;;  %26408 = vmatpush3.msra.mxu1 %v21001_v55  ;;  %v22587_v55 = vld [vmem:[%s31297_s8 + $0x11] ss:$0 sm:$0xff] }
0x1fb8   :  { %26379 = vmatpush3.msra.mxu0 %v20509_v10  ;;  %26409 = vmatprep.subr.mxu1 %v26594_v38 }
0x1fb9   :  { %26381 = vmatmul.mubr.f32.vlgmr.msra.gmra.mxu0 %v20451_v48  ;;  %26394 = vmatprep.subr.mxu0 %v26594_v38  ;;  %v31086_v48 = vsub.f32 %v21373_v33, %v31077_v39 }
0x1fba   :  { %26402 = vmatprep.mubr.msk.f32.mxu0 %vm26595_vm1, %v26594_v38  ;;  %26395 = vmatpush3.msra.mxu0 %v30957_v22 }
0x1fbb   :  { %26396 = vmatprep.subr.mxu0 %v26594_v38  ;;  %26410 = vmatpush3.msra.mxu1 %v21008_v13  ;;  %v21498_v34 = vand.u32 4294901760, %v31086_v48 }
0x1fbc   :  { %26397 = vmatpush3.msra.mxu0 %v30965_v61  ;;  %26411 = vmatprep.subr.mxu1 %v26594_v38 }
0x1fbd   :  { %26398 = vmatprep.subr.mxu0 %v26594_v38  ;;  %26412 = vmatpush3.msra.mxu1 %v21015_v62 }
0x1fbe   :  { %26399 = vmatpush3.msra.mxu0 %v30976_v63  ;;  %26427 = vmatprep.subr.mxu1 %v26594_v38 }
0x1fbf   :  { %26400 = vmatprep.subr.mxu0 %v26594_v38 }
0x1fc0   :  { %26401 = vmatpush3.msra.mxu0 %v30990_v54 }
0x1fc1   :  { %26416 = vmatprep.subr.mxu0 %v26594_v38 }
0x205f   :  { %v20548_v56 = vpop.f32.mrf.mxu1 }
0x2061   :  { %v26349_v53 = vpop.f32.mrf.mxu1 }
0x2067   :  { %v20705_v51 = vpop.f32.mrf.mxu1 }
0x2068   :  { %v20457_v17 = vpop.f32.mrf.mxu0 }
0x2069   :  { %v26371_v35 = vpop.f32.mrf.mxu1  ;;  %v20458_v46 = vadd.f32 %v22581_v25, %v20457_v17 }
0x206a   :  { %v26338_v1 = vpop.f32.mrf.mxu0 }
0x206b   :  { %v20549_v27 = vadd.f32 %v20548_v56, %v20458_v46 }
0x2070   :  { %v20628_v57 = vpop.f32.mrf.mxu0 }
0x2071   :  { %v20863_v10 = vpop.f32.mrf.mxu1  ;;  %v20629_v42 = vadd.f32 %v20628_v57, %v20549_v27 }
0x2072   :  { %v26360_v9 = vpop.f32.mrf.mxu0 }
0x2073   :  { %v26393_v44 = vpop.f32.mrf.mxu1  ;;  %v20706_v19 = vadd.f32 %v20705_v51, %v20629_v42  ;;  %v21876_v42 = vld [vmem:[%s31300_s11 + $0x18] sm:$0xff] }
0x2079   :  { %v20788_v32 = vpop.f32.mrf.mxu0 }
0x207a   :  { %v20789_v3 = vadd.f32 %v20788_v32, %v20706_v19  ;;  %v31181_v19 = vand.u32 4294901760, %v21876_v42  ;;  %v21875_v32 = vld [vmem:[%s31300_s11 + $0x10] sm:$0xff] }
0x207b   :  { %v26382_v29 = vpop.f32.mrf.mxu0 }
0x207c   :  { %v20864_v52 = vadd.f32 %v20863_v10, %v20789_v3  ;;  %v31187_v3 = vsub.f32 %v21876_v42, %v31181_v19  ;;  %v31189_v29 = vand.u32 4294901760, %v21875_v32 }
0x207e   :  { %vm20867_vm6 = vcmp.gt.f32.partialorder %v20864_v52, 0.0  ;;  %v20868_v6 = vmul.f32 0.01, %v20864_v52 }
0x2080   :  { %v20869_v30 = vsel %vm20867_vm6, %v20864_v52, %v20868_v6  ;;  %v21874_v52 = vld [vmem:[%s31300_s11 + $0x8] sm:$0xff]  ;;  %v21993_v6 = vand.u32 4294901760, %v31187_v3 }
0x2081   :  { %v20884_v7 = vsel %vm61_vm0, %v20869_v30, 0  ;;  %v31198_v30 = vsub.f32 %v21875_v32, %v31189_v29 }
0x2082   :  { %v20955_v5 = vand.u32 4294901760, %v20884_v7 }
0x2084   :  { %v20956_v11 = vsub.f32 %v20884_v7, %v20955_v5  ;;  %26414 = vmatmul.mubr.f32.vlgmr.msra.gmra.mxu1 %v20955_v5  ;;  %v31200_v7 = vand.u32 4294901760, %v21874_v52 }
0x2085   :  { %26428 = vmatpush3.msra.mxu1 %v30957_v22  ;;  %26435 = vmatprep.mubr.msk.f32.mxu1 %vm26595_vm1, %v26594_v38 }
0x2086   :  { %26429 = vmatprep.subr.mxu1 %v26594_v38  ;;  %v20957_v15 = vand.u32 4294901760, %v20956_v11 }
0x2087   :  { %26430 = vmatpush3.msra.mxu1 %v30965_v61 }
0x2088   :  { %26431 = vmatprep.subr.mxu1 %v26594_v38  ;;  %v20958_v21 = vsub.f32 %v20956_v11, %v20957_v15 }
0x2089   :  { %26432 = vmatpush3.msra.mxu1 %v30976_v63 }
0x208a   :  { %26433 = vmatprep.subr.mxu1 %v26594_v38  ;;  %v20959_v49 = vand.u32 4294901760, %v20958_v21  ;;  %v31212_v21 = vsub.f32 %v21874_v52, %v31200_v7 }
0x208b   :  { %26434 = vmatpush3.msra.mxu1 %v30990_v54 }
0x208c   :  { %26436 = vmatmul.mubr.f32.vlgmr.msra.gmra.mxu1 %v20957_v15  ;;  %26449 = vmatprep.subr.mxu1 %v26594_v38  ;;  %v22000_v15 = vand.u32 4294901760, %v31198_v30  ;;  %v22007_v33 = vand.u32 4294901760, %v31212_v21 }
0x208d   :  { %26403 = vmatmul.mubr.f32.vlgmr.msra.gmra.mxu0 %v20959_v49  ;;  %26450 = vmatpush3.msra.mxu1 %v30957_v22  ;;  %v31102_v22 = vand.u32 4294901760, %v21371_v14 }
0x208e   :  { %26417 = vmatpush3.msra.mxu0 %v30963_v58  ;;  %26451 = vmatprep.subr.mxu1 %v26594_v38  ;;  %v21499_v58 = vsub.f32 %v31086_v48, %v21498_v34  ;;  %v22008_v50 = vsub.f32 %v31212_v21, %v22007_v33 }
0x208f   :  { %26418 = vmatprep.subr.mxu0 %v26594_v38  ;;  %26452 = vmatpush3.msra.mxu1 %v30965_v61  ;;  %v21505_v61 = vand.u32 4294901760, %v31100_v12  ;;  %v31111_v60 = vsub.f32 %v21371_v14, %v31102_v22 }
0x2090   :  { %26419 = vmatpush3.msra.mxu0 %v30974_v43  ;;  %26453 = vmatprep.subr.mxu1 %v26594_v38 }
0x2091   :  { %26420 = vmatprep.subr.mxu0 %v26594_v38  ;;  %26454 = vmatpush3.msra.mxu1 %v30976_v63  ;;  %v21506_v43 = vsub.f32 %v31100_v12, %v21505_v61  ;;  %v21512_v63 = vand.u32 4294901760, %v31111_v60 }
0x2092   :  { %26421 = vmatpush3.msra.mxu0 %v30988_v45  ;;  %26455 = vmatprep.subr.mxu1 %v26594_v38 }
0x2093   :  { %26422 = vmatprep.subr.mxu0 %v26594_v38  ;;  %26424 = vmatprep.mubr.msk.f32.mxu0 %vm26595_vm1, %v26594_v38  ;;  %v21507_v2 = vand.u32 4294901760, %v21506_v43  ;;  %v21513_v18 = vsub.f32 %v31111_v60, %v21512_v63 }
0x2094   :  { %26423 = vmatpush3.msra.mxu0 %v30999_v23  ;;  %26456 = vmatpush3.msra.mxu1 %v30990_v54 }
0x2095   :  { %26457 = vmatprep.mubr.msk.f32.mxu1 %vm26595_vm1, %v26594_v38  ;;  %26425 = vmatmul.mubr.f32.vlgmr.msra.gmra.mxu0 %v20956_v11  ;;  %v21994_v11 = vsub.f32 %v31187_v3, %v21993_v6 }
0x2096   :  { %26438 = vmatprep.subr.mxu0 %v26594_v38  ;;  %26458 = vmatmul.mubr.f32.vlgmr.msra.gmra.mxu1 %v20955_v5 }
0x2097   :  { %26439 = vmatpush3.msra.mxu0 %v20992_v24  ;;  %26446 = vmatprep.mubr.msk.f32.mxu0 %vm26595_vm1, %v26594_v38  ;;  %v21500_v24 = vand.u32 4294901760, %v21499_v58  ;;  %v21995_v28 = vand.u32 4294901760, %v21994_v11 }
0x2098   :  { %26440 = vmatprep.subr.mxu0 %v26594_v38  ;;  %26471 = vmatprep.subr.mxu1 %v26594_v38 }
0x2099   :  { %26441 = vmatpush3.msra.mxu0 %v20999_v4  ;;  %26479 = vmatprep.mubr.msk.f32.mxu1 %vm26595_vm1, %v26594_v38  ;;  %v21514_v4 = vand.u32 4294901760, %v21513_v18 }
0x209a   :  { %26442 = vmatprep.subr.mxu0 %v26594_v38  ;;  %26472 = vmatpush3.msra.mxu1 %v21493_v37 }
0x209b   :  { %26443 = vmatpush3.msra.mxu0 %v21006_v16  ;;  %26473 = vmatprep.subr.mxu1 %v26594_v38 }
0x209c   :  { %26444 = vmatprep.subr.mxu0 %v26594_v38  ;;  %26474 = vmatpush3.msra.mxu1 %v21500_v24 }
0x209d   :  { %26445 = vmatpush3.msra.mxu0 %v21013_v8  ;;  %26475 = vmatprep.subr.mxu1 %v26594_v38 }
0x209e   :  { %26447 = vmatmul.mubr.f32.vlgmr.msra.gmra.mxu0 %v20955_v5  ;;  %26460 = vmatprep.subr.mxu0 %v26594_v38  ;;  %v21873_v5 = vld [vmem:[%s31300_s11] sm:$0xff] }
0x209f   :  { %26468 = vmatprep.mubr.msk.f32.mxu0 %vm26595_vm1, %v26594_v38  ;;  %26461 = vmatpush3.msra.mxu0 %v31069_v40  ;;  %v31214_v49 = vand.u32 4294901760, %v21873_v5 }
0x20a0   :  { %26462 = vmatprep.subr.mxu0 %v26594_v38  ;;  %26476 = vmatpush3.msra.mxu1 %v21507_v2 }
0x20a1   :  { %26463 = vmatpush3.msra.mxu0 %v31077_v39  ;;  %26477 = vmatprep.subr.mxu1 %v26594_v38 }
0x20a2   :  { %26464 = vmatprep.subr.mxu0 %v26594_v38  ;;  %26478 = vmatpush3.msra.mxu1 %v21514_v4 }
0x20a3   :  { %26465 = vmatpush3.msra.mxu0 %v31088_v47  ;;  %26493 = vmatprep.subr.mxu1 %v26594_v38 }
0x20a4   :  { %26466 = vmatprep.subr.mxu0 %v26594_v38 }
0x20a5   :  { %26467 = vmatpush3.msra.mxu0 %v31102_v22 }
0x20a6   :  { %26482 = vmatprep.subr.mxu0 %v26594_v38 }
0x2144   :  { %v21052_v45 = vpop.f32.mrf.mxu1 }
0x2146   :  { %v26415_v54 = vpop.f32.mrf.mxu1 }
0x214c   :  { %v21209_v31 = vpop.f32.mrf.mxu1 }
0x214d   :  { %v20961_v41 = vpop.f32.mrf.mxu0 }
0x214e   :  { %v26437_v16 = vpop.f32.mrf.mxu1  ;;  %v20962_v0 = vadd.f32 %v22587_v55, %v20961_v41 }
0x214f   :  { %v26404_v23 = vpop.f32.mrf.mxu0 }
0x2150   :  { %v21053_v26 = vadd.f32 %v21052_v45, %v20962_v0 }
0x2155   :  { %v21132_v8 = vpop.f32.mrf.mxu0 }
0x2156   :  { %v21367_v13 = vpop.f32.mrf.mxu1  ;;  %v21133_v53 = vadd.f32 %v21132_v8, %v21053_v26 }
0x2157   :  { %v26426_v62 = vpop.f32.mrf.mxu0 }
0x2158   :  { %v26459_v56 = vpop.f32.mrf.mxu1  ;;  %v21210_v51 = vadd.f32 %v21209_v31, %v21133_v53  ;;  %v18_v53 = vstv %s31302_s12 }
0x2159   :  { %19 = vst [vmem:[#allocation2] sm:$0x1] %v18_v53 }
0x215e   :  { %v21292_v17 = vpop.f32.mrf.mxu0 }
0x215f   :  { %v21293_v35 = vadd.f32 %v21292_v17, %v21210_v51 }
0x2160   :  { %v26448_v1 = vpop.f32.mrf.mxu0 }
0x2161   :  { %v21368_v25 = vadd.f32 %v21367_v13, %v21293_v35 }
0x2163   :  { %v21383_v46 = vsel %vm61_vm0, %v21368_v25, 0 }
0x2164   :  { %v21454_v57 = vand.u32 4294901760, %v21383_v46 }
0x2166   :  { %v21455_v10 = vsub.f32 %v21383_v46, %v21454_v57  ;;  %26480 = vmatmul.mubr.f32.vlgmr.msra.gmra.mxu1 %v21454_v57 }
0x2167   :  { %26494 = vmatpush3.msra.mxu1 %v31069_v40  ;;  %26501 = vmatprep.mubr.msk.f32.mxu1 %vm26595_vm1, %v26594_v38 }
0x2168   :  { %v21456_v27 = vand.u32 4294901760, %v21455_v10  ;;  %26495 = vmatprep.subr.mxu1 %v26594_v38 }
0x2169   :  { %26496 = vmatpush3.msra.mxu1 %v31077_v39 }
0x216a   :  { %v21457_v9 = vsub.f32 %v21455_v10, %v21456_v27  ;;  %26497 = vmatprep.subr.mxu1 %v26594_v38 }
0x216b   :  { %26498 = vmatpush3.msra.mxu1 %v31088_v47 }
0x216c   :  { %v21458_v44 = vand.u32 4294901760, %v21457_v9  ;;  %26499 = vmatprep.subr.mxu1 %v26594_v38 }
0x216d   :  { %26500 = vmatpush3.msra.mxu1 %v31102_v22 }
0x216e   :  { %26502 = vmatmul.mubr.f32.vlgmr.msra.gmra.mxu1 %v21456_v27  ;;  %26515 = vmatprep.subr.mxu1 %v26594_v38 }
0x216f   :  { %26469 = vmatmul.mubr.f32.vlgmr.msra.gmra.mxu0 %v21458_v44  ;;  %26516 = vmatpush3.msra.mxu1 %v31069_v40  ;;  %v22001_v40 = vsub.f32 %v31198_v30, %v22000_v15 }
0x2170   :  { %26483 = vmatpush3.msra.mxu0 %v31075_v36  ;;  %26517 = vmatprep.subr.mxu1 %v26594_v38  ;;  %v31223_v36 = vsub.f32 %v21873_v5, %v31214_v49 }
0x2171   :  { %26484 = vmatprep.subr.mxu0 %v26594_v38  ;;  %26518 = vmatpush3.msra.mxu1 %v31077_v39  ;;  %v22002_v39 = vand.u32 4294901760, %v22001_v40 }
0x2172   :  { %26485 = vmatpush3.msra.mxu0 %v31086_v48  ;;  %26519 = vmatprep.subr.mxu1 %v26594_v38  ;;  %v22009_v48 = vand.u32 4294901760, %v22008_v50 }
0x2173   :  { %26486 = vmatprep.subr.mxu0 %v26594_v38  ;;  %26520 = vmatpush3.msra.mxu1 %v31088_v47 }
0x2174   :  { %26487 = vmatpush3.msra.mxu0 %v31100_v12  ;;  %26521 = vmatprep.subr.mxu1 %v26594_v38 }
0x2175   :  { %26488 = vmatprep.subr.mxu0 %v26594_v38  ;;  %26490 = vmatprep.mubr.msk.f32.mxu0 %vm26595_vm1, %v26594_v38 }
0x2176   :  { %26489 = vmatpush3.msra.mxu0 %v31111_v60  ;;  %26522 = vmatpush3.msra.mxu1 %v31102_v22 }
0x2177   :  { %26523 = vmatprep.mubr.msk.f32.mxu1 %vm26595_vm1, %v26594_v38  ;;  %26491 = vmatmul.mubr.f32.vlgmr.msra.gmra.mxu0 %v21455_v10 }
0x2178   :  { %26504 = vmatprep.subr.mxu0 %v26594_v38  ;;  %26524 = vmatmul.mubr.f32.vlgmr.msra.gmra.mxu1 %v21454_v57 }
0x2179   :  { %26505 = vmatpush3.msra.mxu0 %v21491_v20  ;;  %26512 = vmatprep.mubr.msk.f32.mxu0 %vm26595_vm1, %v26594_v38  ;;  %v22014_v20 = vand.u32 4294901760, %v31223_v36 }
0x217a   :  { %26506 = vmatprep.subr.mxu0 %v26594_v38  ;;  %26537 = vmatprep.subr.mxu1 %v26594_v38 }
0x217b   :  { %26507 = vmatpush3.msra.mxu0 %v21498_v34  ;;  %26545 = vmatprep.mubr.msk.f32.mxu1 %vm26595_vm1, %v26594_v38  ;;  %v22015_v47 = vsub.f32 %v31223_v36, %v22014_v20 }
0x217c   :  { %26508 = vmatprep.subr.mxu0 %v26594_v38  ;;  %26538 = vmatpush3.msra.mxu1 %v21995_v28 }
0x217d   :  { %26509 = vmatpush3.msra.mxu0 %v21505_v61  ;;  %26539 = vmatprep.subr.mxu1 %v26594_v38  ;;  %v22016_v14 = vand.u32 4294901760, %v22015_v47  ;;  %v22588_v61 = vld [vmem:[%s31301_s10] ss:$0 sm:$0xff] }
0x217e   :  { %26510 = vmatprep.subr.mxu0 %v26594_v38  ;;  %26540 = vmatpush3.msra.mxu1 %v22002_v39 }
0x217f   :  { %26511 = vmatpush3.msra.mxu0 %v21512_v63  ;;  %26541 = vmatprep.subr.mxu1 %v26594_v38 }
0x2180   :  { %26513 = vmatmul.mubr.f32.vlgmr.msra.gmra.mxu0 %v21454_v57  ;;  %26526 = vmatprep.subr.mxu0 %v26594_v38  ;;  %v22589_v57 = vld [vmem:[#allocation2] ss:$0 sm:$0xff] }
0x2181   :  { %26534 = vmatprep.mubr.msk.f32.mxu0 %vm26595_vm1, %v26594_v38  ;;  %26527 = vmatpush3.msra.mxu0 %v31181_v19 }
0x2182   :  { %26528 = vmatprep.subr.mxu0 %v26594_v38  ;;  %26542 = vmatpush3.msra.mxu1 %v22009_v48 }
0x2183   :  { %26529 = vmatpush3.msra.mxu0 %v31189_v29  ;;  %26543 = vmatprep.subr.mxu1 %v26594_v38 }
0x2184   :  { %26530 = vmatprep.subr.mxu0 %v26594_v38  ;;  %26544 = vmatpush3.msra.mxu1 %v22016_v14 }
0x2185   :  { %26531 = vmatpush3.msra.mxu0 %v31200_v7  ;;  %26559 = vmatprep.subr.mxu1 %v26594_v38 }
0x2186   :  { %26532 = vmatprep.subr.mxu0 %v26594_v38 }
0x2187   :  { %26533 = vmatpush3.msra.mxu0 %v31214_v49 }
0x2188   :  { %26548 = vmatprep.subr.mxu0 %v26594_v38 }
0x2226   :  { %v21551_v59 = vpop.f32.mrf.mxu1 }
0x2228   :  { %v26481_v34 = vpop.f32.mrf.mxu1 }
0x222e   :  { %v21708_v12 = vpop.f32.mrf.mxu1 }
0x222f   :  { %v21460_v22 = vpop.f32.mrf.mxu0 }
0x2230   :  { %v26503_v37 = vpop.f32.mrf.mxu1  ;;  %v21461_v60 = vadd.f32 %v22588_v61, %v21460_v22 }
0x2231   :  { %v26470_v58 = vpop.f32.mrf.mxu0 }
0x2232   :  { %v21552_v63 = vadd.f32 %v21551_v59, %v21461_v60 }
0x2237   :  { %v21631_v24 = vpop.f32.mrf.mxu0 }
0x2238   :  { %v21866_v43 = vpop.f32.mrf.mxu1  ;;  %v21632_v4 = vadd.f32 %v21631_v24, %v21552_v63 }
0x2239   :  { %v26492_v2 = vpop.f32.mrf.mxu0 }
0x223a   :  { %v26525_v18 = vpop.f32.mrf.mxu1  ;;  %v21709_v45 = vadd.f32 %v21708_v12, %v21632_v4 }
0x2240   :  { %v21791_v54 = vpop.f32.mrf.mxu0 }
0x2241   :  { %v21792_v31 = vadd.f32 %v21791_v54, %v21709_v45 }
0x2242   :  { %v26514_v41 = vpop.f32.mrf.mxu0 }
0x2243   :  { %v21867_v16 = vadd.f32 %v21866_v43, %v21792_v31 }
0x2245   :  { %vm21870_vm7 = vcmp.gt.f32.partialorder %v21867_v16, 0.0  ;;  %v21871_v23 = vmul.f32 0.01, %v21867_v16 }
0x2247   :  { %v21872_v55 = vsel %vm21870_vm7, %v21867_v16, %v21871_v23 }
0x2248   :  { %v21885_v0 = vsel %vm61_vm0, %v21872_v55, 0 }
0x2249   :  { %v21956_v8 = vand.u32 4294901760, %v21885_v0 }
0x224b   :  { %v21957_v13 = vsub.f32 %v21885_v0, %v21956_v8  ;;  %26546 = vmatmul.mubr.f32.vlgmr.msra.gmra.mxu1 %v21956_v8 }
0x224c   :  { %26560 = vmatpush3.msra.mxu1 %v31181_v19  ;;  %26567 = vmatprep.mubr.msk.f32.mxu1 %vm26595_vm1, %v26594_v38 }
0x224d   :  { %26561 = vmatprep.subr.mxu1 %v26594_v38  ;;  %v21958_v26 = vand.u32 4294901760, %v21957_v13 }
0x224e   :  { %26562 = vmatpush3.msra.mxu1 %v31189_v29 }
0x224f   :  { %26563 = vmatprep.subr.mxu1 %v26594_v38  ;;  %v21959_v62 = vsub.f32 %v21957_v13, %v21958_v26 }
0x2250   :  { %26564 = vmatpush3.msra.mxu1 %v31200_v7 }
0x2251   :  { %26565 = vmatprep.subr.mxu1 %v26594_v38  ;;  %v21960_v56 = vand.u32 4294901760, %v21959_v62 }
0x2252   :  { %26566 = vmatpush3.msra.mxu1 %v31214_v49 }
0x2253   :  { %26568 = vmatmul.mubr.f32.vlgmr.msra.gmra.mxu1 %v21958_v26  ;;  %26581 = vmatprep.subr.mxu1 %v26594_v38 }
0x2254   :  { %26535 = vmatmul.mubr.f32.vlgmr.msra.gmra.mxu0 %v21960_v56  ;;  %26582 = vmatpush3.msra.mxu1 %v31181_v19 }
0x2255   :  { %26549 = vmatpush3.msra.mxu0 %v31187_v3  ;;  %26583 = vmatprep.subr.mxu1 %v26594_v38 }
0x2256   :  { %26550 = vmatprep.subr.mxu0 %v26594_v38  ;;  %26584 = vmatpush3.msra.mxu1 %v31189_v29 }
0x2257   :  { %26551 = vmatpush3.msra.mxu0 %v31198_v30  ;;  %26585 = vmatprep.subr.mxu1 %v26594_v38 }
0x2258   :  { %26552 = vmatprep.subr.mxu0 %v26594_v38  ;;  %26586 = vmatpush3.msra.mxu1 %v31200_v7 }
0x2259   :  { %26553 = vmatpush3.msra.mxu0 %v31212_v21  ;;  %26587 = vmatprep.subr.mxu1 %v26594_v38 }
0x225a   :  { %26554 = vmatprep.subr.mxu0 %v26594_v38  ;;  %26556 = vmatprep.mubr.msk.f32.mxu0 %vm26595_vm1, %v26594_v38 }
0x225b   :  { %26555 = vmatpush3.msra.mxu0 %v31223_v36  ;;  %26588 = vmatpush3.msra.mxu1 %v31214_v49 }
0x225c   :  { %26589 = vmatprep.mubr.msk.f32.mxu1 %vm26595_vm1, %v26594_v38  ;;  %26557 = vmatmul.mubr.f32.vlgmr.msra.gmra.mxu0 %v21957_v13 }
0x225d   :  { %26570 = vmatprep.subr.mxu0 %v26594_v38  ;;  %26590 = vmatmul.mubr.f32.vlgmr.msra.gmra.mxu1 %v21956_v8 }
0x225e   :  { %26571 = vmatpush3.msra.mxu0 %v21993_v6  ;;  %26578 = vmatprep.mubr.msk.f32.mxu0 %vm26595_vm1, %v26594_v38  ;;  %vm22375_vm1 = vcmask 7168  }
0x225f   :  { %26572 = vmatprep.subr.mxu0 %v26594_v38 }
0x2260   :  { %26573 = vmatpush3.msra.mxu0 %v22000_v15 }
0x2261   :  { %26574 = vmatprep.subr.mxu0 %v26594_v38 }
0x2262   :  { %26575 = vmatpush3.msra.mxu0 %v22007_v33 }
0x2263   :  { %26576 = vmatprep.subr.mxu0 %v26594_v38 }
0x2264   :  { %26577 = vmatpush3.msra.mxu0 %v22014_v20 }
0x2265   :  { %26579 = vmatmul.mubr.f32.vlgmr.msra.gmra.mxu0 %v21956_v8 }
0x230b   :  { %v22053_v51 = vpop.f32.mrf.mxu1 }
0x230d   :  { %v26547_v17 = vpop.f32.mrf.mxu1 }
0x2313   :  { %v22210_v35 = vpop.f32.mrf.mxu1 }
0x2314   :  { %v21962_v1 = vpop.f32.mrf.mxu0 }
0x2315   :  { %v26569_v25 = vpop.f32.mrf.mxu1  ;;  %v21963_v10 = vadd.f32 %v22589_v57, %v21962_v1 }
0x2316   :  { %v26536_v46 = vpop.f32.mrf.mxu0 }
0x2317   :  { %v22054_v38 = vadd.f32 %v22053_v51, %v21963_v10 }
0x231c   :  { %v22133_v27 = vpop.f32.mrf.mxu0 }
0x231d   :  { %v22368_v9 = vpop.f32.mrf.mxu1  ;;  %v22134_v19 = vadd.f32 %v22133_v27, %v22054_v38 }
0x231e   :  { %v26558_v44 = vpop.f32.mrf.mxu0 }
0x231f   :  { %v26591_v42 = vpop.f32.mrf.mxu1  ;;  %v22211_v32 = vadd.f32 %v22210_v35, %v22134_v19 }
0x2325   :  { %v22293_v3 = vpop.f32.mrf.mxu0 }
0x2326   :  { %v22294_v29 = vadd.f32 %v22293_v3, %v22211_v32 }
0x2327   :  { %v26580_v52 = vpop.f32.mrf.mxu0 }
0x2328   :  { %v22369_v6 = vadd.f32 %v22368_v9, %v22294_v29 }
0x232a   :  { %vm22372_vm0 = vcmp.gt.f32.partialorder %v22369_v6, 0.0  ;;  %v22373_v30 = vmul.f32 0.01, %v22369_v6 }
0x232c   :  { %v22374_v7 = vsel %vm22372_vm0, %v22369_v6, %v22373_v30 }
0x232d   :  { %22376 = vst.msk [vmem:[%s31303_s13] sm:$0xff] %vm22375_vm1, %v22374_v7 }

</bundles_post_ra>
